<compile_context>
chip_gen: v7x
topology: tpu7x:2x2x1
jax: 0.10.0
libtpu: 0.0.40
codegen_flags: <defaults>
</compile_context>

<pallas_src>
import functools

import jax
import jax.numpy as jnp
from jax.experimental import pallas as pl
from jax.experimental.pallas import tpu as pltpu


def _round_up(n, m):
    return -(-n // m) * m


def _sig(v):
    # sigmoid(x) == 0.5 * tanh(0.5 * x) + 0.5  -- single EUP pass
    return 0.5 * jnp.tanh(0.5 * v) + 0.5


# ----------------------------------------------------------------------------
# Kernel: one grid step == one LSTM layer; FC head fused into the last step.
# ----------------------------------------------------------------------------
def _fused_lstm_fc_kernel(x_ref, wih_ref, whh_ref, b_ref,
                          wf1_ref, bf1_ref, wf2_ref, bf2_ref,
                          o_ref, y_scr, gx_scr, *, T, B, H, num_layers):
    layer = pl.program_id(0)
    cdt = jnp.bfloat16

    # Layer 0 input comes from x (already bf16, padded to (T*B, H)); later
    # layers read the previous layer's hidden sequence, which lives in y_scr.
    @pl.when(layer == 0)
    def _():
        y_scr[...] = x_ref[...]

    # Hoisted input projection over all timesteps: one big MXU pass.
    gx_scr[...] = (
        jnp.dot(y_scr[...], wih_ref[...], preferred_element_type=jnp.float32)
        + b_ref[...]
    )

    h = jnp.zeros((B, H), jnp.float32)
    c = jnp.zeros((B, H), jnp.float32)
    for t in range(T):                          # unrolled, static indices
        gx = gx_scr[pl.ds(t * B, B), :]
        h_bf = h.astype(cdt)
        # Per-gate matmuls (static lane slices of W_hh / gx, multiples of 128).
        g_i = gx[:, 0 * H:1 * H] + jnp.dot(
            h_bf, whh_ref[:, 0 * H:1 * H], preferred_element_type=jnp.float32)
        g_f = gx[:, 1 * H:2 * H] + jnp.dot(
            h_bf, whh_ref[:, 1 * H:2 * H], preferred_element_type=jnp.float32)
        g_g = gx[:, 2 * H:3 * H] + jnp.dot(
            h_bf, whh_ref[:, 2 * H:3 * H], preferred_element_type=jnp.float32)
        g_o = gx[:, 3 * H:4 * H] + jnp.dot(
            h_bf, whh_ref[:, 3 * H:4 * H], preferred_element_type=jnp.float32)
        i_g = _sig(g_i)
        f_g = _sig(g_f)
        g_t = jnp.tanh(g_g)
        o_g = _sig(g_o)
        c = f_g * c + i_g * g_t
        h = o_g * jnp.tanh(c)
        # Next layer's input (bf16: only ever consumed as an MXU operand).
        y_scr[pl.ds(t * B, B), :] = h.astype(cdt)

    # FC head on the final timestep of the top layer:
    # Linear(H->64) -> LeakyReLU(0.01) -> Linear(64->out) -> sigmoid
    @pl.when(layer == num_layers - 1)
    def _():
        z = jnp.dot(h.astype(cdt), wf1_ref[...],
                    preferred_element_type=jnp.float32) + bf1_ref[...]
        z = jnp.where(z > 0.0, z, 0.01 * z)      # nn.LeakyReLU default slope
        z = jnp.dot(z.astype(cdt), wf2_ref[...],
                    preferred_element_type=jnp.float32) + bf2_ref[...]
        o_ref[...] = _sig(z)


# ----------------------------------------------------------------------------
# Wrapper
# ----------------------------------------------------------------------------
@functools.partial(jax.jit, static_argnames=("output_size",))
def lstm_model_forward(x, params, *, output_size):
    """x: (batch, seq, input_size) — batch_first like the PyTorch module."""
    w_ih_s = params["w_ih"]          # (L, H, 4H) bf16 (layer-0 rows zero-padded)
    w_hh_s = params["w_hh"]          # (L, H, 4H) bf16
    bias_s = params["bias"]          # (L, 1, 4H) f32  (b_ih + b_hh)
    wf1, bf1, wf2, bf2 = params["fc"]

    num_layers, H, H4 = w_ih_s.shape
    B, T, Din = x.shape
    Bp = max(8, _round_up(B, 8))     # pad batch to full sublanes
    F1 = wf1.shape[1]                # padded FC hidden (128)
    Pout = wf2.shape[1]              # padded output dim (128)

    # time-major, zero-pad batch->Bp and features->H, bf16, flatten to 2D.
    x_tm = jnp.transpose(x, (1, 0, 2))
    x_p = jnp.zeros((T, Bp, H), jnp.bfloat16).at[:, :B, :Din].set(
        x_tm.astype(jnp.bfloat16))
    x_flat = x_p.reshape(T * Bp, H)

    kernel = functools.partial(_fused_lstm_fc_kernel,
                               T=T, B=Bp, H=H, num_layers=num_layers)

    out_p = pl.pallas_call(
        kernel,
        out_shape=jax.ShapeDtypeStruct((Bp, Pout), jnp.float32),
        grid_spec=pltpu.PrefetchScalarGridSpec(
            num_scalar_prefetch=0,
            grid=(num_layers,),
            in_specs=[
                pl.BlockSpec((T * Bp, H), lambda l: (0, 0)),          # x
                pl.BlockSpec((None, H, H4), lambda l: (l, 0, 0)),     # w_ih[l]
                pl.BlockSpec((None, H, H4), lambda l: (l, 0, 0)),     # w_hh[l]
                pl.BlockSpec((None, 1, H4), lambda l: (l, 0, 0)),     # bias[l]
                pl.BlockSpec((H, F1), lambda l: (0, 0)),              # fc1 w
                pl.BlockSpec((1, F1), lambda l: (0, 0)),              # fc1 b
                pl.BlockSpec((F1, Pout), lambda l: (0, 0)),           # fc2 w
                pl.BlockSpec((1, Pout), lambda l: (0, 0)),            # fc2 b
            ],
            out_specs=pl.BlockSpec((Bp, Pout), lambda l: (0, 0)),
            scratch_shapes=[
                pltpu.VMEM((T * Bp, H), jnp.bfloat16),      # inter-layer hidden seq
                pltpu.VMEM((T * Bp, 4 * H), jnp.float32),   # hoisted gate projections
            ],
        ),
        compiler_params=pltpu.CompilerParams(
            dimension_semantics=("arbitrary",)),
    )(x_flat, w_ih_s, w_hh_s, bias_s, wf1, bf1, wf2, bf2)

    return out_p[:B, :output_size]


# ----------------------------------------------------------------------------
# Deterministic parameter init (PyTorch-style uniform(-1/sqrt(fan), 1/sqrt(fan))).
# LSTM weights stored transposed, stacked over layers, zero-padded, bf16.
# ----------------------------------------------------------------------------
def init_params(key, input_size, hidden_size, output_size, num_layers,
                fc_hidden=64, lane=128):
    H = hidden_size
    assert H % lane == 0 and _round_up(input_size, lane) <= H
    bound = 1.0 / float(H) ** 0.5

    w_ih_layers, w_hh_layers, bias_layers = [], [], []
    for layer in range(num_layers):
        d_in = input_size if layer == 0 else H
        key, k1, k2, k3, k4 = jax.random.split(key, 5)
        w_ih = jax.random.uniform(k1, (d_in, 4 * H), jnp.float32, -bound, bound)
        w_hh = jax.random.uniform(k2, (H, 4 * H), jnp.float32, -bound, bound)
        b_ih = jax.random.uniform(k3, (4 * H,), jnp.float32, -bound, bound)
        b_hh = jax.random.uniform(k4, (4 * H,), jnp.float32, -bound, bound)
        w_ih_p = jnp.zeros((H, 4 * H), jnp.float32).at[:d_in, :].set(w_ih)
        w_ih_layers.append(w_ih_p.astype(jnp.bfloat16))
        w_hh_layers.append(w_hh.astype(jnp.bfloat16))
        bias_layers.append((b_ih + b_hh).reshape(1, 4 * H))

    f1_pad = _round_up(fc_hidden, lane)
    out_pad = _round_up(output_size, lane)
    key, k1, k2, k3, k4 = jax.random.split(key, 5)
    b1 = 1.0 / float(H) ** 0.5
    w1 = jax.random.uniform(k1, (H, fc_hidden), jnp.float32, -b1, b1)
    c1 = jax.random.uniform(k2, (fc_hidden,), jnp.float32, -b1, b1)
    b2 = 1.0 / float(fc_hidden) ** 0.5
    w2 = jax.random.uniform(k3, (fc_hidden, output_size), jnp.float32, -b2, b2)
    c2 = jax.random.uniform(k4, (output_size,), jnp.float32, -b2, b2)

    w1_p = jnp.zeros((H, f1_pad), jnp.float32).at[:, :fc_hidden].set(w1)
    c1_p = jnp.zeros((1, f1_pad), jnp.float32).at[0, :fc_hidden].set(c1)
    w2_p = jnp.zeros((f1_pad, out_pad), jnp.float32).at[:fc_hidden, :output_size].set(w2)
    c2_p = jnp.zeros((1, out_pad), jnp.float32).at[0, :output_size].set(c2)

    return {
        "w_ih": jnp.stack(w_ih_layers),                 # (L, H, 4H) bf16
        "w_hh": jnp.stack(w_hh_layers),                 # (L, H, 4H) bf16
        "bias": jnp.stack(bias_layers),                 # (L, 1, 4H) f32
        "fc": (w1_p.astype(jnp.bfloat16), c1_p,
               w2_p.astype(jnp.bfloat16), c2_p),
    }


# ----------------------------------------------------------------------------
if __name__ == "__main__":
    INPUT_SIZE = 63
    HIDDEN_SIZE = 256
    OUTPUT_SIZE = 2
    NUM_LAYERS = 3
    BATCH = 2
    SEQ = 8

    key = jax.random.PRNGKey(0)
    key, xk = jax.random.split(key)
    x = jax.random.normal(xk, (BATCH, SEQ, INPUT_SIZE), dtype=jnp.float32)

    params = init_params(key, INPUT_SIZE, HIDDEN_SIZE, OUTPUT_SIZE, NUM_LAYERS)

    out = lstm_model_forward(x, params, output_size=OUTPUT_SIZE)
    out = jax.block_until_ready(out)
    assert out.shape == (BATCH, OUTPUT_SIZE)
    assert bool(jnp.all(jnp.isfinite(out)))
    assert bool(jnp.all((out >= 0.0) & (out <= 1.0)))   # sigmoid range
    print("KERNEL_OK")
</pallas_src>

<mosaic_0001>
module attributes {stable_mosaic.version = 11 : i64} {
  func.func @_fused_lstm_fc_kernel(%arg0: i32, %arg1: memref<64x256xbf16, #tpu.memory_space<vmem>>, %arg2: memref<1x256x1024xbf16, #tpu.memory_space<vmem>>, %arg3: memref<1x256x1024xbf16, #tpu.memory_space<vmem>>, %arg4: memref<1x1x1024xf32, #tpu.memory_space<vmem>>, %arg5: memref<256x128xbf16, #tpu.memory_space<vmem>>, %arg6: memref<1x128xf32, #tpu.memory_space<vmem>>, %arg7: memref<128x128xbf16, #tpu.memory_space<vmem>>, %arg8: memref<1x128xf32, #tpu.memory_space<vmem>>, %arg9: memref<8x128xf32, #tpu.memory_space<vmem>>, %arg10: memref<64x256xbf16, #tpu.memory_space<vmem>>, %arg11: memref<64x1024xf32, #tpu.memory_space<vmem>>) attributes {dimension_semantics = [#tpu.dimension_semantics<arbitrary>], iteration_bounds = array<i64: 3>, scalar_prefetch = 0 : i64, scratch_operands = 2 : i64, tpu.core_type = #tpu.core_type<tc>, window_params = [{pipeline_mode = #tpu.pipeline_mode<synchronous>, transform_indices = @transform_0, window_bounds = array<i64: 64, 256>}, {transform_indices = @transform_1, window_bounds = array<i64: 1, 256, 1024>}, {transform_indices = @transform_2, window_bounds = array<i64: 1, 256, 1024>}, {transform_indices = @transform_3, window_bounds = array<i64: 1, 1, 1024>}, {pipeline_mode = #tpu.pipeline_mode<synchronous>, transform_indices = @transform_4, window_bounds = array<i64: 256, 128>}, {pipeline_mode = #tpu.pipeline_mode<synchronous>, transform_indices = @transform_5, window_bounds = array<i64: 1, 128>}, {pipeline_mode = #tpu.pipeline_mode<synchronous>, transform_indices = @transform_6, window_bounds = array<i64: 128, 128>}, {pipeline_mode = #tpu.pipeline_mode<synchronous>, transform_indices = @transform_7, window_bounds = array<i64: 1, 128>}, {pipeline_mode = #tpu.pipeline_mode<synchronous>, transform_indices = @transform_8, window_bounds = array<i64: 8, 128>}]} {
    %c0_i32 = arith.constant 0 : i32
    %0 = arith.cmpi eq, %arg0, %c0_i32 : i32
    %1 = arith.extui %0 : i1 to i32
    %c0_i32_0 = arith.constant 0 : i32
    %2 = arith.cmpi ne, %1, %c0_i32_0 : i32
    scf.if %2 {
      %c0_235 = arith.constant 0 : index
      %c0_236 = arith.constant 0 : index
      %425 = vector.load %arg1[%c0_235, %c0_236] : memref<64x256xbf16, #tpu.memory_space<vmem>>, vector<64x256xbf16>
      %c0_237 = arith.constant 0 : index
      %c0_238 = arith.constant 0 : index
      %426 = vector.load %arg10[%c0_237, %c0_238] : memref<64x256xbf16, #tpu.memory_space<vmem>>, vector<64x256xbf16>
      tpu.vector_store %arg10[%c0_237, %c0_238], %425 {strides = array<i32>} : memref<64x256xbf16, #tpu.memory_space<vmem>>, vector<64x256xbf16>,
    } else {
    }
    %c0 = arith.constant 0 : index
    %c0_1 = arith.constant 0 : index
    %3 = vector.load %arg10[%c0, %c0_1] : memref<64x256xbf16, #tpu.memory_space<vmem>>, vector<64x256xbf16>
    %c0_2 = arith.constant 0 : index
    %c0_3 = arith.constant 0 : index
    %c0_4 = arith.constant 0 : index
    %4 = vector.load %arg2[%c0_2, %c0_3, %c0_4] : memref<1x256x1024xbf16, #tpu.memory_space<vmem>>, vector<1x256x1024xbf16>
    %5 = vector.shape_cast %4 : vector<1x256x1024xbf16> to vector<256x1024xbf16>
    %cst = arith.constant dense<0.000000e+00> : vector<64x1024xf32>
    %6 = tpu.matmul %3, %5, %cst {dimension_numbers = #tpu.dot_dimension_numbers<[1], [0], [0], [1], [0, 0, 1, 1], [], []>} : vector<64x256xbf16>, vector<256x1024xbf16>, vector<64x1024xf32> -> vector<64x1024xf32>
    %c0_5 = arith.constant 0 : index
    %c0_6 = arith.constant 0 : index
    %c0_7 = arith.constant 0 : index
    %7 = vector.load %arg4[%c0_5, %c0_6, %c0_7] : memref<1x1x1024xf32, #tpu.memory_space<vmem>>, vector<1x1x1024xf32>
    %8 = vector.shape_cast %7 : vector<1x1x1024xf32> to vector<1x1024xf32>
    %9 = vector.broadcast %8 : vector<1x1024xf32> to vector<64x1024xf32>
    %10 = arith.addf %6, %9 : vector<64x1024xf32>
    %c0_8 = arith.constant 0 : index
    %c0_9 = arith.constant 0 : index
    %11 = vector.load %arg11[%c0_8, %c0_9] : memref<64x1024xf32, #tpu.memory_space<vmem>>, vector<64x1024xf32>
    tpu.vector_store %arg11[%c0_8, %c0_9], %10 {strides = array<i32>} : memref<64x1024xf32, #tpu.memory_space<vmem>>, vector<64x1024xf32>,
    %cst_10 = arith.constant 0.000000e+00 : f32
    %12 = vector.broadcast %cst_10 : f32 to vector<8x256xf32>
    %cst_11 = arith.constant 0.000000e+00 : f32
    %13 = vector.broadcast %cst_11 : f32 to vector<8x256xf32>
    %c0_12 = arith.constant 0 : index
    %c0_13 = arith.constant 0 : index
    %14 = vector.load %arg11[%c0_12, %c0_13] : memref<64x1024xf32, #tpu.memory_space<vmem>>, vector<8x1024xf32>
    %15 = arith.truncf %12 : vector<8x256xf32> to vector<8x256xbf16>
    %16 = vector.extract_strided_slice %14 {offsets = [0, 0], sizes = [8, 256], strides = [1, 1]} : vector<8x1024xf32> to vector<8x256xf32>
    %c0_14 = arith.constant 0 : index
    %c0_15 = arith.constant 0 : index
    %c0_16 = arith.constant 0 : index
    %17 = vector.load %arg3[%c0_14, %c0_15, %c0_16] : memref<1x256x1024xbf16, #tpu.memory_space<vmem>>, vector<1x256x256xbf16>
    %18 = vector.shape_cast %17 : vector<1x256x256xbf16> to vector<256x256xbf16>
    %cst_17 = arith.constant dense<0.000000e+00> : vector<8x256xf32>
    %19 = tpu.matmul %15, %18, %cst_17 {dimension_numbers = #tpu.dot_dimension_numbers<[1], [0], [0], [1], [0, 0, 1, 1], [], []>} : vector<8x256xbf16>, vector<256x256xbf16>, vector<8x256xf32> -> vector<8x256xf32>
    %20 = arith.addf %16, %19 : vector<8x256xf32>
    %21 = vector.extract_strided_slice %14 {offsets = [0, 256], sizes = [8, 256], strides = [1, 1]} : vector<8x1024xf32> to vector<8x256xf32>
    %c0_18 = arith.constant 0 : index
    %c0_19 = arith.constant 0 : index
    %c256 = arith.constant 256 : index
    %22 = vector.load %arg3[%c0_18, %c0_19, %c256] : memref<1x256x1024xbf16, #tpu.memory_space<vmem>>, vector<1x256x256xbf16>
    %23 = vector.shape_cast %22 : vector<1x256x256xbf16> to vector<256x256xbf16>
    %cst_20 = arith.constant dense<0.000000e+00> : vector<8x256xf32>
    %24 = tpu.matmul %15, %23, %cst_20 {dimension_numbers = #tpu.dot_dimension_numbers<[1], [0], [0], [1], [0, 0, 1, 1], [], []>} : vector<8x256xbf16>, vector<256x256xbf16>, vector<8x256xf32> -> vector<8x256xf32>
    %25 = arith.addf %21, %24 : vector<8x256xf32>
    %26 = vector.extract_strided_slice %14 {offsets = [0, 512], sizes = [8, 256], strides = [1, 1]} : vector<8x1024xf32> to vector<8x256xf32>
    %c0_21 = arith.constant 0 : index
    %c0_22 = arith.constant 0 : index
    %c512 = arith.constant 512 : index
    %27 = vector.load %arg3[%c0_21, %c0_22, %c512] : memref<1x256x1024xbf16, #tpu.memory_space<vmem>>, vector<1x256x256xbf16>
    %28 = vector.shape_cast %27 : vector<1x256x256xbf16> to vector<256x256xbf16>
    %cst_23 = arith.constant dense<0.000000e+00> : vector<8x256xf32>
    %29 = tpu.matmul %15, %28, %cst_23 {dimension_numbers = #tpu.dot_dimension_numbers<[1], [0], [0], [1], [0, 0, 1, 1], [], []>} : vector<8x256xbf16>, vector<256x256xbf16>, vector<8x256xf32> -> vector<8x256xf32>
    %30 = arith.addf %26, %29 : vector<8x256xf32>
    %31 = vector.extract_strided_slice %14 {offsets = [0, 768], sizes = [8, 256], strides = [1, 1]} : vector<8x1024xf32> to vector<8x256xf32>
    %c0_24 = arith.constant 0 : index
    %c0_25 = arith.constant 0 : index
    %c768 = arith.constant 768 : index
    %32 = vector.load %arg3[%c0_24, %c0_25, %c768] : memref<1x256x1024xbf16, #tpu.memory_space<vmem>>, vector<1x256x256xbf16>
    %33 = vector.shape_cast %32 : vector<1x256x256xbf16> to vector<256x256xbf16>
    %cst_26 = arith.constant dense<0.000000e+00> : vector<8x256xf32>
    %34 = tpu.matmul %15, %33, %cst_26 {dimension_numbers = #tpu.dot_dimension_numbers<[1], [0], [0], [1], [0, 0, 1, 1], [], []>} : vector<8x256xbf16>, vector<256x256xbf16>, vector<8x256xf32> -> vector<8x256xf32>
    %35 = arith.addf %31, %34 : vector<8x256xf32>
    %cst_27 = arith.constant 5.000000e-01 : f32
    %36 = vector.broadcast %cst_27 : f32 to vector<8x256xf32>
    %37 = arith.mulf %36, %20 : vector<8x256xf32>
    %38 = math.tanh %37 : vector<8x256xf32>
    %cst_28 = arith.constant 5.000000e-01 : f32
    %39 = vector.broadcast %cst_28 : f32 to vector<8x256xf32>
    %40 = arith.mulf %39, %38 : vector<8x256xf32>
    %cst_29 = arith.constant 5.000000e-01 : f32
    %41 = vector.broadcast %cst_29 : f32 to vector<8x256xf32>
    %42 = arith.addf %40, %41 : vector<8x256xf32>
    %cst_30 = arith.constant 5.000000e-01 : f32
    %43 = vector.broadcast %cst_30 : f32 to vector<8x256xf32>
    %44 = arith.mulf %43, %25 : vector<8x256xf32>
    %45 = math.tanh %44 : vector<8x256xf32>
    %cst_31 = arith.constant 5.000000e-01 : f32
    %46 = vector.broadcast %cst_31 : f32 to vector<8x256xf32>
    %47 = arith.mulf %46, %45 : vector<8x256xf32>
    %cst_32 = arith.constant 5.000000e-01 : f32
    %48 = vector.broadcast %cst_32 : f32 to vector<8x256xf32>
    %49 = arith.addf %47, %48 : vector<8x256xf32>
    %50 = math.tanh %30 : vector<8x256xf32>
    %cst_33 = arith.constant 5.000000e-01 : f32
    %51 = vector.broadcast %cst_33 : f32 to vector<8x256xf32>
    %52 = arith.mulf %51, %35 : vector<8x256xf32>
    %53 = math.tanh %52 : vector<8x256xf32>
    %cst_34 = arith.constant 5.000000e-01 : f32
    %54 = vector.broadcast %cst_34 : f32 to vector<8x256xf32>
    %55 = arith.mulf %54, %53 : vector<8x256xf32>
    %cst_35 = arith.constant 5.000000e-01 : f32
    %56 = vector.broadcast %cst_35 : f32 to vector<8x256xf32>
    %57 = arith.addf %55, %56 : vector<8x256xf32>
    %58 = arith.mulf %49, %13 : vector<8x256xf32>
    %59 = arith.mulf %42, %50 : vector<8x256xf32>
    %60 = arith.addf %58, %59 : vector<8x256xf32>
    %61 = math.tanh %60 : vector<8x256xf32>
    %62 = arith.mulf %57, %61 : vector<8x256xf32>
    %63 = arith.truncf %62 : vector<8x256xf32> to vector<8x256xbf16>
    %c0_36 = arith.constant 0 : index
    %c0_37 = arith.constant 0 : index
    %64 = vector.load %arg10[%c0_36, %c0_37] : memref<64x256xbf16, #tpu.memory_space<vmem>>, vector<8x256xbf16>
    tpu.vector_store %arg10[%c0_36, %c0_37], %63 {strides = array<i32>} : memref<64x256xbf16, #tpu.memory_space<vmem>>, vector<8x256xbf16>,
    %c8 = arith.constant 8 : index
    %c0_38 = arith.constant 0 : index
    %65 = vector.load %arg11[%c8, %c0_38] : memref<64x1024xf32, #tpu.memory_space<vmem>>, vector<8x1024xf32>
    %66 = arith.truncf %62 : vector<8x256xf32> to vector<8x256xbf16>
    %67 = vector.extract_strided_slice %65 {offsets = [0, 0], sizes = [8, 256], strides = [1, 1]} : vector<8x1024xf32> to vector<8x256xf32>
    %c0_39 = arith.constant 0 : index
    %c0_40 = arith.constant 0 : index
    %c0_41 = arith.constant 0 : index
    %68 = vector.load %arg3[%c0_39, %c0_40, %c0_41] : memref<1x256x1024xbf16, #tpu.memory_space<vmem>>, vector<1x256x256xbf16>
    %69 = vector.shape_cast %68 : vector<1x256x256xbf16> to vector<256x256xbf16>
    %cst_42 = arith.constant dense<0.000000e+00> : vector<8x256xf32>
    %70 = tpu.matmul %66, %69, %cst_42 {dimension_numbers = #tpu.dot_dimension_numbers<[1], [0], [0], [1], [0, 0, 1, 1], [], []>} : vector<8x256xbf16>, vector<256x256xbf16>, vector<8x256xf32> -> vector<8x256xf32>
    %71 = arith.addf %67, %70 : vector<8x256xf32>
    %72 = vector.extract_strided_slice %65 {offsets = [0, 256], sizes = [8, 256], strides = [1, 1]} : vector<8x1024xf32> to vector<8x256xf32>
    %c0_43 = arith.constant 0 : index
    %c0_44 = arith.constant 0 : index
    %c256_45 = arith.constant 256 : index
    %73 = vector.load %arg3[%c0_43, %c0_44, %c256_45] : memref<1x256x1024xbf16, #tpu.memory_space<vmem>>, vector<1x256x256xbf16>
    %74 = vector.shape_cast %73 : vector<1x256x256xbf16> to vector<256x256xbf16>
    %cst_46 = arith.constant dense<0.000000e+00> : vector<8x256xf32>
    %75 = tpu.matmul %66, %74, %cst_46 {dimension_numbers = #tpu.dot_dimension_numbers<[1], [0], [0], [1], [0, 0, 1, 1], [], []>} : vector<8x256xbf16>, vector<256x256xbf16>, vector<8x256xf32> -> vector<8x256xf32>
    %76 = arith.addf %72, %75 : vector<8x256xf32>
    %77 = vector.extract_strided_slice %65 {offsets = [0, 512], sizes = [8, 256], strides = [1, 1]} : vector<8x1024xf32> to vector<8x256xf32>
    %c0_47 = arith.constant 0 : index
    %c0_48 = arith.constant 0 : index
    %c512_49 = arith.constant 512 : index
    %78 = vector.load %arg3[%c0_47, %c0_48, %c512_49] : memref<1x256x1024xbf16, #tpu.memory_space<vmem>>, vector<1x256x256xbf16>
    %79 = vector.shape_cast %78 : vector<1x256x256xbf16> to vector<256x256xbf16>
    %cst_50 = arith.constant dense<0.000000e+00> : vector<8x256xf32>
    %80 = tpu.matmul %66, %79, %cst_50 {dimension_numbers = #tpu.dot_dimension_numbers<[1], [0], [0], [1], [0, 0, 1, 1], [], []>} : vector<8x256xbf16>, vector<256x256xbf16>, vector<8x256xf32> -> vector<8x256xf32>
    %81 = arith.addf %77, %80 : vector<8x256xf32>
    %82 = vector.extract_strided_slice %65 {offsets = [0, 768], sizes = [8, 256], strides = [1, 1]} : vector<8x1024xf32> to vector<8x256xf32>
    %c0_51 = arith.constant 0 : index
    %c0_52 = arith.constant 0 : index
    %c768_53 = arith.constant 768 : index
    %83 = vector.load %arg3[%c0_51, %c0_52, %c768_53] : memref<1x256x1024xbf16, #tpu.memory_space<vmem>>, vector<1x256x256xbf16>
    %84 = vector.shape_cast %83 : vector<1x256x256xbf16> to vector<256x256xbf16>
    %cst_54 = arith.constant dense<0.000000e+00> : vector<8x256xf32>
    %85 = tpu.matmul %66, %84, %cst_54 {dimension_numbers = #tpu.dot_dimension_numbers<[1], [0], [0], [1], [0, 0, 1, 1], [], []>} : vector<8x256xbf16>, vector<256x256xbf16>, vector<8x256xf32> -> vector<8x256xf32>
    %86 = arith.addf %82, %85 : vector<8x256xf32>
    %cst_55 = arith.constant 5.000000e-01 : f32
    %87 = vector.broadcast %cst_55 : f32 to vector<8x256xf32>
    %88 = arith.mulf %87, %71 : vector<8x256xf32>
    %89 = math.tanh %88 : vector<8x256xf32>
    %cst_56 = arith.constant 5.000000e-01 : f32
    %90 = vector.broadcast %cst_56 : f32 to vector<8x256xf32>
    %91 = arith.mulf %90, %89 : vector<8x256xf32>
    %cst_57 = arith.constant 5.000000e-01 : f32
    %92 = vector.broadcast %cst_57 : f32 to vector<8x256xf32>
    %93 = arith.addf %91, %92 : vector<8x256xf32>
    %cst_58 = arith.constant 5.000000e-01 : f32
    %94 = vector.broadcast %cst_58 : f32 to vector<8x256xf32>
    %95 = arith.mulf %94, %76 : vector<8x256xf32>
    %96 = math.tanh %95 : vector<8x256xf32>
    %cst_59 = arith.constant 5.000000e-01 : f32
    %97 = vector.broadcast %cst_59 : f32 to vector<8x256xf32>
    %98 = arith.mulf %97, %96 : vector<8x256xf32>
    %cst_60 = arith.constant 5.000000e-01 : f32
    %99 = vector.broadcast %cst_60 : f32 to vector<8x256xf32>
    %100 = arith.addf %98, %99 : vector<8x256xf32>
    %101 = math.tanh %81 : vector<8x256xf32>
    %cst_61 = arith.constant 5.000000e-01 : f32
    %102 = vector.broadcast %cst_61 : f32 to vector<8x256xf32>
    %103 = arith.mulf %102, %86 : vector<8x256xf32>
    %104 = math.tanh %103 : vector<8x256xf32>
    %cst_62 = arith.constant 5.000000e-01 : f32
    %105 = vector.broadcast %cst_62 : f32 to vector<8x256xf32>
    %106 = arith.mulf %105, %104 : vector<8x256xf32>
    %cst_63 = arith.constant 5.000000e-01 : f32
    %107 = vector.broadcast %cst_63 : f32 to vector<8x256xf32>
    %108 = arith.addf %106, %107 : vector<8x256xf32>
    %109 = arith.mulf %100, %60 : vector<8x256xf32>
    %110 = arith.mulf %93, %101 : vector<8x256xf32>
    %111 = arith.addf %109, %110 : vector<8x256xf32>
    %112 = math.tanh %111 : vector<8x256xf32>
    %113 = arith.mulf %108, %112 : vector<8x256xf32>
    %114 = arith.truncf %113 : vector<8x256xf32> to vector<8x256xbf16>
    %c8_64 = arith.constant 8 : index
    %c0_65 = arith.constant 0 : index
    %115 = vector.load %arg10[%c8_64, %c0_65] : memref<64x256xbf16, #tpu.memory_space<vmem>>, vector<8x256xbf16>
    tpu.vector_store %arg10[%c8_64, %c0_65], %114 {strides = array<i32>} : memref<64x256xbf16, #tpu.memory_space<vmem>>, vector<8x256xbf16>,
    %c16 = arith.constant 16 : index
    %c0_66 = arith.constant 0 : index
    %116 = vector.load %arg11[%c16, %c0_66] : memref<64x1024xf32, #tpu.memory_space<vmem>>, vector<8x1024xf32>
    %117 = arith.truncf %113 : vector<8x256xf32> to vector<8x256xbf16>
    %118 = vector.extract_strided_slice %116 {offsets = [0, 0], sizes = [8, 256], strides = [1, 1]} : vector<8x1024xf32> to vector<8x256xf32>
    %c0_67 = arith.constant 0 : index
    %c0_68 = arith.constant 0 : index
    %c0_69 = arith.constant 0 : index
    %119 = vector.load %arg3[%c0_67, %c0_68, %c0_69] : memref<1x256x1024xbf16, #tpu.memory_space<vmem>>, vector<1x256x256xbf16>
    %120 = vector.shape_cast %119 : vector<1x256x256xbf16> to vector<256x256xbf16>
    %cst_70 = arith.constant dense<0.000000e+00> : vector<8x256xf32>
    %121 = tpu.matmul %117, %120, %cst_70 {dimension_numbers = #tpu.dot_dimension_numbers<[1], [0], [0], [1], [0, 0, 1, 1], [], []>} : vector<8x256xbf16>, vector<256x256xbf16>, vector<8x256xf32> -> vector<8x256xf32>
    %122 = arith.addf %118, %121 : vector<8x256xf32>
    %123 = vector.extract_strided_slice %116 {offsets = [0, 256], sizes = [8, 256], strides = [1, 1]} : vector<8x1024xf32> to vector<8x256xf32>
    %c0_71 = arith.constant 0 : index
    %c0_72 = arith.constant 0 : index
    %c256_73 = arith.constant 256 : index
    %124 = vector.load %arg3[%c0_71, %c0_72, %c256_73] : memref<1x256x1024xbf16, #tpu.memory_space<vmem>>, vector<1x256x256xbf16>
    %125 = vector.shape_cast %124 : vector<1x256x256xbf16> to vector<256x256xbf16>
    %cst_74 = arith.constant dense<0.000000e+00> : vector<8x256xf32>
    %126 = tpu.matmul %117, %125, %cst_74 {dimension_numbers = #tpu.dot_dimension_numbers<[1], [0], [0], [1], [0, 0, 1, 1], [], []>} : vector<8x256xbf16>, vector<256x256xbf16>, vector<8x256xf32> -> vector<8x256xf32>
    %127 = arith.addf %123, %126 : vector<8x256xf32>
    %128 = vector.extract_strided_slice %116 {offsets = [0, 512], sizes = [8, 256], strides = [1, 1]} : vector<8x1024xf32> to vector<8x256xf32>
    %c0_75 = arith.constant 0 : index
    %c0_76 = arith.constant 0 : index
    %c512_77 = arith.constant 512 : index
    %129 = vector.load %arg3[%c0_75, %c0_76, %c512_77] : memref<1x256x1024xbf16, #tpu.memory_space<vmem>>, vector<1x256x256xbf16>
    %130 = vector.shape_cast %129 : vector<1x256x256xbf16> to vector<256x256xbf16>
    %cst_78 = arith.constant dense<0.000000e+00> : vector<8x256xf32>
    %131 = tpu.matmul %117, %130, %cst_78 {dimension_numbers = #tpu.dot_dimension_numbers<[1], [0], [0], [1], [0, 0, 1, 1], [], []>} : vector<8x256xbf16>, vector<256x256xbf16>, vector<8x256xf32> -> vector<8x256xf32>
    %132 = arith.addf %128, %131 : vector<8x256xf32>
    %133 = vector.extract_strided_slice %116 {offsets = [0, 768], sizes = [8, 256], strides = [1, 1]} : vector<8x1024xf32> to vector<8x256xf32>
    %c0_79 = arith.constant 0 : index
    %c0_80 = arith.constant 0 : index
    %c768_81 = arith.constant 768 : index
    %134 = vector.load %arg3[%c0_79, %c0_80, %c768_81] : memref<1x256x1024xbf16, #tpu.memory_space<vmem>>, vector<1x256x256xbf16>
    %135 = vector.shape_cast %134 : vector<1x256x256xbf16> to vector<256x256xbf16>
    %cst_82 = arith.constant dense<0.000000e+00> : vector<8x256xf32>
    %136 = tpu.matmul %117, %135, %cst_82 {dimension_numbers = #tpu.dot_dimension_numbers<[1], [0], [0], [1], [0, 0, 1, 1], [], []>} : vector<8x256xbf16>, vector<256x256xbf16>, vector<8x256xf32> -> vector<8x256xf32>
    %137 = arith.addf %133, %136 : vector<8x256xf32>
    %cst_83 = arith.constant 5.000000e-01 : f32
    %138 = vector.broadcast %cst_83 : f32 to vector<8x256xf32>
    %139 = arith.mulf %138, %122 : vector<8x256xf32>
    %140 = math.tanh %139 : vector<8x256xf32>
    %cst_84 = arith.constant 5.000000e-01 : f32
    %141 = vector.broadcast %cst_84 : f32 to vector<8x256xf32>
    %142 = arith.mulf %141, %140 : vector<8x256xf32>
    %cst_85 = arith.constant 5.000000e-01 : f32
    %143 = vector.broadcast %cst_85 : f32 to vector<8x256xf32>
    %144 = arith.addf %142, %143 : vector<8x256xf32>
    %cst_86 = arith.constant 5.000000e-01 : f32
    %145 = vector.broadcast %cst_86 : f32 to vector<8x256xf32>
    %146 = arith.mulf %145, %127 : vector<8x256xf32>
    %147 = math.tanh %146 : vector<8x256xf32>
    %cst_87 = arith.constant 5.000000e-01 : f32
    %148 = vector.broadcast %cst_87 : f32 to vector<8x256xf32>
    %149 = arith.mulf %148, %147 : vector<8x256xf32>
    %cst_88 = arith.constant 5.000000e-01 : f32
    %150 = vector.broadcast %cst_88 : f32 to vector<8x256xf32>
    %151 = arith.addf %149, %150 : vector<8x256xf32>
    %152 = math.tanh %132 : vector<8x256xf32>
    %cst_89 = arith.constant 5.000000e-01 : f32
    %153 = vector.broadcast %cst_89 : f32 to vector<8x256xf32>
    %154 = arith.mulf %153, %137 : vector<8x256xf32>
    %155 = math.tanh %154 : vector<8x256xf32>
    %cst_90 = arith.constant 5.000000e-01 : f32
    %156 = vector.broadcast %cst_90 : f32 to vector<8x256xf32>
    %157 = arith.mulf %156, %155 : vector<8x256xf32>
    %cst_91 = arith.constant 5.000000e-01 : f32
    %158 = vector.broadcast %cst_91 : f32 to vector<8x256xf32>
    %159 = arith.addf %157, %158 : vector<8x256xf32>
    %160 = arith.mulf %151, %111 : vector<8x256xf32>
    %161 = arith.mulf %144, %152 : vector<8x256xf32>
    %162 = arith.addf %160, %161 : vector<8x256xf32>
    %163 = math.tanh %162 : vector<8x256xf32>
    %164 = arith.mulf %159, %163 : vector<8x256xf32>
    %165 = arith.truncf %164 : vector<8x256xf32> to vector<8x256xbf16>
    %c16_92 = arith.constant 16 : index
    %c0_93 = arith.constant 0 : index
    %166 = vector.load %arg10[%c16_92, %c0_93] : memref<64x256xbf16, #tpu.memory_space<vmem>>, vector<8x256xbf16>
    tpu.vector_store %arg10[%c16_92, %c0_93], %165 {strides = array<i32>} : memref<64x256xbf16, #tpu.memory_space<vmem>>, vector<8x256xbf16>,
    %c24 = arith.constant 24 : index
    %c0_94 = arith.constant 0 : index
    %167 = vector.load %arg11[%c24, %c0_94] : memref<64x1024xf32, #tpu.memory_space<vmem>>, vector<8x1024xf32>
    %168 = arith.truncf %164 : vector<8x256xf32> to vector<8x256xbf16>
    %169 = vector.extract_strided_slice %167 {offsets = [0, 0], sizes = [8, 256], strides = [1, 1]} : vector<8x1024xf32> to vector<8x256xf32>
    %c0_95 = arith.constant 0 : index
    %c0_96 = arith.constant 0 : index
    %c0_97 = arith.constant 0 : index
    %170 = vector.load %arg3[%c0_95, %c0_96, %c0_97] : memref<1x256x1024xbf16, #tpu.memory_space<vmem>>, vector<1x256x256xbf16>
    %171 = vector.shape_cast %170 : vector<1x256x256xbf16> to vector<256x256xbf16>
    %cst_98 = arith.constant dense<0.000000e+00> : vector<8x256xf32>
    %172 = tpu.matmul %168, %171, %cst_98 {dimension_numbers = #tpu.dot_dimension_numbers<[1], [0], [0], [1], [0, 0, 1, 1], [], []>} : vector<8x256xbf16>, vector<256x256xbf16>, vector<8x256xf32> -> vector<8x256xf32>
    %173 = arith.addf %169, %172 : vector<8x256xf32>
    %174 = vector.extract_strided_slice %167 {offsets = [0, 256], sizes = [8, 256], strides = [1, 1]} : vector<8x1024xf32> to vector<8x256xf32>
    %c0_99 = arith.constant 0 : index
    %c0_100 = arith.constant 0 : index
    %c256_101 = arith.constant 256 : index
    %175 = vector.load %arg3[%c0_99, %c0_100, %c256_101] : memref<1x256x1024xbf16, #tpu.memory_space<vmem>>, vector<1x256x256xbf16>
    %176 = vector.shape_cast %175 : vector<1x256x256xbf16> to vector<256x256xbf16>
    %cst_102 = arith.constant dense<0.000000e+00> : vector<8x256xf32>
    %177 = tpu.matmul %168, %176, %cst_102 {dimension_numbers = #tpu.dot_dimension_numbers<[1], [0], [0], [1], [0, 0, 1, 1], [], []>} : vector<8x256xbf16>, vector<256x256xbf16>, vector<8x256xf32> -> vector<8x256xf32>
    %178 = arith.addf %174, %177 : vector<8x256xf32>
    %179 = vector.extract_strided_slice %167 {offsets = [0, 512], sizes = [8, 256], strides = [1, 1]} : vector<8x1024xf32> to vector<8x256xf32>
    %c0_103 = arith.constant 0 : index
    %c0_104 = arith.constant 0 : index
    %c512_105 = arith.constant 512 : index
    %180 = vector.load %arg3[%c0_103, %c0_104, %c512_105] : memref<1x256x1024xbf16, #tpu.memory_space<vmem>>, vector<1x256x256xbf16>
    %181 = vector.shape_cast %180 : vector<1x256x256xbf16> to vector<256x256xbf16>
    %cst_106 = arith.constant dense<0.000000e+00> : vector<8x256xf32>
    %182 = tpu.matmul %168, %181, %cst_106 {dimension_numbers = #tpu.dot_dimension_numbers<[1], [0], [0], [1], [0, 0, 1, 1], [], []>} : vector<8x256xbf16>, vector<256x256xbf16>, vector<8x256xf32> -> vector<8x256xf32>
    %183 = arith.addf %179, %182 : vector<8x256xf32>
    %184 = vector.extract_strided_slice %167 {offsets = [0, 768], sizes = [8, 256], strides = [1, 1]} : vector<8x1024xf32> to vector<8x256xf32>
    %c0_107 = arith.constant 0 : index
    %c0_108 = arith.constant 0 : index
    %c768_109 = arith.constant 768 : index
    %185 = vector.load %arg3[%c0_107, %c0_108, %c768_109] : memref<1x256x1024xbf16, #tpu.memory_space<vmem>>, vector<1x256x256xbf16>
    %186 = vector.shape_cast %185 : vector<1x256x256xbf16> to vector<256x256xbf16>
    %cst_110 = arith.constant dense<0.000000e+00> : vector<8x256xf32>
    %187 = tpu.matmul %168, %186, %cst_110 {dimension_numbers = #tpu.dot_dimension_numbers<[1], [0], [0], [1], [0, 0, 1, 1], [], []>} : vector<8x256xbf16>, vector<256x256xbf16>, vector<8x256xf32> -> vector<8x256xf32>
    %188 = arith.addf %184, %187 : vector<8x256xf32>
    %cst_111 = arith.constant 5.000000e-01 : f32
    %189 = vector.broadcast %cst_111 : f32 to vector<8x256xf32>
    %190 = arith.mulf %189, %173 : vector<8x256xf32>
    %191 = math.tanh %190 : vector<8x256xf32>
    %cst_112 = arith.constant 5.000000e-01 : f32
    %192 = vector.broadcast %cst_112 : f32 to vector<8x256xf32>
    %193 = arith.mulf %192, %191 : vector<8x256xf32>
    %cst_113 = arith.constant 5.000000e-01 : f32
    %194 = vector.broadcast %cst_113 : f32 to vector<8x256xf32>
    %195 = arith.addf %193, %194 : vector<8x256xf32>
    %cst_114 = arith.constant 5.000000e-01 : f32
    %196 = vector.broadcast %cst_114 : f32 to vector<8x256xf32>
    %197 = arith.mulf %196, %178 : vector<8x256xf32>
    %198 = math.tanh %197 : vector<8x256xf32>
    %cst_115 = arith.constant 5.000000e-01 : f32
    %199 = vector.broadcast %cst_115 : f32 to vector<8x256xf32>
    %200 = arith.mulf %199, %198 : vector<8x256xf32>
    %cst_116 = arith.constant 5.000000e-01 : f32
    %201 = vector.broadcast %cst_116 : f32 to vector<8x256xf32>
    %202 = arith.addf %200, %201 : vector<8x256xf32>
    %203 = math.tanh %183 : vector<8x256xf32>
    %cst_117 = arith.constant 5.000000e-01 : f32
    %204 = vector.broadcast %cst_117 : f32 to vector<8x256xf32>
    %205 = arith.mulf %204, %188 : vector<8x256xf32>
    %206 = math.tanh %205 : vector<8x256xf32>
    %cst_118 = arith.constant 5.000000e-01 : f32
    %207 = vector.broadcast %cst_118 : f32 to vector<8x256xf32>
    %208 = arith.mulf %207, %206 : vector<8x256xf32>
    %cst_119 = arith.constant 5.000000e-01 : f32
    %209 = vector.broadcast %cst_119 : f32 to vector<8x256xf32>
    %210 = arith.addf %208, %209 : vector<8x256xf32>
    %211 = arith.mulf %202, %162 : vector<8x256xf32>
    %212 = arith.mulf %195, %203 : vector<8x256xf32>
    %213 = arith.addf %211, %212 : vector<8x256xf32>
    %214 = math.tanh %213 : vector<8x256xf32>
    %215 = arith.mulf %210, %214 : vector<8x256xf32>
    %216 = arith.truncf %215 : vector<8x256xf32> to vector<8x256xbf16>
    %c24_120 = arith.constant 24 : index
    %c0_121 = arith.constant 0 : index
    %217 = vector.load %arg10[%c24_120, %c0_121] : memref<64x256xbf16, #tpu.memory_space<vmem>>, vector<8x256xbf16>
    tpu.vector_store %arg10[%c24_120, %c0_121], %216 {strides = array<i32>} : memref<64x256xbf16, #tpu.memory_space<vmem>>, vector<8x256xbf16>,
    %c32 = arith.constant 32 : index
    %c0_122 = arith.constant 0 : index
    %218 = vector.load %arg11[%c32, %c0_122] : memref<64x1024xf32, #tpu.memory_space<vmem>>, vector<8x1024xf32>
    %219 = arith.truncf %215 : vector<8x256xf32> to vector<8x256xbf16>
    %220 = vector.extract_strided_slice %218 {offsets = [0, 0], sizes = [8, 256], strides = [1, 1]} : vector<8x1024xf32> to vector<8x256xf32>
    %c0_123 = arith.constant 0 : index
    %c0_124 = arith.constant 0 : index
    %c0_125 = arith.constant 0 : index
    %221 = vector.load %arg3[%c0_123, %c0_124, %c0_125] : memref<1x256x1024xbf16, #tpu.memory_space<vmem>>, vector<1x256x256xbf16>
    %222 = vector.shape_cast %221 : vector<1x256x256xbf16> to vector<256x256xbf16>
    %cst_126 = arith.constant dense<0.000000e+00> : vector<8x256xf32>
    %223 = tpu.matmul %219, %222, %cst_126 {dimension_numbers = #tpu.dot_dimension_numbers<[1], [0], [0], [1], [0, 0, 1, 1], [], []>} : vector<8x256xbf16>, vector<256x256xbf16>, vector<8x256xf32> -> vector<8x256xf32>
    %224 = arith.addf %220, %223 : vector<8x256xf32>
    %225 = vector.extract_strided_slice %218 {offsets = [0, 256], sizes = [8, 256], strides = [1, 1]} : vector<8x1024xf32> to vector<8x256xf32>
    %c0_127 = arith.constant 0 : index
    %c0_128 = arith.constant 0 : index
    %c256_129 = arith.constant 256 : index
    %226 = vector.load %arg3[%c0_127, %c0_128, %c256_129] : memref<1x256x1024xbf16, #tpu.memory_space<vmem>>, vector<1x256x256xbf16>
    %227 = vector.shape_cast %226 : vector<1x256x256xbf16> to vector<256x256xbf16>
    %cst_130 = arith.constant dense<0.000000e+00> : vector<8x256xf32>
    %228 = tpu.matmul %219, %227, %cst_130 {dimension_numbers = #tpu.dot_dimension_numbers<[1], [0], [0], [1], [0, 0, 1, 1], [], []>} : vector<8x256xbf16>, vector<256x256xbf16>, vector<8x256xf32> -> vector<8x256xf32>
    %229 = arith.addf %225, %228 : vector<8x256xf32>
    %230 = vector.extract_strided_slice %218 {offsets = [0, 512], sizes = [8, 256], strides = [1, 1]} : vector<8x1024xf32> to vector<8x256xf32>
    %c0_131 = arith.constant 0 : index
    %c0_132 = arith.constant 0 : index
    %c512_133 = arith.constant 512 : index
    %231 = vector.load %arg3[%c0_131, %c0_132, %c512_133] : memref<1x256x1024xbf16, #tpu.memory_space<vmem>>, vector<1x256x256xbf16>
    %232 = vector.shape_cast %231 : vector<1x256x256xbf16> to vector<256x256xbf16>
    %cst_134 = arith.constant dense<0.000000e+00> : vector<8x256xf32>
    %233 = tpu.matmul %219, %232, %cst_134 {dimension_numbers = #tpu.dot_dimension_numbers<[1], [0], [0], [1], [0, 0, 1, 1], [], []>} : vector<8x256xbf16>, vector<256x256xbf16>, vector<8x256xf32> -> vector<8x256xf32>
    %234 = arith.addf %230, %233 : vector<8x256xf32>
    %235 = vector.extract_strided_slice %218 {offsets = [0, 768], sizes = [8, 256], strides = [1, 1]} : vector<8x1024xf32> to vector<8x256xf32>
    %c0_135 = arith.constant 0 : index
    %c0_136 = arith.constant 0 : index
    %c768_137 = arith.constant 768 : index
    %236 = vector.load %arg3[%c0_135, %c0_136, %c768_137] : memref<1x256x1024xbf16, #tpu.memory_space<vmem>>, vector<1x256x256xbf16>
    %237 = vector.shape_cast %236 : vector<1x256x256xbf16> to vector<256x256xbf16>
    %cst_138 = arith.constant dense<0.000000e+00> : vector<8x256xf32>
    %238 = tpu.matmul %219, %237, %cst_138 {dimension_numbers = #tpu.dot_dimension_numbers<[1], [0], [0], [1], [0, 0, 1, 1], [], []>} : vector<8x256xbf16>, vector<256x256xbf16>, vector<8x256xf32> -> vector<8x256xf32>
    %239 = arith.addf %235, %238 : vector<8x256xf32>
    %cst_139 = arith.constant 5.000000e-01 : f32
    %240 = vector.broadcast %cst_139 : f32 to vector<8x256xf32>
    %241 = arith.mulf %240, %224 : vector<8x256xf32>
    %242 = math.tanh %241 : vector<8x256xf32>
    %cst_140 = arith.constant 5.000000e-01 : f32
    %243 = vector.broadcast %cst_140 : f32 to vector<8x256xf32>
    %244 = arith.mulf %243, %242 : vector<8x256xf32>
    %cst_141 = arith.constant 5.000000e-01 : f32
    %245 = vector.broadcast %cst_141 : f32 to vector<8x256xf32>
    %246 = arith.addf %244, %245 : vector<8x256xf32>
    %cst_142 = arith.constant 5.000000e-01 : f32
    %247 = vector.broadcast %cst_142 : f32 to vector<8x256xf32>
    %248 = arith.mulf %247, %229 : vector<8x256xf32>
    %249 = math.tanh %248 : vector<8x256xf32>
    %cst_143 = arith.constant 5.000000e-01 : f32
    %250 = vector.broadcast %cst_143 : f32 to vector<8x256xf32>
    %251 = arith.mulf %250, %249 : vector<8x256xf32>
    %cst_144 = arith.constant 5.000000e-01 : f32
    %252 = vector.broadcast %cst_144 : f32 to vector<8x256xf32>
    %253 = arith.addf %251, %252 : vector<8x256xf32>
    %254 = math.tanh %234 : vector<8x256xf32>
    %cst_145 = arith.constant 5.000000e-01 : f32
    %255 = vector.broadcast %cst_145 : f32 to vector<8x256xf32>
    %256 = arith.mulf %255, %239 : vector<8x256xf32>
    %257 = math.tanh %256 : vector<8x256xf32>
    %cst_146 = arith.constant 5.000000e-01 : f32
    %258 = vector.broadcast %cst_146 : f32 to vector<8x256xf32>
    %259 = arith.mulf %258, %257 : vector<8x256xf32>
    %cst_147 = arith.constant 5.000000e-01 : f32
    %260 = vector.broadcast %cst_147 : f32 to vector<8x256xf32>
    %261 = arith.addf %259, %260 : vector<8x256xf32>
    %262 = arith.mulf %253, %213 : vector<8x256xf32>
    %263 = arith.mulf %246, %254 : vector<8x256xf32>
    %264 = arith.addf %262, %263 : vector<8x256xf32>
    %265 = math.tanh %264 : vector<8x256xf32>
    %266 = arith.mulf %261, %265 : vector<8x256xf32>
    %267 = arith.truncf %266 : vector<8x256xf32> to vector<8x256xbf16>
    %c32_148 = arith.constant 32 : index
    %c0_149 = arith.constant 0 : index
    %268 = vector.load %arg10[%c32_148, %c0_149] : memref<64x256xbf16, #tpu.memory_space<vmem>>, vector<8x256xbf16>
    tpu.vector_store %arg10[%c32_148, %c0_149], %267 {strides = array<i32>} : memref<64x256xbf16, #tpu.memory_space<vmem>>, vector<8x256xbf16>,
    %c40 = arith.constant 40 : index
    %c0_150 = arith.constant 0 : index
    %269 = vector.load %arg11[%c40, %c0_150] : memref<64x1024xf32, #tpu.memory_space<vmem>>, vector<8x1024xf32>
    %270 = arith.truncf %266 : vector<8x256xf32> to vector<8x256xbf16>
    %271 = vector.extract_strided_slice %269 {offsets = [0, 0], sizes = [8, 256], strides = [1, 1]} : vector<8x1024xf32> to vector<8x256xf32>
    %c0_151 = arith.constant 0 : index
    %c0_152 = arith.constant 0 : index
    %c0_153 = arith.constant 0 : index
    %272 = vector.load %arg3[%c0_151, %c0_152, %c0_153] : memref<1x256x1024xbf16, #tpu.memory_space<vmem>>, vector<1x256x256xbf16>
    %273 = vector.shape_cast %272 : vector<1x256x256xbf16> to vector<256x256xbf16>
    %cst_154 = arith.constant dense<0.000000e+00> : vector<8x256xf32>
    %274 = tpu.matmul %270, %273, %cst_154 {dimension_numbers = #tpu.dot_dimension_numbers<[1], [0], [0], [1], [0, 0, 1, 1], [], []>} : vector<8x256xbf16>, vector<256x256xbf16>, vector<8x256xf32> -> vector<8x256xf32>
    %275 = arith.addf %271, %274 : vector<8x256xf32>
    %276 = vector.extract_strided_slice %269 {offsets = [0, 256], sizes = [8, 256], strides = [1, 1]} : vector<8x1024xf32> to vector<8x256xf32>
    %c0_155 = arith.constant 0 : index
    %c0_156 = arith.constant 0 : index
    %c256_157 = arith.constant 256 : index
    %277 = vector.load %arg3[%c0_155, %c0_156, %c256_157] : memref<1x256x1024xbf16, #tpu.memory_space<vmem>>, vector<1x256x256xbf16>
    %278 = vector.shape_cast %277 : vector<1x256x256xbf16> to vector<256x256xbf16>
    %cst_158 = arith.constant dense<0.000000e+00> : vector<8x256xf32>
    %279 = tpu.matmul %270, %278, %cst_158 {dimension_numbers = #tpu.dot_dimension_numbers<[1], [0], [0], [1], [0, 0, 1, 1], [], []>} : vector<8x256xbf16>, vector<256x256xbf16>, vector<8x256xf32> -> vector<8x256xf32>
    %280 = arith.addf %276, %279 : vector<8x256xf32>
    %281 = vector.extract_strided_slice %269 {offsets = [0, 512], sizes = [8, 256], strides = [1, 1]} : vector<8x1024xf32> to vector<8x256xf32>
    %c0_159 = arith.constant 0 : index
    %c0_160 = arith.constant 0 : index
    %c512_161 = arith.constant 512 : index
    %282 = vector.load %arg3[%c0_159, %c0_160, %c512_161] : memref<1x256x1024xbf16, #tpu.memory_space<vmem>>, vector<1x256x256xbf16>
    %283 = vector.shape_cast %282 : vector<1x256x256xbf16> to vector<256x256xbf16>
    %cst_162 = arith.constant dense<0.000000e+00> : vector<8x256xf32>
    %284 = tpu.matmul %270, %283, %cst_162 {dimension_numbers = #tpu.dot_dimension_numbers<[1], [0], [0], [1], [0, 0, 1, 1], [], []>} : vector<8x256xbf16>, vector<256x256xbf16>, vector<8x256xf32> -> vector<8x256xf32>
    %285 = arith.addf %281, %284 : vector<8x256xf32>
    %286 = vector.extract_strided_slice %269 {offsets = [0, 768], sizes = [8, 256], strides = [1, 1]} : vector<8x1024xf32> to vector<8x256xf32>
    %c0_163 = arith.constant 0 : index
    %c0_164 = arith.constant 0 : index
    %c768_165 = arith.constant 768 : index
    %287 = vector.load %arg3[%c0_163, %c0_164, %c768_165] : memref<1x256x1024xbf16, #tpu.memory_space<vmem>>, vector<1x256x256xbf16>
    %288 = vector.shape_cast %287 : vector<1x256x256xbf16> to vector<256x256xbf16>
    %cst_166 = arith.constant dense<0.000000e+00> : vector<8x256xf32>
    %289 = tpu.matmul %270, %288, %cst_166 {dimension_numbers = #tpu.dot_dimension_numbers<[1], [0], [0], [1], [0, 0, 1, 1], [], []>} : vector<8x256xbf16>, vector<256x256xbf16>, vector<8x256xf32> -> vector<8x256xf32>
    %290 = arith.addf %286, %289 : vector<8x256xf32>
    %cst_167 = arith.constant 5.000000e-01 : f32
    %291 = vector.broadcast %cst_167 : f32 to vector<8x256xf32>
    %292 = arith.mulf %291, %275 : vector<8x256xf32>
    %293 = math.tanh %292 : vector<8x256xf32>
    %cst_168 = arith.constant 5.000000e-01 : f32
    %294 = vector.broadcast %cst_168 : f32 to vector<8x256xf32>
    %295 = arith.mulf %294, %293 : vector<8x256xf32>
    %cst_169 = arith.constant 5.000000e-01 : f32
    %296 = vector.broadcast %cst_169 : f32 to vector<8x256xf32>
    %297 = arith.addf %295, %296 : vector<8x256xf32>
    %cst_170 = arith.constant 5.000000e-01 : f32
    %298 = vector.broadcast %cst_170 : f32 to vector<8x256xf32>
    %299 = arith.mulf %298, %280 : vector<8x256xf32>
    %300 = math.tanh %299 : vector<8x256xf32>
    %cst_171 = arith.constant 5.000000e-01 : f32
    %301 = vector.broadcast %cst_171 : f32 to vector<8x256xf32>
    %302 = arith.mulf %301, %300 : vector<8x256xf32>
    %cst_172 = arith.constant 5.000000e-01 : f32
    %303 = vector.broadcast %cst_172 : f32 to vector<8x256xf32>
    %304 = arith.addf %302, %303 : vector<8x256xf32>
    %305 = math.tanh %285 : vector<8x256xf32>
    %cst_173 = arith.constant 5.000000e-01 : f32
    %306 = vector.broadcast %cst_173 : f32 to vector<8x256xf32>
    %307 = arith.mulf %306, %290 : vector<8x256xf32>
    %308 = math.tanh %307 : vector<8x256xf32>
    %cst_174 = arith.constant 5.000000e-01 : f32
    %309 = vector.broadcast %cst_174 : f32 to vector<8x256xf32>
    %310 = arith.mulf %309, %308 : vector<8x256xf32>
    %cst_175 = arith.constant 5.000000e-01 : f32
    %311 = vector.broadcast %cst_175 : f32 to vector<8x256xf32>
    %312 = arith.addf %310, %311 : vector<8x256xf32>
    %313 = arith.mulf %304, %264 : vector<8x256xf32>
    %314 = arith.mulf %297, %305 : vector<8x256xf32>
    %315 = arith.addf %313, %314 : vector<8x256xf32>
    %316 = math.tanh %315 : vector<8x256xf32>
    %317 = arith.mulf %312, %316 : vector<8x256xf32>
    %318 = arith.truncf %317 : vector<8x256xf32> to vector<8x256xbf16>
    %c40_176 = arith.constant 40 : index
    %c0_177 = arith.constant 0 : index
    %319 = vector.load %arg10[%c40_176, %c0_177] : memref<64x256xbf16, #tpu.memory_space<vmem>>, vector<8x256xbf16>
    tpu.vector_store %arg10[%c40_176, %c0_177], %318 {strides = array<i32>} : memref<64x256xbf16, #tpu.memory_space<vmem>>, vector<8x256xbf16>,
    %c48 = arith.constant 48 : index
    %c0_178 = arith.constant 0 : index
    %320 = vector.load %arg11[%c48, %c0_178] : memref<64x1024xf32, #tpu.memory_space<vmem>>, vector<8x1024xf32>
    %321 = arith.truncf %317 : vector<8x256xf32> to vector<8x256xbf16>
    %322 = vector.extract_strided_slice %320 {offsets = [0, 0], sizes = [8, 256], strides = [1, 1]} : vector<8x1024xf32> to vector<8x256xf32>
    %c0_179 = arith.constant 0 : index
    %c0_180 = arith.constant 0 : index
    %c0_181 = arith.constant 0 : index
    %323 = vector.load %arg3[%c0_179, %c0_180, %c0_181] : memref<1x256x1024xbf16, #tpu.memory_space<vmem>>, vector<1x256x256xbf16>
    %324 = vector.shape_cast %323 : vector<1x256x256xbf16> to vector<256x256xbf16>
    %cst_182 = arith.constant dense<0.000000e+00> : vector<8x256xf32>
    %325 = tpu.matmul %321, %324, %cst_182 {dimension_numbers = #tpu.dot_dimension_numbers<[1], [0], [0], [1], [0, 0, 1, 1], [], []>} : vector<8x256xbf16>, vector<256x256xbf16>, vector<8x256xf32> -> vector<8x256xf32>
    %326 = arith.addf %322, %325 : vector<8x256xf32>
    %327 = vector.extract_strided_slice %320 {offsets = [0, 256], sizes = [8, 256], strides = [1, 1]} : vector<8x1024xf32> to vector<8x256xf32>
    %c0_183 = arith.constant 0 : index
    %c0_184 = arith.constant 0 : index
    %c256_185 = arith.constant 256 : index
    %328 = vector.load %arg3[%c0_183, %c0_184, %c256_185] : memref<1x256x1024xbf16, #tpu.memory_space<vmem>>, vector<1x256x256xbf16>
    %329 = vector.shape_cast %328 : vector<1x256x256xbf16> to vector<256x256xbf16>
    %cst_186 = arith.constant dense<0.000000e+00> : vector<8x256xf32>
    %330 = tpu.matmul %321, %329, %cst_186 {dimension_numbers = #tpu.dot_dimension_numbers<[1], [0], [0], [1], [0, 0, 1, 1], [], []>} : vector<8x256xbf16>, vector<256x256xbf16>, vector<8x256xf32> -> vector<8x256xf32>
    %331 = arith.addf %327, %330 : vector<8x256xf32>
    %332 = vector.extract_strided_slice %320 {offsets = [0, 512], sizes = [8, 256], strides = [1, 1]} : vector<8x1024xf32> to vector<8x256xf32>
    %c0_187 = arith.constant 0 : index
    %c0_188 = arith.constant 0 : index
    %c512_189 = arith.constant 512 : index
    %333 = vector.load %arg3[%c0_187, %c0_188, %c512_189] : memref<1x256x1024xbf16, #tpu.memory_space<vmem>>, vector<1x256x256xbf16>
    %334 = vector.shape_cast %333 : vector<1x256x256xbf16> to vector<256x256xbf16>
    %cst_190 = arith.constant dense<0.000000e+00> : vector<8x256xf32>
    %335 = tpu.matmul %321, %334, %cst_190 {dimension_numbers = #tpu.dot_dimension_numbers<[1], [0], [0], [1], [0, 0, 1, 1], [], []>} : vector<8x256xbf16>, vector<256x256xbf16>, vector<8x256xf32> -> vector<8x256xf32>
    %336 = arith.addf %332, %335 : vector<8x256xf32>
    %337 = vector.extract_strided_slice %320 {offsets = [0, 768], sizes = [8, 256], strides = [1, 1]} : vector<8x1024xf32> to vector<8x256xf32>
    %c0_191 = arith.constant 0 : index
    %c0_192 = arith.constant 0 : index
    %c768_193 = arith.constant 768 : index
    %338 = vector.load %arg3[%c0_191, %c0_192, %c768_193] : memref<1x256x1024xbf16, #tpu.memory_space<vmem>>, vector<1x256x256xbf16>
    %339 = vector.shape_cast %338 : vector<1x256x256xbf16> to vector<256x256xbf16>
    %cst_194 = arith.constant dense<0.000000e+00> : vector<8x256xf32>
    %340 = tpu.matmul %321, %339, %cst_194 {dimension_numbers = #tpu.dot_dimension_numbers<[1], [0], [0], [1], [0, 0, 1, 1], [], []>} : vector<8x256xbf16>, vector<256x256xbf16>, vector<8x256xf32> -> vector<8x256xf32>
    %341 = arith.addf %337, %340 : vector<8x256xf32>
    %cst_195 = arith.constant 5.000000e-01 : f32
    %342 = vector.broadcast %cst_195 : f32 to vector<8x256xf32>
    %343 = arith.mulf %342, %326 : vector<8x256xf32>
    %344 = math.tanh %343 : vector<8x256xf32>
    %cst_196 = arith.constant 5.000000e-01 : f32
    %345 = vector.broadcast %cst_196 : f32 to vector<8x256xf32>
    %346 = arith.mulf %345, %344 : vector<8x256xf32>
    %cst_197 = arith.constant 5.000000e-01 : f32
    %347 = vector.broadcast %cst_197 : f32 to vector<8x256xf32>
    %348 = arith.addf %346, %347 : vector<8x256xf32>
    %cst_198 = arith.constant 5.000000e-01 : f32
    %349 = vector.broadcast %cst_198 : f32 to vector<8x256xf32>
    %350 = arith.mulf %349, %331 : vector<8x256xf32>
    %351 = math.tanh %350 : vector<8x256xf32>
    %cst_199 = arith.constant 5.000000e-01 : f32
    %352 = vector.broadcast %cst_199 : f32 to vector<8x256xf32>
    %353 = arith.mulf %352, %351 : vector<8x256xf32>
    %cst_200 = arith.constant 5.000000e-01 : f32
    %354 = vector.broadcast %cst_200 : f32 to vector<8x256xf32>
    %355 = arith.addf %353, %354 : vector<8x256xf32>
    %356 = math.tanh %336 : vector<8x256xf32>
    %cst_201 = arith.constant 5.000000e-01 : f32
    %357 = vector.broadcast %cst_201 : f32 to vector<8x256xf32>
    %358 = arith.mulf %357, %341 : vector<8x256xf32>
    %359 = math.tanh %358 : vector<8x256xf32>
    %cst_202 = arith.constant 5.000000e-01 : f32
    %360 = vector.broadcast %cst_202 : f32 to vector<8x256xf32>
    %361 = arith.mulf %360, %359 : vector<8x256xf32>
    %cst_203 = arith.constant 5.000000e-01 : f32
    %362 = vector.broadcast %cst_203 : f32 to vector<8x256xf32>
    %363 = arith.addf %361, %362 : vector<8x256xf32>
    %364 = arith.mulf %355, %315 : vector<8x256xf32>
    %365 = arith.mulf %348, %356 : vector<8x256xf32>
    %366 = arith.addf %364, %365 : vector<8x256xf32>
    %367 = math.tanh %366 : vector<8x256xf32>
    %368 = arith.mulf %363, %367 : vector<8x256xf32>
    %369 = arith.truncf %368 : vector<8x256xf32> to vector<8x256xbf16>
    %c48_204 = arith.constant 48 : index
    %c0_205 = arith.constant 0 : index
    %370 = vector.load %arg10[%c48_204, %c0_205] : memref<64x256xbf16, #tpu.memory_space<vmem>>, vector<8x256xbf16>
    tpu.vector_store %arg10[%c48_204, %c0_205], %369 {strides = array<i32>} : memref<64x256xbf16, #tpu.memory_space<vmem>>, vector<8x256xbf16>,
    %c56 = arith.constant 56 : index
    %c0_206 = arith.constant 0 : index
    %371 = vector.load %arg11[%c56, %c0_206] : memref<64x1024xf32, #tpu.memory_space<vmem>>, vector<8x1024xf32>
    %372 = arith.truncf %368 : vector<8x256xf32> to vector<8x256xbf16>
    %373 = vector.extract_strided_slice %371 {offsets = [0, 0], sizes = [8, 256], strides = [1, 1]} : vector<8x1024xf32> to vector<8x256xf32>
    %c0_207 = arith.constant 0 : index
    %c0_208 = arith.constant 0 : index
    %c0_209 = arith.constant 0 : index
    %374 = vector.load %arg3[%c0_207, %c0_208, %c0_209] : memref<1x256x1024xbf16, #tpu.memory_space<vmem>>, vector<1x256x256xbf16>
    %375 = vector.shape_cast %374 : vector<1x256x256xbf16> to vector<256x256xbf16>
    %cst_210 = arith.constant dense<0.000000e+00> : vector<8x256xf32>
    %376 = tpu.matmul %372, %375, %cst_210 {dimension_numbers = #tpu.dot_dimension_numbers<[1], [0], [0], [1], [0, 0, 1, 1], [], []>} : vector<8x256xbf16>, vector<256x256xbf16>, vector<8x256xf32> -> vector<8x256xf32>
    %377 = arith.addf %373, %376 : vector<8x256xf32>
    %378 = vector.extract_strided_slice %371 {offsets = [0, 256], sizes = [8, 256], strides = [1, 1]} : vector<8x1024xf32> to vector<8x256xf32>
    %c0_211 = arith.constant 0 : index
    %c0_212 = arith.constant 0 : index
    %c256_213 = arith.constant 256 : index
    %379 = vector.load %arg3[%c0_211, %c0_212, %c256_213] : memref<1x256x1024xbf16, #tpu.memory_space<vmem>>, vector<1x256x256xbf16>
    %380 = vector.shape_cast %379 : vector<1x256x256xbf16> to vector<256x256xbf16>
    %cst_214 = arith.constant dense<0.000000e+00> : vector<8x256xf32>
    %381 = tpu.matmul %372, %380, %cst_214 {dimension_numbers = #tpu.dot_dimension_numbers<[1], [0], [0], [1], [0, 0, 1, 1], [], []>} : vector<8x256xbf16>, vector<256x256xbf16>, vector<8x256xf32> -> vector<8x256xf32>
    %382 = arith.addf %378, %381 : vector<8x256xf32>
    %383 = vector.extract_strided_slice %371 {offsets = [0, 512], sizes = [8, 256], strides = [1, 1]} : vector<8x1024xf32> to vector<8x256xf32>
    %c0_215 = arith.constant 0 : index
    %c0_216 = arith.constant 0 : index
    %c512_217 = arith.constant 512 : index
    %384 = vector.load %arg3[%c0_215, %c0_216, %c512_217] : memref<1x256x1024xbf16, #tpu.memory_space<vmem>>, vector<1x256x256xbf16>
    %385 = vector.shape_cast %384 : vector<1x256x256xbf16> to vector<256x256xbf16>
    %cst_218 = arith.constant dense<0.000000e+00> : vector<8x256xf32>
    %386 = tpu.matmul %372, %385, %cst_218 {dimension_numbers = #tpu.dot_dimension_numbers<[1], [0], [0], [1], [0, 0, 1, 1], [], []>} : vector<8x256xbf16>, vector<256x256xbf16>, vector<8x256xf32> -> vector<8x256xf32>
    %387 = arith.addf %383, %386 : vector<8x256xf32>
    %388 = vector.extract_strided_slice %371 {offsets = [0, 768], sizes = [8, 256], strides = [1, 1]} : vector<8x1024xf32> to vector<8x256xf32>
    %c0_219 = arith.constant 0 : index
    %c0_220 = arith.constant 0 : index
    %c768_221 = arith.constant 768 : index
    %389 = vector.load %arg3[%c0_219, %c0_220, %c768_221] : memref<1x256x1024xbf16, #tpu.memory_space<vmem>>, vector<1x256x256xbf16>
    %390 = vector.shape_cast %389 : vector<1x256x256xbf16> to vector<256x256xbf16>
    %cst_222 = arith.constant dense<0.000000e+00> : vector<8x256xf32>
    %391 = tpu.matmul %372, %390, %cst_222 {dimension_numbers = #tpu.dot_dimension_numbers<[1], [0], [0], [1], [0, 0, 1, 1], [], []>} : vector<8x256xbf16>, vector<256x256xbf16>, vector<8x256xf32> -> vector<8x256xf32>
    %392 = arith.addf %388, %391 : vector<8x256xf32>
    %cst_223 = arith.constant 5.000000e-01 : f32
    %393 = vector.broadcast %cst_223 : f32 to vector<8x256xf32>
    %394 = arith.mulf %393, %377 : vector<8x256xf32>
    %395 = math.tanh %394 : vector<8x256xf32>
    %cst_224 = arith.constant 5.000000e-01 : f32
    %396 = vector.broadcast %cst_224 : f32 to vector<8x256xf32>
    %397 = arith.mulf %396, %395 : vector<8x256xf32>
    %cst_225 = arith.constant 5.000000e-01 : f32
    %398 = vector.broadcast %cst_225 : f32 to vector<8x256xf32>
    %399 = arith.addf %397, %398 : vector<8x256xf32>
    %cst_226 = arith.constant 5.000000e-01 : f32
    %400 = vector.broadcast %cst_226 : f32 to vector<8x256xf32>
    %401 = arith.mulf %400, %382 : vector<8x256xf32>
    %402 = math.tanh %401 : vector<8x256xf32>
    %cst_227 = arith.constant 5.000000e-01 : f32
    %403 = vector.broadcast %cst_227 : f32 to vector<8x256xf32>
    %404 = arith.mulf %403, %402 : vector<8x256xf32>
    %cst_228 = arith.constant 5.000000e-01 : f32
    %405 = vector.broadcast %cst_228 : f32 to vector<8x256xf32>
    %406 = arith.addf %404, %405 : vector<8x256xf32>
    %407 = math.tanh %387 : vector<8x256xf32>
    %cst_229 = arith.constant 5.000000e-01 : f32
    %408 = vector.broadcast %cst_229 : f32 to vector<8x256xf32>
    %409 = arith.mulf %408, %392 : vector<8x256xf32>
    %410 = math.tanh %409 : vector<8x256xf32>
    %cst_230 = arith.constant 5.000000e-01 : f32
    %411 = vector.broadcast %cst_230 : f32 to vector<8x256xf32>
    %412 = arith.mulf %411, %410 : vector<8x256xf32>
    %cst_231 = arith.constant 5.000000e-01 : f32
    %413 = vector.broadcast %cst_231 : f32 to vector<8x256xf32>
    %414 = arith.addf %412, %413 : vector<8x256xf32>
    %415 = arith.mulf %406, %366 : vector<8x256xf32>
    %416 = arith.mulf %399, %407 : vector<8x256xf32>
    %417 = arith.addf %415, %416 : vector<8x256xf32>
    %418 = math.tanh %417 : vector<8x256xf32>
    %419 = arith.mulf %414, %418 : vector<8x256xf32>
    %420 = arith.truncf %419 : vector<8x256xf32> to vector<8x256xbf16>
    %c56_232 = arith.constant 56 : index
    %c0_233 = arith.constant 0 : index
    %421 = vector.load %arg10[%c56_232, %c0_233] : memref<64x256xbf16, #tpu.memory_space<vmem>>, vector<8x256xbf16>
    tpu.vector_store %arg10[%c56_232, %c0_233], %420 {strides = array<i32>} : memref<64x256xbf16, #tpu.memory_space<vmem>>, vector<8x256xbf16>,
    %c2_i32 = arith.constant 2 : i32
    %422 = arith.cmpi eq, %arg0, %c2_i32 : i32
    %423 = arith.extui %422 : i1 to i32
    %c0_i32_234 = arith.constant 0 : i32
    %424 = arith.cmpi ne, %423, %c0_i32_234 : i32
    scf.if %424 {
      %425 = arith.truncf %419 : vector<8x256xf32> to vector<8x256xbf16>
      %c0_235 = arith.constant 0 : index
      %c0_236 = arith.constant 0 : index
      %426 = vector.load %arg5[%c0_235, %c0_236] : memref<256x128xbf16, #tpu.memory_space<vmem>>, vector<256x128xbf16>
      %cst_237 = arith.constant dense<0.000000e+00> : vector<8x128xf32>
      %427 = tpu.matmul %425, %426, %cst_237 {dimension_numbers = #tpu.dot_dimension_numbers<[1], [0], [0], [1], [0, 0, 1, 1], [], []>} : vector<8x256xbf16>, vector<256x128xbf16>, vector<8x128xf32> -> vector<8x128xf32>
      %c0_238 = arith.constant 0 : index
      %c0_239 = arith.constant 0 : index
      %428 = vector.load %arg6[%c0_238, %c0_239] : memref<1x128xf32, #tpu.memory_space<vmem>>, vector<1x128xf32>
      %429 = vector.broadcast %428 : vector<1x128xf32> to vector<8x128xf32>
      %430 = arith.addf %427, %429 : vector<8x128xf32>
      %cst_240 = arith.constant 0.000000e+00 : f32
      %431 = vector.broadcast %cst_240 : f32 to vector<8x128xf32>
      %432 = arith.cmpf ogt, %430, %431 : vector<8x128xf32>
      %cst_241 = arith.constant 0.00999999977 : f32
      %433 = vector.broadcast %cst_241 : f32 to vector<8x128xf32>
      %434 = arith.mulf %433, %430 : vector<8x128xf32>
      %435 = arith.select %432, %430, %434 : vector<8x128xi1>, vector<8x128xf32>
      %436 = arith.truncf %435 : vector<8x128xf32> to vector<8x128xbf16>
      %c0_242 = arith.constant 0 : index
      %c0_243 = arith.constant 0 : index
      %437 = vector.load %arg7[%c0_242, %c0_243] : memref<128x128xbf16, #tpu.memory_space<vmem>>, vector<128x128xbf16>
      %cst_244 = arith.constant dense<0.000000e+00> : vector<8x128xf32>
      %438 = tpu.matmul %436, %437, %cst_244 {dimension_numbers = #tpu.dot_dimension_numbers<[1], [0], [0], [1], [0, 0, 1, 1], [], []>} : vector<8x128xbf16>, vector<128x128xbf16>, vector<8x128xf32> -> vector<8x128xf32>
      %c0_245 = arith.constant 0 : index
      %c0_246 = arith.constant 0 : index
      %439 = vector.load %arg8[%c0_245, %c0_246] : memref<1x128xf32, #tpu.memory_space<vmem>>, vector<1x128xf32>
      %440 = vector.broadcast %439 : vector<1x128xf32> to vector<8x128xf32>
      %441 = arith.addf %438, %440 : vector<8x128xf32>
      %cst_247 = arith.constant 5.000000e-01 : f32
      %442 = vector.broadcast %cst_247 : f32 to vector<8x128xf32>
      %443 = arith.mulf %442, %441 : vector<8x128xf32>
      %444 = math.tanh %443 : vector<8x128xf32>
      %cst_248 = arith.constant 5.000000e-01 : f32
      %445 = vector.broadcast %cst_248 : f32 to vector<8x128xf32>
      %446 = arith.mulf %445, %444 : vector<8x128xf32>
      %cst_249 = arith.constant 5.000000e-01 : f32
      %447 = vector.broadcast %cst_249 : f32 to vector<8x128xf32>
      %448 = arith.addf %446, %447 : vector<8x128xf32>
      %c0_250 = arith.constant 0 : index
      %c0_251 = arith.constant 0 : index
      %449 = vector.load %arg9[%c0_250, %c0_251] : memref<8x128xf32, #tpu.memory_space<vmem>>, vector<8x128xf32>
      tpu.vector_store %arg9[%c0_250, %c0_251], %448 {strides = array<i32>} : memref<8x128xf32, #tpu.memory_space<vmem>>, vector<8x128xf32>,
    } else {
    }
    return
  }
  func.func @transform_0(%arg0: i32) -> (i32, i32) {
    %c0_i32 = arith.constant 0 : i32
    %c0_i32_0 = arith.constant 0 : i32
    %c0_i32_1 = arith.constant 0 : i32
    return %c0_i32, %c0_i32_0 : i32, i32
  }
  func.func @transform_1(%arg0: i32) -> (i32, i32, i32) {
    %c0_i32 = arith.constant 0 : i32
    %c0_i32_0 = arith.constant 0 : i32
    %c0_i32_1 = arith.constant 0 : i32
    return %arg0, %c0_i32, %c0_i32_0 : i32, i32, i32
  }
  func.func @transform_2(%arg0: i32) -> (i32, i32, i32) {
    %c0_i32 = arith.constant 0 : i32
    %c0_i32_0 = arith.constant 0 : i32
    %c0_i32_1 = arith.constant 0 : i32
    return %arg0, %c0_i32, %c0_i32_0 : i32, i32, i32
  }
  func.func @transform_3(%arg0: i32) -> (i32, i32, i32) {
    %c0_i32 = arith.constant 0 : i32
    %c0_i32_0 = arith.constant 0 : i32
    %c0_i32_1 = arith.constant 0 : i32
    return %arg0, %c0_i32, %c0_i32_0 : i32, i32, i32
  }
  func.func @transform_4(%arg0: i32) -> (i32, i32) {
    %c0_i32 = arith.constant 0 : i32
    %c0_i32_0 = arith.constant 0 : i32
    %c0_i32_1 = arith.constant 0 : i32
    return %c0_i32, %c0_i32_0 : i32, i32
  }
  func.func @transform_5(%arg0: i32) -> (i32, i32) {
    %c0_i32 = arith.constant 0 : i32
    %c0_i32_0 = arith.constant 0 : i32
    %c0_i32_1 = arith.constant 0 : i32
    return %c0_i32, %c0_i32_0 : i32, i32
  }
  func.func @transform_6(%arg0: i32) -> (i32, i32) {
    %c0_i32 = arith.constant 0 : i32
    %c0_i32_0 = arith.constant 0 : i32
    %c0_i32_1 = arith.constant 0 : i32
    return %c0_i32, %c0_i32_0 : i32, i32
  }
  func.func @transform_7(%arg0: i32) -> (i32, i32) {
    %c0_i32 = arith.constant 0 : i32
    %c0_i32_0 = arith.constant 0 : i32
    %c0_i32_1 = arith.constant 0 : i32
    return %c0_i32, %c0_i32_0 : i32, i32
  }
  func.func @transform_8(%arg0: i32) -> (i32, i32) {
    %c0_i32 = arith.constant 0 : i32
    %c0_i32_0 = arith.constant 0 : i32
    %c0_i32_1 = arith.constant 0 : i32
    return %c0_i32, %c0_i32_0 : i32, i32
  }
}

</mosaic_0001>

<bundles_post_ra>
// kernel: lstm_model_forward.1
= control target key start
LH: loop header
LB: loop body
LE: loop exit
PB: predicated region body
PF: predicated region fallthrough
CT: control target
= control target key end

     0   :  { %s14997_s0 = inlined_call_operand.vmem [shape: bf16[64,256], index: 0, kind: input, shape index: {}]   ;;  %s14998_s1 = inlined_call_operand.hbm [shape: bf16[3,256,1024], index: 1, kind: input, shape index: {}]   ;;  %s14999_s2 = inlined_call_operand.hbm [shape: bf16[3,256,1024], index: 2, kind: input, shape index: {}]   ;;  %s15000_s3 = inlined_call_operand.hbm [shape: f32[3,1,1024], index: 3, kind: input, shape index: {}]   ;;  %s15001_s4 = inlined_call_operand.hbm [shape: bf16[256,128], index: 4, kind: input, shape index: {}]   ;;  %s15002_s5 = inlined_call_operand.hbm [shape: f32[1,128], index: 5, kind: input, shape index: {}]   ;;  %s15003_s6 = inlined_call_operand.hbm [shape: bf16[128,128], index: 6, kind: input, shape index: {}]   ;;  %s15004_s7 = inlined_call_operand.hbm [shape: f32[1,128], index: 7, kind: input, shape index: {}]   ;;  %s15005_s8 = inlined_call_operand.vmem [shape: f32[8,128], index: 8, kind: output, shape index: {}]  }
   0x1   :  { %15247 = sst [smem:[#allocation153_spill]] %s14999_s2 }
   0x2   :  { %15248 = sst [smem:[#allocation154_spill]] %s15001_s4 }
   0x3   :  { %15249 = sst [smem:[#allocation155_spill]] %s15003_s6 }
   0x4   :  { %15250 = sst [smem:[#allocation156_spill]] %s15005_s8 }
   0x5   :  { %13 = vsyncpa [#allocation5], 0 }
   0x6   :  { %15 = vsyncpa [#allocation5 + $0x1], 0 }
   0x7   :  { %16 = vsyncpa [#allocation7], 0 }
   0x8   :  { %18 = vsyncpa [#allocation7 + $0x1], 0 }
   0x9   :  { %19 = vsyncpa [#allocation10], 0 }
   0xa   :  { %20 = vsyncpa [#allocation13], 0  ;;  %s11894_s27 = smov 0   ;;  %s11896_s28 = smov 0  }
   0xb   :  { %s11898_s29 = smov 0   ;;  %s11900_s30 = smov 0  }
   0xc LB: > { %15251 = sst [smem:[#allocation19_spill]] %s11829_s29  ;;  %s11913_s9 = sadd.s32 4294967295, %s11833_s30   ;;  %s11833_s30 = sphi %s11900_s30, %s15840_s30   ;;  %s11829_s29 = sphi %s11898_s29, %s15842_s29   ;;  %s11825_s28 = sphi %s11896_s28, %s15844_s28   ;;  %s11821_s27 = sphi %s11894_s27, %s15843_s27  }
   0xd   : > { %p67_p0 = scmp.ne.s32.totalorder %s11825_s28, %s11821_s27  ;;  %p15006_p1 = scmp.eq.s32.totalorder %s11913_s9, 0 }
   0xe   : > { %p10023_p2 = scmp.ge.s32.totalorder %s11833_s30, 1  ;;  %p235_p3 = scmp.lt.s32.totalorder %s11833_s30, 4 }
   0xf   : > { %p11922_p5 = por %p15006_p1, %p67_p0  ;;  %s11835_s12 = smov [#allocation9]  }
  0x10   : > { %p11926_p6 = pnand %p10023_p2, %p235_p3  ;;  %s250_s13 = sshll.u32 %s11835_s12, 4  ;;  %s251_s13 = int_to_ptr.vmem [resolvable:$true] %s250_s13 }
  0x11   : > { %s15252_s10 = scalar_select %p11922_p5, 1, 0 }
  0x12   : > { %s15253_s11 = scalar_select %p11926_p6, 1, 0 }
  0x13   : > { %p11312_p7 = pneg %p11926_p6  ;;  %s11836_s15 = smov [#allocation12]  }
  0x14   : > { %s274_s16 = sshll.u32 %s11836_s15, 4  ;;  %s15255_s4 = sld [smem:[#allocation154_spill]]  ;;  %s11938_s16 = int_to_ptr.vmem [resolvable:$true] %s274_s16 }
  0x15   : > { %p11934_p8 = pnand %p11312_p7, %p15006_p1 }
  0x17   : > { %s15254_s14 = scalar_select %p11934_p8, 1, 0 }
  0x18   : > { %p11948_p10 = pneg %p11934_p8 }
  0x1a   : > { %s11585_s19 = scalar_lea.hbm %s15255_s4, 2048 }
  0x1b   : > { %p11586_p9 = scmp.ne.s32.totalorder %s15255_s4, %s11585_s19  ;;  %p11592_p13 = scmp.lt.u32.totalorder %s11585_s19, %s15255_s4 }
  0x1c   : > { %s15256_s22 = scalar_select %p11948_p10, 1, 0 }
  0x1d   : > { %p11588_p11 = pnand %p11948_p10, %p11586_p9 }
  0x1f   : > { %p11589_p12 = pneg %p11588_p11 }
  0x21   : > { %p11594_p0 = pnand %p11592_p13, %p11589_p12 }
  0x23   : > { %11597 = shalt.err (!%p11594_p0)
}
  0x24   : > { %s11598_s25 = scalar_lea.vmem %s251_s13, 2048  ;;  %p11606_p4 = scmp.lt.s32.totalorder %s251_s13, %s251_s13 }
  0x25   : > { %p11599_p2 = scmp.ne.s32.totalorder %s251_s13, %s11598_s25  ;;  %p11607_p1 = scmp.lt.s32.totalorder %s11598_s25, %s11598_s25 }
  0x27   : > { %p11601_p3 = pnand %p11599_p2, %p11948_p10  ;;  %p11608_p5 = por %p11607_p1, %p11606_p4 }
  0x29   : > { %p11602_p7 = pneg %p11601_p3 }
  0x2b   : > { %p11609_p6 = pnand %p11608_p5, %p11602_p7 }
  0x2d   : > { %11612 = shalt.err (!%p11609_p6)
}
  0x2e   : > { %s11837_s26 = smov 64   ;;  %s11838_s27 = smov 4  }
  0x2f   : > { %11315 = dma.hbm_to_vmem [thread:$0]  (!%p11934_p8), %s15255_s4, 2048, %s251_s13, [#allocation10], %s11837_s26, %s11837_s26, %s11838_s27  }
  0x30   : > { %s15257_s6 = sld [smem:[#allocation155_spill]] }
  0x36   : > { %s11613_s19 = scalar_lea.hbm %s15257_s6, 1024 }
  0x37   : > { %p11614_p9 = scmp.ne.s32.totalorder %s15257_s6, %s11613_s19  ;;  %p11620_p5 = scmp.lt.u32.totalorder %s11613_s19, %s15257_s6 }
  0x39   : > { %p11616_p1 = pnand %p11614_p9, %p11948_p10 }
  0x3b   : > { %p11617_p4 = pneg %p11616_p1 }
  0x3d   : > { %p11622_p6 = pnand %p11620_p5, %p11617_p4 }
  0x3f   : > { %11625 = shalt.err (!%p11622_p6)
}
  0x40   : > { %s11626_s13 = scalar_lea.vmem %s11938_s16, 1024  ;;  %p11634_p0 = scmp.lt.s32.totalorder %s11938_s16, %s11938_s16 }
  0x41   : > { %p11627_p11 = scmp.ne.s32.totalorder %s11938_s16, %s11626_s13  ;;  %p11635_p2 = scmp.lt.s32.totalorder %s11626_s13, %s11626_s13 }
  0x43   : > { %p11629_p12 = pnand %p11627_p11, %p11948_p10  ;;  %p11636_p3 = por %p11635_p2, %p11634_p0 }
  0x45   : > { %p11630_p13 = pneg %p11629_p12 }
  0x47   : > { %p11637_p7 = pnand %p11636_p3, %p11630_p13 }
  0x49   : > { %11640 = shalt.err (!%p11637_p7)
}
  0x4a   : > { %11321 = dma.hbm_to_vmem [thread:$0]  (!%p11934_p8), %s15257_s6, 1024, %s11938_s16, [#allocation13], %s11837_s26, %s11837_s26, %s11838_s27  }
  0x4b   : > { %s11988_s15 = sadd.s32 1, %s11833_s30   ;;  %s54_s17 = sadd.s32 1, %s11829_s29 }
  0x4c   : > { %15258 = sst [smem:[#allocation20_spill]] %s11988_s15  ;;  %s51_s18 = ssub.s32 %s11833_s30, %s11988_s15 }
  0x4d   : > { %p61_p9 = scmp.ne.s32.totalorder %s11829_s29, %s11825_s28  ;;  %p52_p1 = scmp.eq.s32.totalorder %s51_s18, 0 }
  0x4e   : > { %p62_p4 = scmp.eq.s32.totalorder %s11833_s30, 0  ;;  %p11339_p5 = scmp.lt.s32.totalorder %s11833_s30, 3 }
  0x4f   : > { %s11998_s19 = sand.u32 1, %s11829_s29   ;;  %s15010_s23 = sshll.u32 %s11833_s30, 14 }
  0x50   : > { %s12001_s20 = scalar_select %p52_p1, %s11829_s29, %s54_s17  }
  0x51   : > { %p63_p6 = por %p62_p4, %p61_p9  ;;  %s15009_s21 = sshll.u32 %s11998_s19, 10 }
  0x52   : > { %15259 = sst [smem:[#allocation21_spill]] %s12001_s20  ;;  %s320_s26 = sand.u32 1, %s11833_s30  }
  0x53   : > { %p12005_p11 = pnand %p11339_p5, %p63_p6  ;;  %s15261_s2 = sld [smem:[#allocation153_spill]] }
  0x54   : > { %s324_s25 = scalar_lea.vmem [#allocation6], %s15009_s21  ;;  %s12021_s17 = scalar_lea.sflag [#allocation7], %s320_s26 }
  0x55   : > { %s15260_s16 = scalar_select %p12005_p11, 1, 0 }
  0x56   : > { %s331_s12 = sshll.u32 %s324_s25, 4  ;;  %p12027_p13 = pneg %p12005_p11  ;;  %s12019_s12 = int_to_ptr.vmem [resolvable:$true] %s331_s12 }
  0x58   : > { %s15262_s4 = scalar_select %p12027_p13, 1, 0 }
  0x59   : > { %s12015_s13 = scalar_lea.hbm %s15261_s2, %s15010_s23  ;;  %s11646_s21 = scalar_lea.hbm %s15261_s2, 49152 }
  0x5a   : > { %s11641_s18 = scalar_lea.hbm %s12015_s13, 16384  ;;  %p11647_p3 = scmp.lt.u32.totalorder %s12015_s13, %s15261_s2 }
  0x5b   : > { %p11642_p12 = scmp.ne.s32.totalorder %s12015_s13, %s11641_s18  ;;  %p11648_p7 = scmp.lt.u32.totalorder %s11646_s21, %s11641_s18 }
  0x5c   : > { %p11650_p1 = scmp.lt.u32.totalorder %s11641_s18, %s12015_s13 }
  0x5d   : > { %p11644_p0 = pnand %p12027_p13, %p11642_p12  ;;  %p11649_p9 = por %p11648_p7, %p11647_p3 }
  0x5f   : > { %p11645_p2 = pneg %p11644_p0  ;;  %p11651_p4 = por %p11650_p1, %p11649_p9 }
  0x61   : > { %p11652_p5 = pnand %p11651_p4, %p11645_p2 }
  0x63   : > { %11655 = shalt.err (!%p11652_p5)
}
  0x64   : > { %s11656_s26 = scalar_lea.vmem %s12019_s12, 16384  ;;  %s11839_s27 = smov [#allocation6]  }
  0x65   : > { %p11657_p6 = scmp.ne.s32.totalorder %s12019_s12, %s11656_s26  ;;  %s11661_s24 = sshll.u32 %s11839_s27, 4  ;;  %s11662_s24 = int_to_ptr.vmem [resolvable:$false] %s11661_s24 }
  0x66   : > { %s11663_s23 = scalar_lea.vmem %s11662_s24, 32768  ;;  %p11664_p8 = scmp.lt.s32.totalorder %s12019_s12, %s11662_s24 }
  0x67   : > { %p11659_p12 = pnand %p11657_p6, %p12027_p13  ;;  %p11665_p10 = scmp.lt.s32.totalorder %s11663_s23, %s11656_s26 }
  0x69   : > { %p11660_p0 = pneg %p11659_p12  ;;  %p11666_p3 = por %p11665_p10, %p11664_p8 }
  0x6b   : > { %p11667_p7 = pnand %p11666_p3, %p11660_p0 }
  0x6d   : > { %11670 = shalt.err (!%p11667_p7)
}
  0x6e   : > { %s11840_s21 = smov 512   ;;  %s11841_s18 = smov 32  }
  0x6f   : > { %11331 = dma.hbm_to_vmem [thread:$0]  (!%p12005_p11), %s12015_s13, 16384, %s12019_s12, %s12021_s17, %s11840_s21, %s11840_s21, %s11841_s18  }
  0x70   : > { %s11842_s25 = smov [#allocation11]   ;;  %s11843_s24 = smov [#allocation14]  }
  0x71   : > { %s264_s27 = sshll.u32 %s11842_s25, 4  ;;  %s288_s26 = sshll.u32 %s11843_s24, 4  ;;  %s265_s27 = int_to_ptr.vmem [resolvable:$true] %s264_s27  ;;  %s289_s26 = int_to_ptr.vmem [resolvable:$true] %s288_s26 }
  0x72   : > { %s11671_s6 = scalar_lea.hbm %s15002_s5, 16  ;;  %p15263_p10 = scmp.ne.s32.totalorder %s15256_s22, 0 }
  0x73   : > { %p11672_p8 = scmp.ne.s32.totalorder %s15002_s5, %s11671_s6  ;;  %p11678_p1 = scmp.lt.u32.totalorder %s11671_s6, %s15002_s5 }
  0x75   : > { %p11674_p2 = pnand %p11672_p8, %p15263_p10 }
  0x77   : > { %p11675_p9 = pneg %p11674_p2 }
  0x79   : > { %p11680_p4 = pnand %p11678_p1, %p11675_p9 }
  0x7b   : > { %11683 = shalt.err (!%p11680_p4)
}
  0x7c   : > { %s11684_s13 = scalar_lea.vmem %s265_s27, 16  ;;  %s11691_s2 = scalar_lea.vmem %s265_s27, 32 }
  0x7d   : > { %p11685_p5 = scmp.ne.s32.totalorder %s265_s27, %s11684_s13  ;;  %p11692_p0 = scmp.lt.s32.totalorder %s265_s27, %s265_s27 }
  0x7e   : > { %p11693_p3 = scmp.lt.s32.totalorder %s11691_s2, %s11684_s13 }
  0x7f   : > { %p11687_p6 = pnand %p11685_p5, %p15263_p10 }
  0x80   : > { %p11694_p7 = por %p11693_p3, %p11692_p0 }
  0x81   : > { %p11688_p12 = pneg %p11687_p6 }
  0x83   : > { %p11695_p11 = pnand %p11694_p7, %p11688_p12 }
  0x85   : > { %11698 = shalt.err (!%p11695_p11)
}
  0x86   : > { %p15264_p8 = scmp.ne.s32.totalorder %s15254_s14, 0  ;;  %s11699_s15 = scalar_lea.hbm %s15004_s7, 16 }
  0x87   : > { %p11700_p2 = scmp.ne.s32.totalorder %s15004_s7, %s11699_s15  ;;  %p11706_p11 = scmp.lt.u32.totalorder %s11699_s15, %s15004_s7 }
  0x88   : > { %11318 = dma.hbm_to_vmem [thread:$0]  (!%p15264_p8), %s15002_s5, 16, %s265_s27, [#allocation10]  }
  0x89   : > { %p11702_p9 = pnand %p11700_p2, %p15263_p10 }
  0x8b   : > { %p11703_p1 = pneg %p11702_p9 }
  0x8d   : > { %p11708_p4 = pnand %p11706_p11, %p11703_p1 }
  0x8f   : > { %11711 = shalt.err (!%p11708_p4)
}
  0x90   : > { %s11712_s13 = scalar_lea.vmem %s289_s26, 16  ;;  %s11719_s27 = scalar_lea.vmem %s289_s26, 32 }
  0x91   : > { %p11713_p5 = scmp.ne.s32.totalorder %s289_s26, %s11712_s13  ;;  %p11720_p0 = scmp.lt.s32.totalorder %s289_s26, %s289_s26 }
  0x92   : > { %p11721_p3 = scmp.lt.s32.totalorder %s11719_s27, %s11712_s13 }
  0x93   : > { %p11715_p6 = pnand %p11713_p5, %p15263_p10 }
  0x94   : > { %p11722_p7 = por %p11721_p3, %p11720_p0 }
  0x95   : > { %p11716_p12 = pneg %p11715_p6 }
  0x97   : > { %p11723_p13 = pnand %p11722_p7, %p11716_p12 }
  0x99   : > { %11726 = shalt.err (!%p11723_p13)
}
  0x9a   : > { %11324 = dma.hbm_to_vmem [thread:$0]  (!%p15264_p8), %s15004_s7, 16, %s289_s26, [#allocation13]  }
  0x9b   : > { %s15265_s22 = sshll.u32 %s11833_s30, 14  ;;  %s15266_s15 = sshll.u32 %s11998_s19, 10 }
  0x9c   : > { %s12095_s8 = scalar_lea.hbm %s14998_s1, %s15265_s22  ;;  %s303_s14 = scalar_lea.vmem [#allocation4], %s15266_s15 }
  0x9d   : > { %s310_s12 = sshll.u32 %s303_s14, 4  ;;  %s10035_s25 = sshll.u32 %s11998_s19, 3  ;;  %s12100_s12 = int_to_ptr.vmem [resolvable:$true] %s310_s12 }
  0x9e   : > { %s300_s24 = scalar_lea.sflag [#allocation5], %s11998_s19  ;;  %s11727_s23 = scalar_lea.hbm %s12095_s8, 16384 }
  0x9f   : > { %p11728_p13 = scmp.ne.s32.totalorder %s12095_s8, %s11727_s23  ;;  %p15267_p10 = scmp.ne.s32.totalorder %s15262_s4, 0 }
  0xa0   : > { %s11732_s27 = scalar_lea.hbm %s14998_s1, 49152  ;;  %p11733_p9 = scmp.lt.u32.totalorder %s12095_s8, %s14998_s1 }
  0xa1   : > { %p11730_p8 = pnand %p11728_p13, %p15267_p10  ;;  %p11734_p1 = scmp.lt.u32.totalorder %s11732_s27, %s11727_s23 }
  0xa2   : > { %p11736_p4 = scmp.lt.u32.totalorder %s11727_s23, %s12095_s8 }
  0xa3   : > { %p11731_p2 = pneg %p11730_p8  ;;  %p11735_p11 = por %p11734_p1, %p11733_p9 }
  0xa5   : > { %p11737_p5 = por %p11736_p4, %p11735_p11 }
  0xa7   : > { %p11738_p6 = pnand %p11737_p5, %p11731_p2 }
  0xa9   : > { %11741 = shalt.err (!%p11738_p6)
}
  0xaa   : > { %s11742_s22 = scalar_lea.vmem %s12100_s12, 16384  ;;  %s11844_s20 = smov [#allocation4]  }
  0xab   : > { %p11743_p12 = scmp.ne.s32.totalorder %s12100_s12, %s11742_s22  ;;  %s11747_s6 = sshll.u32 %s11844_s20, 4  ;;  %s11748_s6 = int_to_ptr.vmem [resolvable:$false] %s11747_s6 }
  0xac   : > { %s11749_s15 = scalar_lea.vmem %s11748_s6, 32768  ;;  %p11750_p7 = scmp.lt.s32.totalorder %s12100_s12, %s11748_s6 }
  0xad   : > { %p11745_p0 = pnand %p11743_p12, %p15267_p10  ;;  %p11751_p13 = scmp.lt.s32.totalorder %s11749_s15, %s11742_s22 }
  0xaf   : > { %p11746_p3 = pneg %p11745_p0  ;;  %p11752_p8 = por %p11751_p13, %p11750_p7 }
  0xb1   : > { %p11753_p9 = pnand %p11752_p8, %p11746_p3 }
  0xb3   : > { %11756 = shalt.err (!%p11753_p9)
}
  0xb4   : > { %p15268_p2 = scmp.ne.s32.totalorder %s15260_s16, 0  ;;  %s11238_s14 = sshll.u32 %s11833_s30, 7 }
  0xb5   : > { %s345_s23 = scalar_lea.vmem [#allocation8], %s10035_s25  ;;  %s351_s2 = scalar_lea.hbm %s15000_s3, %s11238_s14 }
  0xb6   : > { %11328 = dma.hbm_to_vmem [thread:$0]  (!%p15268_p2), %s12095_s8, 16384, %s12100_s12, %s300_s24, %s11840_s21, %s11840_s21, %s11841_s18  }
  0xb7   : > { %s353_s26 = sshll.u32 %s345_s23, 4  ;;  %s11757_s29 = scalar_lea.hbm %s351_s2, 128  ;;  %s354_s26 = int_to_ptr.vmem [resolvable:$true] %s353_s26 }
  0xb8   : > { %p11758_p1 = scmp.ne.s32.totalorder %s351_s2, %s11757_s29  ;;  %s11762_s6 = scalar_lea.hbm %s15000_s3, 384 }
  0xb9   : > { %p11763_p5 = scmp.lt.u32.totalorder %s351_s2, %s15000_s3  ;;  %p11764_p6 = scmp.lt.u32.totalorder %s11762_s6, %s11757_s29 }
  0xba   : > { %p11760_p11 = pnand %p11758_p1, %p15267_p10  ;;  %p11766_p0 = scmp.lt.u32.totalorder %s11757_s29, %s351_s2 }
  0xbb   : > { %p11765_p12 = por %p11764_p6, %p11763_p5 }
  0xbc   : > { %p11761_p4 = pneg %p11760_p11 }
  0xbd   : > { %p11767_p3 = por %p11766_p0, %p11765_p12 }
  0xbf   : > { %p11768_p7 = pnand %p11767_p3, %p11761_p4 }
  0xc1   : > { %11771 = shalt.err (!%p11768_p7)
}
  0xc2   : > { %s11772_s30 = scalar_lea.vmem %s354_s26, 128  ;;  %s11845_s19 = smov [#allocation8]  }
  0xc3   : > { %p11773_p13 = scmp.ne.s32.totalorder %s354_s26, %s11772_s30  ;;  %s11777_s18 = sshll.u32 %s11845_s19, 4  ;;  %s11778_s18 = int_to_ptr.vmem [resolvable:$false] %s11777_s18 }
  0xc4   : > { %s11779_s8 = scalar_lea.vmem %s11778_s18, 256  ;;  %p11780_p1 = scmp.lt.s32.totalorder %s354_s26, %s11778_s18 }
  0xc5   : > { %p11775_p8 = pnand %p11773_p13, %p15267_p10  ;;  %p11781_p11 = scmp.lt.s32.totalorder %s11779_s8, %s11772_s30 }
  0xc7   : > { %p11776_p9 = pneg %p11775_p8  ;;  %p11782_p2 = por %p11781_p11, %p11780_p1 }
  0xc9   : > { %p11783_p5 = pnand %p11782_p2, %p11776_p9 }
  0xcb   : > { %11786 = shalt.err (!%p11783_p5)
}
  0xcc   : > { %p15269_p6 = scmp.ne.s32.totalorder %s15260_s16, 0  ;;  %p15270_p4 = scmp.ne.s32.totalorder %s15253_s11, 0 }
  0xce   : > { %11334 = dma.hbm_to_vmem [thread:$0]  (!%p15269_p6), %s351_s2, 128, %s354_s26, %s12021_s17  }
  0xcf   : > { %362 = sbr.rel (%p15270_p4) target bundleno = 3366 (0xd26), region = 52 }
  0xd6   : > { %s364_s4 = sand.u32 1, %s11825_s28   ;;  %p15271_p10 = scmp.ne.s32.totalorder %s15252_s10, 0 }
  0xd7   : > { %s10039_s12 = sshll.u32 %s364_s4, 10  ;;  %s365_s25 = scalar_lea.sflag [#allocation5], %s364_s4 }
  0xd8   : > { %s12151_s24 = scalar_lea.vmem [#allocation4], %s10039_s12 }
  0xd9   : > { %11804 = dma.done.wait (%p15271_p10), %s365_s25, 16384  }
  0xda   : > { %11806 = vsyncadd (%p15271_p10), %s365_s25, 4294950912  ;;  %s373_s16 = sand.u32 1, %s11913_s9   ;;  %s12158_s17 = scalar_lea.vmem [#allocation6], %s10039_s12 }
  0xdb   : > { %s374_s14 = scalar_lea.sflag [#allocation7], %s373_s16 }
  0xdc   : > { %11808 = dma.done.wait (%p15271_p10), %s374_s14, 16512  }
  0xdd   : > { %11810 = vsyncadd (%p15271_p10), %s374_s14, 4294950784  ;;  %s10041_s11 = sshll.u32 %s364_s4, 3  ;;  %p15272_p2 = scmp.eq.s32.totalorder %s11913_s9, 0 }
  0xde   : > { %s12164_s23 = scalar_lea.vmem [#allocation8], %s10041_s11 }
  0xdf   : > { %11812 = dma.done.wait (%p15272_p2), [#allocation10], 2064   ;;  %p15273_p12 = pmov %p15272_p2 }
  0xe0   : > { %p15274_p0 = pmov %p15272_p2 }
  0xe1   : > { %11814 = vsyncadd (%p15273_p12), [#allocation10], 4294965232 }
  0xe2   : > { %11816 = dma.done.wait (%p15274_p0), [#allocation13], 1040   ;;  %p15275_p3 = pmov %p15274_p0 }
  0xe3   : > { %p15276_p7 = scmp.ne.s32.totalorder %s11913_s9, 0 }
  0xe4   : > { %11818 = vsyncadd (%p15275_p3), [#allocation13], 4294966256  ;;  %v11387_v0 = vld [vmem:[%s14997_s0] ss:$8 sps:$4 sm:$0xff] (!%p15276_p7)   ;;  %v11389_v1 = vld [vmem:[%s14997_s0 + $0x4] ss:$8 sps:$4 sm:$0xff] (!%p15276_p7)  }
  0xe5   : > { %444 = sbr.rel (%p15276_p7) target bundleno = 236 (0xec), region = 84  ;;  %493 = vst [vmem:[#allocation2] sm:$0xff] (!%p15276_p7), %v11387_v0  ;;  %v11390_v2 = vld [vmem:[%s14997_s0 + $0x10] ss:$8 sps:$4 sm:$0xff] (!%p15276_p7)   ;;  %v11392_v3 = vld [vmem:[%s14997_s0 + $0x14] ss:$8 sps:$4 sm:$0xff] (!%p15276_p7)  }
  0xe6   : > { %494 = vst [vmem:[#allocation2 + $0x8] sm:$0xff] (!%p15276_p7), %v11389_v1  ;;  %v11393_v4 = vld [vmem:[%s14997_s0 + $0x20] ss:$8 sps:$4 sm:$0xff] (!%p15276_p7)   ;;  %v11395_v5 = vld [vmem:[%s14997_s0 + $0x24] ss:$8 sps:$4 sm:$0xff] (!%p15276_p7)   ;;  %495 = vst [vmem:[#allocation2 + $0x10] sm:$0xff] (!%p15276_p7), %v11390_v2 }
  0xe7   : > { %496 = vst [vmem:[#allocation2 + $0x18] sm:$0xff] (!%p15276_p7), %v11392_v3  ;;  %v11396_v6 = vld [vmem:[%s14997_s0 + $0x30] ss:$8 sps:$4 sm:$0xff] (!%p15276_p7)   ;;  %497 = vst [vmem:[#allocation2 + $0x20] sm:$0xff] (!%p15276_p7), %v11393_v4  ;;  %v11398_v7 = vld [vmem:[%s14997_s0 + $0x34] ss:$8 sps:$4 sm:$0xff] (!%p15276_p7)  }
  0xe8   : > { %498 = vst [vmem:[#allocation2 + $0x28] sm:$0xff] (!%p15276_p7), %v11395_v5  ;;  %499 = vst [vmem:[#allocation2 + $0x30] sm:$0xff] (!%p15276_p7), %v11396_v6 }
  0xe9   : > { %500 = vst [vmem:[#allocation2 + $0x38] sm:$0xff] (!%p15276_p7), %v11398_v7 }
  0xec PF: > { %v509_v8 = vld [vmem:[%s12151_s24] sm:$0xff]  ;;  %v510_v10 = vld [vmem:[%s12151_s24 + $0x8] sm:$0xff]  ;;  %p11207_p13 = scmp.ne.s32.totalorder %s11913_s9, 2 }
  0xed   : > { %v513_v9 = vld [vmem:[%s12151_s24 + $0x20] sm:$0xff]  ;;  %v514_v12 = vld [vmem:[%s12151_s24 + $0x28] sm:$0xff]  ;;  %vm11848_vm0 = vmmov (!%p11207_p13), 0   ;;  %s15839_s25 = sld [smem:[#allocation156_spill]] (!%p11207_p13) }
  0xee   : > { %v10056_v11 = vcombine.high %v509_v8, %v513_v9  ;;  %v10055_v13 = vcombine.low %v509_v8, %v513_v9  ;;  %v517_v14 = vld [vmem:[%s12151_s24 + $0x40] sm:$0xff]  ;;  %v10058_v16 = vcombine.high %v510_v10, %v514_v12  ;;  %v10057_v17 = vcombine.low %v510_v10, %v514_v12  ;;  %v518_v19 = vld [vmem:[%s12151_s24 + $0x48] sm:$0xff] }
  0xef   : > { %v521_v15 = vld [vmem:[%s12151_s24 + $0x60] sm:$0xff]  ;;  %v522_v20 = vld [vmem:[%s12151_s24 + $0x68] sm:$0xff] }
  0xf0   : > { %v10064_v18 = vcombine.high %v517_v14, %v521_v15  ;;  %v525_v21 = vld [vmem:[%s12151_s24 + $0x80] sm:$0xff]  ;;  %1319 = vmatprep.subr.bf16.mxu0 %v10056_v11  ;;  %v10066_v22 = vcombine.high %v518_v19, %v522_v20  ;;  %v526_v24 = vld [vmem:[%s12151_s24 + $0x88] sm:$0xff]  ;;  %1392 = vmatprep.subr.bf16.mxu1 %v10058_v16  ;;  %v10063_v26 = vcombine.low %v517_v14, %v521_v15 }
  0xf1   : > { %v529_v23 = vld [vmem:[%s12151_s24 + $0xa0] sm:$0xff]  ;;  %v530_v25 = vld [vmem:[%s12151_s24 + $0xa8] sm:$0xff]  ;;  %1320 = vmatpush1.bf16.msra.mxu0 %v10055_v13  ;;  %1393 = vmatpush1.bf16.msra.mxu1 %v10057_v17  ;;  %v10065_v27 = vcombine.low %v518_v19, %v522_v20 }
  0xf2   : > { %1321 = vmatprep.subr.bf16.mxu0 %v10064_v18  ;;  %v10072_v28 = vcombine.high %v525_v21, %v529_v23  ;;  %1394 = vmatprep.subr.bf16.mxu1 %v10066_v22  ;;  %v10074_v29 = vcombine.high %v526_v24, %v530_v25  ;;  %v533_v30 = vld [vmem:[%s12151_s24 + $0xc0] sm:$0xff]  ;;  %v534_v32 = vld [vmem:[%s12151_s24 + $0xc8] sm:$0xff]  ;;  %v10071_v34 = vcombine.low %v525_v21, %v529_v23 }
  0xf3   : > { %v537_v31 = vld [vmem:[%s12151_s24 + $0xe0] sm:$0xff]  ;;  %v538_v33 = vld [vmem:[%s12151_s24 + $0xe8] sm:$0xff]  ;;  %v10073_v35 = vcombine.low %v526_v24, %v530_v25 }
  0xf4   : > { %v10080_v36 = vcombine.high %v533_v30, %v537_v31  ;;  %v10082_v37 = vcombine.high %v534_v32, %v538_v33  ;;  %v541_v38 = vld [vmem:[%s12151_s24 + $0x100] sm:$0xff]  ;;  %v542_v40 = vld [vmem:[%s12151_s24 + $0x108] sm:$0xff]  ;;  %v10079_v42 = vcombine.low %v533_v30, %v537_v31  ;;  %v10081_v43 = vcombine.low %v534_v32, %v538_v33 }
  0xf5   : > { %1322 = vmatpush1.bf16.msra.mxu0 %v10063_v26  ;;  %1395 = vmatpush1.bf16.msra.mxu1 %v10065_v27  ;;  %v545_v39 = vld [vmem:[%s12151_s24 + $0x120] sm:$0xff]  ;;  %v546_v41 = vld [vmem:[%s12151_s24 + $0x128] sm:$0xff] }
  0xf6   : > { %1323 = vmatprep.subr.bf16.mxu0 %v10072_v28  ;;  %1396 = vmatprep.subr.bf16.mxu1 %v10074_v29  ;;  %v10088_v44 = vcombine.high %v541_v38, %v545_v39  ;;  %v10090_v45 = vcombine.high %v542_v40, %v546_v41  ;;  %v549_v46 = vld [vmem:[%s12151_s24 + $0x140] sm:$0xff]  ;;  %v550_v48 = vld [vmem:[%s12151_s24 + $0x148] sm:$0xff]  ;;  %v10087_v50 = vcombine.low %v541_v38, %v545_v39 }
  0xf7   : > { %v553_v47 = vld [vmem:[%s12151_s24 + $0x160] sm:$0xff]  ;;  %v554_v49 = vld [vmem:[%s12151_s24 + $0x168] sm:$0xff]  ;;  %v10089_v51 = vcombine.low %v542_v40, %v546_v41 }
  0xf8   : > { %v10096_v52 = vcombine.high %v549_v46, %v553_v47  ;;  %v10098_v53 = vcombine.high %v550_v48, %v554_v49  ;;  %v557_v54 = vld [vmem:[%s12151_s24 + $0x180] sm:$0xff]  ;;  %v558_v56 = vld [vmem:[%s12151_s24 + $0x188] sm:$0xff]  ;;  %v10095_v58 = vcombine.low %v549_v46, %v553_v47  ;;  %v10097_v59 = vcombine.low %v550_v48, %v554_v49 }
  0xf9   : > { %1324 = vmatpush1.bf16.msra.mxu0 %v10071_v34  ;;  %1397 = vmatpush1.bf16.msra.mxu1 %v10073_v35  ;;  %v561_v55 = vld [vmem:[%s12151_s24 + $0x1a0] sm:$0xff]  ;;  %v562_v57 = vld [vmem:[%s12151_s24 + $0x1a8] sm:$0xff] }
  0xfa   : > { %1325 = vmatprep.subr.bf16.mxu0 %v10080_v36  ;;  %1398 = vmatprep.subr.bf16.mxu1 %v10082_v37  ;;  %v10104_v60 = vcombine.high %v557_v54, %v561_v55  ;;  %v12228_v61 = vld [vmem:[#allocation2 + $0x8] sm:$0xff]  ;;  %v10106_v62 = vcombine.high %v558_v56, %v562_v57  ;;  %v565_v63 = vld [vmem:[%s12151_s24 + $0x1c0] sm:$0xff]  ;;  %v10103_v3 = vcombine.low %v557_v54, %v561_v55 }
  0xfb   : > { %v569_v0 = vld [vmem:[%s12151_s24 + $0x1e0] sm:$0xff]  ;;  %1351 = vmatprep.mubr.bf16.mxu0 %v12228_v61  ;;  %v566_v1 = vld [vmem:[%s12151_s24 + $0x1c8] sm:$0xff]  ;;  %1424 = vmatprep.mubr.bf16.mxu1 %v12228_v61  ;;  %v10105_v4 = vcombine.low %v558_v56, %v562_v57 }
  0xfc   : > { %v570_v2 = vld [vmem:[%s12151_s24 + $0x1e8] sm:$0xff]  ;;  %v10112_v5 = vcombine.high %v565_v63, %v569_v0  ;;  %v573_v7 = vld [vmem:[%s12151_s24 + $0x200] sm:$0xff]  ;;  %v10111_v11 = vcombine.low %v565_v63, %v569_v0 }
  0xfd   : > { %1326 = vmatpush1.bf16.msra.mxu0 %v10079_v42  ;;  %1399 = vmatpush1.bf16.msra.mxu1 %v10081_v43  ;;  %v10114_v6 = vcombine.high %v566_v1, %v570_v2  ;;  %v577_v8 = vld [vmem:[%s12151_s24 + $0x220] sm:$0xff]  ;;  %v574_v9 = vld [vmem:[%s12151_s24 + $0x208] sm:$0xff]  ;;  %v10113_v12 = vcombine.low %v566_v1, %v570_v2 }
  0xfe   : > { %1327 = vmatprep.subr.bf16.mxu0 %v10088_v44  ;;  %1400 = vmatprep.subr.bf16.mxu1 %v10090_v45  ;;  %v578_v10 = vld [vmem:[%s12151_s24 + $0x228] sm:$0xff]  ;;  %v10120_v13 = vcombine.high %v573_v7, %v577_v8  ;;  %v581_v15 = vld [vmem:[%s12151_s24 + $0x240] sm:$0xff]  ;;  %v10119_v19 = vcombine.low %v573_v7, %v577_v8  ;;  %v511_v8 = vld [vmem:[%s12151_s24 + $0x10] sm:$0xff] }
  0xff   : > { %v10122_v14 = vcombine.high %v574_v9, %v578_v10  ;;  %v585_v16 = vld [vmem:[%s12151_s24 + $0x260] sm:$0xff]  ;;  %v582_v17 = vld [vmem:[%s12151_s24 + $0x248] sm:$0xff]  ;;  %v10121_v20 = vcombine.low %v574_v9, %v578_v10  ;;  %v515_v9 = vld [vmem:[%s12151_s24 + $0x30] sm:$0xff] }
 0x100   : > { %v586_v18 = vld [vmem:[%s12151_s24 + $0x268] sm:$0xff]  ;;  %v10128_v21 = vcombine.high %v581_v15, %v585_v16  ;;  %v589_v23 = vld [vmem:[%s12151_s24 + $0x280] sm:$0xff]  ;;  %v10127_v27 = vcombine.low %v581_v15, %v585_v16  ;;  %v512_v10 = vld [vmem:[%s12151_s24 + $0x18] sm:$0xff] }
 0x101   : > { %1328 = vmatpush1.bf16.msra.mxu0 %v10087_v50  ;;  %1401 = vmatpush1.bf16.msra.mxu1 %v10089_v51  ;;  %v10130_v22 = vcombine.high %v582_v17, %v586_v18  ;;  %v593_v24 = vld [vmem:[%s12151_s24 + $0x2a0] sm:$0xff]  ;;  %v590_v25 = vld [vmem:[%s12151_s24 + $0x288] sm:$0xff]  ;;  %v10129_v28 = vcombine.low %v582_v17, %v586_v18  ;;  %v519_v16 = vld [vmem:[%s12151_s24 + $0x50] sm:$0xff] }
 0x102   : > { %1329 = vmatprep.subr.bf16.mxu0 %v10096_v52  ;;  %1402 = vmatprep.subr.bf16.mxu1 %v10098_v53  ;;  %v594_v26 = vld [vmem:[%s12151_s24 + $0x2a8] sm:$0xff]  ;;  %v10136_v29 = vcombine.high %v589_v23, %v593_v24  ;;  %v597_v31 = vld [vmem:[%s12151_s24 + $0x2c0] sm:$0xff]  ;;  %v10135_v35 = vcombine.low %v589_v23, %v593_v24  ;;  %v523_v17 = vld [vmem:[%s12151_s24 + $0x70] sm:$0xff] }
 0x103   : > { %v10138_v30 = vcombine.high %v590_v25, %v594_v26  ;;  %v601_v32 = vld [vmem:[%s12151_s24 + $0x2e0] sm:$0xff]  ;;  %v598_v33 = vld [vmem:[%s12151_s24 + $0x2c8] sm:$0xff]  ;;  %v10137_v36 = vcombine.low %v590_v25, %v594_v26  ;;  %v520_v18 = vld [vmem:[%s12151_s24 + $0x58] sm:$0xff]  ;;  %v10068_v23 = vcombine.high %v519_v16, %v523_v17 }
 0x104   : > { %v602_v34 = vld [vmem:[%s12151_s24 + $0x2e8] sm:$0xff]  ;;  %v10144_v37 = vcombine.high %v597_v31, %v601_v32  ;;  %v605_v39 = vld [vmem:[%s12151_s24 + $0x300] sm:$0xff]  ;;  %v10143_v43 = vcombine.low %v597_v31, %v601_v32  ;;  %v527_v25 = vld [vmem:[%s12151_s24 + $0x90] sm:$0xff] }
 0x105   : > { %1330 = vmatpush1.bf16.msra.mxu0 %v10095_v58  ;;  %1403 = vmatpush1.bf16.msra.mxu1 %v10097_v59  ;;  %v10146_v38 = vcombine.high %v598_v33, %v602_v34  ;;  %v609_v40 = vld [vmem:[%s12151_s24 + $0x320] sm:$0xff]  ;;  %v606_v41 = vld [vmem:[%s12151_s24 + $0x308] sm:$0xff]  ;;  %v10145_v44 = vcombine.low %v598_v33, %v602_v34  ;;  %v531_v26 = vld [vmem:[%s12151_s24 + $0xb0] sm:$0xff] }
 0x106   : > { %1331 = vmatprep.subr.bf16.mxu0 %v10104_v60  ;;  %1404 = vmatprep.subr.bf16.mxu1 %v10106_v62  ;;  %v610_v42 = vld [vmem:[%s12151_s24 + $0x328] sm:$0xff]  ;;  %v10152_v45 = vcombine.high %v605_v39, %v609_v40  ;;  %v613_v47 = vld [vmem:[%s12151_s24 + $0x340] sm:$0xff]  ;;  %v10151_v51 = vcombine.low %v605_v39, %v609_v40  ;;  %v10076_v32 = vcombine.high %v527_v25, %v531_v26  ;;  %v535_v34 = vld [vmem:[%s12151_s24 + $0xd0] sm:$0xff] }
 0x107   : > { %v10154_v46 = vcombine.high %v606_v41, %v610_v42  ;;  %v617_v48 = vld [vmem:[%s12151_s24 + $0x360] sm:$0xff]  ;;  %v614_v49 = vld [vmem:[%s12151_s24 + $0x348] sm:$0xff]  ;;  %v10153_v52 = vcombine.low %v606_v41, %v610_v42  ;;  %v12292_v39 = vld [vmem:[#allocation2 + $0x10] sm:$0xff] }
 0x108   : > { %v618_v50 = vld [vmem:[%s12151_s24 + $0x368] sm:$0xff]  ;;  %v10160_v53 = vcombine.high %v613_v47, %v617_v48  ;;  %v621_v55 = vld [vmem:[%s12151_s24 + $0x380] sm:$0xff]  ;;  %v10159_v59 = vcombine.low %v613_v47, %v617_v48 }
 0x109   : > { %1332 = vmatpush1.bf16.msra.mxu0 %v10103_v3  ;;  %1405 = vmatpush1.bf16.msra.mxu1 %v10105_v4  ;;  %v10162_v54 = vcombine.high %v614_v49, %v618_v50  ;;  %v625_v56 = vld [vmem:[%s12151_s24 + $0x3a0] sm:$0xff]  ;;  %v622_v57 = vld [vmem:[%s12151_s24 + $0x388] sm:$0xff]  ;;  %v10161_v60 = vcombine.low %v614_v49, %v618_v50 }
 0x10a   : > { %1333 = vmatprep.subr.bf16.mxu0 %v10112_v5  ;;  %1406 = vmatprep.subr.bf16.mxu1 %v10114_v6  ;;  %v626_v58 = vld [vmem:[%s12151_s24 + $0x3a8] sm:$0xff]  ;;  %v10168_v62 = vcombine.high %v621_v55, %v625_v56  ;;  %v629_v0 = vld [vmem:[%s12151_s24 + $0x3c0] sm:$0xff]  ;;  %v10167_v4 = vcombine.low %v621_v55, %v625_v56  ;;  %v556_v55 = vld [vmem:[%s12151_s24 + $0x178] sm:$0xff] }
 0x10b   : > { %v10170_v63 = vcombine.high %v622_v57, %v626_v58  ;;  %v633_v1 = vld [vmem:[%s12151_s24 + $0x3e0] sm:$0xff]  ;;  %v630_v2 = vld [vmem:[%s12151_s24 + $0x3c8] sm:$0xff]  ;;  %v10169_v5 = vcombine.low %v622_v57, %v626_v58 }
 0x10c   : > { %v634_v3 = vld [vmem:[%s12151_s24 + $0x3e8] sm:$0xff]  ;;  %v10176_v6 = vcombine.high %v629_v0, %v633_v1  ;;  %v12308_v57 = vld [vmem:[#allocation2 + $0x20] sm:$0xff] }
 0x10d   : > { %1334 = vmatpush1.bf16.msra.mxu0 %v10111_v11  ;;  %1407 = vmatpush1.bf16.msra.mxu1 %v10113_v12  ;;  %v10178_v7 = vcombine.high %v630_v2, %v634_v3  ;;  %v516_v11 = vld [vmem:[%s12151_s24 + $0x38] sm:$0xff]  ;;  %v10175_v12 = vcombine.low %v629_v0, %v633_v1  ;;  %v12299_v47 = vld [vmem:[#allocation2 + $0x28] sm:$0xff] }
 0x10e   : > { %1335 = vmatprep.subr.bf16.mxu0 %v10120_v13  ;;  %1408 = vmatprep.subr.bf16.mxu1 %v10122_v14  ;;  %v10177_v13 = vcombine.low %v630_v2, %v634_v3  ;;  %v10060_v14 = vcombine.high %v511_v8, %v515_v9  ;;  %v10062_v15 = vcombine.high %v512_v10, %v516_v11  ;;  %v560_v0 = vld [vmem:[%s12151_s24 + $0x198] sm:$0xff] }
 0x10f   : > { %v564_v1 = vld [vmem:[%s12151_s24 + $0x1b8] sm:$0xff] }
 0x110   : > { %v12315_v2 = vld [vmem:[#allocation2 + $0x38] sm:$0xff] }
 0x111   : > { %1336 = vmatpush1.bf16.msra.mxu0 %v10119_v19  ;;  %1409 = vmatpush1.bf16.msra.mxu1 %v10121_v20  ;;  %v524_v19 = vld [vmem:[%s12151_s24 + $0x78] sm:$0xff]  ;;  %v12276_v20 = vld [vmem:[#allocation2] sm:$0xff] }
 0x112   : > { %1337 = vmatprep.subr.bf16.mxu0 %v10128_v21  ;;  %1410 = vmatprep.subr.bf16.mxu1 %v10130_v22  ;;  %v10059_v21 = vcombine.low %v511_v8, %v515_v9  ;;  %v10061_v22 = vcombine.low %v512_v10, %v516_v11  ;;  %v10070_v24 = vcombine.high %v520_v18, %v524_v19  ;;  %v571_v8 = vld [vmem:[%s12151_s24 + $0x1f0] sm:$0xff]  ;;  %v568_v9 = vld [vmem:[%s12151_s24 + $0x1d8] sm:$0xff] }
 0x113   : > { %v10069_v31 = vcombine.low %v520_v18, %v524_v19  ;;  %v572_v10 = vld [vmem:[%s12151_s24 + $0x1f8] sm:$0xff] }
 0x114   : > { %v576_v18 = vld [vmem:[%s12151_s24 + $0x218] sm:$0xff] }
 0x115   : > { %1338 = vmatpush1.bf16.msra.mxu0 %v10127_v27  ;;  %1411 = vmatpush1.bf16.msra.mxu1 %v10129_v28  ;;  %v528_v27 = vld [vmem:[%s12151_s24 + $0x98] sm:$0xff] }
 0x116   : > { %1339 = vmatprep.subr.bf16.mxu0 %v10136_v29  ;;  %1412 = vmatprep.subr.bf16.mxu1 %v10138_v30  ;;  %v532_v28 = vld [vmem:[%s12151_s24 + $0xb8] sm:$0xff]  ;;  %v10067_v30 = vcombine.low %v519_v16, %v523_v17  ;;  %v575_v16 = vld [vmem:[%s12151_s24 + $0x210] sm:$0xff] }
 0x117   : > { %v12283_v29 = vld [vmem:[#allocation2 + $0x18] sm:$0xff]  ;;  %v10078_v33 = vcombine.high %v528_v27, %v532_v28  ;;  %v10077_v40 = vcombine.low %v528_v27, %v532_v28  ;;  %v579_v17 = vld [vmem:[%s12151_s24 + $0x230] sm:$0xff] }
 0x118   : > { %v580_v19 = vld [vmem:[%s12151_s24 + $0x238] sm:$0xff] }
 0x119   : > { %1340 = vmatpush1.bf16.msra.mxu0 %v10135_v35  ;;  %1413 = vmatpush1.bf16.msra.mxu1 %v10137_v36  ;;  %v539_v35 = vld [vmem:[%s12151_s24 + $0xf0] sm:$0xff]  ;;  %v536_v36 = vld [vmem:[%s12151_s24 + $0xd8] sm:$0xff] }
 0x11a   : > { %1341 = vmatprep.subr.bf16.mxu0 %v10144_v37  ;;  %1414 = vmatprep.subr.bf16.mxu1 %v10146_v38  ;;  %v540_v37 = vld [vmem:[%s12151_s24 + $0xf8] sm:$0xff]  ;;  %v10075_v38 = vcombine.low %v527_v25, %v531_v26  ;;  %v10084_v41 = vcombine.high %v535_v34, %v539_v35  ;;  %v10083_v48 = vcombine.low %v535_v34, %v539_v35  ;;  %v583_v25 = vld [vmem:[%s12151_s24 + $0x250] sm:$0xff] }
 0x11b   : > { %v10086_v42 = vcombine.high %v536_v36, %v540_v37  ;;  %v10085_v49 = vcombine.low %v536_v36, %v540_v37  ;;  %v587_v26 = vld [vmem:[%s12151_s24 + $0x270] sm:$0xff]  ;;  %v584_v27 = vld [vmem:[%s12151_s24 + $0x258] sm:$0xff] }
 0x11c   : > { %v588_v28 = vld [vmem:[%s12151_s24 + $0x278] sm:$0xff]  ;;  %v591_v34 = vld [vmem:[%s12151_s24 + $0x290] sm:$0xff] }
 0x11d   : > { %1342 = vmatpush1.bf16.msra.mxu0 %v10143_v43  ;;  %1415 = vmatpush1.bf16.msra.mxu1 %v10145_v44  ;;  %v543_v43 = vld [vmem:[%s12151_s24 + $0x110] sm:$0xff]  ;;  %v592_v36 = vld [vmem:[%s12151_s24 + $0x298] sm:$0xff] }
 0x11e   : > { %1343 = vmatprep.subr.bf16.mxu0 %v10152_v45  ;;  %1416 = vmatprep.subr.bf16.mxu1 %v10154_v46  ;;  %v547_v44 = vld [vmem:[%s12151_s24 + $0x130] sm:$0xff]  ;;  %v544_v45 = vld [vmem:[%s12151_s24 + $0x118] sm:$0xff] }
 0x11f   : > { %v548_v46 = vld [vmem:[%s12151_s24 + $0x138] sm:$0xff]  ;;  %v10092_v50 = vcombine.high %v543_v43, %v547_v44  ;;  %v10091_v56 = vcombine.low %v543_v43, %v547_v44  ;;  %v595_v35 = vld [vmem:[%s12151_s24 + $0x2b0] sm:$0xff] }
 0x120   : > { %v10093_v58 = vcombine.low %v544_v45, %v548_v46  ;;  %v596_v37 = vld [vmem:[%s12151_s24 + $0x2b8] sm:$0xff]  ;;  %v603_v43 = vld [vmem:[%s12151_s24 + $0x2f0] sm:$0xff] }
 0x121   : > { %1344 = vmatpush1.bf16.msra.mxu0 %v10151_v51  ;;  %1417 = vmatpush1.bf16.msra.mxu1 %v10153_v52  ;;  %v10094_v51 = vcombine.high %v544_v45, %v548_v46  ;;  %v551_v52 = vld [vmem:[%s12151_s24 + $0x150] sm:$0xff]  ;;  %v600_v44 = vld [vmem:[%s12151_s24 + $0x2d8] sm:$0xff]  ;;  %v10139_v46 = vcombine.low %v591_v34, %v595_v35 }
 0x122   : > { %1345 = vmatprep.subr.bf16.mxu0 %v10160_v53  ;;  %1418 = vmatprep.subr.bf16.mxu1 %v10162_v54  ;;  %v555_v53 = vld [vmem:[%s12151_s24 + $0x170] sm:$0xff]  ;;  %v552_v54 = vld [vmem:[%s12151_s24 + $0x158] sm:$0xff] }
 0x123   : > { %v10099_v3 = vcombine.low %v551_v52, %v555_v53  ;;  %v604_v45 = vld [vmem:[%s12151_s24 + $0x2f8] sm:$0xff] }
 0x125   : > { %1346 = vmatpush1.bf16.msra.mxu0 %v10159_v59  ;;  %1419 = vmatpush1.bf16.msra.mxu1 %v10161_v60  ;;  %v10100_v59 = vcombine.high %v551_v52, %v555_v53  ;;  %v10102_v60 = vcombine.high %v552_v54, %v556_v55  ;;  %v611_v52 = vld [vmem:[%s12151_s24 + $0x330] sm:$0xff]  ;;  %v608_v53 = vld [vmem:[%s12151_s24 + $0x318] sm:$0xff] }
 0x126   : > { %1347 = vmatprep.subr.bf16.mxu0 %v10168_v62  ;;  %1420 = vmatprep.subr.bf16.mxu1 %v10170_v63  ;;  %v559_v62 = vld [vmem:[%s12151_s24 + $0x190] sm:$0xff] }
 0x127   : > { %v563_v63 = vld [vmem:[%s12151_s24 + $0x1b0] sm:$0xff] }
 0x128   : > { %v10107_v11 = vcombine.low %v559_v62, %v563_v63 }
 0x129   : > { %1348 = vmatpush1.bf16.msra.mxu0 %v10167_v4  ;;  %1421 = vmatpush1.bf16.msra.mxu1 %v10169_v5  ;;  %v10101_v4 = vcombine.low %v552_v54, %v556_v55  ;;  %v10108_v5 = vcombine.high %v559_v62, %v563_v63  ;;  %v612_v54 = vld [vmem:[%s12151_s24 + $0x338] sm:$0xff]  ;;  %v619_v62 = vld [vmem:[%s12151_s24 + $0x370] sm:$0xff] }
 0x12a   : > { %1349 = vmatprep.subr.bf16.mxu0 %v10176_v6  ;;  %1422 = vmatprep.subr.bf16.mxu1 %v10178_v7  ;;  %v10110_v6 = vcombine.high %v560_v0, %v564_v1  ;;  %v567_v7 = vld [vmem:[%s12151_s24 + $0x1d0] sm:$0xff]  ;;  %v616_v63 = vld [vmem:[%s12151_s24 + $0x358] sm:$0xff] }
 0x12d   : > { %1350 = vmatpush1.bf16.msra.mxu0 %v10175_v12  ;;  %1423 = vmatpush1.bf16.msra.mxu1 %v10177_v13  ;;  %v12324_v12 = vld [vmem:[#allocation2 + $0x30] sm:$0xff]  ;;  %v10109_v13 = vcombine.low %v560_v0, %v564_v1  ;;  %v620_v0 = vld [vmem:[%s12151_s24 + $0x378] sm:$0xff] }
 0x12e   : > { %1465 = vmatprep.subr.bf16.mxu0 %v10060_v14  ;;  %1538 = vmatprep.subr.bf16.mxu1 %v10062_v15  ;;  %v10116_v14 = vcombine.high %v567_v7, %v571_v8  ;;  %v10118_v15 = vcombine.high %v568_v9, %v572_v10 }
 0x130   : > { %1352 = vmatmul.mubr.bf16.vlgmr.msra.gmra.mrb[0].mxu0 %v12276_v20  ;;  %1425 = vmatmul.mubr.bf16.vlgmr.msra.gmra.mrb[0].mxu1 %v12276_v20 }
 0x131   : > { %1466 = vmatpush1.bf16.msra.mxu0 %v10059_v21  ;;  %1539 = vmatpush1.bf16.msra.mxu1 %v10061_v22  ;;  %v10115_v21 = vcombine.low %v567_v7, %v571_v8  ;;  %v10117_v22 = vcombine.low %v568_v9, %v572_v10  ;;  %v627_v7 = vld [vmem:[%s12151_s24 + $0x3b0] sm:$0xff]  ;;  %v624_v8 = vld [vmem:[%s12151_s24 + $0x398] sm:$0xff] }
 0x132   : > { %1467 = vmatprep.subr.bf16.mxu0 %v10068_v23  ;;  %1540 = vmatprep.subr.bf16.mxu1 %v10070_v24  ;;  %v10124_v23 = vcombine.high %v575_v16, %v579_v17  ;;  %v10126_v24 = vcombine.high %v576_v18, %v580_v19  ;;  %v628_v9 = vld [vmem:[%s12151_s24 + $0x3b8] sm:$0xff] }
 0x133   : > { %1361 = vmatprep.mubr.bf16.mxu0 %v12283_v29  ;;  %1434 = vmatprep.mubr.bf16.mxu1 %v12283_v29 }
 0x135   : > { %1468 = vmatpush1.bf16.msra.mxu0 %v10067_v30  ;;  %1541 = vmatpush1.bf16.msra.mxu1 %v10069_v31  ;;  %v10123_v30 = vcombine.low %v575_v16, %v579_v17  ;;  %v10125_v31 = vcombine.low %v576_v18, %v580_v19  ;;  %v635_v16 = vld [vmem:[%s12151_s24 + $0x3f0] sm:$0xff]  ;;  %v632_v17 = vld [vmem:[%s12151_s24 + $0x3d8] sm:$0xff] }
 0x136   : > { %1469 = vmatprep.subr.bf16.mxu0 %v10076_v32  ;;  %1542 = vmatprep.subr.bf16.mxu1 %v10078_v33  ;;  %v10132_v32 = vcombine.high %v583_v25, %v587_v26  ;;  %v10134_v33 = vcombine.high %v584_v27, %v588_v28  ;;  %v636_v18 = vld [vmem:[%s12151_s24 + $0x3f8] sm:$0xff] }
 0x138   : > { %1362 = vmatmul.mubr.bf16.gmra.mrb[4].mxu0 %v12292_v39  ;;  %1435 = vmatmul.mubr.bf16.gmra.mrb[4].mxu1 %v12292_v39 }
 0x139   : > { %1470 = vmatpush1.bf16.msra.mxu0 %v10075_v38  ;;  %1543 = vmatpush1.bf16.msra.mxu1 %v10077_v40  ;;  %v10131_v38 = vcombine.low %v583_v25, %v587_v26  ;;  %v10140_v40 = vcombine.high %v591_v34, %v595_v35  ;;  %v1684_v25 = vld [vmem:[%s12158_s17 + $0x20] sm:$0xff]  ;;  %v1918_v26 = vld [vmem:[%s12158_s17 + $0x8] sm:$0xff] }
 0x13a   : > { %1471 = vmatprep.subr.bf16.mxu0 %v10084_v41  ;;  %1544 = vmatprep.subr.bf16.mxu1 %v10086_v42  ;;  %v10142_v41 = vcombine.high %v592_v36, %v596_v37  ;;  %v599_v42 = vld [vmem:[%s12151_s24 + $0x2d0] sm:$0xff]  ;;  %v1686_v34 = vld [vmem:[%s12158_s17 + $0x60] sm:$0xff]  ;;  %v1920_v35 = vld [vmem:[%s12158_s17 + $0x48] sm:$0xff] }
 0x13b   : > { %1371 = vmatprep.mubr.bf16.mxu0 %v12299_v47  ;;  %1444 = vmatprep.mubr.bf16.mxu1 %v12299_v47  ;;  %v10147_v55 = vcombine.low %v599_v42, %v603_v43 }
 0x13d   : > { %1472 = vmatpush1.bf16.msra.mxu0 %v10083_v48  ;;  %1545 = vmatpush1.bf16.msra.mxu1 %v10085_v49  ;;  %v10141_v48 = vcombine.low %v592_v36, %v596_v37  ;;  %v10148_v49 = vcombine.high %v599_v42, %v603_v43  ;;  %v1921_v36 = vld [vmem:[%s12158_s17 + $0x68] sm:$0xff]  ;;  %v1688_v42 = vld [vmem:[%s12158_s17 + $0xa0] sm:$0xff] }
 0x13e   : > { %1473 = vmatprep.subr.bf16.mxu0 %v10092_v50  ;;  %1546 = vmatprep.subr.bf16.mxu1 %v10094_v51  ;;  %v10150_v50 = vcombine.high %v600_v44, %v604_v45  ;;  %v607_v51 = vld [vmem:[%s12151_s24 + $0x310] sm:$0xff]  ;;  %v1922_v43 = vld [vmem:[%s12158_s17 + $0x88] sm:$0xff] }
 0x13f   : > { %v10155_v1 = vcombine.low %v607_v51, %v611_v52 }
 0x140   : > { %1372 = vmatmul.mubr.bf16.gmra.mrb[8].mxu0 %v12308_v57  ;;  %1445 = vmatmul.mubr.bf16.gmra.mrb[8].mxu1 %v12308_v57 }
 0x141   : > { %1474 = vmatpush1.bf16.msra.mxu0 %v10091_v56  ;;  %1547 = vmatpush1.bf16.msra.mxu1 %v10093_v58  ;;  %v10149_v56 = vcombine.low %v600_v44, %v604_v45  ;;  %v10156_v58 = vcombine.high %v607_v51, %v611_v52  ;;  %v1923_v44 = vld [vmem:[%s12158_s17 + $0xa8] sm:$0xff]  ;;  %v1690_v51 = vld [vmem:[%s12158_s17 + $0xe0] sm:$0xff] }
 0x142   : > { %1475 = vmatprep.subr.bf16.mxu0 %v10100_v59  ;;  %1548 = vmatprep.subr.bf16.mxu1 %v10102_v60  ;;  %v10158_v59 = vcombine.high %v608_v53, %v612_v54  ;;  %v615_v60 = vld [vmem:[%s12151_s24 + $0x350] sm:$0xff]  ;;  %v1924_v52 = vld [vmem:[%s12158_s17 + $0xc8] sm:$0xff] }
 0x143   : > { %1381 = vmatprep.mubr.bf16.mxu0 %v12315_v2  ;;  %1454 = vmatprep.mubr.bf16.mxu1 %v12315_v2  ;;  %v10163_v10 = vcombine.low %v615_v60, %v619_v62 }
 0x145   : > { %1476 = vmatpush1.bf16.msra.mxu0 %v10099_v3  ;;  %1549 = vmatpush1.bf16.msra.mxu1 %v10101_v4  ;;  %v10157_v3 = vcombine.low %v608_v53, %v612_v54  ;;  %v10164_v4 = vcombine.high %v615_v60, %v619_v62  ;;  %v1925_v53 = vld [vmem:[%s12158_s17 + $0xe8] sm:$0xff]  ;;  %v10219_v54 = vcombine.low %v1922_v43, %v1923_v44 }
 0x146   : > { %1477 = vmatprep.subr.bf16.mxu0 %v10108_v5  ;;  %1550 = vmatprep.subr.bf16.mxu1 %v10110_v6  ;;  %v10166_v5 = vcombine.high %v616_v63, %v620_v0  ;;  %v623_v6 = vld [vmem:[%s12151_s24 + $0x390] sm:$0xff]  ;;  %v1926_v60 = vld [vmem:[%s12158_s17 + $0x108] sm:$0xff] }
 0x147   : > { %v10171_v19 = vcombine.low %v623_v6, %v627_v7  ;;  %v1927_v62 = vld [vmem:[%s12158_s17 + $0x128] sm:$0xff] }
 0x148   : > { %1382 = vmatmul.mubr.bf16.gmra.mrb[12].mxu0 %v12324_v12  ;;  %1455 = vmatmul.mubr.bf16.gmra.mrb[12].mxu1 %v12324_v12 }
 0x149   : > { %1478 = vmatpush1.bf16.msra.mxu0 %v10107_v11  ;;  %1551 = vmatpush1.bf16.msra.mxu1 %v10109_v13  ;;  %v10165_v11 = vcombine.low %v616_v63, %v620_v0  ;;  %v10172_v13 = vcombine.high %v623_v6, %v627_v7  ;;  %v10221_v63 = vcombine.low %v1924_v52, %v1925_v53  ;;  %v1929_v6 = vld [vmem:[%s12158_s17 + $0x168] sm:$0xff] }
 0x14a   : > { %1479 = vmatprep.subr.bf16.mxu0 %v10116_v14  ;;  %1552 = vmatprep.subr.bf16.mxu1 %v10118_v15  ;;  %v10174_v14 = vcombine.high %v624_v8, %v628_v9  ;;  %v631_v15 = vld [vmem:[%s12151_s24 + $0x3d0] sm:$0xff]  ;;  %v10223_v7 = vcombine.low %v1926_v60, %v1927_v62 }
 0x14b   : > { %1497 = vmatprep.mubr.bf16.mxu0 %v12228_v61  ;;  %1570 = vmatprep.mubr.bf16.mxu1 %v12228_v61  ;;  %v10133_v61 = vcombine.low %v584_v27, %v588_v28  ;;  %v1919_v27 = vld [vmem:[%s12158_s17 + $0x28] sm:$0xff]  ;;  %v10179_v28 = vcombine.low %v631_v15, %v635_v16 }
 0x14d   : > { %1480 = vmatpush1.bf16.msra.mxu0 %v10115_v21  ;;  %1553 = vmatpush1.bf16.msra.mxu1 %v10117_v22  ;;  %v10173_v21 = vcombine.low %v624_v8, %v628_v9  ;;  %v10180_v22 = vcombine.high %v631_v15, %v635_v16 }
 0x14e   : > { %1481 = vmatprep.subr.bf16.mxu0 %v10124_v23  ;;  %1554 = vmatprep.subr.bf16.mxu1 %v10126_v24  ;;  %v10182_v23 = vcombine.high %v632_v17, %v636_v18  ;;  %v1683_v24 = vld [vmem:[%s12158_s17] sm:$0xff] }
 0x14f   : > { %v10183_v37 = vcombine.low %v1683_v24, %v1684_v25 }
 0x151   : > { %1482 = vmatpush1.bf16.msra.mxu0 %v10123_v30  ;;  %1555 = vmatpush1.bf16.msra.mxu1 %v10125_v31  ;;  %v10181_v30 = vcombine.low %v632_v17, %v636_v18  ;;  %v10184_v31 = vcombine.high %v1683_v24, %v1684_v25  ;;  %v1697_v18 = vld [vmem:[%s12158_s17 + $0x1c0] sm:$0xff] }
 0x152   : > { %1483 = vmatprep.subr.bf16.mxu0 %v10132_v32  ;;  %1556 = vmatprep.subr.bf16.mxu1 %v10134_v33  ;;  %v10216_v32 = vcombine.high %v1918_v26, %v1919_v27  ;;  %v1685_v33 = vld [vmem:[%s12158_s17 + $0x40] sm:$0xff] }
 0x153   : > { %v10185_v45 = vcombine.low %v1685_v33, %v1686_v34 }
 0x155   : > { %1484 = vmatpush1.bf16.msra.mxu0 %v10131_v38  ;;  %1557 = vmatpush1.bf16.msra.mxu1 %v10133_v61  ;;  %v10215_v38 = vcombine.low %v1918_v26, %v1919_v27  ;;  %v10186_v61 = vcombine.high %v1685_v33, %v1686_v34  ;;  %v1699_v26 = vld [vmem:[%s12158_s17 + $0x200] sm:$0xff] }
 0x156   : > { %1485 = vmatprep.subr.bf16.mxu0 %v10140_v40  ;;  %1558 = vmatprep.subr.bf16.mxu1 %v10142_v41  ;;  %v10218_v40 = vcombine.high %v1920_v35, %v1921_v36  ;;  %v1687_v41 = vld [vmem:[%s12158_s17 + $0x80] sm:$0xff] }
 0x157   : > { %v1700_v27 = vld [vmem:[%s12158_s17 + $0x220] sm:$0xff] }
 0x158   : > { %v1701_v34 = vld [vmem:[%s12158_s17 + $0x240] sm:$0xff] }
 0x159   : > { %1486 = vmatpush1.bf16.msra.mxu0 %v10139_v46  ;;  %1559 = vmatpush1.bf16.msra.mxu1 %v10141_v48  ;;  %v10217_v46 = vcombine.low %v1920_v35, %v1921_v36  ;;  %v10188_v48 = vcombine.high %v1687_v41, %v1688_v42  ;;  %v1702_v35 = vld [vmem:[%s12158_s17 + $0x260] sm:$0xff]  ;;  %v11846_v36 = vmov 0  }
 0x15a   : > { %1487 = vmatprep.subr.bf16.mxu0 %v10148_v49  ;;  %1560 = vmatprep.subr.bf16.mxu1 %v10150_v50  ;;  %v10220_v49 = vcombine.high %v1922_v43, %v1923_v44  ;;  %v1689_v50 = vld [vmem:[%s12158_s17 + $0xc0] sm:$0xff]  ;;  %v1938_v44 = vld [vmem:[%s12158_s17 + $0x288] sm:$0xff] }
 0x15b   : > { %v1704_v43 = vld [vmem:[%s12158_s17 + $0x2a0] sm:$0xff] }
 0x15d   : > { %1488 = vmatpush1.bf16.msra.mxu0 %v10147_v55  ;;  %1561 = vmatpush1.bf16.msra.mxu1 %v10149_v56  ;;  %v10190_v55 = vcombine.high %v1689_v50, %v1690_v51  ;;  %v10222_v56 = vcombine.high %v1924_v52, %v1925_v53  ;;  %v1706_v52 = vld [vmem:[%s12158_s17 + $0x2e0] sm:$0xff]  ;;  %v1940_v53 = vld [vmem:[%s12158_s17 + $0x2c8] sm:$0xff] }
 0x15e   : > { %1489 = vmatprep.subr.bf16.mxu0 %v10156_v58  ;;  %1562 = vmatprep.subr.bf16.mxu1 %v10158_v59  ;;  %v1691_v58 = vld [vmem:[%s12158_s17 + $0x100] sm:$0xff] }
 0x15f   : > { %v1692_v59 = vld [vmem:[%s12158_s17 + $0x120] sm:$0xff] }
 0x160   : > { %v10192_v0 = vcombine.high %v1691_v58, %v1692_v59 }
 0x161   : > { %1490 = vmatpush1.bf16.msra.mxu0 %v10155_v1  ;;  %1563 = vmatpush1.bf16.msra.mxu1 %v10157_v3  ;;  %v10224_v1 = vcombine.high %v1926_v60, %v1927_v62  ;;  %v1693_v3 = vld [vmem:[%s12158_s17 + $0x140] sm:$0xff]  ;;  %v1942_v62 = vld [vmem:[%s12158_s17 + $0x308] sm:$0xff] }
 0x162   : > { %1491 = vmatprep.subr.bf16.mxu0 %v10164_v4  ;;  %1564 = vmatprep.subr.bf16.mxu1 %v10166_v5  ;;  %v1694_v4 = vld [vmem:[%s12158_s17 + $0x160] sm:$0xff]  ;;  %v1928_v5 = vld [vmem:[%s12158_s17 + $0x148] sm:$0xff] }
 0x163   : > { %v10194_v8 = vcombine.high %v1693_v3, %v1694_v4  ;;  %v10226_v9 = vcombine.high %v1928_v5, %v1929_v6  ;;  %v10225_v15 = vcombine.low %v1928_v5, %v1929_v6  ;;  %v1708_v60 = vld [vmem:[%s12158_s17 + $0x320] sm:$0xff]  ;;  %v1944_v6 = vld [vmem:[%s12158_s17 + $0x348] sm:$0xff] }
 0x164   : > { %v1710_v5 = vld [vmem:[%s12158_s17 + $0x360] sm:$0xff] }
 0x165   : > { %1492 = vmatpush1.bf16.msra.mxu0 %v10163_v10  ;;  %1565 = vmatpush1.bf16.msra.mxu1 %v10165_v11  ;;  %v1695_v10 = vld [vmem:[%s12158_s17 + $0x180] sm:$0xff] }
 0x166   : > { %1493 = vmatprep.subr.bf16.mxu0 %v10172_v13  ;;  %1566 = vmatprep.subr.bf16.mxu1 %v10174_v14  ;;  %v1696_v11 = vld [vmem:[%s12158_s17 + $0x1a0] sm:$0xff]  ;;  %v1930_v13 = vld [vmem:[%s12158_s17 + $0x188] sm:$0xff] }
 0x167   : > { %v1931_v14 = vld [vmem:[%s12158_s17 + $0x1a8] sm:$0xff]  ;;  %v10196_v16 = vcombine.high %v1695_v10, %v1696_v11 }
 0x168   : > { %v10228_v17 = vcombine.high %v1930_v13, %v1931_v14 }
 0x169   : > { %1494 = vmatpush1.bf16.msra.mxu0 %v10171_v19  ;;  %1567 = vmatpush1.bf16.msra.mxu1 %v10173_v21  ;;  %v1698_v19 = vld [vmem:[%s12158_s17 + $0x1e0] sm:$0xff]  ;;  %v1932_v21 = vld [vmem:[%s12158_s17 + $0x1c8] sm:$0xff] }
 0x16a   : > { %1495 = vmatprep.subr.bf16.mxu0 %v10180_v22  ;;  %1568 = vmatprep.subr.bf16.mxu1 %v10182_v23  ;;  %v1933_v22 = vld [vmem:[%s12158_s17 + $0x1e8] sm:$0xff]  ;;  %v10227_v23 = vcombine.low %v1930_v13, %v1931_v14  ;;  %v10198_v24 = vcombine.high %v1697_v18, %v1698_v19  ;;  %v1712_v13 = vld [vmem:[%s12158_s17 + $0x3a0] sm:$0xff] }
 0x16b   : > { %v10230_v25 = vcombine.high %v1932_v21, %v1933_v22  ;;  %v1946_v14 = vld [vmem:[%s12158_s17 + $0x388] sm:$0xff] }
 0x16d   : > { %1496 = vmatpush1.bf16.msra.mxu0 %v10179_v28  ;;  %1569 = vmatpush1.bf16.msra.mxu1 %v10181_v30  ;;  %v1934_v28 = vld [vmem:[%s12158_s17 + $0x208] sm:$0xff] }
 0x16e   : > { %1875 = vmatprep.subr.bf16.mxu0 %v10184_v31  ;;  %2110 = vmatprep.subr.bf16.mxu1 %v10216_v32  ;;  %v1935_v30 = vld [vmem:[%s12158_s17 + $0x228] sm:$0xff]  ;;  %v10229_v31 = vcombine.low %v1932_v21, %v1933_v22  ;;  %v10200_v32 = vcombine.high %v1699_v26, %v1700_v27  ;;  %v1714_v21 = vld [vmem:[%s12158_s17 + $0x3e0] sm:$0xff] }
 0x16f   : > { %v10232_v33 = vcombine.high %v1934_v28, %v1935_v30  ;;  %v1948_v22 = vld [vmem:[%s12158_s17 + $0x3c8] sm:$0xff] }
 0x170   : > { %1498 = vmatmul.mubr.bf16.vlgmr.msra.gmra.mrb[16].mxu0 %v12276_v20  ;;  %1571 = vmatmul.mubr.bf16.vlgmr.msra.gmra.mrb[16].mxu1 %v12276_v20  ;;  %v10187_v20 = vcombine.low %v1687_v41, %v1688_v42  ;;  %v1703_v42 = vld [vmem:[%s12158_s17 + $0x280] sm:$0xff] }
 0x171   : > { %1876 = vmatpush1.bf16.msra.mxu0 %v10183_v37  ;;  %2111 = vmatpush1.bf16.msra.mxu1 %v10215_v38  ;;  %v1936_v37 = vld [vmem:[%s12158_s17 + $0x248] sm:$0xff] }
 0x172   : > { %1877 = vmatprep.subr.bf16.mxu0 %v10186_v61  ;;  %2112 = vmatprep.subr.bf16.mxu1 %v10218_v40  ;;  %v1937_v38 = vld [vmem:[%s12158_s17 + $0x268] sm:$0xff]  ;;  %v10231_v61 = vcombine.low %v1934_v28, %v1935_v30  ;;  %v10202_v40 = vcombine.high %v1701_v34, %v1702_v35  ;;  %v2154_v28 = vld [vmem:[%s12158_s17 + $0x30] sm:$0xff]  ;;  %v2388_v30 = vld [vmem:[%s12158_s17 + $0x18] sm:$0xff] }
 0x173   : > { %1507 = vmatprep.mubr.bf16.mxu0 %v12283_v29  ;;  %1580 = vmatprep.mubr.bf16.mxu1 %v12283_v29  ;;  %v10189_v29 = vcombine.low %v1689_v50, %v1690_v51  ;;  %v10234_v41 = vcombine.high %v1936_v37, %v1937_v38  ;;  %v1705_v51 = vld [vmem:[%s12158_s17 + $0x2c0] sm:$0xff] }
 0x175   : > { %1878 = vmatpush1.bf16.msra.mxu0 %v10185_v45  ;;  %2113 = vmatpush1.bf16.msra.mxu1 %v10217_v46  ;;  %v1939_v45 = vld [vmem:[%s12158_s17 + $0x2a8] sm:$0xff]  ;;  %v10201_v46 = vcombine.low %v1701_v34, %v1702_v35  ;;  %v2155_v35 = vld [vmem:[%s12158_s17 + $0x50] sm:$0xff] }
 0x176   : > { %1879 = vmatprep.subr.bf16.mxu0 %v10188_v48  ;;  %2114 = vmatprep.subr.bf16.mxu1 %v10220_v49  ;;  %v10233_v48 = vcombine.low %v1936_v37, %v1937_v38  ;;  %v10204_v49 = vcombine.high %v1703_v42, %v1704_v43  ;;  %v10236_v50 = vcombine.high %v1938_v44, %v1939_v45  ;;  %v2156_v37 = vld [vmem:[%s12158_s17 + $0x70] sm:$0xff]  ;;  %v2390_v38 = vld [vmem:[%s12158_s17 + $0x58] sm:$0xff] }
 0x178   : > { %1508 = vmatmul.mubr.bf16.gmra.mrb[20].mxu0 %v12292_v39  ;;  %1581 = vmatmul.mubr.bf16.gmra.mrb[20].mxu1 %v12292_v39  ;;  %v10191_v39 = vcombine.low %v1691_v58, %v1692_v59  ;;  %v1707_v59 = vld [vmem:[%s12158_s17 + $0x300] sm:$0xff] }
 0x179   : > { %1880 = vmatpush1.bf16.msra.mxu0 %v10187_v20  ;;  %2115 = vmatpush1.bf16.msra.mxu1 %v10219_v54  ;;  %v1941_v20 = vld [vmem:[%s12158_s17 + $0x2e8] sm:$0xff]  ;;  %v10203_v54 = vcombine.low %v1703_v42, %v1704_v43  ;;  %v2157_v43 = vld [vmem:[%s12158_s17 + $0x90] sm:$0xff] }
 0x17a   : > { %1881 = vmatprep.subr.bf16.mxu0 %v10190_v55  ;;  %2116 = vmatprep.subr.bf16.mxu1 %v10222_v56  ;;  %v10235_v55 = vcombine.low %v1938_v44, %v1939_v45  ;;  %v10206_v56 = vcombine.high %v1705_v51, %v1706_v52  ;;  %v10238_v58 = vcombine.high %v1940_v53, %v1941_v20  ;;  %v2158_v44 = vld [vmem:[%s12158_s17 + $0xb0] sm:$0xff]  ;;  %v2392_v45 = vld [vmem:[%s12158_s17 + $0x98] sm:$0xff] }
 0x17b   : > { %1517 = vmatprep.mubr.bf16.mxu0 %v12299_v47  ;;  %1590 = vmatprep.mubr.bf16.mxu1 %v12299_v47  ;;  %v10193_v47 = vcombine.low %v1693_v3, %v1694_v4  ;;  %v1709_v4 = vld [vmem:[%s12158_s17 + $0x340] sm:$0xff] }
 0x17d   : > { %1882 = vmatpush1.bf16.msra.mxu0 %v10189_v29  ;;  %2117 = vmatpush1.bf16.msra.mxu1 %v10221_v63  ;;  %v1943_v29 = vld [vmem:[%s12158_s17 + $0x328] sm:$0xff]  ;;  %v10205_v63 = vcombine.low %v1705_v51, %v1706_v52  ;;  %v2159_v52 = vld [vmem:[%s12158_s17 + $0xd0] sm:$0xff] }
 0x17e   : > { %1883 = vmatprep.subr.bf16.mxu0 %v10192_v0  ;;  %2118 = vmatprep.subr.bf16.mxu1 %v10224_v1  ;;  %v10237_v0 = vcombine.low %v1940_v53, %v1941_v20  ;;  %v10208_v1 = vcombine.high %v1707_v59, %v1708_v60  ;;  %v10240_v3 = vcombine.high %v1942_v62, %v1943_v29  ;;  %v2160_v53 = vld [vmem:[%s12158_s17 + $0xf0] sm:$0xff]  ;;  %v2394_v20 = vld [vmem:[%s12158_s17 + $0xd8] sm:$0xff] }
 0x180   : > { %1518 = vmatmul.mubr.bf16.gmra.mrb[24].mxu0 %v12308_v57  ;;  %1591 = vmatmul.mubr.bf16.gmra.mrb[24].mxu1 %v12308_v57  ;;  %v10195_v57 = vcombine.low %v1695_v10, %v1696_v11  ;;  %v1711_v11 = vld [vmem:[%s12158_s17 + $0x380] sm:$0xff] }
 0x181   : > { %1884 = vmatpush1.bf16.msra.mxu0 %v10191_v39  ;;  %2119 = vmatpush1.bf16.msra.mxu1 %v10223_v7  ;;  %v1945_v39 = vld [vmem:[%s12158_s17 + $0x368] sm:$0xff]  ;;  %v10207_v7 = vcombine.low %v1707_v59, %v1708_v60  ;;  %v2161_v60 = vld [vmem:[%s12158_s17 + $0x110] sm:$0xff] }
 0x182   : > { %1885 = vmatprep.subr.bf16.mxu0 %v10194_v8  ;;  %2120 = vmatprep.subr.bf16.mxu1 %v10226_v9  ;;  %v10239_v8 = vcombine.low %v1942_v62, %v1943_v29  ;;  %v10210_v9 = vcombine.high %v1709_v4, %v1710_v5  ;;  %v10242_v10 = vcombine.high %v1944_v6, %v1945_v39  ;;  %v2162_v62 = vld [vmem:[%s12158_s17 + $0x130] sm:$0xff]  ;;  %v2396_v29 = vld [vmem:[%s12158_s17 + $0x118] sm:$0xff] }
 0x183   : > { %1527 = vmatprep.mubr.bf16.mxu0 %v12315_v2  ;;  %1600 = vmatprep.mubr.bf16.mxu1 %v12315_v2  ;;  %v10197_v2 = vcombine.low %v1697_v18, %v1698_v19  ;;  %v1713_v19 = vld [vmem:[%s12158_s17 + $0x3c0] sm:$0xff] }
 0x185   : > { %1886 = vmatpush1.bf16.msra.mxu0 %v10193_v47  ;;  %2121 = vmatpush1.bf16.msra.mxu1 %v10225_v15  ;;  %v1947_v47 = vld [vmem:[%s12158_s17 + $0x3a8] sm:$0xff]  ;;  %v10209_v15 = vcombine.low %v1709_v4, %v1710_v5  ;;  %v2163_v5 = vld [vmem:[%s12158_s17 + $0x150] sm:$0xff] }
 0x186   : > { %1887 = vmatprep.subr.bf16.mxu0 %v10196_v16  ;;  %2122 = vmatprep.subr.bf16.mxu1 %v10228_v17  ;;  %v10241_v16 = vcombine.low %v1944_v6, %v1945_v39  ;;  %v10212_v17 = vcombine.high %v1711_v11, %v1712_v13  ;;  %v10244_v18 = vcombine.high %v1946_v14, %v1947_v47  ;;  %v2164_v6 = vld [vmem:[%s12158_s17 + $0x170] sm:$0xff]  ;;  %v2398_v39 = vld [vmem:[%s12158_s17 + $0x158] sm:$0xff] }
 0x188   : > { %1528 = vmatmul.mubr.bf16.gmra.mrb[28].mxu0 %v12324_v12  ;;  %1601 = vmatmul.mubr.bf16.gmra.mrb[28].mxu1 %v12324_v12  ;;  %v10199_v12 = vcombine.low %v1699_v26, %v1700_v27  ;;  %v2153_v27 = vld [vmem:[%s12158_s17 + $0x10] sm:$0xff] }
 0x189   : > { %1888 = vmatpush1.bf16.msra.mxu0 %v10195_v57  ;;  %2123 = vmatpush1.bf16.msra.mxu1 %v10227_v23  ;;  %v1949_v57 = vld [vmem:[%s12158_s17 + $0x3e8] sm:$0xff]  ;;  %v10211_v23 = vcombine.low %v1711_v11, %v1712_v13  ;;  %v2165_v13 = vld [vmem:[%s12158_s17 + $0x190] sm:$0xff] }
 0x18a   : > { %1889 = vmatprep.subr.bf16.mxu0 %v10198_v24  ;;  %2124 = vmatprep.subr.bf16.mxu1 %v10230_v25  ;;  %v10243_v24 = vcombine.low %v1946_v14, %v1947_v47  ;;  %v10214_v25 = vcombine.high %v1713_v19, %v1714_v21  ;;  %v10246_v26 = vcombine.high %v1948_v22, %v1949_v57  ;;  %v2166_v14 = vld [vmem:[%s12158_s17 + $0x1b0] sm:$0xff]  ;;  %v2400_v47 = vld [vmem:[%s12158_s17 + $0x198] sm:$0xff] }
 0x18b   : > { %1907 = vmatprep.mubr.bf16.mxu0 %v11846_v36  ;;  %2142 = vmatprep.mubr.bf16.mxu1 %v11846_v36 }
 0x18d   : > { %1890 = vmatpush1.bf16.msra.mxu0 %v10197_v2  ;;  %2125 = vmatpush1.bf16.msra.mxu1 %v10229_v31  ;;  %v2389_v2 = vld [vmem:[%s12158_s17 + $0x38] sm:$0xff]  ;;  %v10213_v31 = vcombine.low %v1713_v19, %v1714_v21  ;;  %v2167_v21 = vld [vmem:[%s12158_s17 + $0x1d0] sm:$0xff] }
 0x18e   : > { %1891 = vmatprep.subr.bf16.mxu0 %v10200_v32  ;;  %2126 = vmatprep.subr.bf16.mxu1 %v10232_v33  ;;  %v10245_v32 = vcombine.low %v1948_v22, %v1949_v57  ;;  %v10248_v33 = vcombine.high %v2153_v27, %v2154_v28  ;;  %v10280_v34 = vcombine.high %v2388_v30, %v2389_v2  ;;  %v2168_v22 = vld [vmem:[%s12158_s17 + $0x1f0] sm:$0xff]  ;;  %v2402_v57 = vld [vmem:[%s12158_s17 + $0x1d8] sm:$0xff] }
 0x191   : > { %1892 = vmatpush1.bf16.msra.mxu0 %v10199_v12  ;;  %2127 = vmatpush1.bf16.msra.mxu1 %v10231_v61  ;;  %v2391_v12 = vld [vmem:[%s12158_s17 + $0x78] sm:$0xff]  ;;  %v10247_v61 = vcombine.low %v2153_v27, %v2154_v28  ;;  %v2169_v28 = vld [vmem:[%s12158_s17 + $0x210] sm:$0xff] }
 0x192   : > { %1893 = vmatprep.subr.bf16.mxu0 %v10202_v40  ;;  %2128 = vmatprep.subr.bf16.mxu1 %v10234_v41  ;;  %v10279_v40 = vcombine.low %v2388_v30, %v2389_v2  ;;  %v10250_v41 = vcombine.high %v2155_v35, %v2156_v37  ;;  %v10282_v42 = vcombine.high %v2390_v38, %v2391_v12  ;;  %v2170_v30 = vld [vmem:[%s12158_s17 + $0x230] sm:$0xff]  ;;  %v2404_v2 = vld [vmem:[%s12158_s17 + $0x218] sm:$0xff] }
 0x195   : > { %1894 = vmatpush1.bf16.msra.mxu0 %v10201_v46  ;;  %2129 = vmatpush1.bf16.msra.mxu1 %v10233_v48  ;;  %v2393_v46 = vld [vmem:[%s12158_s17 + $0xb8] sm:$0xff]  ;;  %v10249_v48 = vcombine.low %v2155_v35, %v2156_v37  ;;  %v2171_v37 = vld [vmem:[%s12158_s17 + $0x250] sm:$0xff] }
 0x196   : > { %1895 = vmatprep.subr.bf16.mxu0 %v10204_v49  ;;  %2130 = vmatprep.subr.bf16.mxu1 %v10236_v50  ;;  %v10281_v49 = vcombine.low %v2390_v38, %v2391_v12  ;;  %v10252_v50 = vcombine.high %v2157_v43, %v2158_v44  ;;  %v10284_v51 = vcombine.high %v2392_v45, %v2393_v46  ;;  %v2172_v38 = vld [vmem:[%s12158_s17 + $0x270] sm:$0xff]  ;;  %v2406_v12 = vld [vmem:[%s12158_s17 + $0x258] sm:$0xff] }
 0x199   : > { %1896 = vmatpush1.bf16.msra.mxu0 %v10203_v54  ;;  %2131 = vmatpush1.bf16.msra.mxu1 %v10235_v55  ;;  %v2395_v54 = vld [vmem:[%s12158_s17 + $0xf8] sm:$0xff]  ;;  %v10251_v55 = vcombine.low %v2157_v43, %v2158_v44  ;;  %v2173_v44 = vld [vmem:[%s12158_s17 + $0x290] sm:$0xff] }
 0x19a   : > { %1897 = vmatprep.subr.bf16.mxu0 %v10206_v56  ;;  %2132 = vmatprep.subr.bf16.mxu1 %v10238_v58  ;;  %v10283_v56 = vcombine.low %v2392_v45, %v2393_v46  ;;  %v10254_v58 = vcombine.high %v2159_v52, %v2160_v53  ;;  %v10286_v59 = vcombine.high %v2394_v20, %v2395_v54  ;;  %v2174_v45 = vld [vmem:[%s12158_s17 + $0x2b0] sm:$0xff]  ;;  %v2408_v46 = vld [vmem:[%s12158_s17 + $0x298] sm:$0xff] }
 0x19d   : > { %1898 = vmatpush1.bf16.msra.mxu0 %v10205_v63  ;;  %2133 = vmatpush1.bf16.msra.mxu1 %v10237_v0  ;;  %v2397_v63 = vld [vmem:[%s12158_s17 + $0x138] sm:$0xff]  ;;  %v10253_v0 = vcombine.low %v2159_v52, %v2160_v53  ;;  %v2175_v53 = vld [vmem:[%s12158_s17 + $0x2d0] sm:$0xff] }
 0x19e   : > { %1899 = vmatprep.subr.bf16.mxu0 %v10208_v1  ;;  %2134 = vmatprep.subr.bf16.mxu1 %v10240_v3  ;;  %v10285_v1 = vcombine.low %v2394_v20, %v2395_v54  ;;  %v10256_v3 = vcombine.high %v2161_v60, %v2162_v62  ;;  %v10288_v4 = vcombine.high %v2396_v29, %v2397_v63  ;;  %v2176_v20 = vld [vmem:[%s12158_s17 + $0x2f0] sm:$0xff]  ;;  %v2410_v54 = vld [vmem:[%s12158_s17 + $0x2d8] sm:$0xff] }
 0x1a1   : > { %1900 = vmatpush1.bf16.msra.mxu0 %v10207_v7  ;;  %2135 = vmatpush1.bf16.msra.mxu1 %v10239_v8  ;;  %v2399_v7 = vld [vmem:[%s12158_s17 + $0x178] sm:$0xff]  ;;  %v10255_v8 = vcombine.low %v2161_v60, %v2162_v62  ;;  %v2177_v62 = vld [vmem:[%s12158_s17 + $0x310] sm:$0xff] }
 0x1a2   : > { %1901 = vmatprep.subr.bf16.mxu0 %v10210_v9  ;;  %2136 = vmatprep.subr.bf16.mxu1 %v10242_v10  ;;  %v10287_v9 = vcombine.low %v2396_v29, %v2397_v63  ;;  %v10258_v10 = vcombine.high %v2163_v5, %v2164_v6  ;;  %v10290_v11 = vcombine.high %v2398_v39, %v2399_v7  ;;  %v2178_v29 = vld [vmem:[%s12158_s17 + $0x330] sm:$0xff]  ;;  %v2412_v63 = vld [vmem:[%s12158_s17 + $0x318] sm:$0xff] }
 0x1a5   : > { %1902 = vmatpush1.bf16.msra.mxu0 %v10209_v15  ;;  %2137 = vmatpush1.bf16.msra.mxu1 %v10241_v16  ;;  %v2401_v15 = vld [vmem:[%s12158_s17 + $0x1b8] sm:$0xff]  ;;  %v10257_v16 = vcombine.low %v2163_v5, %v2164_v6  ;;  %v2179_v6 = vld [vmem:[%s12158_s17 + $0x350] sm:$0xff] }
 0x1a6   : > { %1903 = vmatprep.subr.bf16.mxu0 %v10212_v17  ;;  %2138 = vmatprep.subr.bf16.mxu1 %v10244_v18  ;;  %v10289_v17 = vcombine.low %v2398_v39, %v2399_v7  ;;  %v10260_v18 = vcombine.high %v2165_v13, %v2166_v14  ;;  %v10292_v19 = vcombine.high %v2400_v47, %v2401_v15  ;;  %v2180_v39 = vld [vmem:[%s12158_s17 + $0x370] sm:$0xff]  ;;  %v2414_v7 = vld [vmem:[%s12158_s17 + $0x358] sm:$0xff] }
 0x1a9   : > { %1904 = vmatpush1.bf16.msra.mxu0 %v10211_v23  ;;  %2139 = vmatpush1.bf16.msra.mxu1 %v10243_v24  ;;  %v2403_v23 = vld [vmem:[%s12158_s17 + $0x1f8] sm:$0xff]  ;;  %v10259_v24 = vcombine.low %v2165_v13, %v2166_v14  ;;  %v2181_v14 = vld [vmem:[%s12158_s17 + $0x390] sm:$0xff] }
 0x1aa   : > { %1905 = vmatprep.subr.bf16.mxu0 %v10214_v25  ;;  %2140 = vmatprep.subr.bf16.mxu1 %v10246_v26  ;;  %v10291_v25 = vcombine.low %v2400_v47, %v2401_v15  ;;  %v10262_v26 = vcombine.high %v2167_v21, %v2168_v22  ;;  %v10294_v27 = vcombine.high %v2402_v57, %v2403_v23  ;;  %v2182_v47 = vld [vmem:[%s12158_s17 + $0x3b0] sm:$0xff]  ;;  %v2416_v15 = vld [vmem:[%s12158_s17 + $0x398] sm:$0xff] }
 0x1ad   : > { %1906 = vmatpush1.bf16.msra.mxu0 %v10213_v31  ;;  %2141 = vmatpush1.bf16.msra.mxu1 %v10245_v32  ;;  %v2405_v31 = vld [vmem:[%s12158_s17 + $0x238] sm:$0xff]  ;;  %v10261_v32 = vcombine.low %v2167_v21, %v2168_v22  ;;  %v2183_v22 = vld [vmem:[%s12158_s17 + $0x3d0] sm:$0xff] }
 0x1ae   : > { %2345 = vmatprep.subr.bf16.mxu0 %v10248_v33  ;;  %2580 = vmatprep.subr.bf16.mxu1 %v10280_v34  ;;  %v10293_v33 = vcombine.low %v2402_v57, %v2403_v23  ;;  %v10264_v34 = vcombine.high %v2169_v28, %v2170_v30  ;;  %v10296_v35 = vcombine.high %v2404_v2, %v2405_v31  ;;  %v2184_v57 = vld [vmem:[%s12158_s17 + $0x3f0] sm:$0xff]  ;;  %v2418_v23 = vld [vmem:[%s12158_s17 + $0x3d8] sm:$0xff] }
 0x1b0   : > { %1908 = vmatmul.mubr.bf16.vlgmr.msra.gmra.mrb[32].mxu0 %v11846_v36  ;;  %2143 = vmatmul.mubr.bf16.vlgmr.msra.gmra.mrb[32].mxu1 %v11846_v36 }
 0x1b1   : > { %2346 = vmatpush1.bf16.msra.mxu0 %v10247_v61  ;;  %2581 = vmatpush1.bf16.msra.mxu1 %v10279_v40  ;;  %v2407_v61 = vld [vmem:[%s12158_s17 + $0x278] sm:$0xff]  ;;  %v10263_v40 = vcombine.low %v2169_v28, %v2170_v30  ;;  %v10277_v30 = vcombine.low %v2183_v22, %v2184_v57 }
 0x1b2   : > { %2347 = vmatprep.subr.bf16.mxu0 %v10250_v41  ;;  %2582 = vmatprep.subr.bf16.mxu1 %v10282_v42  ;;  %v10295_v41 = vcombine.low %v2404_v2, %v2405_v31  ;;  %v10266_v42 = vcombine.high %v2171_v37, %v2172_v38  ;;  %v10298_v43 = vcombine.high %v2406_v12, %v2407_v61  ;;  %v639_v31 = vlaneseq }
 0x1b3   : > { %2377 = vmatprep.mubr.bf16.mxu0 %v11846_v36  ;;  %2612 = vmatprep.mubr.bf16.mxu1 %v11846_v36 }
 0x1b5   : > { %2348 = vmatpush1.bf16.msra.mxu0 %v10249_v48  ;;  %2583 = vmatpush1.bf16.msra.mxu1 %v10281_v49  ;;  %v2409_v48 = vld [vmem:[%s12158_s17 + $0x2b8] sm:$0xff]  ;;  %v10265_v49 = vcombine.low %v2171_v37, %v2172_v38 }
 0x1b6   : > { %2349 = vmatprep.subr.bf16.mxu0 %v10252_v50  ;;  %2584 = vmatprep.subr.bf16.mxu1 %v10284_v51  ;;  %v10297_v50 = vcombine.low %v2406_v12, %v2407_v61  ;;  %v10268_v51 = vcombine.high %v2173_v44, %v2174_v45  ;;  %v10300_v52 = vcombine.high %v2408_v46, %v2409_v48 }
 0x1b9   : > { %2350 = vmatpush1.bf16.msra.mxu0 %v10251_v55  ;;  %2585 = vmatpush1.bf16.msra.mxu1 %v10283_v56  ;;  %v2411_v55 = vld [vmem:[%s12158_s17 + $0x2f8] sm:$0xff]  ;;  %v10267_v56 = vcombine.low %v2173_v44, %v2174_v45 }
 0x1ba   : > { %2351 = vmatprep.subr.bf16.mxu0 %v10254_v58  ;;  %2586 = vmatprep.subr.bf16.mxu1 %v10286_v59  ;;  %v10299_v58 = vcombine.low %v2408_v46, %v2409_v48  ;;  %v10270_v59 = vcombine.high %v2175_v53, %v2176_v20  ;;  %v10302_v60 = vcombine.high %v2410_v54, %v2411_v55 }
 0x1bd   : > { %2352 = vmatpush1.bf16.msra.mxu0 %v10253_v0  ;;  %2587 = vmatpush1.bf16.msra.mxu1 %v10285_v1  ;;  %v2413_v0 = vld [vmem:[%s12158_s17 + $0x338] sm:$0xff]  ;;  %v10269_v1 = vcombine.low %v2175_v53, %v2176_v20 }
 0x1be   : > { %2353 = vmatprep.subr.bf16.mxu0 %v10256_v3  ;;  %2588 = vmatprep.subr.bf16.mxu1 %v10288_v4  ;;  %v10301_v3 = vcombine.low %v2410_v54, %v2411_v55  ;;  %v10272_v4 = vcombine.high %v2177_v62, %v2178_v29  ;;  %v10304_v5 = vcombine.high %v2412_v63, %v2413_v0 }
 0x1c1   : > { %2354 = vmatpush1.bf16.msra.mxu0 %v10255_v8  ;;  %2589 = vmatpush1.bf16.msra.mxu1 %v10287_v9  ;;  %v2415_v8 = vld [vmem:[%s12158_s17 + $0x378] sm:$0xff]  ;;  %v10271_v9 = vcombine.low %v2177_v62, %v2178_v29 }
 0x1c2   : > { %2355 = vmatprep.subr.bf16.mxu0 %v10258_v10  ;;  %2590 = vmatprep.subr.bf16.mxu1 %v10290_v11  ;;  %v10303_v10 = vcombine.low %v2412_v63, %v2413_v0  ;;  %v10274_v11 = vcombine.high %v2179_v6, %v2180_v39  ;;  %v10306_v13 = vcombine.high %v2414_v7, %v2415_v8 }
 0x1c5   : > { %2356 = vmatpush1.bf16.msra.mxu0 %v10257_v16  ;;  %2591 = vmatpush1.bf16.msra.mxu1 %v10289_v17  ;;  %v2417_v16 = vld [vmem:[%s12158_s17 + $0x3b8] sm:$0xff]  ;;  %v10273_v17 = vcombine.low %v2179_v6, %v2180_v39 }
 0x1c6   : > { %2357 = vmatprep.subr.bf16.mxu0 %v10260_v18  ;;  %2592 = vmatprep.subr.bf16.mxu1 %v10292_v19  ;;  %v10305_v18 = vcombine.low %v2414_v7, %v2415_v8  ;;  %v10276_v19 = vcombine.high %v2181_v14, %v2182_v47  ;;  %v10308_v21 = vcombine.high %v2416_v15, %v2417_v16 }
 0x1c9   : > { %2358 = vmatpush1.bf16.msra.mxu0 %v10259_v24  ;;  %2593 = vmatpush1.bf16.msra.mxu1 %v10291_v25  ;;  %v2419_v24 = vld [vmem:[%s12158_s17 + $0x3f8] sm:$0xff]  ;;  %v10275_v25 = vcombine.low %v2181_v14, %v2182_v47 }
 0x1ca   : > { %2359 = vmatprep.subr.bf16.mxu0 %v10262_v26  ;;  %2594 = vmatprep.subr.bf16.mxu1 %v10294_v27  ;;  %v10307_v26 = vcombine.low %v2416_v15, %v2417_v16  ;;  %v10278_v27 = vcombine.high %v2183_v22, %v2184_v57  ;;  %v10310_v28 = vcombine.high %v2418_v23, %v2419_v24  ;;  %v2671_v57 = vld [vmem:[%s12158_s17] sm:$0xff] }
 0x1cb   : > { %v10309_v2 = vcombine.low %v2418_v23, %v2419_v24  ;;  %v2672_v23 = vld [vmem:[%s12158_s17 + $0x20] sm:$0xff]  ;;  %v2906_v24 = vld [vmem:[%s12158_s17 + $0x8] sm:$0xff] }
 0x1cd   : > { %2360 = vmatpush1.bf16.msra.mxu0 %v10261_v32  ;;  %2595 = vmatpush1.bf16.msra.mxu1 %v10293_v33  ;;  %v12512_v32 = vshrl.u32 %v639_v31, 7 }
 0x1ce   : > { %2361 = vmatprep.subr.bf16.mxu0 %v10264_v34  ;;  %2596 = vmatprep.subr.bf16.mxu1 %v10296_v35  ;;  %v12516_v34 = vld [vmem:[%s12164_s23] sm:$0xff] }
 0x1cf   : > { %v641_v33 = vsub.s32 0, %v12512_v32  ;;  %v649_v35 = vsub.s32 2, %v12512_v32  ;;  %v653_v37 = vsub.s32 3, %v12512_v32  ;;  %v645_v38 = vsub.s32 1, %v12512_v32 }
 0x1d1   : > { %2362 = vmatpush1.bf16.msra.mxu0 %v10263_v40  ;;  %2597 = vmatpush1.bf16.msra.mxu1 %v10295_v41  ;;  %v12522_v12 = vrot.slane %v12516_v34, %v641_v33 }
 0x1d2   : > { %2363 = vmatprep.subr.bf16.mxu0 %v10266_v42  ;;  %2598 = vmatprep.subr.bf16.mxu1 %v10298_v43  ;;  %v12534_v42 = vrot.slane %v12516_v34, %v653_v37  ;;  %v12537_v43 = vrot.slane %v12516_v34, %v645_v38 }
 0x1d5   : > { %2364 = vmatpush1.bf16.msra.mxu0 %v10265_v49  ;;  %2599 = vmatpush1.bf16.msra.mxu1 %v10297_v50 }
 0x1d6   : > { %2365 = vmatprep.subr.bf16.mxu0 %v10268_v51  ;;  %2600 = vmatprep.subr.bf16.mxu1 %v10300_v52 }
 0x1d9   : > { %2366 = vmatpush1.bf16.msra.mxu0 %v10267_v56  ;;  %2601 = vmatpush1.bf16.msra.mxu1 %v10299_v58 }
 0x1da   : > { %2367 = vmatprep.subr.bf16.mxu0 %v10270_v59  ;;  %2602 = vmatprep.subr.bf16.mxu1 %v10302_v60 }
 0x1dd   : > { %2368 = vmatpush1.bf16.msra.mxu0 %v10269_v1  ;;  %2603 = vmatpush1.bf16.msra.mxu1 %v10301_v3 }
 0x1de   : > { %2369 = vmatprep.subr.bf16.mxu0 %v10272_v4  ;;  %2604 = vmatprep.subr.bf16.mxu1 %v10304_v5 }
 0x1e1   : > { %2370 = vmatpush1.bf16.msra.mxu0 %v10271_v9  ;;  %2605 = vmatpush1.bf16.msra.mxu1 %v10303_v10 }
 0x1e2   : > { %2371 = vmatprep.subr.bf16.mxu0 %v10274_v11  ;;  %2606 = vmatprep.subr.bf16.mxu1 %v10306_v13 }
 0x1e5   : > { %2372 = vmatpush1.bf16.msra.mxu0 %v10273_v17  ;;  %2607 = vmatpush1.bf16.msra.mxu1 %v10305_v18 }
 0x1e6   : > { %2373 = vmatprep.subr.bf16.mxu0 %v10276_v19  ;;  %2608 = vmatprep.subr.bf16.mxu1 %v10308_v21 }
 0x1e9   : > { %2374 = vmatpush1.bf16.msra.mxu0 %v10275_v25  ;;  %2609 = vmatpush1.bf16.msra.mxu1 %v10307_v26  ;;  %v12604_v26 = vcombine.low %v2671_v57, %v2672_v23 }
 0x1ea   : > { %2375 = vmatprep.subr.bf16.mxu0 %v10278_v27  ;;  %2610 = vmatprep.subr.bf16.mxu1 %v10310_v28  ;;  %v12606_v27 = vcombine.high %v2671_v57, %v2672_v23  ;;  %v2907_v28 = vld [vmem:[%s12158_s17 + $0x28] sm:$0xff] }
 0x1eb   : > { %v12614_v37 = vcombine.low %v2906_v24, %v2907_v28  ;;  %v12616_v38 = vcombine.high %v2906_v24, %v2907_v28  ;;  %v2677_v28 = vld [vmem:[%s12158_s17 + $0xc0] sm:$0xff] }
 0x1ed   : > { %2376 = vmatpush1.bf16.msra.mxu0 %v10277_v30  ;;  %2611 = vmatpush1.bf16.msra.mxu1 %v10309_v2  ;;  %v2673_v30 = vld [vmem:[%s12158_s17 + $0x40] sm:$0xff] }
 0x1ee   : > { %v2674_v2 = vld [vmem:[%s12158_s17 + $0x60] sm:$0xff]  ;;  %2863 = vmatprep.subr.bf16.mxu0 %v12606_v27  ;;  %3098 = vmatprep.subr.bf16.mxu1 %v12616_v38 }
 0x1f0   : > { %2378 = vmatmul.mubr.bf16.vlgmr.msra.gmra.mrb[36].mxu0 %v11846_v36  ;;  %2613 = vmatmul.mubr.bf16.vlgmr.msra.gmra.mrb[36].mxu1 %v11846_v36  ;;  %v12527_v36 = vrot.slane %v12516_v34, %v649_v35 }
 0x1f1   : > { %2864 = vmatpush1.bf16.msra.mxu0 %v12604_v26  ;;  %3099 = vmatpush1.bf16.msra.mxu1 %v12614_v37 }
 0x203   : > { %v12524_v61 = vpop.f32.mrb[0].mxu0  ;;  %v12531_v41 = vpop.f32.mrb[0].mxu1 }
 0x204   : > { %v12529_v40 = vpop.f32.mrb[1].mxu0  ;;  %v12539_v45 = vpop.f32.mrb[1].mxu1 }
 0x205   : > { %v1357_v44 = vpop.f32.mrb[2].mxu0  ;;  %v1430_v49 = vpop.f32.mrb[2].mxu1 }
 0x206   : > { %v12542_v46 = vadd.f32 %v1357_v44, %v12522_v12  ;;  %v1359_v48 = vpop.f32.mrb[3].mxu0  ;;  %v12548_v51 = vadd.f32 %v1430_v49, %v12527_v36  ;;  %v1432_v52 = vpop.f32.mrb[3].mxu1  ;;  %v2908_v44 = vld [vmem:[%s12158_s17 + $0x48] sm:$0xff]  ;;  %v2675_v49 = vld [vmem:[%s12158_s17 + $0x80] sm:$0xff] }
 0x207   : > { %v12545_v50 = vadd.f32 %v1359_v48, %v12537_v43  ;;  %v12551_v53 = vadd.f32 %v1432_v52, %v12534_v42  ;;  %v2909_v48 = vld [vmem:[%s12158_s17 + $0x68] sm:$0xff] }
 0x208   : > { %15277 = vst [vmem:[#allocation22_spill] sm:$0xff] %v12542_v46  ;;  %15279 = vst [vmem:[#allocation24_spill] sm:$0xff] %v12548_v51  ;;  %v12653_v57 = vcombine.low %v2908_v44, %v2909_v48 }
 0x209   : > { %15278 = vst [vmem:[#allocation23_spill] sm:$0xff] %v12545_v50  ;;  %15280 = vst [vmem:[#allocation25_spill] sm:$0xff] %v12551_v53 }
 0x20b   : > { %v1363_v20 = vpop.f32.mrb[4].mxu0  ;;  %v1436_v56 = vpop.f32.mrb[4].mxu1 }
 0x20c   : > { %v12554_v54 = vadd.f32 %v1363_v20, %v12522_v12  ;;  %v1365_v55 = vpop.f32.mrb[5].mxu0  ;;  %v12560_v60 = vadd.f32 %v1436_v56, %v12527_v36  ;;  %v1438_v62 = vpop.f32.mrb[5].mxu1 }
 0x20d   : > { %v12557_v58 = vadd.f32 %v1365_v55, %v12537_v43  ;;  %v1367_v59 = vpop.f32.mrb[6].mxu0  ;;  %v12566_v0 = vadd.f32 %v1438_v62, %v12534_v42  ;;  %v1440_v1 = vpop.f32.mrb[6].mxu1  ;;  %v12630_v62 = vcombine.high %v2673_v30, %v2674_v2 }
 0x20e   : > { %15281 = vst [vmem:[#allocation26_spill] sm:$0xff] %v12554_v54  ;;  %15283 = vst [vmem:[#allocation28_spill] sm:$0xff] %v12560_v60  ;;  %v12563_v29 = vadd.f32 %v1367_v59, %v12522_v12  ;;  %v1369_v63 = vpop.f32.mrb[7].mxu0  ;;  %v12572_v4 = vadd.f32 %v1440_v1, %v12527_v36  ;;  %v1442_v5 = vpop.f32.mrb[7].mxu1  ;;  %v12628_v59 = vcombine.low %v2673_v30, %v2674_v2  ;;  %v2910_v1 = vld [vmem:[%s12158_s17 + $0x88] sm:$0xff]  ;;  %v2678_v30 = vld [vmem:[%s12158_s17 + $0xe0] sm:$0xff] }
 0x20f   : > { %15282 = vst [vmem:[#allocation27_spill] sm:$0xff] %v12557_v58  ;;  %15285 = vst [vmem:[#allocation30_spill] sm:$0xff] %v12566_v0  ;;  %v12569_v3 = vadd.f32 %v1369_v63, %v12537_v43  ;;  %v12575_v6 = vadd.f32 %v1442_v5, %v12534_v42  ;;  %v2676_v63 = vld [vmem:[%s12158_s17 + $0xa0] sm:$0xff]  ;;  %v2911_v5 = vld [vmem:[%s12158_s17 + $0xa8] sm:$0xff]  ;;  %2865 = vmatprep.subr.bf16.mxu0 %v12630_v62 }
 0x210   : > { %15284 = vst [vmem:[#allocation29_spill] sm:$0xff] %v12563_v29  ;;  %15287 = vst [vmem:[#allocation32_spill] sm:$0xff] %v12572_v4  ;;  %v12659_v24 = vcombine.high %v2675_v49, %v2676_v63  ;;  %v2912_v2 = vld [vmem:[%s12158_s17 + $0xc8] sm:$0xff]  ;;  %2866 = vmatpush1.bf16.msra.mxu0 %v12628_v59 }
 0x211   : > { %15286 = vst [vmem:[#allocation31_spill] sm:$0xff] %v12569_v3  ;;  %15288 = vst [vmem:[#allocation33_spill] sm:$0xff] %v12575_v6  ;;  %v2687_v6 = vld [vmem:[%s12158_s17 + $0x200] sm:$0xff]  ;;  %v2922_v4 = vld [vmem:[%s12158_s17 + $0x208] sm:$0xff] }
 0x212   : > { %2867 = vmatprep.subr.bf16.mxu0 %v12659_v24  ;;  %v2688_v3 = vld [vmem:[%s12158_s17 + $0x220] sm:$0xff]  ;;  %v2923_v0 = vld [vmem:[%s12158_s17 + $0x228] sm:$0xff] }
 0x213   : > { %v1373_v39 = vpop.f32.mrb[8].mxu0  ;;  %v1446_v9 = vpop.f32.mrb[8].mxu1  ;;  %v12786_v54 = vcombine.low %v2687_v6, %v2688_v3  ;;  %v12788_v53 = vcombine.low %v2922_v4, %v2923_v0  ;;  %v12797_v51 = vcombine.high %v2922_v4, %v2923_v0 }
 0x214   : > { %v12578_v7 = vadd.f32 %v1373_v39, %v12522_v12  ;;  %v1375_v8 = vpop.f32.mrb[9].mxu0  ;;  %v12584_v13 = vadd.f32 %v1446_v9, %v12527_v36  ;;  %v1448_v14 = vpop.f32.mrb[9].mxu1 }
 0x215   : > { %v12581_v10 = vadd.f32 %v1375_v8, %v12537_v43  ;;  %v1377_v11 = vpop.f32.mrb[10].mxu0  ;;  %v12590_v16 = vadd.f32 %v1448_v14, %v12534_v42  ;;  %v1450_v17 = vpop.f32.mrb[10].mxu1  ;;  %v12643_v14 = vcombine.high %v2908_v44, %v2909_v48  ;;  %v12672_v44 = vcombine.low %v2910_v1, %v2911_v5  ;;  %15309 = vst [vmem:[#allocation54_spill] sm:$0xff] %v12786_v54 }
 0x216   : > { %15289 = vst [vmem:[#allocation34_spill] sm:$0xff] %v12578_v7  ;;  %15291 = vst [vmem:[#allocation36_spill] sm:$0xff] %v12584_v13  ;;  %v12587_v47 = vadd.f32 %v1377_v11, %v12522_v12  ;;  %v1379_v15 = vpop.f32.mrb[11].mxu0  ;;  %v12596_v19 = vadd.f32 %v1450_v17, %v12527_v36  ;;  %v1452_v21 = vpop.f32.mrb[11].mxu1  ;;  %v12674_v48 = vcombine.high %v2677_v28, %v2678_v30 }
 0x217   : > { %15290 = vst [vmem:[#allocation35_spill] sm:$0xff] %v12581_v10  ;;  %15293 = vst [vmem:[#allocation38_spill] sm:$0xff] %v12590_v16  ;;  %v12593_v18 = vadd.f32 %v1379_v15, %v12537_v43  ;;  %v12599_v22 = vadd.f32 %v1452_v21, %v12534_v42  ;;  %3100 = vmatprep.subr.bf16.mxu1 %v12643_v14 }
 0x218   : > { %15292 = vst [vmem:[#allocation37_spill] sm:$0xff] %v12587_v47  ;;  %15295 = vst [vmem:[#allocation40_spill] sm:$0xff] %v12596_v19  ;;  %3101 = vmatpush1.bf16.msra.mxu1 %v12653_v57  ;;  %v2920_v19 = vld [vmem:[%s12158_s17 + $0x1c8] sm:$0xff] }
 0x219   : > { %15294 = vst [vmem:[#allocation39_spill] sm:$0xff] %v12593_v18  ;;  %15296 = vst [vmem:[#allocation41_spill] sm:$0xff] %v12599_v22  ;;  %v2685_v22 = vld [vmem:[%s12158_s17 + $0x1c0] sm:$0xff]  ;;  %v2921_v47 = vld [vmem:[%s12158_s17 + $0x1e8] sm:$0xff] }
 0x21a   : > { %v2686_v18 = vld [vmem:[%s12158_s17 + $0x1e0] sm:$0xff]  ;;  %15310 = vst [vmem:[#allocation55_spill] sm:$0xff] %v12788_v53  ;;  %15313 = vst [vmem:[#allocation58_spill] sm:$0xff] %v12797_v51 }
 0x21b   : > { %v1383_v25 = vpop.f32.mrb[12].mxu0  ;;  %v1456_v35 = vpop.f32.mrb[12].mxu1  ;;  %v12744_v16 = vcombine.low %v2685_v22, %v2686_v18 }
 0x21c   : > { %v12612_v31 = vadd.f32 %v1383_v25, %v12522_v12  ;;  %v1385_v33 = vpop.f32.mrb[13].mxu0  ;;  %v12625_v55 = vadd.f32 %v1456_v35, %v12527_v36  ;;  %v1458_v56 = vpop.f32.mrb[13].mxu1  ;;  %v12661_v25 = vcombine.high %v2910_v1, %v2911_v5  ;;  %v12668_v35 = vcombine.low %v2675_v49, %v2676_v63  ;;  %v2914_v49 = vld [vmem:[%s12158_s17 + $0x108] sm:$0xff] }
 0x21d   : > { %v12622_v52 = vadd.f32 %v1385_v33, %v12537_v43  ;;  %v1387_v20 = vpop.f32.mrb[14].mxu0  ;;  %v12639_v9 = vadd.f32 %v1458_v56, %v12534_v42  ;;  %v1460_v11 = vpop.f32.mrb[14].mxu1  ;;  %v2913_v33 = vld [vmem:[%s12158_s17 + $0xe8] sm:$0xff]  ;;  %v2679_v56 = vld [vmem:[%s12158_s17 + $0x100] sm:$0xff]  ;;  %15305 = vst [vmem:[#allocation50_spill] sm:$0xff] %v12744_v16 }
 0x21e   : > { %15297 = vst [vmem:[#allocation42_spill] sm:$0xff] %v12612_v31  ;;  %15299 = vst [vmem:[#allocation44_spill] sm:$0xff] %v12625_v55  ;;  %v12636_v39 = vadd.f32 %v1387_v20, %v12522_v12  ;;  %v1389_v8 = vpop.f32.mrb[15].mxu0  ;;  %v12649_v17 = vadd.f32 %v1460_v11, %v12527_v36  ;;  %v1462_v21 = vpop.f32.mrb[15].mxu1  ;;  %3102 = vmatprep.subr.bf16.mxu1 %v12661_v25  ;;  %v12677_v20 = vcombine.high %v2912_v2, %v2913_v33  ;;  %v2915_v63 = vld [vmem:[%s12158_s17 + $0x128] sm:$0xff] }
 0x21f   : > { %15298 = vst [vmem:[#allocation43_spill] sm:$0xff] %v12622_v52  ;;  %15301 = vst [vmem:[#allocation46_spill] sm:$0xff] %v12639_v9  ;;  %v12646_v15 = vadd.f32 %v1389_v8, %v12537_v43  ;;  %v12656_v23 = vadd.f32 %v1462_v21, %v12534_v42  ;;  %v2680_v8 = vld [vmem:[%s12158_s17 + $0x120] sm:$0xff]  ;;  %2868 = vmatpush1.bf16.msra.mxu0 %v12668_v35  ;;  %v12684_v11 = vcombine.low %v2677_v28, %v2678_v30  ;;  %v2916_v28 = vld [vmem:[%s12158_s17 + $0x148] sm:$0xff] }
 0x220   : > { %15300 = vst [vmem:[#allocation45_spill] sm:$0xff] %v12636_v39  ;;  %15303 = vst [vmem:[#allocation48_spill] sm:$0xff] %v12649_v17  ;;  %3103 = vmatpush1.bf16.msra.mxu1 %v12672_v44  ;;  %2869 = vmatprep.subr.bf16.mxu0 %v12674_v48  ;;  %v12688_v1 = vcombine.low %v2912_v2, %v2913_v33  ;;  %v12690_v5 = vcombine.high %v2679_v56, %v2680_v8  ;;  %v2917_v30 = vld [vmem:[%s12158_s17 + $0x168] sm:$0xff]  ;;  %v2683_v9 = vld [vmem:[%s12158_s17 + $0x180] sm:$0xff] }
 0x221   : > { %15302 = vst [vmem:[#allocation47_spill] sm:$0xff] %v12646_v15  ;;  %15304 = vst [vmem:[#allocation49_spill] sm:$0xff] %v12656_v23  ;;  %3104 = vmatprep.subr.bf16.mxu1 %v12677_v20  ;;  %v12693_v21 = vcombine.high %v2914_v49, %v2915_v63  ;;  %v2681_v23 = vld [vmem:[%s12158_s17 + $0x140] sm:$0xff]  ;;  %v12700_v17 = vcombine.low %v2679_v56, %v2680_v8  ;;  %v12704_v2 = vcombine.low %v2914_v49, %v2915_v63  ;;  %v2918_v56 = vld [vmem:[%s12158_s17 + $0x188] sm:$0xff] }
 0x222   : > { %v2682_v15 = vld [vmem:[%s12158_s17 + $0x160] sm:$0xff]  ;;  %v12709_v39 = vcombine.high %v2916_v28, %v2917_v30  ;;  %v2919_v8 = vld [vmem:[%s12158_s17 + $0x1a8] sm:$0xff]  ;;  %v12720_v49 = vcombine.low %v2916_v28, %v2917_v30  ;;  %v12738_v28 = vcombine.high %v2685_v22, %v2686_v18  ;;  %v12741_v30 = vcombine.high %v2920_v19, %v2921_v47 }
 0x223   : > { %2870 = vmatpush1.bf16.msra.mxu0 %v12684_v11  ;;  %v12706_v33 = vcombine.high %v2681_v23, %v2682_v15  ;;  %v2684_v52 = vld [vmem:[%s12158_s17 + $0x1a0] sm:$0xff]  ;;  %v12716_v55 = vcombine.low %v2681_v23, %v2682_v15  ;;  %v12725_v31 = vcombine.high %v2918_v56, %v2919_v8  ;;  %v12736_v23 = vcombine.low %v2918_v56, %v2919_v8 }
 0x224   : > { %3105 = vmatpush1.bf16.msra.mxu1 %v12688_v1  ;;  %2871 = vmatprep.subr.bf16.mxu0 %v12690_v5  ;;  %v12722_v63 = vcombine.high %v2683_v9, %v2684_v52  ;;  %v12732_v15 = vcombine.low %v2683_v9, %v2684_v52  ;;  %v12748_v52 = vcombine.low %v2920_v19, %v2921_v47  ;;  %v657_v9 = vsub.s32 4, %v12512_v32 }
 0x225   : > { %3106 = vmatprep.subr.bf16.mxu1 %v12693_v21  ;;  %v665_v18 = vsub.s32 6, %v12512_v32  ;;  %v669_v22 = vsub.s32 7, %v12512_v32  ;;  %v661_v56 = vsub.s32 5, %v12512_v32 }
 0x226   : > { %15306 = vst [vmem:[#allocation51_spill] sm:$0xff] %v12748_v52  ;;  %v12758_v8 = vrot.slane %v12516_v34, %v657_v9 }
 0x227   : > { %2872 = vmatpush1.bf16.msra.mxu0 %v12700_v17  ;;  %v12763_v19 = vrot.slane %v12516_v34, %v665_v18  ;;  %v12770_v7 = vrot.slane %v12516_v34, %v669_v22  ;;  %v12776_v32 = vrot.slane %v12516_v34, %v661_v56  ;;  %v12780_v18 = vcombine.high %v2687_v6, %v2688_v3  ;;  %v2689_v3 = vld [vmem:[%s12158_s17 + $0x240] sm:$0xff] }
 0x228   : > { %3107 = vmatpush1.bf16.msra.mxu1 %v12704_v2  ;;  %2873 = vmatprep.subr.bf16.mxu0 %v12706_v33  ;;  %v2690_v6 = vld [vmem:[%s12158_s17 + $0x260] sm:$0xff] }
 0x229   : > { %3108 = vmatprep.subr.bf16.mxu1 %v12709_v39  ;;  %15307 = vst [vmem:[#allocation52_spill] sm:$0xff] %v12780_v18  ;;  %v12811_v0 = vcombine.low %v2689_v3, %v2690_v6 }
 0x22b   : > { %2874 = vmatpush1.bf16.msra.mxu0 %v12716_v55  ;;  %15316 = vst [vmem:[#allocation61_spill] sm:$0xff] %v12811_v0 }
 0x22c   : > { %3109 = vmatpush1.bf16.msra.mxu1 %v12720_v49  ;;  %2875 = vmatprep.subr.bf16.mxu0 %v12722_v63 }
 0x22d   : > { %3110 = vmatprep.subr.bf16.mxu1 %v12725_v31 }
 0x22f   : > { %2876 = vmatpush1.bf16.msra.mxu0 %v12732_v15 }
 0x230   : > { %3111 = vmatpush1.bf16.msra.mxu1 %v12736_v23  ;;  %2877 = vmatprep.subr.bf16.mxu0 %v12738_v28 }
 0x231   : > { %3112 = vmatprep.subr.bf16.mxu1 %v12741_v30 }
 0x233   : > { %2878 = vmatpush1.bf16.msra.mxu0 %v12744_v16 }
 0x234   : > { %3113 = vmatpush1.bf16.msra.mxu1 %v12748_v52  ;;  %2879 = vmatprep.subr.bf16.mxu0 %v12780_v18 }
 0x235   : > { %3114 = vmatprep.subr.bf16.mxu1 %v12797_v51 }
 0x237   : > { %2880 = vmatpush1.bf16.msra.mxu0 %v12786_v54 }
 0x238   : > { %3115 = vmatpush1.bf16.msra.mxu1 %v12788_v53  ;;  %v2691_v53 = vld [vmem:[%s12158_s17 + $0x280] sm:$0xff] }
 0x243   : > { %v12760_v47 = vpop.f32.mrb[16].mxu0  ;;  %v12767_v13 = vpop.f32.mrb[16].mxu1 }
 0x244   : > { %v12765_v10 = vpop.f32.mrb[17].mxu0  ;;  %v12778_v29 = vpop.f32.mrb[17].mxu1 }
 0x245   : > { %v1503_v9 = vpop.f32.mrb[18].mxu0  ;;  %v1576_v60 = vpop.f32.mrb[18].mxu1 }
 0x246   : > { %v12784_v58 = vadd.f32 %v1503_v9, %v12758_v8  ;;  %v1505_v22 = vpop.f32.mrb[19].mxu0  ;;  %v12794_v56 = vadd.f32 %v1576_v60, %v12763_v19  ;;  %v1578_v50 = vpop.f32.mrb[19].mxu1  ;;  %v12807_v60 = vcombine.high %v2689_v3, %v2690_v6  ;;  %v2692_v3 = vld [vmem:[%s12158_s17 + $0x2a0] sm:$0xff]  ;;  %v2926_v6 = vld [vmem:[%s12158_s17 + $0x288] sm:$0xff] }
 0x247   : > { %v12791_v34 = vadd.f32 %v1505_v22, %v12776_v32  ;;  %v12800_v9 = vadd.f32 %v1578_v50, %v12770_v7  ;;  %v2925_v22 = vld [vmem:[%s12158_s17 + $0x268] sm:$0xff]  ;;  %v12832_v51 = vcombine.high %v2691_v53, %v2692_v3 }
 0x248   : > { %15308 = vst [vmem:[#allocation53_spill] sm:$0xff] %v12784_v58  ;;  %15312 = vst [vmem:[#allocation57_spill] sm:$0xff] %v12794_v56  ;;  %v2924_v58 = vld [vmem:[%s12158_s17 + $0x248] sm:$0xff]  ;;  %2881 = vmatprep.subr.bf16.mxu0 %v12807_v60 }
 0x249   : > { %15311 = vst [vmem:[#allocation56_spill] sm:$0xff] %v12791_v34  ;;  %15314 = vst [vmem:[#allocation59_spill] sm:$0xff] %v12800_v9  ;;  %v12813_v4 = vcombine.low %v2924_v58, %v2925_v22  ;;  %v12815_v50 = vcombine.high %v2924_v58, %v2925_v22  ;;  %2882 = vmatpush1.bf16.msra.mxu0 %v12811_v0 }
 0x24a   : > { %15315 = vst [vmem:[#allocation60_spill] sm:$0xff] %v12807_v60  ;;  %15322 = vst [vmem:[#allocation67_spill] sm:$0xff] %v12832_v51  ;;  %2883 = vmatprep.subr.bf16.mxu0 %v12832_v51 }
 0x24b   : > { %15317 = vst [vmem:[#allocation62_spill] sm:$0xff] %v12813_v4  ;;  %15318 = vst [vmem:[#allocation63_spill] sm:$0xff] %v12815_v50  ;;  %v1509_v9 = vpop.f32.mrb[20].mxu0  ;;  %v1582_v46 = vpop.f32.mrb[20].mxu1  ;;  %3116 = vmatprep.subr.bf16.mxu1 %v12815_v50 }
 0x24c   : > { %v12819_v34 = vadd.f32 %v1509_v9, %v12758_v8  ;;  %v1511_v56 = vpop.f32.mrb[21].mxu0  ;;  %v12830_v22 = vadd.f32 %v1582_v46, %v12763_v19  ;;  %v1584_v60 = vpop.f32.mrb[21].mxu1  ;;  %v2927_v9 = vld [vmem:[%s12158_s17 + $0x2a8] sm:$0xff]  ;;  %3117 = vmatpush1.bf16.msra.mxu1 %v12813_v4  ;;  %v12842_v46 = vcombine.low %v2691_v53, %v2692_v3  ;;  %v2693_v53 = vld [vmem:[%s12158_s17 + $0x2c0] sm:$0xff] }
 0x24d   : > { %v12827_v54 = vadd.f32 %v1511_v56, %v12776_v32  ;;  %v1513_v58 = vpop.f32.mrb[22].mxu0  ;;  %v12839_v50 = vadd.f32 %v1584_v60, %v12770_v7  ;;  %v1586_v56 = vpop.f32.mrb[22].mxu1  ;;  %v2694_v3 = vld [vmem:[%s12158_s17 + $0x2e0] sm:$0xff] }
 0x24e   : > { %15319 = vst [vmem:[#allocation64_spill] sm:$0xff] %v12819_v34  ;;  %15321 = vst [vmem:[#allocation66_spill] sm:$0xff] %v12830_v22  ;;  %v12836_v34 = vadd.f32 %v1513_v58, %v12758_v8  ;;  %v1515_v0 = vpop.f32.mrb[23].mxu0  ;;  %v12850_v18 = vadd.f32 %v1586_v56, %v12763_v19  ;;  %v1588_v58 = vpop.f32.mrb[23].mxu1  ;;  %2884 = vmatpush1.bf16.msra.mxu0 %v12842_v46  ;;  %v2929_v56 = vld [vmem:[%s12158_s17 + $0x2e8] sm:$0xff] }
 0x24f   : > { %15320 = vst [vmem:[#allocation65_spill] sm:$0xff] %v12827_v54  ;;  %15324 = vst [vmem:[#allocation69_spill] sm:$0xff] %v12839_v50  ;;  %v12844_v54 = vcombine.low %v2926_v6, %v2927_v9  ;;  %v12847_v22 = vadd.f32 %v1515_v0, %v12776_v32  ;;  %v12856_v60 = vadd.f32 %v1588_v58, %v12770_v7  ;;  %v2928_v50 = vld [vmem:[%s12158_s17 + $0x2c8] sm:$0xff] }
 0x250   : > { %15323 = vst [vmem:[#allocation68_spill] sm:$0xff] %v12836_v34  ;;  %15325 = vst [vmem:[#allocation70_spill] sm:$0xff] %v12842_v46  ;;  %v12853_v34 = vcombine.high %v2926_v6, %v2927_v9  ;;  %v12863_v0 = vcombine.high %v2693_v53, %v2694_v3  ;;  %v12867_v6 = vcombine.low %v2693_v53, %v2694_v3  ;;  %v2696_v53 = vld [vmem:[%s12158_s17 + $0x320] sm:$0xff]  ;;  %v2930_v3 = vld [vmem:[%s12158_s17 + $0x308] sm:$0xff] }
 0x251   : > { %15326 = vst [vmem:[#allocation71_spill] sm:$0xff] %v12844_v54  ;;  %15327 = vst [vmem:[#allocation72_spill] sm:$0xff] %v12847_v22  ;;  %v12869_v9 = vcombine.low %v2928_v50, %v2929_v56  ;;  %v12871_v58 = vcombine.high %v2928_v50, %v2929_v56 }
 0x252   : > { %15328 = vst [vmem:[#allocation73_spill] sm:$0xff] %v12850_v18  ;;  %15329 = vst [vmem:[#allocation74_spill] sm:$0xff] %v12853_v34  ;;  %3118 = vmatprep.subr.bf16.mxu1 %v12853_v34  ;;  %2885 = vmatprep.subr.bf16.mxu0 %v12863_v0 }
 0x253   : > { %15330 = vst [vmem:[#allocation75_spill] sm:$0xff] %v12856_v60  ;;  %15331 = vst [vmem:[#allocation76_spill] sm:$0xff] %v12863_v0  ;;  %3119 = vmatpush1.bf16.msra.mxu1 %v12844_v54  ;;  %v1519_v60 = vpop.f32.mrb[24].mxu0  ;;  %v1592_v46 = vpop.f32.mrb[24].mxu1  ;;  %2886 = vmatpush1.bf16.msra.mxu0 %v12867_v6  ;;  %v2695_v54 = vld [vmem:[%s12158_s17 + $0x300] sm:$0xff] }
 0x254   : > { %15332 = vst [vmem:[#allocation77_spill] sm:$0xff] %v12867_v6  ;;  %15333 = vst [vmem:[#allocation78_spill] sm:$0xff] %v12869_v9  ;;  %v12875_v22 = vadd.f32 %v1519_v60, %v12758_v8  ;;  %v1521_v18 = vpop.f32.mrb[25].mxu0  ;;  %3120 = vmatprep.subr.bf16.mxu1 %v12871_v58  ;;  %v12886_v56 = vadd.f32 %v1592_v46, %v12763_v19  ;;  %v1594_v0 = vpop.f32.mrb[25].mxu1  ;;  %v12888_v51 = vcombine.high %v2695_v54, %v2696_v53  ;;  %v2931_v60 = vld [vmem:[%s12158_s17 + $0x328] sm:$0xff] }
 0x255   : > { %15334 = vst [vmem:[#allocation79_spill] sm:$0xff] %v12871_v58  ;;  %v12883_v34 = vadd.f32 %v1521_v18, %v12776_v32  ;;  %v1523_v50 = vpop.f32.mrb[26].mxu0  ;;  %v12895_v58 = vadd.f32 %v1594_v0, %v12770_v7  ;;  %v1596_v18 = vpop.f32.mrb[26].mxu1  ;;  %v12898_v46 = vcombine.low %v2695_v54, %v2696_v53  ;;  %v2697_v54 = vld [vmem:[%s12158_s17 + $0x340] sm:$0xff] }
 0x256   : > { %15335 = vst [vmem:[#allocation80_spill] sm:$0xff] %v12875_v22  ;;  %15337 = vst [vmem:[#allocation82_spill] sm:$0xff] %v12886_v56  ;;  %v12892_v22 = vadd.f32 %v1523_v50, %v12758_v8  ;;  %v1525_v6 = vpop.f32.mrb[27].mxu0  ;;  %v12906_v4 = vadd.f32 %v1596_v18, %v12763_v19  ;;  %v1598_v50 = vpop.f32.mrb[27].mxu1  ;;  %2887 = vmatprep.subr.bf16.mxu0 %v12888_v51  ;;  %v2698_v53 = vld [vmem:[%s12158_s17 + $0x360] sm:$0xff]  ;;  %v2933_v18 = vld [vmem:[%s12158_s17 + $0x368] sm:$0xff] }
 0x257   : > { %15336 = vst [vmem:[#allocation81_spill] sm:$0xff] %v12883_v34  ;;  %15338 = vst [vmem:[#allocation83_spill] sm:$0xff] %v12888_v51  ;;  %3121 = vmatpush1.bf16.msra.mxu1 %v12869_v9  ;;  %v12900_v34 = vcombine.low %v2930_v3, %v2931_v60  ;;  %v12903_v56 = vadd.f32 %v1525_v6, %v12776_v32  ;;  %v12912_v0 = vadd.f32 %v1598_v50, %v12770_v7 }
 0x258   : > { %15339 = vst [vmem:[#allocation84_spill] sm:$0xff] %v12892_v22  ;;  %15340 = vst [vmem:[#allocation85_spill] sm:$0xff] %v12895_v58  ;;  %v12909_v22 = vcombine.high %v2930_v3, %v2931_v60  ;;  %2888 = vmatpush1.bf16.msra.mxu0 %v12898_v46  ;;  %v2932_v58 = vld [vmem:[%s12158_s17 + $0x348] sm:$0xff]  ;;  %v12919_v6 = vcombine.high %v2697_v54, %v2698_v53  ;;  %v12923_v3 = vcombine.low %v2697_v54, %v2698_v53  ;;  %v2700_v54 = vld [vmem:[%s12158_s17 + $0x3a0] sm:$0xff] }
 0x259   : > { %15341 = vst [vmem:[#allocation86_spill] sm:$0xff] %v12898_v46  ;;  %15342 = vst [vmem:[#allocation87_spill] sm:$0xff] %v12900_v34  ;;  %v12925_v60 = vcombine.low %v2932_v58, %v2933_v18  ;;  %v12927_v50 = vcombine.high %v2932_v58, %v2933_v18  ;;  %v2934_v53 = vld [vmem:[%s12158_s17 + $0x388] sm:$0xff] }
 0x25a   : > { %15343 = vst [vmem:[#allocation88_spill] sm:$0xff] %v12903_v56  ;;  %15344 = vst [vmem:[#allocation89_spill] sm:$0xff] %v12906_v4  ;;  %3122 = vmatprep.subr.bf16.mxu1 %v12909_v22  ;;  %2889 = vmatprep.subr.bf16.mxu0 %v12919_v6 }
 0x25b   : > { %15345 = vst [vmem:[#allocation90_spill] sm:$0xff] %v12909_v22  ;;  %15346 = vst [vmem:[#allocation91_spill] sm:$0xff] %v12912_v0  ;;  %3123 = vmatpush1.bf16.msra.mxu1 %v12900_v34  ;;  %v1529_v0 = vpop.f32.mrb[28].mxu0  ;;  %v1602_v46 = vpop.f32.mrb[28].mxu1  ;;  %v2699_v34 = vld [vmem:[%s12158_s17 + $0x380] sm:$0xff] }
 0x25c   : > { %15347 = vst [vmem:[#allocation92_spill] sm:$0xff] %v12919_v6  ;;  %15348 = vst [vmem:[#allocation93_spill] sm:$0xff] %v12923_v3  ;;  %v12931_v56 = vadd.f32 %v1529_v0, %v12758_v8  ;;  %v1531_v4 = vpop.f32.mrb[29].mxu0  ;;  %3124 = vmatprep.subr.bf16.mxu1 %v12927_v50  ;;  %2890 = vmatpush1.bf16.msra.mxu0 %v12923_v3  ;;  %v12942_v18 = vadd.f32 %v1602_v46, %v12763_v19  ;;  %v1604_v6 = vpop.f32.mrb[29].mxu1  ;;  %v2935_v0 = vld [vmem:[%s12158_s17 + $0x3a8] sm:$0xff] }
 0x25d   : > { %15349 = vst [vmem:[#allocation94_spill] sm:$0xff] %v12925_v60  ;;  %15350 = vst [vmem:[#allocation95_spill] sm:$0xff] %v12927_v50  ;;  %v12939_v22 = vadd.f32 %v1531_v4, %v12776_v32  ;;  %v1533_v58 = vpop.f32.mrb[30].mxu0  ;;  %v12944_v51 = vcombine.high %v2699_v34, %v2700_v54  ;;  %v12951_v50 = vadd.f32 %v1604_v6, %v12770_v7  ;;  %v1606_v4 = vpop.f32.mrb[30].mxu1 }
 0x25e   : > { %15351 = vst [vmem:[#allocation96_spill] sm:$0xff] %v12931_v56  ;;  %15353 = vst [vmem:[#allocation98_spill] sm:$0xff] %v12942_v18  ;;  %v12948_v56 = vadd.f32 %v1533_v58, %v12758_v8  ;;  %v1535_v3 = vpop.f32.mrb[31].mxu0  ;;  %v12954_v46 = vcombine.low %v2699_v34, %v2700_v54  ;;  %v12962_v9 = vadd.f32 %v1606_v4, %v12763_v19  ;;  %v1608_v58 = vpop.f32.mrb[31].mxu1  ;;  %v2701_v34 = vld [vmem:[%s12158_s17 + $0x3c0] sm:$0xff] }
 0x25f   : > { %15352 = vst [vmem:[#allocation97_spill] sm:$0xff] %v12939_v22  ;;  %15354 = vst [vmem:[#allocation99_spill] sm:$0xff] %v12944_v51  ;;  %3125 = vmatpush1.bf16.msra.mxu1 %v12925_v60  ;;  %v12956_v22 = vcombine.low %v2934_v53, %v2935_v0  ;;  %v12959_v18 = vadd.f32 %v1535_v3, %v12776_v32  ;;  %2891 = vmatprep.subr.bf16.mxu0 %v12944_v51  ;;  %v2702_v54 = vld [vmem:[%s12158_s17 + $0x3e0] sm:$0xff]  ;;  %v2936_v3 = vld [vmem:[%s12158_s17 + $0x3c8] sm:$0xff] }
 0x260   : > { %15355 = vst [vmem:[#allocation100_spill] sm:$0xff] %v12948_v56  ;;  %15356 = vst [vmem:[#allocation101_spill] sm:$0xff] %v12951_v50  ;;  %v12965_v56 = vcombine.high %v2934_v53, %v2935_v0  ;;  %v12968_v6 = vadd.f32 %v1608_v58, %v12770_v7  ;;  %2892 = vmatpush1.bf16.msra.mxu0 %v12954_v46  ;;  %v12975_v4 = vcombine.high %v2701_v34, %v2702_v54  ;;  %v3376_v50 = vld [vmem:[%s12158_s17 + $0x18] sm:$0xff] }
 0x261   : > { %15357 = vst [vmem:[#allocation102_spill] sm:$0xff] %v12954_v46  ;;  %15358 = vst [vmem:[#allocation103_spill] sm:$0xff] %v12956_v22  ;;  %v12979_v53 = vcombine.low %v2701_v34, %v2702_v54  ;;  %v1354_v54 = vadd.f32 %v12524_v61, %v12522_v12 }
 0x262   : > { %15359 = vst [vmem:[#allocation104_spill] sm:$0xff] %v12959_v18  ;;  %15360 = vst [vmem:[#allocation105_spill] sm:$0xff] %v12962_v9  ;;  %3126 = vmatprep.subr.bf16.mxu1 %v12965_v56  ;;  %v2937_v18 = vld [vmem:[%s12158_s17 + $0x3e8] sm:$0xff]  ;;  %2893 = vmatprep.subr.bf16.mxu0 %v12975_v4  ;;  %v3142_v9 = vld [vmem:[%s12158_s17 + $0x30] sm:$0xff] }
 0x263   : > { %15361 = vst [vmem:[#allocation106_spill] sm:$0xff] %v12965_v56  ;;  %15362 = vst [vmem:[#allocation107_spill] sm:$0xff] %v12968_v6  ;;  %3127 = vmatpush1.bf16.msra.mxu1 %v12956_v22  ;;  %v12981_v0 = vcombine.low %v2936_v3, %v2937_v18  ;;  %v12983_v58 = vcombine.high %v2936_v3, %v2937_v18  ;;  %v3141_v6 = vld [vmem:[%s12158_s17 + $0x10] sm:$0xff]  ;;  %v3377_v22 = vld [vmem:[%s12158_s17 + $0x38] sm:$0xff]  ;;  %v1356_v3 = vadd.f32 %v12529_v40, %v12537_v43 }
 0x264   : > { %15363 = vst [vmem:[#allocation108_spill] sm:$0xff] %v12975_v4  ;;  %15364 = vst [vmem:[#allocation109_spill] sm:$0xff] %v12979_v53  ;;  %2894 = vmatpush1.bf16.msra.mxu0 %v12979_v53  ;;  %v12991_v46 = vcombine.low %v3141_v6, %v3142_v9  ;;  %v12993_v56 = vcombine.high %v3141_v6, %v3142_v9  ;;  %v12997_v34 = vcombine.low %v3376_v50, %v3377_v22 }
 0x265   : > { %15365 = vst [vmem:[#allocation110_spill] sm:$0xff] %v12981_v0  ;;  %15366 = vst [vmem:[#allocation111_spill] sm:$0xff] %v12983_v58  ;;  %3128 = vmatprep.subr.bf16.mxu1 %v12983_v58  ;;  %v12999_v18 = vcombine.high %v3376_v50, %v3377_v22  ;;  %v1427_v9 = vadd.f32 %v12531_v41, %v12527_v36  ;;  %v1500_v36 = vadd.f32 %v12760_v47, %v12758_v8 }
 0x266   : > { %15367 = vst [vmem:[#allocation112_spill] sm:$0xff] %v12993_v56  ;;  %3333 = vmatprep.subr.bf16.mxu0 %v12993_v56  ;;  %v1502_v41 = vadd.f32 %v12765_v10, %v12776_v32 }
 0x267   : > { %3129 = vmatpush1.bf16.msra.mxu1 %v12981_v0  ;;  %15368 = vst [vmem:[#allocation113_spill] sm:$0xff] %v12999_v18  ;;  %v1429_v0 = vadd.f32 %v12539_v45, %v12534_v42  ;;  %v1573_v42 = vadd.f32 %v12767_v13, %v12763_v19 }
 0x268   : > { %3568 = vmatprep.subr.bf16.mxu1 %v12999_v18 }
 0x283   : > { %v1909_v6 = vpop.f32.mrb[32].mxu0  ;;  %v2144_v22 = vpop.f32.mrb[32].mxu1 }
 0x284   : > { %v1916_v53 = vadd.f32 %v1909_v6, %v1354_v54  ;;  %v1911_v50 = vpop.f32.mrb[33].mxu0  ;;  %v2151_v58 = vadd.f32 %v2144_v22, %v1427_v9  ;;  %v2146_v4 = vpop.f32.mrb[33].mxu1 }
 0x285   : > { %v1917_v56 = vadd.f32 %v1911_v50, %v1356_v3  ;;  %v1913_v18 = vpop.f32.mrb[34].mxu0  ;;  %v2152_v51 = vadd.f32 %v2146_v4, %v1429_v0  ;;  %v2148_v12 = vpop.f32.mrb[34].mxu1 }
 0x286   : > { %v1914_v60 = vpop.f32.mrb[35].mxu0  ;;  %v2149_v61 = vpop.f32.mrb[35].mxu1  ;;  %v2631_v52 = vmul.f32 0.5, %v2151_v58  ;;  %v2623_v43 = vmul.f32 0.5, %v1916_v53 }
 0x287   : > { %v2632_v40 = vmul.f32 0.5, %v2152_v51  ;;  %v2624_v16 = vmul.f32 0.5, %v1917_v56  ;;  %v1575_v60 = vadd.f32 %v12778_v29, %v12770_v7 }
 0x288   : > { %11399 = vtanh.f32 %v2631_v52 }
 0x289   : > { %11401 = vtanh.f32 %v2632_v40 }
 0x28a   : > { %11403 = vtanh.f32 %v2623_v43 }
 0x28b   : > { %11405 = vtanh.f32 %v2624_v16 }
 0x292   : > { %v11400_v58 = vpop.eup %11399 }
 0x293   : > { %v11402_v10 = vpop.eup %11401  ;;  %v2635_v54 = vmul.f32 0.5, %v11400_v58 }
 0x294   : > { %v11404_v13 = vpop.eup %11403  ;;  %v2636_v29 = vmul.f32 0.5, %v11402_v10  ;;  %v3143_v10 = vld [vmem:[%s12158_s17 + $0x50] sm:$0xff] }
 0x295   : > { %v11406_v19 = vpop.eup %11405  ;;  %v2627_v9 = vmul.f32 0.5, %v11404_v13  ;;  %v2637_v22 = vadd.f32 0.5, %v2635_v54  ;;  %v3144_v13 = vld [vmem:[%s12158_s17 + $0x70] sm:$0xff]  ;;  %v3379_v54 = vld [vmem:[%s12158_s17 + $0x78] sm:$0xff] }
 0x296   : > { %v2628_v6 = vmul.f32 0.5, %v11406_v19  ;;  %v2638_v50 = vadd.f32 0.5, %v2636_v29  ;;  %v3378_v19 = vld [vmem:[%s12158_s17 + $0x58] sm:$0xff]  ;;  %v3145_v29 = vld [vmem:[%s12158_s17 + $0x90] sm:$0xff] }
 0x297   : > { %v2629_v12 = vadd.f32 0.5, %v2627_v9  ;;  %v13035_v9 = vcombine.high %v3378_v19, %v3379_v54 }
 0x298   : > { %v2630_v40 = vadd.f32 0.5, %v2628_v6  ;;  %v3146_v6 = vld [vmem:[%s12158_s17 + $0xb0] sm:$0xff] }
 0x2c3   : > { %v2379_v45 = vpop.f32.mrb[36].mxu0  ;;  %v2614_v4 = vpop.f32.mrb[36].mxu1 }
 0x2c4   : > { %v2386_v51 = vadd.f32 %v2379_v45, %v1500_v36  ;;  %v2381_v56 = vpop.f32.mrb[37].mxu0  ;;  %v2621_v52 = vadd.f32 %v2614_v4, %v1573_v42  ;;  %v2616_v0 = vpop.f32.mrb[37].mxu1  ;;  %v2649_v36 = vmul.f32 0.0, %v2637_v22  ;;  %v2650_v42 = vmul.f32 0.0, %v2638_v50  ;;  %v3380_v22 = vld [vmem:[%s12158_s17 + $0x98] sm:$0xff] }
 0x2c5   : > { %v2387_v53 = vadd.f32 %v2381_v56, %v1502_v41  ;;  %v2383_v16 = vpop.f32.mrb[38].mxu0  ;;  %v2622_v8 = vadd.f32 %v2616_v0, %v1575_v60  ;;  %v2618_v18 = vpop.f32.mrb[38].mxu1  ;;  %v3381_v50 = vld [vmem:[%s12158_s17 + $0xb8] sm:$0xff] }
 0x2c6   : > { %11407 = vtanh.f32 %v2386_v51  ;;  %v2384_v47 = vpop.f32.mrb[39].mxu0  ;;  %v2619_v32 = vpop.f32.mrb[39].mxu1  ;;  %v2641_v3 = vmul.f32 0.5, %v2621_v52 }
 0x2c7   : > { %11409 = vtanh.f32 %v2387_v53  ;;  %v2642_v7 = vmul.f32 0.5, %v2622_v8 }
 0x2c8   : > { %11411 = vtanh.f32 %v2641_v3 }
 0x2c9   : > { %11413 = vtanh.f32 %v2642_v7  ;;  %v13033_v7 = vcombine.high %v3143_v10, %v3144_v13 }
 0x2d0   : > { %v11408_v61 = vpop.eup %11407 }
 0x2d1   : > { %v11410_v43 = vpop.eup %11409  ;;  %v2651_v41 = vmul.f32 %v11408_v61, %v2629_v12  ;;  %v13044_v12 = vcombine.low %v3143_v10, %v3144_v13  ;;  %v13046_v61 = vcombine.low %v3378_v19, %v3379_v54  ;;  %v3151_v19 = vld [vmem:[%s12158_s17 + $0x150] sm:$0xff] }
 0x2d2   : > { %v2652_v45 = vmul.f32 %v11410_v43, %v2630_v40  ;;  %v11412_v4 = vpop.eup %11411  ;;  %v13048_v40 = vcombine.high %v3145_v29, %v3146_v6  ;;  %v13050_v43 = vcombine.high %v3380_v22, %v3381_v50  ;;  %v3152_v54 = vld [vmem:[%s12158_s17 + $0x170] sm:$0xff] }
 0x2d3   : > { %v13019_v60 = vadd.f32 %v2651_v41, %v2649_v36  ;;  %v11414_v56 = vpop.eup %11413  ;;  %v2645_v52 = vmul.f32 0.5, %v11412_v4  ;;  %v3147_v36 = vld [vmem:[%s12158_s17 + $0xd0] sm:$0xff]  ;;  %v13060_v4 = vcombine.low %v3145_v29, %v3146_v6  ;;  %v3387_v29 = vld [vmem:[%s12158_s17 + $0x178] sm:$0xff] }
 0x2d4   : > { %v13021_v51 = vadd.f32 %v2652_v45, %v2650_v42  ;;  %v2646_v53 = vmul.f32 0.5, %v11414_v56  ;;  %v3148_v41 = vld [vmem:[%s12158_s17 + $0xf0] sm:$0xff]  ;;  %v3382_v42 = vld [vmem:[%s12158_s17 + $0xd8] sm:$0xff]  ;;  %v13062_v56 = vcombine.low %v3380_v22, %v3381_v50  ;;  %v13098_v50 = vcombine.high %v3151_v19, %v3152_v54 }
 0x2d5   : > { %11415 = vtanh.f32 %v13019_v60  ;;  %v2647_v0 = vadd.f32 0.5, %v2645_v52  ;;  %v3383_v45 = vld [vmem:[%s12158_s17 + $0xf8] sm:$0xff]  ;;  %v13066_v52 = vcombine.high %v3147_v36, %v3148_v41 }
 0x2d6   : > { %11417 = vtanh.f32 %v13021_v51  ;;  %v2648_v58 = vadd.f32 0.5, %v2646_v53  ;;  %v13068_v53 = vcombine.high %v3382_v42, %v3383_v45  ;;  %15376 = vst [vmem:[#allocation121_spill] sm:$0xff] %v13098_v50 }
 0x2d8   : > { %15369 = vst [vmem:[#allocation114_spill] sm:$0xff] %v13068_v53 }
 0x2df   : > { %v11416_v16 = vpop.eup %11415 }
 0x2e0   : > { %v11418_v8 = vpop.eup %11417  ;;  %v2657_v47 = vmul.f32 %v11416_v16, %v2647_v0  ;;  %v3149_v0 = vld [vmem:[%s12158_s17 + $0x110] sm:$0xff] }
 0x2e1   : > { %v2658_v18 = vmul.f32 %v11418_v8, %v2648_v58  ;;  %v3150_v16 = vld [vmem:[%s12158_s17 + $0x130] sm:$0xff]  ;;  %v3384_v58 = vld [vmem:[%s12158_s17 + $0x118] sm:$0xff] }
 0x2e2   : > { %v13026_v32 = vpack.c.bf16 %v2657_v47, %v2657_v47  ;;  %v3385_v8 = vld [vmem:[%s12158_s17 + $0x138] sm:$0xff]  ;;  %v13076_v47 = vcombine.low %v3147_v36, %v3148_v41  ;;  %v13082_v10 = vcombine.high %v3149_v0, %v3150_v16  ;;  %v13092_v6 = vcombine.low %v3149_v0, %v3150_v16  ;;  %v3153_v41 = vld [vmem:[%s12158_s17 + $0x190] sm:$0xff] }
 0x2e3   : > { %v2660_v3 = vpack.c.bf16 %v2658_v18, %v2658_v18  ;;  %v13078_v18 = vcombine.low %v3382_v42, %v3383_v45  ;;  %v13084_v13 = vcombine.high %v3384_v58, %v3385_v8  ;;  %v13094_v22 = vcombine.low %v3384_v58, %v3385_v8  ;;  %v3154_v42 = vld [vmem:[%s12158_s17 + $0x1b0] sm:$0xff]  ;;  %v3388_v45 = vld [vmem:[%s12158_s17 + $0x198] sm:$0xff] }
 0x2e4   : > { %2661 = vst [vmem:[#allocation2] sm:$0xf] %v13026_v32  ;;  %15370 = vst [vmem:[#allocation115_spill] sm:$0xff] %v13076_v47  ;;  %v13108_v0 = vcombine.low %v3151_v19, %v3152_v54  ;;  %v13114_v58 = vcombine.high %v3153_v41, %v3154_v42  ;;  %v13124_v19 = vcombine.low %v3153_v41, %v3154_v42 }
 0x2e5   : > { %2662 = vst [vmem:[#allocation2 + $0x8] sm:$0xf] %v2660_v3  ;;  %2895 = vmatprep.mubr.bf16.mxu0 %v2660_v3  ;;  %3130 = vmatprep.mubr.bf16.mxu1 %v2660_v3  ;;  %15371 = vst [vmem:[#allocation116_spill] sm:$0xff] %v13078_v18 }
 0x2e6   : > { %2896 = vmatmul.mubr.bf16.vlgmr.msra.gmra.mrb[40].mxu0 %v13026_v32  ;;  %3131 = vmatmul.mubr.bf16.vlgmr.msra.gmra.mrb[40].mxu1 %v13026_v32  ;;  %15372 = vst [vmem:[#allocation117_spill] sm:$0xff] %v13082_v10  ;;  %15373 = vst [vmem:[#allocation118_spill] sm:$0xff] %v13084_v13 }
 0x2e7   : > { %3334 = vmatpush1.bf16.msra.mxu0 %v12991_v46  ;;  %3569 = vmatpush1.bf16.msra.mxu1 %v12997_v34  ;;  %15374 = vst [vmem:[#allocation119_spill] sm:$0xff] %v13092_v6  ;;  %15375 = vst [vmem:[#allocation120_spill] sm:$0xff] %v13094_v22 }
 0x2e8   : > { %3365 = vmatprep.mubr.bf16.mxu0 %v2660_v3  ;;  %3600 = vmatprep.mubr.bf16.mxu1 %v2660_v3  ;;  %v3386_v3 = vld [vmem:[%s12158_s17 + $0x158] sm:$0xff]  ;;  %15378 = vst [vmem:[#allocation123_spill] sm:$0xff] %v13108_v0  ;;  %15380 = vst [vmem:[#allocation125_spill] sm:$0xff] %v13114_v58 }
 0x2e9   : > { %3335 = vmatprep.subr.bf16.mxu0 %v13033_v7  ;;  %3570 = vmatprep.subr.bf16.mxu1 %v13035_v9  ;;  %v13100_v36 = vcombine.high %v3386_v3, %v3387_v29  ;;  %v13110_v16 = vcombine.low %v3386_v3, %v3387_v29  ;;  %15382 = vst [vmem:[#allocation127_spill] sm:$0xff] %v13124_v19 }
 0x2eb   : > { %3336 = vmatpush1.bf16.msra.mxu0 %v13044_v12  ;;  %3571 = vmatpush1.bf16.msra.mxu1 %v13046_v61  ;;  %15377 = vst [vmem:[#allocation122_spill] sm:$0xff] %v13100_v36  ;;  %15379 = vst [vmem:[#allocation124_spill] sm:$0xff] %v13110_v16 }
 0x2ec   : > { %3337 = vmatprep.subr.bf16.mxu0 %v13048_v40  ;;  %3572 = vmatprep.subr.bf16.mxu1 %v13050_v43 }
 0x2ef   : > { %3338 = vmatpush1.bf16.msra.mxu0 %v13060_v4  ;;  %3573 = vmatpush1.bf16.msra.mxu1 %v13062_v56 }
 0x2f0   : > { %3339 = vmatprep.subr.bf16.mxu0 %v13066_v52  ;;  %3574 = vmatprep.subr.bf16.mxu1 %v13068_v53  ;;  %v3407_v53 = vld [vmem:[%s12158_s17 + $0x3f8] sm:$0xff] }
 0x2f3   : > { %3340 = vmatpush1.bf16.msra.mxu0 %v13076_v47  ;;  %3575 = vmatpush1.bf16.msra.mxu1 %v13078_v18  ;;  %v3389_v18 = vld [vmem:[%s12158_s17 + $0x1b8] sm:$0xff] }
 0x2f4   : > { %3341 = vmatprep.subr.bf16.mxu0 %v13082_v10  ;;  %3576 = vmatprep.subr.bf16.mxu1 %v13084_v13  ;;  %v13116_v8 = vcombine.high %v3388_v45, %v3389_v18  ;;  %v3155_v13 = vld [vmem:[%s12158_s17 + $0x1d0] sm:$0xff]  ;;  %v3390_v10 = vld [vmem:[%s12158_s17 + $0x1d8] sm:$0xff]  ;;  %v13126_v54 = vcombine.low %v3388_v45, %v3389_v18 }
 0x2f5   : > { %v3406_v47 = vld [vmem:[%s12158_s17 + $0x3d8] sm:$0xff] }
 0x2f6   : > { %15381 = vst [vmem:[#allocation126_spill] sm:$0xff] %v13116_v8  ;;  %15383 = vst [vmem:[#allocation128_spill] sm:$0xff] %v13126_v54 }
 0x2f7   : > { %3342 = vmatpush1.bf16.msra.mxu0 %v13092_v6  ;;  %3577 = vmatpush1.bf16.msra.mxu1 %v13094_v22  ;;  %v3156_v6 = vld [vmem:[%s12158_s17 + $0x1f0] sm:$0xff]  ;;  %v3391_v22 = vld [vmem:[%s12158_s17 + $0x1f8] sm:$0xff] }
 0x2f8   : > { %3343 = vmatprep.subr.bf16.mxu0 %v13098_v50  ;;  %3578 = vmatprep.subr.bf16.mxu1 %v13100_v36  ;;  %v13130_v3 = vcombine.high %v3155_v13, %v3156_v6  ;;  %v13132_v29 = vcombine.high %v3390_v10, %v3391_v22  ;;  %v3157_v36 = vld [vmem:[%s12158_s17 + $0x210] sm:$0xff]  ;;  %v3392_v50 = vld [vmem:[%s12158_s17 + $0x218] sm:$0xff]  ;;  %v13140_v18 = vcombine.low %v3155_v13, %v3156_v6 }
 0x2f9   : > { %v13142_v41 = vcombine.low %v3390_v10, %v3391_v22 }
 0x2fa   : > { %15384 = vst [vmem:[#allocation129_spill] sm:$0xff] %v13130_v3  ;;  %15385 = vst [vmem:[#allocation130_spill] sm:$0xff] %v13132_v29 }
 0x2fb   : > { %3344 = vmatpush1.bf16.msra.mxu0 %v13108_v0  ;;  %3579 = vmatpush1.bf16.msra.mxu1 %v13110_v16  ;;  %v3158_v0 = vld [vmem:[%s12158_s17 + $0x230] sm:$0xff]  ;;  %v3393_v16 = vld [vmem:[%s12158_s17 + $0x238] sm:$0xff]  ;;  %15386 = vst [vmem:[#allocation131_spill] sm:$0xff] %v13140_v18  ;;  %15387 = vst [vmem:[#allocation132_spill] sm:$0xff] %v13142_v41 }
 0x2fc   : > { %3345 = vmatprep.subr.bf16.mxu0 %v13114_v58  ;;  %3580 = vmatprep.subr.bf16.mxu1 %v13116_v8  ;;  %v13146_v42 = vcombine.high %v3157_v36, %v3158_v0  ;;  %v13148_v45 = vcombine.high %v3392_v50, %v3393_v16  ;;  %v3159_v8 = vld [vmem:[%s12158_s17 + $0x250] sm:$0xff]  ;;  %v3394_v58 = vld [vmem:[%s12158_s17 + $0x258] sm:$0xff]  ;;  %v13156_v10 = vcombine.low %v3157_v36, %v3158_v0 }
 0x2fd   : > { %v13158_v13 = vcombine.low %v3392_v50, %v3393_v16 }
 0x2fe   : > { %15388 = vst [vmem:[#allocation133_spill] sm:$0xff] %v13146_v42  ;;  %15389 = vst [vmem:[#allocation134_spill] sm:$0xff] %v13148_v45 }
 0x2ff   : > { %3346 = vmatpush1.bf16.msra.mxu0 %v13124_v19  ;;  %3581 = vmatpush1.bf16.msra.mxu1 %v13126_v54  ;;  %v3160_v19 = vld [vmem:[%s12158_s17 + $0x270] sm:$0xff]  ;;  %v3395_v54 = vld [vmem:[%s12158_s17 + $0x278] sm:$0xff]  ;;  %15390 = vst [vmem:[#allocation135_spill] sm:$0xff] %v13156_v10  ;;  %15391 = vst [vmem:[#allocation136_spill] sm:$0xff] %v13158_v13 }
 0x300   : > { %3347 = vmatprep.subr.bf16.mxu0 %v13130_v3  ;;  %3582 = vmatprep.subr.bf16.mxu1 %v13132_v29  ;;  %v13162_v6 = vcombine.high %v3159_v8, %v3160_v19  ;;  %v13164_v22 = vcombine.high %v3394_v58, %v3395_v54  ;;  %v3161_v29 = vld [vmem:[%s12158_s17 + $0x290] sm:$0xff]  ;;  %v3396_v3 = vld [vmem:[%s12158_s17 + $0x298] sm:$0xff]  ;;  %v13172_v50 = vcombine.low %v3159_v8, %v3160_v19 }
 0x301   : > { %v13174_v36 = vcombine.low %v3394_v58, %v3395_v54 }
 0x302   : > { %15392 = vst [vmem:[#allocation137_spill] sm:$0xff] %v13162_v6  ;;  %15393 = vst [vmem:[#allocation138_spill] sm:$0xff] %v13164_v22 }
 0x303   : > { %3348 = vmatpush1.bf16.msra.mxu0 %v13140_v18  ;;  %3583 = vmatpush1.bf16.msra.mxu1 %v13142_v41  ;;  %v3162_v18 = vld [vmem:[%s12158_s17 + $0x2b0] sm:$0xff]  ;;  %v3397_v41 = vld [vmem:[%s12158_s17 + $0x2b8] sm:$0xff]  ;;  %15394 = vst [vmem:[#allocation139_spill] sm:$0xff] %v13172_v50  ;;  %15395 = vst [vmem:[#allocation140_spill] sm:$0xff] %v13174_v36 }
 0x304   : > { %3349 = vmatprep.subr.bf16.mxu0 %v13146_v42  ;;  %3584 = vmatprep.subr.bf16.mxu1 %v13148_v45  ;;  %v13178_v0 = vcombine.high %v3161_v29, %v3162_v18  ;;  %v13180_v16 = vcombine.high %v3396_v3, %v3397_v41  ;;  %v3163_v45 = vld [vmem:[%s12158_s17 + $0x2d0] sm:$0xff]  ;;  %v3398_v42 = vld [vmem:[%s12158_s17 + $0x2d8] sm:$0xff]  ;;  %v13188_v58 = vcombine.low %v3161_v29, %v3162_v18 }
 0x305   : > { %v13190_v8 = vcombine.low %v3396_v3, %v3397_v41 }
 0x306   : > { %15396 = vst [vmem:[#allocation141_spill] sm:$0xff] %v13178_v0  ;;  %15397 = vst [vmem:[#allocation142_spill] sm:$0xff] %v13180_v16 }
 0x307   : > { %3350 = vmatpush1.bf16.msra.mxu0 %v13156_v10  ;;  %3585 = vmatpush1.bf16.msra.mxu1 %v13158_v13  ;;  %v3164_v10 = vld [vmem:[%s12158_s17 + $0x2f0] sm:$0xff]  ;;  %v3399_v13 = vld [vmem:[%s12158_s17 + $0x2f8] sm:$0xff]  ;;  %15398 = vst [vmem:[#allocation143_spill] sm:$0xff] %v13188_v58  ;;  %15399 = vst [vmem:[#allocation144_spill] sm:$0xff] %v13190_v8 }
 0x308   : > { %3351 = vmatprep.subr.bf16.mxu0 %v13162_v6  ;;  %3586 = vmatprep.subr.bf16.mxu1 %v13164_v22  ;;  %v13194_v19 = vcombine.high %v3163_v45, %v3164_v10  ;;  %v13196_v54 = vcombine.high %v3398_v42, %v3399_v13  ;;  %v3165_v22 = vld [vmem:[%s12158_s17 + $0x310] sm:$0xff]  ;;  %v3400_v6 = vld [vmem:[%s12158_s17 + $0x318] sm:$0xff]  ;;  %v13204_v3 = vcombine.low %v3163_v45, %v3164_v10 }
 0x309   : > { %v13206_v29 = vcombine.low %v3398_v42, %v3399_v13 }
 0x30a   : > { %15400 = vst [vmem:[#allocation145_spill] sm:$0xff] %v13194_v19  ;;  %15401 = vst [vmem:[#allocation146_spill] sm:$0xff] %v13196_v54 }
 0x30b   : > { %3352 = vmatpush1.bf16.msra.mxu0 %v13172_v50  ;;  %3587 = vmatpush1.bf16.msra.mxu1 %v13174_v36  ;;  %v3166_v50 = vld [vmem:[%s12158_s17 + $0x330] sm:$0xff]  ;;  %v3401_v36 = vld [vmem:[%s12158_s17 + $0x338] sm:$0xff]  ;;  %15402 = vst [vmem:[#allocation147_spill] sm:$0xff] %v13204_v3  ;;  %15403 = vst [vmem:[#allocation148_spill] sm:$0xff] %v13206_v29 }
 0x30c   : > { %3353 = vmatprep.subr.bf16.mxu0 %v13178_v0  ;;  %3588 = vmatprep.subr.bf16.mxu1 %v13180_v16  ;;  %v13210_v18 = vcombine.high %v3165_v22, %v3166_v50  ;;  %v13212_v41 = vcombine.high %v3400_v6, %v3401_v36  ;;  %v3167_v16 = vld [vmem:[%s12158_s17 + $0x350] sm:$0xff]  ;;  %v3402_v0 = vld [vmem:[%s12158_s17 + $0x358] sm:$0xff]  ;;  %v13220_v42 = vcombine.low %v3165_v22, %v3166_v50 }
 0x30d   : > { %v13222_v45 = vcombine.low %v3400_v6, %v3401_v36 }
 0x30e   : > { %15404 = vst [vmem:[#allocation149_spill] sm:$0xff] %v13210_v18  ;;  %15405 = vst [vmem:[#allocation150_spill] sm:$0xff] %v13212_v41 }
 0x30f   : > { %3354 = vmatpush1.bf16.msra.mxu0 %v13188_v58  ;;  %3589 = vmatpush1.bf16.msra.mxu1 %v13190_v8  ;;  %v3168_v58 = vld [vmem:[%s12158_s17 + $0x370] sm:$0xff]  ;;  %v3403_v8 = vld [vmem:[%s12158_s17 + $0x378] sm:$0xff] }
 0x310   : > { %3355 = vmatprep.subr.bf16.mxu0 %v13194_v19  ;;  %3590 = vmatprep.subr.bf16.mxu1 %v13196_v54  ;;  %v13226_v10 = vcombine.high %v3167_v16, %v3168_v58  ;;  %v13228_v13 = vcombine.high %v3402_v0, %v3403_v8  ;;  %v3169_v54 = vld [vmem:[%s12158_s17 + $0x390] sm:$0xff]  ;;  %v3404_v19 = vld [vmem:[%s12158_s17 + $0x398] sm:$0xff]  ;;  %v13236_v6 = vcombine.low %v3167_v16, %v3168_v58 }
 0x311   : > { %v13238_v22 = vcombine.low %v3402_v0, %v3403_v8  ;;  %v13260_v8 = vcombine.high %v3406_v47, %v3407_v53 }
 0x312   : > { %15406 = vst [vmem:[#allocation151_spill] sm:$0xff] %v13228_v13  ;;  %15407 = vst [vmem:[#allocation152_spill] sm:$0xff] %v13236_v6 }
 0x313   : > { %3356 = vmatpush1.bf16.msra.mxu0 %v13204_v3  ;;  %3591 = vmatpush1.bf16.msra.mxu1 %v13206_v29  ;;  %v3170_v3 = vld [vmem:[%s12158_s17 + $0x3b0] sm:$0xff]  ;;  %v3405_v29 = vld [vmem:[%s12158_s17 + $0x3b8] sm:$0xff] }
 0x314   : > { %3357 = vmatprep.subr.bf16.mxu0 %v13210_v18  ;;  %3592 = vmatprep.subr.bf16.mxu1 %v13212_v41  ;;  %v13242_v50 = vcombine.high %v3169_v54, %v3170_v3  ;;  %v13244_v36 = vcombine.high %v3404_v19, %v3405_v29  ;;  %v3171_v41 = vld [vmem:[%s12158_s17 + $0x3d0] sm:$0xff]  ;;  %v13252_v16 = vcombine.low %v3169_v54, %v3170_v3  ;;  %v15442_v54 = vld [vmem:[#allocation112_spill] sm:$0xff] }
 0x315   : > { %v3172_v18 = vld [vmem:[%s12158_s17 + $0x3f0] sm:$0xff]  ;;  %v13254_v0 = vcombine.low %v3404_v19, %v3405_v29 }
 0x316   : > { %v13258_v58 = vcombine.high %v3171_v41, %v3172_v18  ;;  %v15441_v19 = vld [vmem:[#allocation110_spill] sm:$0xff]  ;;  %v15443_v3 = vld [vmem:[#allocation113_spill] sm:$0xff] }
 0x317   : > { %3358 = vmatpush1.bf16.msra.mxu0 %v13220_v42  ;;  %3593 = vmatpush1.bf16.msra.mxu1 %v13222_v45 }
 0x318   : > { %3359 = vmatprep.subr.bf16.mxu0 %v13226_v10  ;;  %3594 = vmatprep.subr.bf16.mxu1 %v13228_v13  ;;  %v13264_v13 = vcombine.low %v3171_v41, %v3172_v18  ;;  %v15444_v41 = vld [vmem:[#allocation22_spill] sm:$0xff] }
 0x31b   : > { %3360 = vmatpush1.bf16.msra.mxu0 %v13236_v6  ;;  %3595 = vmatpush1.bf16.msra.mxu1 %v13238_v22  ;;  %v13266_v6 = vcombine.low %v3406_v47, %v3407_v53  ;;  %v15439_v53 = vld [vmem:[#allocation111_spill] sm:$0xff]  ;;  %v15440_v47 = vld [vmem:[#allocation109_spill] sm:$0xff] }
 0x31c   : > { %3361 = vmatprep.subr.bf16.mxu0 %v13242_v50  ;;  %3596 = vmatprep.subr.bf16.mxu1 %v13244_v36 }
 0x31f   : > { %3362 = vmatpush1.bf16.msra.mxu0 %v13252_v16  ;;  %3597 = vmatpush1.bf16.msra.mxu1 %v13254_v0 }
 0x320   : > { %3363 = vmatprep.subr.bf16.mxu0 %v13258_v58  ;;  %3598 = vmatprep.subr.bf16.mxu1 %v13260_v8 }
 0x323   : > { %3364 = vmatpush1.bf16.msra.mxu0 %v13264_v13  ;;  %3599 = vmatpush1.bf16.msra.mxu1 %v13266_v6 }
 0x324   : > { %3857 = vmatprep.subr.bf16.mxu0 %v12606_v27  ;;  %4092 = vmatprep.subr.bf16.mxu1 %v12616_v38  ;;  %v15409_v27 = vld [vmem:[#allocation51_spill] sm:$0xff]  ;;  %v15411_v38 = vld [vmem:[#allocation58_spill] sm:$0xff] }
 0x326   : > { %3366 = vmatmul.mubr.bf16.vlgmr.msra.gmra.mrb[44].mxu0 %v13026_v32  ;;  %3601 = vmatmul.mubr.bf16.vlgmr.msra.gmra.mrb[44].mxu1 %v13026_v32  ;;  %v15438_v32 = vld [vmem:[#allocation108_spill] sm:$0xff] }
 0x327   : > { %3858 = vmatpush1.bf16.msra.mxu0 %v12604_v26  ;;  %4093 = vmatpush1.bf16.msra.mxu1 %v12614_v37  ;;  %v15408_v26 = vld [vmem:[#allocation50_spill] sm:$0xff]  ;;  %v15410_v37 = vld [vmem:[#allocation52_spill] sm:$0xff] }
 0x328   : > { %3859 = vmatprep.subr.bf16.mxu0 %v12630_v62  ;;  %4094 = vmatprep.subr.bf16.mxu1 %v12643_v14  ;;  %v15415_v62 = vld [vmem:[#allocation63_spill] sm:$0xff]  ;;  %v15417_v14 = vld [vmem:[#allocation62_spill] sm:$0xff] }
 0x32b   : > { %3860 = vmatpush1.bf16.msra.mxu0 %v12628_v59  ;;  %4095 = vmatpush1.bf16.msra.mxu1 %v12653_v57  ;;  %v15413_v59 = vld [vmem:[#allocation55_spill] sm:$0xff]  ;;  %v15419_v57 = vld [vmem:[#allocation74_spill] sm:$0xff] }
 0x32c   : > { %3861 = vmatprep.subr.bf16.mxu0 %v12659_v24  ;;  %4096 = vmatprep.subr.bf16.mxu1 %v12661_v25  ;;  %v15420_v24 = vld [vmem:[#allocation70_spill] sm:$0xff]  ;;  %v15421_v25 = vld [vmem:[#allocation71_spill] sm:$0xff] }
 0x32f   : > { %3862 = vmatpush1.bf16.msra.mxu0 %v12668_v35  ;;  %4097 = vmatpush1.bf16.msra.mxu1 %v12672_v44  ;;  %v15422_v35 = vld [vmem:[#allocation76_spill] sm:$0xff]  ;;  %v15423_v44 = vld [vmem:[#allocation79_spill] sm:$0xff] }
 0x330   : > { %3863 = vmatprep.subr.bf16.mxu0 %v12674_v48  ;;  %4098 = vmatprep.subr.bf16.mxu1 %v12677_v20  ;;  %v15424_v48 = vld [vmem:[#allocation77_spill] sm:$0xff]  ;;  %v15425_v20 = vld [vmem:[#allocation78_spill] sm:$0xff] }
 0x333   : > { %3864 = vmatpush1.bf16.msra.mxu0 %v12684_v11  ;;  %4099 = vmatpush1.bf16.msra.mxu1 %v12688_v1  ;;  %v15426_v11 = vld [vmem:[#allocation83_spill] sm:$0xff]  ;;  %v15427_v1 = vld [vmem:[#allocation90_spill] sm:$0xff] }
 0x334   : > { %3865 = vmatprep.subr.bf16.mxu0 %v12690_v5  ;;  %4100 = vmatprep.subr.bf16.mxu1 %v12693_v21  ;;  %v15428_v5 = vld [vmem:[#allocation86_spill] sm:$0xff]  ;;  %v15429_v21 = vld [vmem:[#allocation87_spill] sm:$0xff] }
 0x337   : > { %3866 = vmatpush1.bf16.msra.mxu0 %v12700_v17  ;;  %4101 = vmatpush1.bf16.msra.mxu1 %v12704_v2  ;;  %v15418_v17 = vld [vmem:[#allocation67_spill] sm:$0xff]  ;;  %v15430_v2 = vld [vmem:[#allocation92_spill] sm:$0xff] }
 0x338   : > { %3867 = vmatprep.subr.bf16.mxu0 %v12706_v33  ;;  %4102 = vmatprep.subr.bf16.mxu1 %v12709_v39  ;;  %v15416_v39 = vld [vmem:[#allocation61_spill] sm:$0xff]  ;;  %v15431_v33 = vld [vmem:[#allocation95_spill] sm:$0xff] }
 0x33b   : > { %3868 = vmatpush1.bf16.msra.mxu0 %v12716_v55  ;;  %4103 = vmatpush1.bf16.msra.mxu1 %v12720_v49  ;;  %v15412_v55 = vld [vmem:[#allocation54_spill] sm:$0xff]  ;;  %v15432_v49 = vld [vmem:[#allocation93_spill] sm:$0xff] }
 0x33c   : > { %3869 = vmatprep.subr.bf16.mxu0 %v12722_v63  ;;  %4104 = vmatprep.subr.bf16.mxu1 %v12725_v31  ;;  %v15414_v31 = vld [vmem:[#allocation60_spill] sm:$0xff]  ;;  %v15433_v63 = vld [vmem:[#allocation94_spill] sm:$0xff] }
 0x33f   : > { %3870 = vmatpush1.bf16.msra.mxu0 %v12732_v15  ;;  %4105 = vmatpush1.bf16.msra.mxu1 %v12736_v23  ;;  %v15434_v15 = vld [vmem:[#allocation99_spill] sm:$0xff]  ;;  %v15435_v23 = vld [vmem:[#allocation106_spill] sm:$0xff] }
 0x340   : > { %3871 = vmatprep.subr.bf16.mxu0 %v12738_v28  ;;  %4106 = vmatprep.subr.bf16.mxu1 %v12741_v30  ;;  %v15436_v28 = vld [vmem:[#allocation102_spill] sm:$0xff]  ;;  %v15437_v30 = vld [vmem:[#allocation103_spill] sm:$0xff] }
 0x343   : > { %3872 = vmatpush1.bf16.msra.mxu0 %v15408_v26  ;;  %4107 = vmatpush1.bf16.msra.mxu1 %v15409_v27  ;;  %v15445_v27 = vld [vmem:[#allocation24_spill] sm:$0xff] }
 0x344   : > { %3873 = vmatprep.subr.bf16.mxu0 %v15410_v37  ;;  %4108 = vmatprep.subr.bf16.mxu1 %v15411_v38 }
 0x347   : > { %3874 = vmatpush1.bf16.msra.mxu0 %v15412_v55  ;;  %4109 = vmatpush1.bf16.msra.mxu1 %v15413_v59  ;;  %v15446_v59 = vld [vmem:[#allocation23_spill] sm:$0xff] }
 0x348   : > { %3875 = vmatprep.subr.bf16.mxu0 %v15414_v31  ;;  %4110 = vmatprep.subr.bf16.mxu1 %v15415_v62  ;;  %v15447_v62 = vld [vmem:[#allocation25_spill] sm:$0xff] }
 0x34b   : > { %3876 = vmatpush1.bf16.msra.mxu0 %v15416_v39  ;;  %4111 = vmatpush1.bf16.msra.mxu1 %v15417_v14 }
 0x34c   : > { %3877 = vmatprep.subr.bf16.mxu0 %v15418_v17  ;;  %4112 = vmatprep.subr.bf16.mxu1 %v15419_v57 }
 0x34f   : > { %3878 = vmatpush1.bf16.msra.mxu0 %v15420_v24  ;;  %4113 = vmatpush1.bf16.msra.mxu1 %v15421_v25 }
 0x350   : > { %3879 = vmatprep.subr.bf16.mxu0 %v15422_v35  ;;  %4114 = vmatprep.subr.bf16.mxu1 %v15423_v44 }
 0x353   : > { %3880 = vmatpush1.bf16.msra.mxu0 %v15424_v48  ;;  %4115 = vmatpush1.bf16.msra.mxu1 %v15425_v20 }
 0x354   : > { %3881 = vmatprep.subr.bf16.mxu0 %v15426_v11  ;;  %4116 = vmatprep.subr.bf16.mxu1 %v15427_v1  ;;  %v15448_v1 = vld [vmem:[#allocation53_spill] sm:$0xff] }
 0x357   : > { %3882 = vmatpush1.bf16.msra.mxu0 %v15428_v5  ;;  %4117 = vmatpush1.bf16.msra.mxu1 %v15429_v21  ;;  %v15449_v21 = vld [vmem:[#allocation57_spill] sm:$0xff] }
 0x358   : > { %3883 = vmatprep.subr.bf16.mxu0 %v15430_v2  ;;  %4118 = vmatprep.subr.bf16.mxu1 %v15431_v33 }
 0x35b   : > { %3884 = vmatpush1.bf16.msra.mxu0 %v15432_v49  ;;  %4119 = vmatpush1.bf16.msra.mxu1 %v15433_v63  ;;  %v15450_v63 = vld [vmem:[#allocation56_spill] sm:$0xff] }
 0x35c   : > { %3885 = vmatprep.subr.bf16.mxu0 %v15434_v15  ;;  %4120 = vmatprep.subr.bf16.mxu1 %v15435_v23  ;;  %v15451_v23 = vld [vmem:[#allocation59_spill] sm:$0xff] }
 0x35f   : > { %3886 = vmatpush1.bf16.msra.mxu0 %v15436_v28  ;;  %4121 = vmatpush1.bf16.msra.mxu1 %v15437_v30 }
 0x360   : > { %3887 = vmatprep.subr.bf16.mxu0 %v15438_v32  ;;  %4122 = vmatprep.subr.bf16.mxu1 %v15439_v53 }
 0x363   : > { %3888 = vmatpush1.bf16.msra.mxu0 %v15440_v47  ;;  %4123 = vmatpush1.bf16.msra.mxu1 %v15441_v19 }
 0x364   : > { %4327 = vmatprep.subr.bf16.mxu0 %v15442_v54  ;;  %4562 = vmatprep.subr.bf16.mxu1 %v15443_v3 }
 0x3b9   : > { %v2897_v29 = vpop.f32.mrb[40].mxu0  ;;  %v3132_v18 = vpop.f32.mrb[40].mxu1 }
 0x3ba   : > { %v2904_v26 = vadd.f32 %v2897_v29, %v15444_v41  ;;  %v3139_v37 = vadd.f32 %v3132_v18, %v15445_v27  ;;  %v2899_v38 = vpop.f32.mrb[41].mxu0  ;;  %v3134_v55 = vpop.f32.mrb[41].mxu1 }
 0x3bb   : > { %v2905_v31 = vadd.f32 %v2899_v38, %v15446_v59  ;;  %v3140_v39 = vadd.f32 %v3134_v55, %v15447_v62  ;;  %v2901_v14 = vpop.f32.mrb[42].mxu0  ;;  %v3136_v17 = vpop.f32.mrb[42].mxu1 }
 0x3bc   : > { %v2902_v57 = vpop.f32.mrb[43].mxu0  ;;  %v3137_v24 = vpop.f32.mrb[43].mxu1  ;;  %v3619_v25 = vmul.f32 0.5, %v3139_v37  ;;  %v3611_v44 = vmul.f32 0.5, %v2904_v26 }
 0x3bd   : > { %v3620_v35 = vmul.f32 0.5, %v3140_v39  ;;  %v3612_v48 = vmul.f32 0.5, %v2905_v31 }
 0x3be   : > { %11419 = vtanh.f32 %v3619_v25 }
 0x3bf   : > { %11421 = vtanh.f32 %v3620_v35 }
 0x3c0   : > { %11423 = vtanh.f32 %v3611_v44 }
 0x3c1   : > { %11425 = vtanh.f32 %v3612_v48 }
 0x3c8   : > { %v11420_v53 = vpop.eup %11419 }
 0x3c9   : > { %v11422_v54 = vpop.eup %11421  ;;  %v3623_v18 = vmul.f32 0.5, %v11420_v53  ;;  %v15466_v53 = vld [vmem:[#allocation128_spill] sm:$0xff] }
 0x3ca   : > { %v11424_v3 = vpop.eup %11423  ;;  %v3624_v26 = vmul.f32 0.5, %v11422_v54  ;;  %v15469_v54 = vld [vmem:[#allocation131_spill] sm:$0xff] }
 0x3cb   : > { %v11426_v29 = vpop.eup %11425  ;;  %v3615_v37 = vmul.f32 0.5, %v11424_v3  ;;  %v3625_v55 = vadd.f32 0.5, %v3623_v18  ;;  %v15470_v3 = vld [vmem:[#allocation132_spill] sm:$0xff]  ;;  %v15472_v18 = vld [vmem:[#allocation134_spill] sm:$0xff] }
 0x3cc   : > { %v3616_v38 = vmul.f32 0.5, %v11426_v29  ;;  %v3626_v59 = vadd.f32 0.5, %v3624_v26  ;;  %v15471_v29 = vld [vmem:[#allocation133_spill] sm:$0xff]  ;;  %v15474_v26 = vld [vmem:[#allocation136_spill] sm:$0xff] }
 0x3cd   : > { %v3617_v31 = vadd.f32 0.5, %v3615_v37  ;;  %v3637_v17 = vmul.f32 %v3625_v55, %v13019_v60  ;;  %v15476_v37 = vld [vmem:[#allocation138_spill] sm:$0xff]  ;;  %v15478_v55 = vld [vmem:[#allocation140_spill] sm:$0xff] }
 0x3ce   : > { %v3618_v39 = vadd.f32 0.5, %v3616_v38  ;;  %v3638_v24 = vmul.f32 %v3626_v59, %v13021_v51  ;;  %v15477_v38 = vld [vmem:[#allocation139_spill] sm:$0xff]  ;;  %v15479_v59 = vld [vmem:[#allocation141_spill] sm:$0xff] }
 0x3f9   : > { %v3367_v20 = vpop.f32.mrb[44].mxu0  ;;  %v3602_v11 = vpop.f32.mrb[44].mxu1 }
 0x3fa   : > { %v3374_v5 = vadd.f32 %v3367_v20, %v15448_v1  ;;  %v3609_v2 = vadd.f32 %v3602_v11, %v15449_v21  ;;  %v3369_v33 = vpop.f32.mrb[45].mxu0  ;;  %v3604_v49 = vpop.f32.mrb[45].mxu1 }
 0x3fb   : > { %v3375_v15 = vadd.f32 %v3369_v33, %v15450_v63  ;;  %v3610_v28 = vadd.f32 %v3604_v49, %v15451_v23  ;;  %v3371_v30 = vpop.f32.mrb[46].mxu0  ;;  %v3606_v32 = vpop.f32.mrb[46].mxu1 }
 0x3fc   : > { %11427 = vtanh.f32 %v3374_v5  ;;  %v3372_v47 = vpop.f32.mrb[47].mxu0  ;;  %v3607_v19 = vpop.f32.mrb[47].mxu1  ;;  %v3629_v41 = vmul.f32 0.5, %v3609_v2  ;;  %v15464_v30 = vld [vmem:[#allocation126_spill] sm:$0xff]  ;;  %v15465_v32 = vld [vmem:[#allocation127_spill] sm:$0xff] }
 0x3fd   : > { %11429 = vtanh.f32 %v3375_v15  ;;  %v3630_v27 = vmul.f32 0.5, %v3610_v28  ;;  %v15463_v28 = vld [vmem:[#allocation125_spill] sm:$0xff]  ;;  %v15468_v19 = vld [vmem:[#allocation130_spill] sm:$0xff] }
 0x3fe   : > { %11431 = vtanh.f32 %v3629_v41  ;;  %v15467_v47 = vld [vmem:[#allocation129_spill] sm:$0xff]  ;;  %v15473_v41 = vld [vmem:[#allocation135_spill] sm:$0xff] }
 0x3ff   : > { %11433 = vtanh.f32 %v3630_v27  ;;  %v15475_v27 = vld [vmem:[#allocation137_spill] sm:$0xff] }
 0x406   : > { %v11428_v62 = vpop.eup %11427 }
 0x407   : > { %v11430_v14 = vpop.eup %11429  ;;  %v3639_v57 = vmul.f32 %v11428_v62, %v3617_v31  ;;  %v15480_v31 = vld [vmem:[#allocation142_spill] sm:$0xff]  ;;  %v15481_v62 = vld [vmem:[#allocation143_spill] sm:$0xff] }
 0x408   : > { %v3640_v25 = vmul.f32 %v11430_v14, %v3618_v39  ;;  %v11432_v48 = vpop.eup %11431  ;;  %v15482_v39 = vld [vmem:[#allocation144_spill] sm:$0xff]  ;;  %v15483_v14 = vld [vmem:[#allocation145_spill] sm:$0xff] }
 0x409   : > { %v13350_v35 = vadd.f32 %v3639_v57, %v3637_v17  ;;  %v11434_v20 = vpop.eup %11433  ;;  %v3633_v11 = vmul.f32 0.5, %v11432_v48  ;;  %v15484_v17 = vld [vmem:[#allocation146_spill] sm:$0xff]  ;;  %v15485_v57 = vld [vmem:[#allocation147_spill] sm:$0xff] }
 0x40a   : > { %v13352_v44 = vadd.f32 %v3640_v25, %v3638_v24  ;;  %v3634_v1 = vmul.f32 0.5, %v11434_v20  ;;  %v15486_v24 = vld [vmem:[#allocation148_spill] sm:$0xff]  ;;  %v15487_v25 = vld [vmem:[#allocation149_spill] sm:$0xff]  ;;  %v15488_v48 = vld [vmem:[#allocation150_spill] sm:$0xff] }
 0x40b   : > { %11435 = vtanh.f32 %v13350_v35  ;;  %v3635_v5 = vadd.f32 0.5, %v3633_v11  ;;  %v15489_v20 = vld [vmem:[#allocation151_spill] sm:$0xff]  ;;  %v15490_v11 = vld [vmem:[#allocation152_spill] sm:$0xff] }
 0x40c   : > { %11437 = vtanh.f32 %v13352_v44  ;;  %v3636_v2 = vadd.f32 0.5, %v3634_v1  ;;  %v4891_v1 = vld [vmem:[%s12158_s17 + $0x68] sm:$0xff] }
 0x415   : > { %v11436_v21 = vpop.eup %11435 }
 0x416   : > { %v11438_v60 = vpop.eup %11437  ;;  %v3645_v33 = vmul.f32 %v11436_v21, %v3635_v5  ;;  %v4657_v5 = vld [vmem:[%s12158_s17 + $0x80] sm:$0xff] }
 0x417   : > { %v3646_v49 = vmul.f32 %v11438_v60, %v3636_v2  ;;  %v4658_v2 = vld [vmem:[%s12158_s17 + $0xa0] sm:$0xff]  ;;  %v4892_v60 = vld [vmem:[%s12158_s17 + $0x88] sm:$0xff] }
 0x418   : > { %v13356_v51 = vpack.c.bf16 %v3645_v33, %v3645_v33  ;;  %v4893_v33 = vld [vmem:[%s12158_s17 + $0xa8] sm:$0xff] }
 0x419   : > { %v3648_v63 = vpack.c.bf16 %v3646_v49, %v3646_v49 }
 0x41a   : > { %v3651_v15 = vrot.slane %v13356_v51, 4 }
 0x41b   : > { %v3652_v23 = vrot.slane %v3648_v63, 4  ;;  %3889 = vmatprep.mubr.bf16.mxu0 %v3648_v63  ;;  %4124 = vmatprep.mubr.bf16.mxu1 %v3648_v63 }
 0x41c   : > { %3655 = vst [vmem:[#allocation2] sm:$0xf0] %v3651_v15  ;;  %3890 = vmatmul.mubr.bf16.vlgmr.msra.gmra.mrb[48].mxu0 %v13356_v51  ;;  %4125 = vmatmul.mubr.bf16.vlgmr.msra.gmra.mrb[48].mxu1 %v13356_v51  ;;  %v13461_v15 = vcombine.high %v4892_v60, %v4893_v33 }
 0x41d   : > { %3656 = vst [vmem:[#allocation2 + $0x8] sm:$0xf0] %v3652_v23  ;;  %4328 = vmatpush1.bf16.msra.mxu0 %v12991_v46  ;;  %4563 = vmatpush1.bf16.msra.mxu1 %v12997_v34  ;;  %v15452_v46 = vld [vmem:[#allocation114_spill] sm:$0xff]  ;;  %v15453_v34 = vld [vmem:[#allocation115_spill] sm:$0xff] }
 0x41e   : > { %4359 = vmatprep.mubr.bf16.mxu0 %v3648_v63  ;;  %4594 = vmatprep.mubr.bf16.mxu1 %v3648_v63  ;;  %v13458_v63 = vcombine.high %v4657_v5, %v4658_v2  ;;  %v4659_v23 = vld [vmem:[%s12158_s17 + $0xc0] sm:$0xff] }
 0x41f   : > { %4329 = vmatprep.subr.bf16.mxu0 %v13033_v7  ;;  %4564 = vmatprep.subr.bf16.mxu1 %v13035_v9  ;;  %v15454_v7 = vld [vmem:[#allocation116_spill] sm:$0xff]  ;;  %v15455_v9 = vld [vmem:[#allocation117_spill] sm:$0xff] }
 0x421   : > { %4330 = vmatpush1.bf16.msra.mxu0 %v13044_v12  ;;  %4565 = vmatpush1.bf16.msra.mxu1 %v13046_v61  ;;  %v15456_v12 = vld [vmem:[#allocation118_spill] sm:$0xff]  ;;  %v15457_v61 = vld [vmem:[#allocation119_spill] sm:$0xff] }
 0x422   : > { %4331 = vmatprep.subr.bf16.mxu0 %v13048_v40  ;;  %4566 = vmatprep.subr.bf16.mxu1 %v13050_v43  ;;  %v15458_v40 = vld [vmem:[#allocation120_spill] sm:$0xff]  ;;  %v15459_v43 = vld [vmem:[#allocation121_spill] sm:$0xff] }
 0x425   : > { %4332 = vmatpush1.bf16.msra.mxu0 %v13060_v4  ;;  %4567 = vmatpush1.bf16.msra.mxu1 %v13062_v56  ;;  %v15460_v4 = vld [vmem:[#allocation122_spill] sm:$0xff]  ;;  %v15461_v56 = vld [vmem:[#allocation123_spill] sm:$0xff] }
 0x426   : > { %4333 = vmatprep.subr.bf16.mxu0 %v13066_v52  ;;  %4568 = vmatprep.subr.bf16.mxu1 %v15452_v46  ;;  %v15462_v52 = vld [vmem:[#allocation124_spill] sm:$0xff] }
 0x427   : > { %v4660_v46 = vld [vmem:[%s12158_s17 + $0xe0] sm:$0xff] }
 0x429   : > { %4334 = vmatpush1.bf16.msra.mxu0 %v15453_v34  ;;  %4569 = vmatpush1.bf16.msra.mxu1 %v15454_v7  ;;  %v4894_v34 = vld [vmem:[%s12158_s17 + $0xc8] sm:$0xff] }
 0x42a   : > { %4335 = vmatprep.subr.bf16.mxu0 %v15455_v9  ;;  %4570 = vmatprep.subr.bf16.mxu1 %v15456_v12  ;;  %v4895_v7 = vld [vmem:[%s12158_s17 + $0xe8] sm:$0xff]  ;;  %v13468_v9 = vcombine.low %v4657_v5, %v4658_v2  ;;  %v13472_v12 = vcombine.low %v4892_v60, %v4893_v33  ;;  %v4671_v60 = vld [vmem:[%s12158_s17 + $0x240] sm:$0xff] }
 0x42b   : > { %v4672_v33 = vld [vmem:[%s12158_s17 + $0x260] sm:$0xff] }
 0x42d   : > { %4336 = vmatpush1.bf16.msra.mxu0 %v15457_v61  ;;  %4571 = vmatpush1.bf16.msra.mxu1 %v15458_v40  ;;  %v13474_v61 = vcombine.high %v4659_v23, %v4660_v46  ;;  %v13477_v40 = vcombine.high %v4894_v34, %v4895_v7 }
 0x42e   : > { %4337 = vmatprep.subr.bf16.mxu0 %v15459_v43  ;;  %4572 = vmatprep.subr.bf16.mxu1 %v15460_v4  ;;  %v4661_v43 = vld [vmem:[%s12158_s17 + $0x100] sm:$0xff] }
 0x42f   : > { %v4662_v4 = vld [vmem:[%s12158_s17 + $0x120] sm:$0xff] }
 0x431   : > { %4338 = vmatpush1.bf16.msra.mxu0 %v15461_v56  ;;  %4573 = vmatpush1.bf16.msra.mxu1 %v15462_v52  ;;  %v4896_v56 = vld [vmem:[%s12158_s17 + $0x108] sm:$0xff] }
 0x432   : > { %4339 = vmatprep.subr.bf16.mxu0 %v15463_v28  ;;  %4574 = vmatprep.subr.bf16.mxu1 %v15464_v30  ;;  %v4897_v52 = vld [vmem:[%s12158_s17 + $0x128] sm:$0xff]  ;;  %v13484_v28 = vcombine.low %v4659_v23, %v4660_v46  ;;  %v13488_v30 = vcombine.low %v4894_v34, %v4895_v7  ;;  %v13572_v46 = vcombine.high %v4671_v60, %v4672_v33 }
 0x433   : > { %v4906_v23 = vld [vmem:[%s12158_s17 + $0x248] sm:$0xff]  ;;  %v13575_v7 = vcombine.low %v4671_v60, %v4672_v33 }
 0x434   : > { %v4907_v34 = vld [vmem:[%s12158_s17 + $0x268] sm:$0xff] }
 0x435   : > { %4340 = vmatpush1.bf16.msra.mxu0 %v15465_v32  ;;  %4575 = vmatpush1.bf16.msra.mxu1 %v15466_v53  ;;  %v13490_v32 = vcombine.high %v4661_v43, %v4662_v4  ;;  %v13493_v53 = vcombine.high %v4896_v56, %v4897_v52  ;;  %15491 = vst [vmem:[#allocation50_spill] sm:$0xff] %v13575_v7  ;;  %v4912_v60 = vld [vmem:[%s12158_s17 + $0x308] sm:$0xff] }
 0x436   : > { %4341 = vmatprep.subr.bf16.mxu0 %v15467_v47  ;;  %4576 = vmatprep.subr.bf16.mxu1 %v15468_v19  ;;  %v4663_v47 = vld [vmem:[%s12158_s17 + $0x140] sm:$0xff] }
 0x437   : > { %v4664_v19 = vld [vmem:[%s12158_s17 + $0x160] sm:$0xff] }
 0x439   : > { %4342 = vmatpush1.bf16.msra.mxu0 %v15469_v54  ;;  %4577 = vmatpush1.bf16.msra.mxu1 %v15470_v3  ;;  %v4898_v54 = vld [vmem:[%s12158_s17 + $0x148] sm:$0xff] }
 0x43a   : > { %4343 = vmatprep.subr.bf16.mxu0 %v15471_v29  ;;  %4578 = vmatprep.subr.bf16.mxu1 %v15472_v18  ;;  %v4899_v3 = vld [vmem:[%s12158_s17 + $0x168] sm:$0xff]  ;;  %v13500_v29 = vcombine.low %v4661_v43, %v4662_v4  ;;  %v13504_v18 = vcombine.low %v4896_v56, %v4897_v52  ;;  %v13577_v43 = vcombine.low %v4906_v23, %v4907_v34  ;;  %v4673_v56 = vld [vmem:[%s12158_s17 + $0x280] sm:$0xff] }
 0x43b   : > { %v13579_v4 = vcombine.high %v4906_v23, %v4907_v34  ;;  %v4674_v52 = vld [vmem:[%s12158_s17 + $0x2a0] sm:$0xff]  ;;  %v4913_v23 = vld [vmem:[%s12158_s17 + $0x328] sm:$0xff] }
 0x43c   : > { %15492 = vst [vmem:[#allocation51_spill] sm:$0xff] %v13577_v43 }
 0x43d   : > { %4344 = vmatpush1.bf16.msra.mxu0 %v15473_v41  ;;  %4579 = vmatpush1.bf16.msra.mxu1 %v15474_v26  ;;  %v13506_v41 = vcombine.high %v4663_v47, %v4664_v19  ;;  %v13509_v26 = vcombine.high %v4898_v54, %v4899_v3  ;;  %15493 = vst [vmem:[#allocation52_spill] sm:$0xff] %v13579_v4 }
 0x43e   : > { %4345 = vmatprep.subr.bf16.mxu0 %v15475_v27  ;;  %4580 = vmatprep.subr.bf16.mxu1 %v15476_v37  ;;  %v4665_v27 = vld [vmem:[%s12158_s17 + $0x180] sm:$0xff] }
 0x43f   : > { %v4666_v37 = vld [vmem:[%s12158_s17 + $0x1a0] sm:$0xff] }
 0x441   : > { %4346 = vmatpush1.bf16.msra.mxu0 %v15477_v38  ;;  %4581 = vmatpush1.bf16.msra.mxu1 %v15478_v55  ;;  %v4900_v38 = vld [vmem:[%s12158_s17 + $0x188] sm:$0xff] }
 0x442   : > { %4347 = vmatprep.subr.bf16.mxu0 %v15479_v59  ;;  %4582 = vmatprep.subr.bf16.mxu1 %v15480_v31  ;;  %v4901_v55 = vld [vmem:[%s12158_s17 + $0x1a8] sm:$0xff]  ;;  %v13516_v59 = vcombine.low %v4663_v47, %v4664_v19  ;;  %v13520_v31 = vcombine.low %v4898_v54, %v4899_v3  ;;  %v13588_v19 = vcombine.high %v4673_v56, %v4674_v52 }
 0x443   : > { %v4908_v47 = vld [vmem:[%s12158_s17 + $0x288] sm:$0xff]  ;;  %v13591_v3 = vcombine.low %v4673_v56, %v4674_v52  ;;  %v13625_v56 = vcombine.low %v4912_v60, %v4913_v23  ;;  %v13627_v52 = vcombine.high %v4912_v60, %v4913_v23  ;;  %v4681_v60 = vld [vmem:[%s12158_s17 + $0x380] sm:$0xff] }
 0x444   : > { %15494 = vst [vmem:[#allocation58_spill] sm:$0xff] %v13588_v19  ;;  %v4909_v54 = vld [vmem:[%s12158_s17 + $0x2a8] sm:$0xff]  ;;  %v4682_v23 = vld [vmem:[%s12158_s17 + $0x3a0] sm:$0xff] }
 0x445   : > { %4348 = vmatpush1.bf16.msra.mxu0 %v15481_v62  ;;  %4583 = vmatpush1.bf16.msra.mxu1 %v15482_v39  ;;  %v13522_v62 = vcombine.high %v4665_v27, %v4666_v37  ;;  %v13525_v39 = vcombine.high %v4900_v38, %v4901_v55  ;;  %15495 = vst [vmem:[#allocation54_spill] sm:$0xff] %v13591_v3  ;;  %15504 = vst [vmem:[#allocation71_spill] sm:$0xff] %v13625_v56 }
 0x446   : > { %4349 = vmatprep.subr.bf16.mxu0 %v15483_v14  ;;  %4584 = vmatprep.subr.bf16.mxu1 %v15484_v17  ;;  %v4667_v14 = vld [vmem:[%s12158_s17 + $0x1c0] sm:$0xff]  ;;  %15505 = vst [vmem:[#allocation76_spill] sm:$0xff] %v13627_v52 }
 0x447   : > { %v4668_v17 = vld [vmem:[%s12158_s17 + $0x1e0] sm:$0xff] }
 0x449   : > { %4350 = vmatpush1.bf16.msra.mxu0 %v15485_v57  ;;  %4585 = vmatpush1.bf16.msra.mxu1 %v15486_v24  ;;  %v4902_v57 = vld [vmem:[%s12158_s17 + $0x1c8] sm:$0xff] }
 0x44a   : > { %4351 = vmatprep.subr.bf16.mxu0 %v15487_v25  ;;  %4586 = vmatprep.subr.bf16.mxu1 %v15488_v48  ;;  %v4903_v24 = vld [vmem:[%s12158_s17 + $0x1e8] sm:$0xff]  ;;  %v13532_v25 = vcombine.low %v4665_v27, %v4666_v37  ;;  %v13536_v48 = vcombine.low %v4900_v38, %v4901_v55  ;;  %v13593_v27 = vcombine.low %v4908_v47, %v4909_v54  ;;  %v4675_v38 = vld [vmem:[%s12158_s17 + $0x2c0] sm:$0xff] }
 0x44b   : > { %v13595_v37 = vcombine.high %v4908_v47, %v4909_v54  ;;  %v4676_v55 = vld [vmem:[%s12158_s17 + $0x2e0] sm:$0xff] }
 0x44c   : > { %15496 = vst [vmem:[#allocation55_spill] sm:$0xff] %v13593_v27  ;;  %v4679_v47 = vld [vmem:[%s12158_s17 + $0x340] sm:$0xff] }
 0x44d   : > { %4352 = vmatpush1.bf16.msra.mxu0 %v13220_v42  ;;  %4587 = vmatpush1.bf16.msra.mxu1 %v13222_v45  ;;  %v4653_v42 = vld [vmem:[%s12158_s17] sm:$0xff]  ;;  %15497 = vst [vmem:[#allocation60_spill] sm:$0xff] %v13595_v37 }
 0x44e   : > { %4353 = vmatprep.subr.bf16.mxu0 %v13226_v10  ;;  %4588 = vmatprep.subr.bf16.mxu1 %v15489_v20  ;;  %v4654_v45 = vld [vmem:[%s12158_s17 + $0x20] sm:$0xff]  ;;  %v4888_v10 = vld [vmem:[%s12158_s17 + $0x8] sm:$0xff]  ;;  %v13538_v20 = vcombine.high %v4667_v14, %v4668_v17 }
 0x44f   : > { %v4680_v54 = vld [vmem:[%s12158_s17 + $0x360] sm:$0xff] }
 0x451   : > { %4354 = vmatpush1.bf16.msra.mxu0 %v15490_v11  ;;  %4589 = vmatpush1.bf16.msra.mxu1 %v13238_v22  ;;  %v13428_v22 = vcombine.low %v4653_v42, %v4654_v45  ;;  %v13541_v11 = vcombine.high %v4902_v57, %v4903_v24 }
 0x452   : > { %4355 = vmatprep.subr.bf16.mxu0 %v13242_v50  ;;  %4590 = vmatprep.subr.bf16.mxu1 %v13244_v36  ;;  %v13430_v50 = vcombine.high %v4653_v42, %v4654_v45  ;;  %v4889_v36 = vld [vmem:[%s12158_s17 + $0x28] sm:$0xff]  ;;  %v13544_v42 = vcombine.low %v4667_v14, %v4668_v17  ;;  %v13548_v45 = vcombine.low %v4902_v57, %v4903_v24 }
 0x453   : > { %v4910_v14 = vld [vmem:[%s12158_s17 + $0x2c8] sm:$0xff]  ;;  %v13604_v17 = vcombine.high %v4675_v38, %v4676_v55  ;;  %v13607_v24 = vcombine.low %v4675_v38, %v4676_v55  ;;  %v13636_v55 = vcombine.high %v4679_v47, %v4680_v54 }
 0x454   : > { %v4911_v57 = vld [vmem:[%s12158_s17 + $0x2e8] sm:$0xff] }
 0x455   : > { %4356 = vmatpush1.bf16.msra.mxu0 %v13252_v16  ;;  %4591 = vmatpush1.bf16.msra.mxu1 %v13254_v0  ;;  %v4656_v16 = vld [vmem:[%s12158_s17 + $0x60] sm:$0xff]  ;;  %v13435_v0 = vcombine.low %v4888_v10, %v4889_v36  ;;  %15498 = vst [vmem:[#allocation63_spill] sm:$0xff] %v13604_v17  ;;  %15499 = vst [vmem:[#allocation61_spill] sm:$0xff] %v13607_v24  ;;  %v4914_v38 = vld [vmem:[%s12158_s17 + $0x348] sm:$0xff] }
 0x456   : > { %4357 = vmatprep.subr.bf16.mxu0 %v13258_v58  ;;  %4592 = vmatprep.subr.bf16.mxu1 %v13260_v8  ;;  %v4890_v8 = vld [vmem:[%s12158_s17 + $0x48] sm:$0xff]  ;;  %15506 = vst [vmem:[#allocation79_spill] sm:$0xff] %v13636_v55 }
 0x457   : > { %v13445_v21 = vcombine.high %v4890_v8, %v4891_v1 }
 0x459   : > { %4358 = vmatpush1.bf16.msra.mxu0 %v13264_v13  ;;  %4593 = vmatpush1.bf16.msra.mxu1 %v13266_v6  ;;  %v4655_v13 = vld [vmem:[%s12158_s17 + $0x40] sm:$0xff]  ;;  %v13437_v6 = vcombine.high %v4888_v10, %v4889_v36 }
 0x45a   : > { %v13439_v58 = vcombine.high %v4655_v13, %v4656_v16  ;;  %4845 = vmatprep.subr.bf16.mxu0 %v13430_v50  ;;  %v13452_v49 = vcombine.low %v4655_v13, %v4656_v16  ;;  %v4669_v10 = vld [vmem:[%s12158_s17 + $0x200] sm:$0xff]  ;;  %v4904_v13 = vld [vmem:[%s12158_s17 + $0x208] sm:$0xff] }
 0x45b   : > { %5080 = vmatprep.subr.bf16.mxu1 %v13437_v6  ;;  %v4670_v36 = vld [vmem:[%s12158_s17 + $0x220] sm:$0xff] }
 0x45c   : > { %4360 = vmatmul.mubr.bf16.vlgmr.msra.gmra.mrb[52].mxu0 %v13356_v51  ;;  %4595 = vmatmul.mubr.bf16.vlgmr.msra.gmra.mrb[52].mxu1 %v13356_v51  ;;  %v13456_v51 = vcombine.low %v4890_v8, %v4891_v1  ;;  %v13556_v16 = vcombine.high %v4669_v10, %v4670_v36  ;;  %v4905_v8 = vld [vmem:[%s12158_s17 + $0x228] sm:$0xff]  ;;  %v13559_v1 = vcombine.low %v4669_v10, %v4670_v36 }
 0x45d   : > { %4846 = vmatpush1.bf16.msra.mxu0 %v13428_v22  ;;  %5081 = vmatpush1.bf16.msra.mxu1 %v13435_v0  ;;  %v13561_v5 = vcombine.low %v4904_v13, %v4905_v8  ;;  %v13563_v2 = vcombine.high %v4904_v13, %v4905_v8  ;;  %v13609_v10 = vcombine.low %v4910_v14, %v4911_v57  ;;  %v4677_v13 = vld [vmem:[%s12158_s17 + $0x300] sm:$0xff] }
 0x45e   : > { %4847 = vmatprep.subr.bf16.mxu0 %v13439_v58  ;;  %5082 = vmatprep.subr.bf16.mxu1 %v13445_v21  ;;  %v13611_v36 = vcombine.high %v4910_v14, %v4911_v57  ;;  %v4678_v8 = vld [vmem:[%s12158_s17 + $0x320] sm:$0xff]  ;;  %v4915_v14 = vld [vmem:[%s12158_s17 + $0x368] sm:$0xff]  ;;  %v13639_v57 = vcombine.low %v4679_v47, %v4680_v54  ;;  %v13652_v47 = vcombine.high %v4681_v60, %v4682_v23 }
 0x45f   : > { %15500 = vst [vmem:[#allocation62_spill] sm:$0xff] %v13609_v10  ;;  %v13620_v33 = vcombine.high %v4677_v13, %v4678_v8  ;;  %v13623_v34 = vcombine.low %v4677_v13, %v4678_v8  ;;  %v13641_v13 = vcombine.low %v4914_v38, %v4915_v14  ;;  %v13643_v8 = vcombine.high %v4914_v38, %v4915_v14  ;;  %v4917_v54 = vld [vmem:[%s12158_s17 + $0x3a8] sm:$0xff] }
 0x460   : > { %15501 = vst [vmem:[#allocation67_spill] sm:$0xff] %v13611_v36  ;;  %15507 = vst [vmem:[#allocation77_spill] sm:$0xff] %v13639_v57  ;;  %v13655_v38 = vcombine.low %v4681_v60, %v4682_v23  ;;  %v4919_v23 = vld [vmem:[%s12158_s17 + $0x3e8] sm:$0xff] }
 0x461   : > { %4848 = vmatpush1.bf16.msra.mxu0 %v13452_v49  ;;  %5083 = vmatpush1.bf16.msra.mxu1 %v13456_v51  ;;  %15502 = vst [vmem:[#allocation74_spill] sm:$0xff] %v13620_v33  ;;  %15503 = vst [vmem:[#allocation70_spill] sm:$0xff] %v13623_v34 }
 0x462   : > { %4849 = vmatprep.subr.bf16.mxu0 %v13458_v63  ;;  %5084 = vmatprep.subr.bf16.mxu1 %v13461_v15  ;;  %15508 = vst [vmem:[#allocation78_spill] sm:$0xff] %v13641_v13  ;;  %15509 = vst [vmem:[#allocation83_spill] sm:$0xff] %v13643_v8 }
 0x463   : > { %15510 = vst [vmem:[#allocation90_spill] sm:$0xff] %v13652_v47  ;;  %15511 = vst [vmem:[#allocation86_spill] sm:$0xff] %v13655_v38 }
 0x465   : > { %4850 = vmatpush1.bf16.msra.mxu0 %v13468_v9  ;;  %5085 = vmatpush1.bf16.msra.mxu1 %v13472_v12 }
 0x466   : > { %4851 = vmatprep.subr.bf16.mxu0 %v13474_v61  ;;  %5086 = vmatprep.subr.bf16.mxu1 %v13477_v40 }
 0x469   : > { %4852 = vmatpush1.bf16.msra.mxu0 %v13484_v28  ;;  %5087 = vmatpush1.bf16.msra.mxu1 %v13488_v30 }
 0x46a   : > { %4853 = vmatprep.subr.bf16.mxu0 %v13490_v32  ;;  %5088 = vmatprep.subr.bf16.mxu1 %v13493_v53 }
 0x46d   : > { %4854 = vmatpush1.bf16.msra.mxu0 %v13500_v29  ;;  %5089 = vmatpush1.bf16.msra.mxu1 %v13504_v18 }
 0x46e   : > { %4855 = vmatprep.subr.bf16.mxu0 %v13506_v41  ;;  %5090 = vmatprep.subr.bf16.mxu1 %v13509_v26 }
 0x471   : > { %4856 = vmatpush1.bf16.msra.mxu0 %v13516_v59  ;;  %5091 = vmatpush1.bf16.msra.mxu1 %v13520_v31 }
 0x472   : > { %4857 = vmatprep.subr.bf16.mxu0 %v13522_v62  ;;  %5092 = vmatprep.subr.bf16.mxu1 %v13525_v39 }
 0x475   : > { %4858 = vmatpush1.bf16.msra.mxu0 %v13532_v25  ;;  %5093 = vmatpush1.bf16.msra.mxu1 %v13536_v48 }
 0x476   : > { %4859 = vmatprep.subr.bf16.mxu0 %v13538_v20  ;;  %5094 = vmatprep.subr.bf16.mxu1 %v13541_v11 }
 0x479   : > { %4860 = vmatpush1.bf16.msra.mxu0 %v13544_v42  ;;  %5095 = vmatpush1.bf16.msra.mxu1 %v13548_v45 }
 0x47a   : > { %4861 = vmatprep.subr.bf16.mxu0 %v13556_v16  ;;  %5096 = vmatprep.subr.bf16.mxu1 %v13563_v2 }
 0x47d   : > { %4862 = vmatpush1.bf16.msra.mxu0 %v13559_v1  ;;  %5097 = vmatpush1.bf16.msra.mxu1 %v13561_v5 }
 0x47e   : > { %4863 = vmatprep.subr.bf16.mxu0 %v13572_v46  ;;  %5098 = vmatprep.subr.bf16.mxu1 %v13579_v4 }
 0x481   : > { %4864 = vmatpush1.bf16.msra.mxu0 %v13575_v7  ;;  %5099 = vmatpush1.bf16.msra.mxu1 %v13577_v43  ;;  %v15525_v43 = vld [vmem:[#allocation66_spill] sm:$0xff] }
 0x482   : > { %4865 = vmatprep.subr.bf16.mxu0 %v13588_v19  ;;  %5100 = vmatprep.subr.bf16.mxu1 %v13595_v37 }
 0x485   : > { %4866 = vmatpush1.bf16.msra.mxu0 %v13591_v3  ;;  %5101 = vmatpush1.bf16.msra.mxu1 %v13593_v27 }
 0x486   : > { %4867 = vmatprep.subr.bf16.mxu0 %v13604_v17  ;;  %5102 = vmatprep.subr.bf16.mxu1 %v13611_v36  ;;  %v15522_v36 = vld [vmem:[#allocation27_spill] sm:$0xff] }
 0x489   : > { %4868 = vmatpush1.bf16.msra.mxu0 %v13607_v24  ;;  %5103 = vmatpush1.bf16.msra.mxu1 %v13609_v10 }
 0x48a   : > { %4869 = vmatprep.subr.bf16.mxu0 %v13620_v33  ;;  %5104 = vmatprep.subr.bf16.mxu1 %v13627_v52  ;;  %v5359_v52 = vld [vmem:[%s12158_s17 + $0x38] sm:$0xff]  ;;  %v15521_v33 = vld [vmem:[#allocation28_spill] sm:$0xff] }
 0x48d   : > { %4870 = vmatpush1.bf16.msra.mxu0 %v13623_v34  ;;  %5105 = vmatpush1.bf16.msra.mxu1 %v13625_v56  ;;  %v4916_v56 = vld [vmem:[%s12158_s17 + $0x388] sm:$0xff]  ;;  %v5358_v34 = vld [vmem:[%s12158_s17 + $0x18] sm:$0xff] }
 0x48e   : > { %4871 = vmatprep.subr.bf16.mxu0 %v13636_v55  ;;  %5106 = vmatprep.subr.bf16.mxu1 %v13643_v8  ;;  %v13657_v14 = vcombine.low %v4916_v56, %v4917_v54  ;;  %v13659_v55 = vcombine.high %v4916_v56, %v4917_v54  ;;  %v4918_v8 = vld [vmem:[%s12158_s17 + $0x3c8] sm:$0xff] }
 0x48f   : > { %v13673_v54 = vcombine.low %v4918_v8, %v4919_v23 }
 0x490   : > { %15512 = vst [vmem:[#allocation87_spill] sm:$0xff] %v13657_v14  ;;  %15513 = vst [vmem:[#allocation92_spill] sm:$0xff] %v13659_v55 }
 0x491   : > { %4872 = vmatpush1.bf16.msra.mxu0 %v13639_v57  ;;  %5107 = vmatpush1.bf16.msra.mxu1 %v13641_v13  ;;  %v4683_v57 = vld [vmem:[%s12158_s17 + $0x3c0] sm:$0xff]  ;;  %15516 = vst [vmem:[#allocation94_spill] sm:$0xff] %v13673_v54 }
 0x492   : > { %4873 = vmatprep.subr.bf16.mxu0 %v13652_v47  ;;  %5108 = vmatprep.subr.bf16.mxu1 %v13659_v55  ;;  %v4684_v13 = vld [vmem:[%s12158_s17 + $0x3e0] sm:$0xff]  ;;  %v13675_v47 = vcombine.high %v4918_v8, %v4919_v23  ;;  %v5124_v55 = vld [vmem:[%s12158_s17 + $0x30] sm:$0xff]  ;;  %v13691_v8 = vcombine.high %v5358_v34, %v5359_v52 }
 0x493   : > { %v13668_v60 = vcombine.high %v4683_v57, %v4684_v13  ;;  %v13671_v56 = vcombine.low %v4683_v57, %v4684_v13  ;;  %v13689_v13 = vcombine.low %v5358_v34, %v5359_v52 }
 0x494   : > { %15517 = vst [vmem:[#allocation99_spill] sm:$0xff] %v13675_v47  ;;  %15519 = vst [vmem:[#allocation102_spill] sm:$0xff] %v13691_v8 }
 0x495   : > { %4874 = vmatpush1.bf16.msra.mxu0 %v13655_v38  ;;  %5109 = vmatpush1.bf16.msra.mxu1 %v13657_v14  ;;  %15514 = vst [vmem:[#allocation95_spill] sm:$0xff] %v13668_v60  ;;  %15515 = vst [vmem:[#allocation93_spill] sm:$0xff] %v13671_v56  ;;  %v5123_v38 = vld [vmem:[%s12158_s17 + $0x10] sm:$0xff] }
 0x496   : > { %4875 = vmatprep.subr.bf16.mxu0 %v13668_v60  ;;  %5110 = vmatprep.subr.bf16.mxu1 %v13675_v47  ;;  %v13684_v14 = vcombine.high %v5123_v38, %v5124_v55  ;;  %v13687_v57 = vcombine.low %v5123_v38, %v5124_v55  ;;  %v15520_v47 = vld [vmem:[#allocation26_spill] sm:$0xff] }
 0x497   : > { %v15523_v55 = vld [vmem:[#allocation30_spill] sm:$0xff] }
 0x498   : > { %15518 = vst [vmem:[#allocation106_spill] sm:$0xff] %v13684_v14 }
 0x499   : > { %4876 = vmatpush1.bf16.msra.mxu0 %v13671_v56  ;;  %5111 = vmatpush1.bf16.msra.mxu1 %v13673_v54 }
 0x49a   : > { %5315 = vmatprep.subr.bf16.mxu0 %v13684_v14  ;;  %5550 = vmatprep.subr.bf16.mxu1 %v13691_v8 }
 0x4ef   : > { %v3891_v23 = vpop.f32.mrb[48].mxu0  ;;  %v4126_v56 = vpop.f32.mrb[48].mxu1 }
 0x4f0   : > { %v3898_v60 = vadd.f32 %v3891_v23, %v15520_v47  ;;  %v4133_v10 = vadd.f32 %v4126_v56, %v15521_v33  ;;  %v3893_v54 = vpop.f32.mrb[49].mxu0  ;;  %v4128_v24 = vpop.f32.mrb[49].mxu1  ;;  %v15524_v56 = vld [vmem:[#allocation64_spill] sm:$0xff] }
 0x4f1   : > { %v3899_v17 = vadd.f32 %v3893_v54, %v15522_v36  ;;  %v4134_v38 = vadd.f32 %v4128_v24, %v15523_v55  ;;  %v3895_v27 = vpop.f32.mrb[50].mxu0  ;;  %v4130_v3 = vpop.f32.mrb[50].mxu1  ;;  %v15527_v55 = vld [vmem:[#allocation69_spill] sm:$0xff] }
 0x4f2   : > { %v3896_v34 = vpop.f32.mrb[51].mxu0  ;;  %v4131_v52 = vpop.f32.mrb[51].mxu1  ;;  %v4613_v37 = vmul.f32 0.5, %v4133_v10  ;;  %v4605_v19 = vmul.f32 0.5, %v3898_v60  ;;  %v15526_v27 = vld [vmem:[#allocation65_spill] sm:$0xff] }
 0x4f3   : > { %v4614_v14 = vmul.f32 0.5, %v4134_v38  ;;  %v4606_v8 = vmul.f32 0.5, %v3899_v17 }
 0x4f4   : > { %11439 = vtanh.f32 %v4613_v37 }
 0x4f5   : > { %11441 = vtanh.f32 %v4614_v14 }
 0x4f6   : > { %11443 = vtanh.f32 %v4605_v19 }
 0x4f7   : > { %11445 = vtanh.f32 %v4606_v8 }
 0x4fe   : > { %v11440_v60 = vpop.eup %11439 }
 0x4ff   : > { %v11442_v19 = vpop.eup %11441  ;;  %v4617_v52 = vmul.f32 0.5, %v11440_v60 }
 0x500   : > { %v11444_v14 = vpop.eup %11443 }
 0x501   : > { %v11446_v8 = vpop.eup %11445  ;;  %v4619_v4 = vadd.f32 0.5, %v4617_v52 }
 0x502   : > { %v4610_v7 = vmul.f32 0.5, %v11446_v8 }
 0x52f   : > { %v4361_v47 = vpop.f32.mrb[52].mxu0  ;;  %v4596_v33 = vpop.f32.mrb[52].mxu1 }
 0x530   : > { %v4368_v23 = vadd.f32 %v4361_v47, %v15524_v56  ;;  %v4603_v36 = vadd.f32 %v4596_v33, %v15525_v43  ;;  %v4363_v54 = vpop.f32.mrb[53].mxu0  ;;  %v4598_v24 = vpop.f32.mrb[53].mxu1  ;;  %v4618_v56 = vmul.f32 0.5, %v11442_v19  ;;  %v4609_v33 = vmul.f32 0.5, %v11444_v14 }
 0x531   : > { %v4369_v3 = vadd.f32 %v4363_v54, %v15526_v27  ;;  %v4604_v34 = vadd.f32 %v4598_v24, %v15527_v55  ;;  %v4365_v10 = vpop.f32.mrb[54].mxu0  ;;  %v4600_v38 = vpop.f32.mrb[54].mxu1  ;;  %v4612_v55 = vadd.f32 0.5, %v4610_v7 }
 0x532   : > { %11447 = vtanh.f32 %v4368_v23  ;;  %v4366_v37 = vpop.f32.mrb[55].mxu0  ;;  %v4601_v17 = vpop.f32.mrb[55].mxu1  ;;  %v4623_v47 = vmul.f32 0.5, %v4603_v36  ;;  %v4620_v54 = vadd.f32 0.5, %v4618_v56  ;;  %v4611_v24 = vadd.f32 0.5, %v4609_v33  ;;  %v5360_v33 = vld [vmem:[%s12158_s17 + $0x58] sm:$0xff] }
 0x533   : > { %11449 = vtanh.f32 %v4369_v3  ;;  %v4624_v43 = vmul.f32 0.5, %v4604_v34  ;;  %v4631_v10 = vmul.f32 %v4619_v4, %v13350_v35 }
 0x534   : > { %11451 = vtanh.f32 %v4623_v47  ;;  %v4632_v3 = vmul.f32 %v4620_v54, %v13352_v44  ;;  %v5125_v47 = vld [vmem:[%s12158_s17 + $0x50] sm:$0xff]  ;;  %v5361_v54 = vld [vmem:[%s12158_s17 + $0x78] sm:$0xff] }
 0x535   : > { %11453 = vtanh.f32 %v4624_v43  ;;  %v5126_v43 = vld [vmem:[%s12158_s17 + $0x70] sm:$0xff] }
 0x53c   : > { %v11448_v27 = vpop.eup %11447 }
 0x53d   : > { %v11450_v23 = vpop.eup %11449  ;;  %v4633_v38 = vmul.f32 %v11448_v27, %v4611_v24  ;;  %v5127_v27 = vld [vmem:[%s12158_s17 + $0x90] sm:$0xff] }
 0x53e   : > { %v4634_v60 = vmul.f32 %v11450_v23, %v4612_v55  ;;  %v11452_v7 = vpop.eup %11451  ;;  %v13719_v55 = vcombine.high %v5125_v47, %v5126_v43  ;;  %v13721_v23 = vcombine.high %v5360_v33, %v5361_v54 }
 0x53f   : > { %v13705_v36 = vadd.f32 %v4633_v38, %v4631_v10  ;;  %v11454_v37 = vpop.eup %11453  ;;  %v4627_v35 = vmul.f32 0.5, %v11452_v7  ;;  %v5128_v10 = vld [vmem:[%s12158_s17 + $0xb0] sm:$0xff]  ;;  %v5362_v38 = vld [vmem:[%s12158_s17 + $0x98] sm:$0xff]  ;;  %v13732_v7 = vcombine.low %v5360_v33, %v5361_v54 }
 0x540   : > { %v13707_v34 = vadd.f32 %v4634_v60, %v4632_v3  ;;  %v4628_v4 = vmul.f32 0.5, %v11454_v37  ;;  %v5363_v3 = vld [vmem:[%s12158_s17 + $0xb8] sm:$0xff]  ;;  %v13730_v60 = vcombine.low %v5125_v47, %v5126_v43  ;;  %v13734_v37 = vcombine.high %v5127_v27, %v5128_v10  ;;  %v5131_v43 = vld [vmem:[%s12158_s17 + $0x110] sm:$0xff] }
 0x541   : > { %11455 = vtanh.f32 %v13705_v36  ;;  %v4629_v17 = vadd.f32 0.5, %v4627_v35  ;;  %15529 = vst [vmem:[#allocation108_spill] sm:$0xff] %v13732_v7  ;;  %v13736_v35 = vcombine.high %v5362_v38, %v5363_v3  ;;  %v5132_v33 = vld [vmem:[%s12158_s17 + $0x130] sm:$0xff]  ;;  %v5366_v54 = vld [vmem:[%s12158_s17 + $0x118] sm:$0xff] }
 0x542   : > { %11457 = vtanh.f32 %v13707_v34  ;;  %v4630_v19 = vadd.f32 0.5, %v4628_v4  ;;  %15528 = vst [vmem:[#allocation103_spill] sm:$0xff] %v13730_v60  ;;  %15530 = vst [vmem:[#allocation111_spill] sm:$0xff] %v13734_v37  ;;  %v5129_v4 = vld [vmem:[%s12158_s17 + $0xd0] sm:$0xff] }
 0x543   : > { %15531 = vst [vmem:[#allocation109_spill] sm:$0xff] %v13736_v35 }
 0x54b   : > { %v11456_v44 = vpop.eup %11455 }
 0x54c   : > { %v11458_v14 = vpop.eup %11457  ;;  %v4639_v8 = vmul.f32 %v11456_v44, %v4629_v17  ;;  %v5130_v17 = vld [vmem:[%s12158_s17 + $0xf0] sm:$0xff]  ;;  %v5364_v44 = vld [vmem:[%s12158_s17 + $0xd8] sm:$0xff] }
 0x54d   : > { %v4640_v52 = vmul.f32 %v11458_v14, %v4630_v19  ;;  %v5365_v19 = vld [vmem:[%s12158_s17 + $0xf8] sm:$0xff]  ;;  %v13746_v14 = vcombine.low %v5127_v27, %v5128_v10  ;;  %v13762_v27 = vcombine.low %v5129_v4, %v5130_v17 }
 0x54e   : > { %v13712_v56 = vpack.c.bf16 %v4639_v8, %v4639_v8  ;;  %v13748_v8 = vcombine.low %v5362_v38, %v5363_v3  ;;  %v13754_v47 = vcombine.high %v5364_v44, %v5365_v19  ;;  %v13764_v10 = vcombine.low %v5364_v44, %v5365_v19 }
 0x54f   : > { %v4642_v24 = vpack.c.bf16 %v4640_v52, %v4640_v52  ;;  %15532 = vst [vmem:[#allocation110_spill] sm:$0xff] %v13746_v14  ;;  %v13752_v52 = vcombine.high %v5129_v4, %v5130_v17  ;;  %15536 = vst [vmem:[#allocation24_spill] sm:$0xff] %v13762_v27  ;;  %v13768_v38 = vcombine.high %v5131_v43, %v5132_v33 }
 0x550   : > { %4643 = vst [vmem:[#allocation2 + $0x10] sm:$0xf] %v13712_v56  ;;  %15533 = vst [vmem:[#allocation112_spill] sm:$0xff] %v13748_v8  ;;  %v13778_v4 = vcombine.low %v5131_v43, %v5132_v33 }
 0x551   : > { %4644 = vst [vmem:[#allocation2 + $0x18] sm:$0xf] %v4642_v24  ;;  %4877 = vmatprep.mubr.bf16.mxu0 %v4642_v24  ;;  %5112 = vmatprep.mubr.bf16.mxu1 %v4642_v24  ;;  %15534 = vst [vmem:[#allocation113_spill] sm:$0xff] %v13752_v52 }
 0x552   : > { %4878 = vmatmul.mubr.bf16.vlgmr.msra.gmra.mrb[56].mxu0 %v13712_v56  ;;  %5113 = vmatmul.mubr.bf16.vlgmr.msra.gmra.mrb[56].mxu1 %v13712_v56  ;;  %15535 = vst [vmem:[#allocation22_spill] sm:$0xff] %v13754_v47  ;;  %15537 = vst [vmem:[#allocation23_spill] sm:$0xff] %v13764_v10 }
 0x553   : > { %5316 = vmatpush1.bf16.msra.mxu0 %v13687_v57  ;;  %5551 = vmatpush1.bf16.msra.mxu1 %v13689_v13  ;;  %15538 = vst [vmem:[#allocation25_spill] sm:$0xff] %v13768_v38  ;;  %15540 = vst [vmem:[#allocation57_spill] sm:$0xff] %v13778_v4 }
 0x554   : > { %5347 = vmatprep.mubr.bf16.mxu0 %v4642_v24  ;;  %5582 = vmatprep.mubr.bf16.mxu1 %v4642_v24  ;;  %v5367_v24 = vld [vmem:[%s12158_s17 + $0x138] sm:$0xff] }
 0x555   : > { %5317 = vmatprep.subr.bf16.mxu0 %v13719_v55  ;;  %5552 = vmatprep.subr.bf16.mxu1 %v13721_v23  ;;  %v13770_v3 = vcombine.high %v5366_v54, %v5367_v24  ;;  %v13780_v17 = vcombine.low %v5366_v54, %v5367_v24 }
 0x557   : > { %5318 = vmatpush1.bf16.msra.mxu0 %v13730_v60  ;;  %5553 = vmatpush1.bf16.msra.mxu1 %v13732_v7  ;;  %15539 = vst [vmem:[#allocation53_spill] sm:$0xff] %v13770_v3  ;;  %15541 = vst [vmem:[#allocation56_spill] sm:$0xff] %v13780_v17  ;;  %v5388_v7 = vld [vmem:[%s12158_s17 + $0x3d8] sm:$0xff] }
 0x558   : > { %5319 = vmatprep.subr.bf16.mxu0 %v13734_v37  ;;  %5554 = vmatprep.subr.bf16.mxu1 %v13736_v35  ;;  %v5133_v35 = vld [vmem:[%s12158_s17 + $0x150] sm:$0xff]  ;;  %v5368_v37 = vld [vmem:[%s12158_s17 + $0x158] sm:$0xff] }
 0x559   : > { %v5389_v60 = vld [vmem:[%s12158_s17 + $0x3f8] sm:$0xff] }
 0x55b   : > { %5320 = vmatpush1.bf16.msra.mxu0 %v13746_v14  ;;  %5555 = vmatpush1.bf16.msra.mxu1 %v13748_v8  ;;  %v5134_v14 = vld [vmem:[%s12158_s17 + $0x170] sm:$0xff]  ;;  %v5369_v8 = vld [vmem:[%s12158_s17 + $0x178] sm:$0xff] }
 0x55c   : > { %5321 = vmatprep.subr.bf16.mxu0 %v13752_v52  ;;  %5556 = vmatprep.subr.bf16.mxu1 %v13754_v47  ;;  %v13784_v44 = vcombine.high %v5133_v35, %v5134_v14  ;;  %v13786_v19 = vcombine.high %v5368_v37, %v5369_v8  ;;  %v5135_v47 = vld [vmem:[%s12158_s17 + $0x190] sm:$0xff]  ;;  %v5370_v52 = vld [vmem:[%s12158_s17 + $0x198] sm:$0xff]  ;;  %v13794_v43 = vcombine.low %v5133_v35, %v5134_v14 }
 0x55d   : > { %v13796_v33 = vcombine.low %v5368_v37, %v5369_v8 }
 0x55e   : > { %15542 = vst [vmem:[#allocation59_spill] sm:$0xff] %v13784_v44  ;;  %15543 = vst [vmem:[#allocation114_spill] sm:$0xff] %v13786_v19 }
 0x55f   : > { %5322 = vmatpush1.bf16.msra.mxu0 %v13762_v27  ;;  %5557 = vmatpush1.bf16.msra.mxu1 %v13764_v10  ;;  %v5136_v27 = vld [vmem:[%s12158_s17 + $0x1b0] sm:$0xff]  ;;  %v5371_v10 = vld [vmem:[%s12158_s17 + $0x1b8] sm:$0xff]  ;;  %15544 = vst [vmem:[#allocation115_spill] sm:$0xff] %v13794_v43  ;;  %15545 = vst [vmem:[#allocation116_spill] sm:$0xff] %v13796_v33 }
 0x560   : > { %5323 = vmatprep.subr.bf16.mxu0 %v13768_v38  ;;  %5558 = vmatprep.subr.bf16.mxu1 %v13770_v3  ;;  %v13800_v54 = vcombine.high %v5135_v47, %v5136_v27  ;;  %v13802_v24 = vcombine.high %v5370_v52, %v5371_v10  ;;  %v5137_v3 = vld [vmem:[%s12158_s17 + $0x1d0] sm:$0xff]  ;;  %v5372_v38 = vld [vmem:[%s12158_s17 + $0x1d8] sm:$0xff]  ;;  %v13810_v37 = vcombine.low %v5135_v47, %v5136_v27 }
 0x561   : > { %v13812_v35 = vcombine.low %v5370_v52, %v5371_v10 }
 0x562   : > { %15546 = vst [vmem:[#allocation117_spill] sm:$0xff] %v13800_v54  ;;  %15547 = vst [vmem:[#allocation118_spill] sm:$0xff] %v13802_v24 }
 0x563   : > { %5324 = vmatpush1.bf16.msra.mxu0 %v13778_v4  ;;  %5559 = vmatpush1.bf16.msra.mxu1 %v13780_v17  ;;  %v5138_v4 = vld [vmem:[%s12158_s17 + $0x1f0] sm:$0xff]  ;;  %v5373_v17 = vld [vmem:[%s12158_s17 + $0x1f8] sm:$0xff]  ;;  %15548 = vst [vmem:[#allocation119_spill] sm:$0xff] %v13810_v37  ;;  %15549 = vst [vmem:[#allocation120_spill] sm:$0xff] %v13812_v35 }
 0x564   : > { %5325 = vmatprep.subr.bf16.mxu0 %v13784_v44  ;;  %5560 = vmatprep.subr.bf16.mxu1 %v13786_v19  ;;  %v13816_v14 = vcombine.high %v5137_v3, %v5138_v4  ;;  %v13818_v8 = vcombine.high %v5372_v38, %v5373_v17  ;;  %v5139_v19 = vld [vmem:[%s12158_s17 + $0x210] sm:$0xff]  ;;  %v5374_v44 = vld [vmem:[%s12158_s17 + $0x218] sm:$0xff]  ;;  %v13826_v52 = vcombine.low %v5137_v3, %v5138_v4 }
 0x565   : > { %v13828_v47 = vcombine.low %v5372_v38, %v5373_v17 }
 0x566   : > { %15550 = vst [vmem:[#allocation121_spill] sm:$0xff] %v13816_v14  ;;  %15551 = vst [vmem:[#allocation122_spill] sm:$0xff] %v13818_v8 }
 0x567   : > { %5326 = vmatpush1.bf16.msra.mxu0 %v13794_v43  ;;  %5561 = vmatpush1.bf16.msra.mxu1 %v13796_v33  ;;  %v5140_v43 = vld [vmem:[%s12158_s17 + $0x230] sm:$0xff]  ;;  %v5375_v33 = vld [vmem:[%s12158_s17 + $0x238] sm:$0xff]  ;;  %15552 = vst [vmem:[#allocation123_spill] sm:$0xff] %v13826_v52  ;;  %15553 = vst [vmem:[#allocation124_spill] sm:$0xff] %v13828_v47 }
 0x568   : > { %5327 = vmatprep.subr.bf16.mxu0 %v13800_v54  ;;  %5562 = vmatprep.subr.bf16.mxu1 %v13802_v24  ;;  %v13832_v27 = vcombine.high %v5139_v19, %v5140_v43  ;;  %v13834_v10 = vcombine.high %v5374_v44, %v5375_v33  ;;  %v5141_v24 = vld [vmem:[%s12158_s17 + $0x250] sm:$0xff]  ;;  %v5376_v54 = vld [vmem:[%s12158_s17 + $0x258] sm:$0xff]  ;;  %v13842_v38 = vcombine.low %v5139_v19, %v5140_v43 }
 0x569   : > { %v13844_v3 = vcombine.low %v5374_v44, %v5375_v33 }
 0x56a   : > { %15554 = vst [vmem:[#allocation125_spill] sm:$0xff] %v13832_v27  ;;  %15555 = vst [vmem:[#allocation126_spill] sm:$0xff] %v13834_v10 }
 0x56b   : > { %5328 = vmatpush1.bf16.msra.mxu0 %v13810_v37  ;;  %5563 = vmatpush1.bf16.msra.mxu1 %v13812_v35  ;;  %v5142_v37 = vld [vmem:[%s12158_s17 + $0x270] sm:$0xff]  ;;  %v5377_v35 = vld [vmem:[%s12158_s17 + $0x278] sm:$0xff]  ;;  %15556 = vst [vmem:[#allocation127_spill] sm:$0xff] %v13842_v38  ;;  %15557 = vst [vmem:[#allocation128_spill] sm:$0xff] %v13844_v3 }
 0x56c   : > { %5329 = vmatprep.subr.bf16.mxu0 %v13816_v14  ;;  %5564 = vmatprep.subr.bf16.mxu1 %v13818_v8  ;;  %v13848_v4 = vcombine.high %v5141_v24, %v5142_v37  ;;  %v13850_v17 = vcombine.high %v5376_v54, %v5377_v35  ;;  %v5143_v8 = vld [vmem:[%s12158_s17 + $0x290] sm:$0xff]  ;;  %v5378_v14 = vld [vmem:[%s12158_s17 + $0x298] sm:$0xff]  ;;  %v13858_v44 = vcombine.low %v5141_v24, %v5142_v37 }
 0x56d   : > { %v13860_v19 = vcombine.low %v5376_v54, %v5377_v35 }
 0x56e   : > { %15558 = vst [vmem:[#allocation129_spill] sm:$0xff] %v13848_v4  ;;  %15559 = vst [vmem:[#allocation130_spill] sm:$0xff] %v13850_v17 }
 0x56f   : > { %5330 = vmatpush1.bf16.msra.mxu0 %v13826_v52  ;;  %5565 = vmatpush1.bf16.msra.mxu1 %v13828_v47  ;;  %v5144_v52 = vld [vmem:[%s12158_s17 + $0x2b0] sm:$0xff]  ;;  %v5379_v47 = vld [vmem:[%s12158_s17 + $0x2b8] sm:$0xff]  ;;  %15560 = vst [vmem:[#allocation131_spill] sm:$0xff] %v13858_v44  ;;  %15561 = vst [vmem:[#allocation132_spill] sm:$0xff] %v13860_v19 }
 0x570   : > { %5331 = vmatprep.subr.bf16.mxu0 %v13832_v27  ;;  %5566 = vmatprep.subr.bf16.mxu1 %v13834_v10  ;;  %v13864_v43 = vcombine.high %v5143_v8, %v5144_v52  ;;  %v13866_v33 = vcombine.high %v5378_v14, %v5379_v47  ;;  %v5145_v10 = vld [vmem:[%s12158_s17 + $0x2d0] sm:$0xff]  ;;  %v5380_v27 = vld [vmem:[%s12158_s17 + $0x2d8] sm:$0xff]  ;;  %v13874_v54 = vcombine.low %v5143_v8, %v5144_v52 }
 0x571   : > { %v13876_v24 = vcombine.low %v5378_v14, %v5379_v47 }
 0x572   : > { %15562 = vst [vmem:[#allocation133_spill] sm:$0xff] %v13864_v43  ;;  %15563 = vst [vmem:[#allocation134_spill] sm:$0xff] %v13866_v33 }
 0x573   : > { %5332 = vmatpush1.bf16.msra.mxu0 %v13842_v38  ;;  %5567 = vmatpush1.bf16.msra.mxu1 %v13844_v3  ;;  %v5146_v38 = vld [vmem:[%s12158_s17 + $0x2f0] sm:$0xff]  ;;  %v5381_v3 = vld [vmem:[%s12158_s17 + $0x2f8] sm:$0xff]  ;;  %15564 = vst [vmem:[#allocation135_spill] sm:$0xff] %v13874_v54  ;;  %15565 = vst [vmem:[#allocation136_spill] sm:$0xff] %v13876_v24 }
 0x574   : > { %5333 = vmatprep.subr.bf16.mxu0 %v13848_v4  ;;  %5568 = vmatprep.subr.bf16.mxu1 %v13850_v17  ;;  %v13880_v37 = vcombine.high %v5145_v10, %v5146_v38  ;;  %v13882_v35 = vcombine.high %v5380_v27, %v5381_v3  ;;  %v5147_v17 = vld [vmem:[%s12158_s17 + $0x310] sm:$0xff]  ;;  %v5382_v4 = vld [vmem:[%s12158_s17 + $0x318] sm:$0xff]  ;;  %v13890_v14 = vcombine.low %v5145_v10, %v5146_v38 }
 0x575   : > { %v13892_v8 = vcombine.low %v5380_v27, %v5381_v3 }
 0x576   : > { %15566 = vst [vmem:[#allocation137_spill] sm:$0xff] %v13880_v37  ;;  %15567 = vst [vmem:[#allocation138_spill] sm:$0xff] %v13882_v35 }
 0x577   : > { %5334 = vmatpush1.bf16.msra.mxu0 %v13858_v44  ;;  %5569 = vmatpush1.bf16.msra.mxu1 %v13860_v19  ;;  %v5148_v44 = vld [vmem:[%s12158_s17 + $0x330] sm:$0xff]  ;;  %v5383_v19 = vld [vmem:[%s12158_s17 + $0x338] sm:$0xff]  ;;  %15568 = vst [vmem:[#allocation139_spill] sm:$0xff] %v13890_v14  ;;  %15569 = vst [vmem:[#allocation140_spill] sm:$0xff] %v13892_v8 }
 0x578   : > { %5335 = vmatprep.subr.bf16.mxu0 %v13864_v43  ;;  %5570 = vmatprep.subr.bf16.mxu1 %v13866_v33  ;;  %v13896_v52 = vcombine.high %v5147_v17, %v5148_v44  ;;  %v13898_v47 = vcombine.high %v5382_v4, %v5383_v19  ;;  %v5149_v33 = vld [vmem:[%s12158_s17 + $0x350] sm:$0xff]  ;;  %v5384_v43 = vld [vmem:[%s12158_s17 + $0x358] sm:$0xff]  ;;  %v13906_v27 = vcombine.low %v5147_v17, %v5148_v44 }
 0x579   : > { %v13908_v10 = vcombine.low %v5382_v4, %v5383_v19 }
 0x57a   : > { %15570 = vst [vmem:[#allocation141_spill] sm:$0xff] %v13896_v52  ;;  %15571 = vst [vmem:[#allocation142_spill] sm:$0xff] %v13898_v47 }
 0x57b   : > { %5336 = vmatpush1.bf16.msra.mxu0 %v13874_v54  ;;  %5571 = vmatpush1.bf16.msra.mxu1 %v13876_v24  ;;  %v5150_v54 = vld [vmem:[%s12158_s17 + $0x370] sm:$0xff]  ;;  %v5385_v24 = vld [vmem:[%s12158_s17 + $0x378] sm:$0xff] }
 0x57c   : > { %5337 = vmatprep.subr.bf16.mxu0 %v13880_v37  ;;  %5572 = vmatprep.subr.bf16.mxu1 %v13882_v35  ;;  %v13912_v38 = vcombine.high %v5149_v33, %v5150_v54  ;;  %v13914_v3 = vcombine.high %v5384_v43, %v5385_v24  ;;  %v5151_v35 = vld [vmem:[%s12158_s17 + $0x390] sm:$0xff]  ;;  %v5386_v37 = vld [vmem:[%s12158_s17 + $0x398] sm:$0xff]  ;;  %v13922_v4 = vcombine.low %v5149_v33, %v5150_v54 }
 0x57d   : > { %v13924_v17 = vcombine.low %v5384_v43, %v5385_v24  ;;  %v13946_v24 = vcombine.high %v5388_v7, %v5389_v60 }
 0x57e   : > { %15572 = vst [vmem:[#allocation143_spill] sm:$0xff] %v13914_v3  ;;  %15573 = vst [vmem:[#allocation144_spill] sm:$0xff] %v13922_v4 }
 0x57f   : > { %5338 = vmatpush1.bf16.msra.mxu0 %v13890_v14  ;;  %5573 = vmatpush1.bf16.msra.mxu1 %v13892_v8  ;;  %v5152_v14 = vld [vmem:[%s12158_s17 + $0x3b0] sm:$0xff]  ;;  %v5387_v8 = vld [vmem:[%s12158_s17 + $0x3b8] sm:$0xff] }
 0x580   : > { %5339 = vmatprep.subr.bf16.mxu0 %v13896_v52  ;;  %5574 = vmatprep.subr.bf16.mxu1 %v13898_v47  ;;  %v13928_v44 = vcombine.high %v5151_v35, %v5152_v14  ;;  %v13930_v19 = vcombine.high %v5386_v37, %v5387_v8  ;;  %v5153_v47 = vld [vmem:[%s12158_s17 + $0x3d0] sm:$0xff]  ;;  %v13938_v33 = vcombine.low %v5151_v35, %v5152_v14 }
 0x581   : > { %v5154_v52 = vld [vmem:[%s12158_s17 + $0x3f0] sm:$0xff]  ;;  %v13940_v43 = vcombine.low %v5386_v37, %v5387_v8 }
 0x582   : > { %v13944_v54 = vcombine.high %v5153_v47, %v5154_v52 }
 0x583   : > { %5340 = vmatpush1.bf16.msra.mxu0 %v13906_v27  ;;  %5575 = vmatpush1.bf16.msra.mxu1 %v13908_v10 }
 0x584   : > { %5341 = vmatprep.subr.bf16.mxu0 %v13912_v38  ;;  %5576 = vmatprep.subr.bf16.mxu1 %v13914_v3  ;;  %v13950_v3 = vcombine.low %v5153_v47, %v5154_v52 }
 0x587   : > { %5342 = vmatpush1.bf16.msra.mxu0 %v13922_v4  ;;  %5577 = vmatpush1.bf16.msra.mxu1 %v13924_v17  ;;  %v13952_v4 = vcombine.low %v5388_v7, %v5389_v60  ;;  %v15606_v7 = vld [vmem:[#allocation33_spill] sm:$0xff] }
 0x588   : > { %5343 = vmatprep.subr.bf16.mxu0 %v13928_v44  ;;  %5578 = vmatprep.subr.bf16.mxu1 %v13930_v19 }
 0x58b   : > { %5344 = vmatpush1.bf16.msra.mxu0 %v13938_v33  ;;  %5579 = vmatpush1.bf16.msra.mxu1 %v13940_v43 }
 0x58c   : > { %5345 = vmatprep.subr.bf16.mxu0 %v13944_v54  ;;  %5580 = vmatprep.subr.bf16.mxu1 %v13946_v24 }
 0x58f   : > { %5346 = vmatpush1.bf16.msra.mxu0 %v13950_v3  ;;  %5581 = vmatpush1.bf16.msra.mxu1 %v13952_v4 }
 0x590   : > { %5839 = vmatprep.subr.bf16.mxu0 %v13430_v50  ;;  %6074 = vmatprep.subr.bf16.mxu1 %v13437_v6  ;;  %v15575_v50 = vld [vmem:[#allocation50_spill] sm:$0xff] }
 0x591   : > { %v15577_v6 = vld [vmem:[#allocation58_spill] sm:$0xff] }
 0x592   : > { %5348 = vmatmul.mubr.bf16.vlgmr.msra.gmra.mrb[60].mxu0 %v13712_v56  ;;  %5583 = vmatmul.mubr.bf16.vlgmr.msra.gmra.mrb[60].mxu1 %v13712_v56  ;;  %v15605_v56 = vld [vmem:[#allocation31_spill] sm:$0xff] }
 0x593   : > { %5840 = vmatpush1.bf16.msra.mxu0 %v13428_v22  ;;  %6075 = vmatpush1.bf16.msra.mxu1 %v13435_v0  ;;  %v15574_v22 = vld [vmem:[#allocation52_spill] sm:$0xff]  ;;  %v15576_v0 = vld [vmem:[#allocation51_spill] sm:$0xff] }
 0x594   : > { %5841 = vmatprep.subr.bf16.mxu0 %v13439_v58  ;;  %6076 = vmatprep.subr.bf16.mxu1 %v13445_v21  ;;  %v15578_v58 = vld [vmem:[#allocation60_spill] sm:$0xff]  ;;  %v15579_v21 = vld [vmem:[#allocation54_spill] sm:$0xff] }
 0x597   : > { %5842 = vmatpush1.bf16.msra.mxu0 %v13452_v49  ;;  %6077 = vmatpush1.bf16.msra.mxu1 %v13456_v51  ;;  %v15580_v49 = vld [vmem:[#allocation55_spill] sm:$0xff] }
 0x598   : > { %5843 = vmatprep.subr.bf16.mxu0 %v13458_v63  ;;  %6078 = vmatprep.subr.bf16.mxu1 %v13461_v15  ;;  %v15581_v51 = vld [vmem:[#allocation63_spill] sm:$0xff]  ;;  %v15583_v15 = vld [vmem:[#allocation61_spill] sm:$0xff] }
 0x599   : > { %v15582_v63 = vld [vmem:[#allocation67_spill] sm:$0xff] }
 0x59b   : > { %5844 = vmatpush1.bf16.msra.mxu0 %v13468_v9  ;;  %6079 = vmatpush1.bf16.msra.mxu1 %v13472_v12  ;;  %v15584_v9 = vld [vmem:[#allocation62_spill] sm:$0xff] }
 0x59c   : > { %5845 = vmatprep.subr.bf16.mxu0 %v13474_v61  ;;  %6080 = vmatprep.subr.bf16.mxu1 %v13477_v40  ;;  %v15585_v12 = vld [vmem:[#allocation74_spill] sm:$0xff]  ;;  %v15586_v61 = vld [vmem:[#allocation76_spill] sm:$0xff] }
 0x59d   : > { %v15587_v40 = vld [vmem:[#allocation70_spill] sm:$0xff] }
 0x59f   : > { %5846 = vmatpush1.bf16.msra.mxu0 %v13484_v28  ;;  %6081 = vmatpush1.bf16.msra.mxu1 %v13488_v30  ;;  %v15588_v28 = vld [vmem:[#allocation71_spill] sm:$0xff] }
 0x5a0   : > { %5847 = vmatprep.subr.bf16.mxu0 %v13490_v32  ;;  %6082 = vmatprep.subr.bf16.mxu1 %v13493_v53  ;;  %v15589_v30 = vld [vmem:[#allocation79_spill] sm:$0xff]  ;;  %v15591_v53 = vld [vmem:[#allocation77_spill] sm:$0xff] }
 0x5a1   : > { %v15590_v32 = vld [vmem:[#allocation83_spill] sm:$0xff] }
 0x5a3   : > { %5848 = vmatpush1.bf16.msra.mxu0 %v13500_v29  ;;  %6083 = vmatpush1.bf16.msra.mxu1 %v13504_v18  ;;  %v15592_v29 = vld [vmem:[#allocation78_spill] sm:$0xff] }
 0x5a4   : > { %5849 = vmatprep.subr.bf16.mxu0 %v13506_v41  ;;  %6084 = vmatprep.subr.bf16.mxu1 %v13509_v26  ;;  %v15593_v18 = vld [vmem:[#allocation90_spill] sm:$0xff]  ;;  %v15594_v41 = vld [vmem:[#allocation92_spill] sm:$0xff] }
 0x5a5   : > { %v15595_v26 = vld [vmem:[#allocation86_spill] sm:$0xff] }
 0x5a7   : > { %5850 = vmatpush1.bf16.msra.mxu0 %v13516_v59  ;;  %6085 = vmatpush1.bf16.msra.mxu1 %v13520_v31  ;;  %v15596_v59 = vld [vmem:[#allocation87_spill] sm:$0xff] }
 0x5a8   : > { %5851 = vmatprep.subr.bf16.mxu0 %v13522_v62  ;;  %6086 = vmatprep.subr.bf16.mxu1 %v13525_v39  ;;  %v15597_v31 = vld [vmem:[#allocation95_spill] sm:$0xff]  ;;  %v15599_v39 = vld [vmem:[#allocation93_spill] sm:$0xff] }
 0x5a9   : > { %v15598_v62 = vld [vmem:[#allocation99_spill] sm:$0xff] }
 0x5ab   : > { %5852 = vmatpush1.bf16.msra.mxu0 %v13532_v25  ;;  %6087 = vmatpush1.bf16.msra.mxu1 %v13536_v48  ;;  %v15600_v25 = vld [vmem:[#allocation94_spill] sm:$0xff] }
 0x5ac   : > { %5853 = vmatprep.subr.bf16.mxu0 %v13538_v20  ;;  %6088 = vmatprep.subr.bf16.mxu1 %v13541_v11  ;;  %v15601_v48 = vld [vmem:[#allocation106_spill] sm:$0xff] }
 0x5ad   : > { %v15602_v20 = vld [vmem:[#allocation102_spill] sm:$0xff] }
 0x5af   : > { %5854 = vmatpush1.bf16.msra.mxu0 %v13544_v42  ;;  %6089 = vmatpush1.bf16.msra.mxu1 %v13548_v45  ;;  %v15603_v45 = vld [vmem:[#allocation29_spill] sm:$0xff] }
 0x5b0   : > { %5855 = vmatprep.subr.bf16.mxu0 %v13556_v16  ;;  %6090 = vmatprep.subr.bf16.mxu1 %v13563_v2 }
 0x5b3   : > { %5856 = vmatpush1.bf16.msra.mxu0 %v13559_v1  ;;  %6091 = vmatpush1.bf16.msra.mxu1 %v13561_v5  ;;  %v15604_v1 = vld [vmem:[#allocation32_spill] sm:$0xff] }
 0x5b4   : > { %5857 = vmatprep.subr.bf16.mxu0 %v13572_v46  ;;  %6092 = vmatprep.subr.bf16.mxu1 %v15574_v22 }
 0x5b7   : > { %5858 = vmatpush1.bf16.msra.mxu0 %v15575_v50  ;;  %6093 = vmatpush1.bf16.msra.mxu1 %v15576_v0 }
 0x5b8   : > { %5859 = vmatprep.subr.bf16.mxu0 %v15577_v6  ;;  %6094 = vmatprep.subr.bf16.mxu1 %v15578_v58 }
 0x5bb   : > { %5860 = vmatpush1.bf16.msra.mxu0 %v15579_v21  ;;  %6095 = vmatpush1.bf16.msra.mxu1 %v15580_v49  ;;  %v15607_v21 = vld [vmem:[#allocation68_spill] sm:$0xff] }
 0x5bc   : > { %5861 = vmatprep.subr.bf16.mxu0 %v15581_v51  ;;  %6096 = vmatprep.subr.bf16.mxu1 %v15582_v63  ;;  %v15608_v51 = vld [vmem:[#allocation73_spill] sm:$0xff] }
 0x5bf   : > { %5862 = vmatpush1.bf16.msra.mxu0 %v15583_v15  ;;  %6097 = vmatpush1.bf16.msra.mxu1 %v15584_v9 }
 0x5c0   : > { %5863 = vmatprep.subr.bf16.mxu0 %v15585_v12  ;;  %6098 = vmatprep.subr.bf16.mxu1 %v15586_v61  ;;  %v15609_v12 = vld [vmem:[#allocation72_spill] sm:$0xff] }
 0x5c3   : > { %5864 = vmatpush1.bf16.msra.mxu0 %v15587_v40  ;;  %6099 = vmatpush1.bf16.msra.mxu1 %v15588_v28  ;;  %v15610_v40 = vld [vmem:[#allocation75_spill] sm:$0xff] }
 0x5c4   : > { %5865 = vmatprep.subr.bf16.mxu0 %v15589_v30  ;;  %6100 = vmatprep.subr.bf16.mxu1 %v15590_v32 }
 0x5c7   : > { %5866 = vmatpush1.bf16.msra.mxu0 %v15591_v53  ;;  %6101 = vmatpush1.bf16.msra.mxu1 %v15592_v29 }
 0x5c8   : > { %5867 = vmatprep.subr.bf16.mxu0 %v15593_v18  ;;  %6102 = vmatprep.subr.bf16.mxu1 %v15594_v41 }
 0x5cb   : > { %5868 = vmatpush1.bf16.msra.mxu0 %v15595_v26  ;;  %6103 = vmatpush1.bf16.msra.mxu1 %v15596_v59 }
 0x5cc   : > { %5869 = vmatprep.subr.bf16.mxu0 %v15597_v31  ;;  %6104 = vmatprep.subr.bf16.mxu1 %v15598_v62 }
 0x5cf   : > { %5870 = vmatpush1.bf16.msra.mxu0 %v15599_v39  ;;  %6105 = vmatpush1.bf16.msra.mxu1 %v15600_v25 }
 0x5d0   : > { %6309 = vmatprep.subr.bf16.mxu0 %v15601_v48  ;;  %6544 = vmatprep.subr.bf16.mxu1 %v15602_v20 }
 0x625   : > { %v4879_v11 = vpop.f32.mrb[56].mxu0  ;;  %v5114_v42 = vpop.f32.mrb[56].mxu1 }
 0x626   : > { %v4886_v16 = vadd.f32 %v4879_v11, %v15603_v45  ;;  %v5121_v5 = vadd.f32 %v5114_v42, %v15604_v1  ;;  %v4881_v2 = vpop.f32.mrb[57].mxu0  ;;  %v5116_v46 = vpop.f32.mrb[57].mxu1 }
 0x627   : > { %v4887_v60 = vadd.f32 %v4881_v2, %v15605_v56  ;;  %v5122_v37 = vadd.f32 %v5116_v46, %v15606_v7  ;;  %v4883_v35 = vpop.f32.mrb[58].mxu0  ;;  %v5118_v14 = vpop.f32.mrb[58].mxu1 }
 0x628   : > { %v4884_v8 = vpop.f32.mrb[59].mxu0  ;;  %v5119_v52 = vpop.f32.mrb[59].mxu1  ;;  %v5601_v47 = vmul.f32 0.5, %v5121_v5  ;;  %v5593_v50 = vmul.f32 0.5, %v4886_v16 }
 0x629   : > { %v5602_v22 = vmul.f32 0.5, %v5122_v37  ;;  %v5594_v0 = vmul.f32 0.5, %v4887_v60 }
 0x62a   : > { %11459 = vtanh.f32 %v5601_v47 }
 0x62b   : > { %11461 = vtanh.f32 %v5602_v22 }
 0x62c   : > { %11463 = vtanh.f32 %v5593_v50 }
 0x62d   : > { %11465 = vtanh.f32 %v5594_v0 }
 0x634   : > { %v11460_v53 = vpop.eup %11459 }
 0x635   : > { %v11462_v41 = vpop.eup %11461  ;;  %v5605_v31 = vmul.f32 0.5, %v11460_v53  ;;  %v15625_v53 = vld [vmem:[#allocation59_spill] sm:$0xff] }
 0x636   : > { %v11464_v26 = vpop.eup %11463  ;;  %v5606_v39 = vmul.f32 0.5, %v11462_v41  ;;  %v15628_v41 = vld [vmem:[#allocation116_spill] sm:$0xff] }
 0x637   : > { %v11466_v59 = vpop.eup %11465  ;;  %v5597_v48 = vmul.f32 0.5, %v11464_v26  ;;  %v5607_v11 = vadd.f32 0.5, %v5605_v31  ;;  %v15629_v26 = vld [vmem:[#allocation117_spill] sm:$0xff]  ;;  %v15631_v31 = vld [vmem:[#allocation119_spill] sm:$0xff] }
 0x638   : > { %v5598_v20 = vmul.f32 0.5, %v11466_v59  ;;  %v5608_v42 = vadd.f32 0.5, %v5606_v39  ;;  %v15630_v59 = vld [vmem:[#allocation118_spill] sm:$0xff]  ;;  %v15633_v39 = vld [vmem:[#allocation121_spill] sm:$0xff] }
 0x639   : > { %v5599_v45 = vadd.f32 0.5, %v5597_v48  ;;  %v5619_v2 = vmul.f32 %v5607_v11, %v13705_v36  ;;  %v15635_v48 = vld [vmem:[#allocation123_spill] sm:$0xff]  ;;  %v15637_v11 = vld [vmem:[#allocation125_spill] sm:$0xff] }
 0x63a   : > { %v5600_v1 = vadd.f32 0.5, %v5598_v20  ;;  %v5620_v56 = vmul.f32 %v5608_v42, %v13707_v34  ;;  %v15636_v20 = vld [vmem:[#allocation124_spill] sm:$0xff]  ;;  %v15638_v42 = vld [vmem:[#allocation126_spill] sm:$0xff] }
 0x665   : > { %v5349_v6 = vpop.f32.mrb[60].mxu0  ;;  %v5584_v58 = vpop.f32.mrb[60].mxu1 }
 0x666   : > { %v5356_v49 = vadd.f32 %v5349_v6, %v15607_v21  ;;  %v5591_v63 = vadd.f32 %v5584_v58, %v15608_v51  ;;  %v5351_v15 = vpop.f32.mrb[61].mxu0  ;;  %v5586_v9 = vpop.f32.mrb[61].mxu1  ;;  %v15611_v51 = vld [vmem:[#allocation103_spill] sm:$0xff] }
 0x667   : > { %v5357_v61 = vadd.f32 %v5351_v15, %v15609_v12  ;;  %v5592_v28 = vadd.f32 %v5586_v9, %v15610_v40  ;;  %v5353_v30 = vpop.f32.mrb[62].mxu0  ;;  %v5588_v32 = vpop.f32.mrb[62].mxu1  ;;  %v15613_v15 = vld [vmem:[#allocation111_spill] sm:$0xff]  ;;  %v15614_v9 = vld [vmem:[#allocation109_spill] sm:$0xff]  ;;  %v15615_v12 = vld [vmem:[#allocation110_spill] sm:$0xff] }
 0x668   : > { %11467 = vtanh.f32 %v5356_v49  ;;  %v5354_v29 = vpop.f32.mrb[63].mxu0  ;;  %v5589_v18 = vpop.f32.mrb[63].mxu1  ;;  %v5611_v62 = vmul.f32 0.5, %v5591_v63  ;;  %v15612_v63 = vld [vmem:[#allocation108_spill] sm:$0xff]  ;;  %v15623_v30 = vld [vmem:[#allocation57_spill] sm:$0xff] }
 0x669   : > { %11469 = vtanh.f32 %v5357_v61  ;;  %v5612_v25 = vmul.f32 0.5, %v5592_v28  ;;  %v15616_v61 = vld [vmem:[#allocation112_spill] sm:$0xff]  ;;  %v15622_v28 = vld [vmem:[#allocation53_spill] sm:$0xff]  ;;  %v15626_v29 = vld [vmem:[#allocation114_spill] sm:$0xff] }
 0x66a   : > { %11471 = vtanh.f32 %v5611_v62  ;;  %v15619_v40 = vld [vmem:[#allocation24_spill] sm:$0xff]  ;;  %v15627_v18 = vld [vmem:[#allocation115_spill] sm:$0xff] }
 0x66b   : > { %11473 = vtanh.f32 %v5612_v25  ;;  %v15624_v32 = vld [vmem:[#allocation56_spill] sm:$0xff]  ;;  %v15634_v25 = vld [vmem:[#allocation122_spill] sm:$0xff] }
 0x66c   : > { %v15632_v62 = vld [vmem:[#allocation120_spill] sm:$0xff] }
 0x672   : > { %v11468_v16 = vpop.eup %11467 }
 0x673   : > { %v11470_v5 = vpop.eup %11469  ;;  %v5621_v46 = vmul.f32 %v11468_v16, %v5599_v45  ;;  %v15639_v45 = vld [vmem:[#allocation127_spill] sm:$0xff]  ;;  %v15640_v16 = vld [vmem:[#allocation128_spill] sm:$0xff] }
 0x674   : > { %v5622_v60 = vmul.f32 %v11470_v5, %v5600_v1  ;;  %v11472_v35 = vpop.eup %11471  ;;  %v15641_v1 = vld [vmem:[#allocation129_spill] sm:$0xff]  ;;  %v15642_v5 = vld [vmem:[#allocation130_spill] sm:$0xff] }
 0x675   : > { %v14036_v7 = vadd.f32 %v5621_v46, %v5619_v2  ;;  %v11474_v14 = vpop.eup %11473  ;;  %v5615_v8 = vmul.f32 0.5, %v11472_v35  ;;  %v15643_v2 = vld [vmem:[#allocation131_spill] sm:$0xff]  ;;  %v15644_v46 = vld [vmem:[#allocation132_spill] sm:$0xff] }
 0x676   : > { %v14038_v37 = vadd.f32 %v5622_v60, %v5620_v56  ;;  %v5616_v52 = vmul.f32 0.5, %v11474_v14  ;;  %v15645_v56 = vld [vmem:[#allocation133_spill] sm:$0xff]  ;;  %v15646_v60 = vld [vmem:[#allocation134_spill] sm:$0xff]  ;;  %v15647_v35 = vld [vmem:[#allocation135_spill] sm:$0xff] }
 0x677   : > { %11475 = vtanh.f32 %v14036_v7  ;;  %v5617_v47 = vadd.f32 0.5, %v5615_v8  ;;  %v15648_v14 = vld [vmem:[#allocation136_spill] sm:$0xff]  ;;  %v15649_v8 = vld [vmem:[#allocation137_spill] sm:$0xff] }
 0x678   : > { %11477 = vtanh.f32 %v14038_v37  ;;  %v5618_v50 = vadd.f32 0.5, %v5616_v52  ;;  %v15650_v52 = vld [vmem:[#allocation138_spill] sm:$0xff] }
 0x681   : > { %v11476_v22 = vpop.eup %11475 }
 0x682   : > { %v11478_v36 = vpop.eup %11477  ;;  %v5627_v0 = vmul.f32 %v11476_v22, %v5617_v47  ;;  %v15651_v47 = vld [vmem:[#allocation139_spill] sm:$0xff]  ;;  %v15652_v22 = vld [vmem:[#allocation140_spill] sm:$0xff] }
 0x683   : > { %v5628_v6 = vmul.f32 %v11478_v36, %v5618_v50  ;;  %v15653_v50 = vld [vmem:[#allocation141_spill] sm:$0xff]  ;;  %v15654_v36 = vld [vmem:[#allocation142_spill] sm:$0xff] }
 0x684   : > { %v14042_v34 = vpack.c.bf16 %v5627_v0, %v5627_v0  ;;  %v15655_v0 = vld [vmem:[#allocation143_spill] sm:$0xff] }
 0x685   : > { %v5630_v58 = vpack.c.bf16 %v5628_v6, %v5628_v6  ;;  %v15656_v6 = vld [vmem:[#allocation144_spill] sm:$0xff] }
 0x686   : > { %v5633_v21 = vrot.slane %v14042_v34, 4 }
 0x687   : > { %v5634_v49 = vrot.slane %v5630_v58, 4  ;;  %5871 = vmatprep.mubr.bf16.mxu0 %v5630_v58  ;;  %6106 = vmatprep.mubr.bf16.mxu1 %v5630_v58 }
 0x688   : > { %5637 = vst [vmem:[#allocation2 + $0x10] sm:$0xf0] %v5633_v21  ;;  %5872 = vmatmul.mubr.bf16.vlgmr.msra.gmra.mrb[64].mxu0 %v14042_v34  ;;  %6107 = vmatmul.mubr.bf16.vlgmr.msra.gmra.mrb[64].mxu1 %v14042_v34 }
 0x689   : > { %5638 = vst [vmem:[#allocation2 + $0x18] sm:$0xf0] %v5634_v49  ;;  %6310 = vmatpush1.bf16.msra.mxu0 %v13687_v57  ;;  %6545 = vmatpush1.bf16.msra.mxu1 %v13689_v13  ;;  %v15617_v57 = vld [vmem:[#allocation113_spill] sm:$0xff]  ;;  %v15618_v13 = vld [vmem:[#allocation22_spill] sm:$0xff]  ;;  %v6640_v49 = vld [vmem:[%s12158_s17 + $0xa0] sm:$0xff] }
 0x68a   : > { %6341 = vmatprep.mubr.bf16.mxu0 %v5630_v58  ;;  %6576 = vmatprep.mubr.bf16.mxu1 %v5630_v58  ;;  %v6639_v58 = vld [vmem:[%s12158_s17 + $0x80] sm:$0xff] }
 0x68b   : > { %6311 = vmatprep.subr.bf16.mxu0 %v13719_v55  ;;  %6546 = vmatprep.subr.bf16.mxu1 %v13721_v23  ;;  %v15620_v55 = vld [vmem:[#allocation23_spill] sm:$0xff]  ;;  %v15621_v23 = vld [vmem:[#allocation25_spill] sm:$0xff] }
 0x68d   : > { %6312 = vmatpush1.bf16.msra.mxu0 %v15611_v51  ;;  %6547 = vmatpush1.bf16.msra.mxu1 %v15612_v63  ;;  %v6874_v51 = vld [vmem:[%s12158_s17 + $0x88] sm:$0xff] }
 0x68e   : > { %6313 = vmatprep.subr.bf16.mxu0 %v15613_v15  ;;  %6548 = vmatprep.subr.bf16.mxu1 %v15614_v9  ;;  %v6875_v63 = vld [vmem:[%s12158_s17 + $0xa8] sm:$0xff] }
 0x691   : > { %6314 = vmatpush1.bf16.msra.mxu0 %v15615_v12  ;;  %6549 = vmatpush1.bf16.msra.mxu1 %v15616_v61  ;;  %v14144_v12 = vcombine.high %v6639_v58, %v6640_v49  ;;  %v14147_v61 = vcombine.high %v6874_v51, %v6875_v63 }
 0x692   : > { %6315 = vmatprep.subr.bf16.mxu0 %v15617_v57  ;;  %6550 = vmatprep.subr.bf16.mxu1 %v15618_v13  ;;  %v6641_v57 = vld [vmem:[%s12158_s17 + $0xc0] sm:$0xff] }
 0x693   : > { %v6642_v13 = vld [vmem:[%s12158_s17 + $0xe0] sm:$0xff] }
 0x695   : > { %6316 = vmatpush1.bf16.msra.mxu0 %v15619_v40  ;;  %6551 = vmatpush1.bf16.msra.mxu1 %v15620_v55  ;;  %v6876_v40 = vld [vmem:[%s12158_s17 + $0xc8] sm:$0xff] }
 0x696   : > { %6317 = vmatprep.subr.bf16.mxu0 %v15621_v23  ;;  %6552 = vmatprep.subr.bf16.mxu1 %v15622_v28  ;;  %v6877_v55 = vld [vmem:[%s12158_s17 + $0xe8] sm:$0xff]  ;;  %v14154_v23 = vcombine.low %v6639_v58, %v6640_v49  ;;  %v14158_v28 = vcombine.low %v6874_v51, %v6875_v63  ;;  %v6653_v51 = vld [vmem:[%s12158_s17 + $0x240] sm:$0xff] }
 0x697   : > { %v6654_v63 = vld [vmem:[%s12158_s17 + $0x260] sm:$0xff] }
 0x699   : > { %6318 = vmatpush1.bf16.msra.mxu0 %v15623_v30  ;;  %6553 = vmatpush1.bf16.msra.mxu1 %v15624_v32  ;;  %v14160_v30 = vcombine.high %v6641_v57, %v6642_v13  ;;  %v14163_v32 = vcombine.high %v6876_v40, %v6877_v55 }
 0x69a   : > { %6319 = vmatprep.subr.bf16.mxu0 %v15625_v53  ;;  %6554 = vmatprep.subr.bf16.mxu1 %v15626_v29  ;;  %v6643_v53 = vld [vmem:[%s12158_s17 + $0x100] sm:$0xff] }
 0x69b   : > { %v6644_v29 = vld [vmem:[%s12158_s17 + $0x120] sm:$0xff] }
 0x69d   : > { %6320 = vmatpush1.bf16.msra.mxu0 %v15627_v18  ;;  %6555 = vmatpush1.bf16.msra.mxu1 %v15628_v41  ;;  %v6878_v18 = vld [vmem:[%s12158_s17 + $0x108] sm:$0xff] }
 0x69e   : > { %6321 = vmatprep.subr.bf16.mxu0 %v15629_v26  ;;  %6556 = vmatprep.subr.bf16.mxu1 %v15630_v59  ;;  %v6879_v41 = vld [vmem:[%s12158_s17 + $0x128] sm:$0xff]  ;;  %v14170_v26 = vcombine.low %v6641_v57, %v6642_v13  ;;  %v14174_v59 = vcombine.low %v6876_v40, %v6877_v55  ;;  %v14258_v13 = vcombine.high %v6653_v51, %v6654_v63 }
 0x69f   : > { %v6888_v57 = vld [vmem:[%s12158_s17 + $0x248] sm:$0xff]  ;;  %v14261_v55 = vcombine.low %v6653_v51, %v6654_v63 }
 0x6a0   : > { %v6889_v40 = vld [vmem:[%s12158_s17 + $0x268] sm:$0xff] }
 0x6a1   : > { %6322 = vmatpush1.bf16.msra.mxu0 %v15631_v31  ;;  %6557 = vmatpush1.bf16.msra.mxu1 %v15632_v62  ;;  %v14176_v31 = vcombine.high %v6643_v53, %v6644_v29  ;;  %v14179_v62 = vcombine.high %v6878_v18, %v6879_v41  ;;  %15657 = vst [vmem:[#allocation145_spill] sm:$0xff] %v14261_v55  ;;  %v6894_v51 = vld [vmem:[%s12158_s17 + $0x308] sm:$0xff] }
 0x6a2   : > { %6323 = vmatprep.subr.bf16.mxu0 %v15633_v39  ;;  %6558 = vmatprep.subr.bf16.mxu1 %v15634_v25  ;;  %v6645_v39 = vld [vmem:[%s12158_s17 + $0x140] sm:$0xff] }
 0x6a3   : > { %v6646_v25 = vld [vmem:[%s12158_s17 + $0x160] sm:$0xff] }
 0x6a5   : > { %6324 = vmatpush1.bf16.msra.mxu0 %v15635_v48  ;;  %6559 = vmatpush1.bf16.msra.mxu1 %v15636_v20  ;;  %v6880_v48 = vld [vmem:[%s12158_s17 + $0x148] sm:$0xff] }
 0x6a6   : > { %6325 = vmatprep.subr.bf16.mxu0 %v15637_v11  ;;  %6560 = vmatprep.subr.bf16.mxu1 %v15638_v42  ;;  %v6881_v20 = vld [vmem:[%s12158_s17 + $0x168] sm:$0xff]  ;;  %v14186_v11 = vcombine.low %v6643_v53, %v6644_v29  ;;  %v14190_v42 = vcombine.low %v6878_v18, %v6879_v41  ;;  %v14263_v53 = vcombine.low %v6888_v57, %v6889_v40  ;;  %v6655_v18 = vld [vmem:[%s12158_s17 + $0x280] sm:$0xff] }
 0x6a7   : > { %v14265_v29 = vcombine.high %v6888_v57, %v6889_v40  ;;  %v6656_v41 = vld [vmem:[%s12158_s17 + $0x2a0] sm:$0xff]  ;;  %v6895_v57 = vld [vmem:[%s12158_s17 + $0x328] sm:$0xff] }
 0x6a8   : > { %15658 = vst [vmem:[#allocation146_spill] sm:$0xff] %v14263_v53 }
 0x6a9   : > { %6326 = vmatpush1.bf16.msra.mxu0 %v15639_v45  ;;  %6561 = vmatpush1.bf16.msra.mxu1 %v15640_v16  ;;  %v14192_v45 = vcombine.high %v6645_v39, %v6646_v25  ;;  %v14195_v16 = vcombine.high %v6880_v48, %v6881_v20  ;;  %15659 = vst [vmem:[#allocation147_spill] sm:$0xff] %v14265_v29 }
 0x6aa   : > { %6327 = vmatprep.subr.bf16.mxu0 %v15641_v1  ;;  %6562 = vmatprep.subr.bf16.mxu1 %v15642_v5  ;;  %v6647_v1 = vld [vmem:[%s12158_s17 + $0x180] sm:$0xff] }
 0x6ab   : > { %v6648_v5 = vld [vmem:[%s12158_s17 + $0x1a0] sm:$0xff] }
 0x6ad   : > { %6328 = vmatpush1.bf16.msra.mxu0 %v15643_v2  ;;  %6563 = vmatpush1.bf16.msra.mxu1 %v15644_v46  ;;  %v6882_v2 = vld [vmem:[%s12158_s17 + $0x188] sm:$0xff] }
 0x6ae   : > { %6329 = vmatprep.subr.bf16.mxu0 %v15645_v56  ;;  %6564 = vmatprep.subr.bf16.mxu1 %v15646_v60  ;;  %v6883_v46 = vld [vmem:[%s12158_s17 + $0x1a8] sm:$0xff]  ;;  %v14202_v56 = vcombine.low %v6645_v39, %v6646_v25  ;;  %v14206_v60 = vcombine.low %v6880_v48, %v6881_v20  ;;  %v14274_v25 = vcombine.high %v6655_v18, %v6656_v41 }
 0x6af   : > { %v6890_v39 = vld [vmem:[%s12158_s17 + $0x288] sm:$0xff]  ;;  %v14277_v20 = vcombine.low %v6655_v18, %v6656_v41  ;;  %v14311_v18 = vcombine.low %v6894_v51, %v6895_v57  ;;  %v14313_v41 = vcombine.high %v6894_v51, %v6895_v57  ;;  %v6663_v51 = vld [vmem:[%s12158_s17 + $0x380] sm:$0xff] }
 0x6b0   : > { %15660 = vst [vmem:[#allocation148_spill] sm:$0xff] %v14274_v25  ;;  %v6891_v48 = vld [vmem:[%s12158_s17 + $0x2a8] sm:$0xff]  ;;  %v6664_v57 = vld [vmem:[%s12158_s17 + $0x3a0] sm:$0xff] }
 0x6b1   : > { %6330 = vmatpush1.bf16.msra.mxu0 %v15647_v35  ;;  %6565 = vmatpush1.bf16.msra.mxu1 %v15648_v14  ;;  %v14208_v35 = vcombine.high %v6647_v1, %v6648_v5  ;;  %v14211_v14 = vcombine.high %v6882_v2, %v6883_v46  ;;  %15661 = vst [vmem:[#allocation149_spill] sm:$0xff] %v14277_v20  ;;  %15670 = vst [vmem:[#allocation66_spill] sm:$0xff] %v14311_v18 }
 0x6b2   : > { %6331 = vmatprep.subr.bf16.mxu0 %v15649_v8  ;;  %6566 = vmatprep.subr.bf16.mxu1 %v15650_v52  ;;  %v6649_v8 = vld [vmem:[%s12158_s17 + $0x1c0] sm:$0xff]  ;;  %15671 = vst [vmem:[#allocation65_spill] sm:$0xff] %v14313_v41 }
 0x6b3   : > { %v6650_v52 = vld [vmem:[%s12158_s17 + $0x1e0] sm:$0xff] }
 0x6b5   : > { %6332 = vmatpush1.bf16.msra.mxu0 %v15651_v47  ;;  %6567 = vmatpush1.bf16.msra.mxu1 %v15652_v22  ;;  %v6884_v47 = vld [vmem:[%s12158_s17 + $0x1c8] sm:$0xff] }
 0x6b6   : > { %6333 = vmatprep.subr.bf16.mxu0 %v15653_v50  ;;  %6568 = vmatprep.subr.bf16.mxu1 %v15654_v36  ;;  %v6885_v22 = vld [vmem:[%s12158_s17 + $0x1e8] sm:$0xff]  ;;  %v14218_v50 = vcombine.low %v6647_v1, %v6648_v5  ;;  %v14222_v36 = vcombine.low %v6882_v2, %v6883_v46  ;;  %v14279_v1 = vcombine.low %v6890_v39, %v6891_v48  ;;  %v6657_v2 = vld [vmem:[%s12158_s17 + $0x2c0] sm:$0xff] }
 0x6b7   : > { %v14281_v5 = vcombine.high %v6890_v39, %v6891_v48  ;;  %v6658_v46 = vld [vmem:[%s12158_s17 + $0x2e0] sm:$0xff] }
 0x6b8   : > { %15662 = vst [vmem:[#allocation150_spill] sm:$0xff] %v14279_v1  ;;  %v6661_v39 = vld [vmem:[%s12158_s17 + $0x340] sm:$0xff] }
 0x6b9   : > { %6334 = vmatpush1.bf16.msra.mxu0 %v13906_v27  ;;  %6569 = vmatpush1.bf16.msra.mxu1 %v13908_v10  ;;  %v6635_v27 = vld [vmem:[%s12158_s17] sm:$0xff]  ;;  %15663 = vst [vmem:[#allocation151_spill] sm:$0xff] %v14281_v5 }
 0x6ba   : > { %6335 = vmatprep.subr.bf16.mxu0 %v13912_v38  ;;  %6570 = vmatprep.subr.bf16.mxu1 %v15655_v0  ;;  %v6636_v10 = vld [vmem:[%s12158_s17 + $0x20] sm:$0xff]  ;;  %v6870_v38 = vld [vmem:[%s12158_s17 + $0x8] sm:$0xff]  ;;  %v14224_v0 = vcombine.high %v6649_v8, %v6650_v52 }
 0x6bb   : > { %v6662_v48 = vld [vmem:[%s12158_s17 + $0x360] sm:$0xff] }
 0x6bd   : > { %6336 = vmatpush1.bf16.msra.mxu0 %v15656_v6  ;;  %6571 = vmatpush1.bf16.msra.mxu1 %v13924_v17  ;;  %v14114_v17 = vcombine.low %v6635_v27, %v6636_v10  ;;  %v14227_v6 = vcombine.high %v6884_v47, %v6885_v22 }
 0x6be   : > { %6337 = vmatprep.subr.bf16.mxu0 %v13928_v44  ;;  %6572 = vmatprep.subr.bf16.mxu1 %v13930_v19  ;;  %v14116_v44 = vcombine.high %v6635_v27, %v6636_v10  ;;  %v6871_v19 = vld [vmem:[%s12158_s17 + $0x28] sm:$0xff]  ;;  %v14230_v27 = vcombine.low %v6649_v8, %v6650_v52  ;;  %v14234_v10 = vcombine.low %v6884_v47, %v6885_v22 }
 0x6bf   : > { %v6892_v8 = vld [vmem:[%s12158_s17 + $0x2c8] sm:$0xff]  ;;  %v14290_v52 = vcombine.high %v6657_v2, %v6658_v46  ;;  %v14293_v22 = vcombine.low %v6657_v2, %v6658_v46  ;;  %v14322_v46 = vcombine.high %v6661_v39, %v6662_v48 }
 0x6c0   : > { %v6893_v47 = vld [vmem:[%s12158_s17 + $0x2e8] sm:$0xff] }
 0x6c1   : > { %6338 = vmatpush1.bf16.msra.mxu0 %v13938_v33  ;;  %6573 = vmatpush1.bf16.msra.mxu1 %v13940_v43  ;;  %v6638_v33 = vld [vmem:[%s12158_s17 + $0x60] sm:$0xff]  ;;  %v14121_v43 = vcombine.low %v6870_v38, %v6871_v19  ;;  %15664 = vst [vmem:[#allocation152_spill] sm:$0xff] %v14290_v52  ;;  %15665 = vst [vmem:[#allocation26_spill] sm:$0xff] %v14293_v22  ;;  %v6896_v2 = vld [vmem:[%s12158_s17 + $0x348] sm:$0xff] }
 0x6c2   : > { %6339 = vmatprep.subr.bf16.mxu0 %v13944_v54  ;;  %6574 = vmatprep.subr.bf16.mxu1 %v13946_v24  ;;  %v6872_v24 = vld [vmem:[%s12158_s17 + $0x48] sm:$0xff]  ;;  %15672 = vst [vmem:[#allocation69_spill] sm:$0xff] %v14322_v46 }
 0x6c5   : > { %6340 = vmatpush1.bf16.msra.mxu0 %v13950_v3  ;;  %6575 = vmatpush1.bf16.msra.mxu1 %v13952_v4  ;;  %v6637_v3 = vld [vmem:[%s12158_s17 + $0x40] sm:$0xff]  ;;  %v14123_v4 = vcombine.high %v6870_v38, %v6871_v19 }
 0x6c6   : > { %v14125_v54 = vcombine.high %v6637_v3, %v6638_v33  ;;  %6827 = vmatprep.subr.bf16.mxu0 %v14116_v44  ;;  %v14138_v15 = vcombine.low %v6637_v3, %v6638_v33  ;;  %v6651_v38 = vld [vmem:[%s12158_s17 + $0x200] sm:$0xff]  ;;  %v6886_v3 = vld [vmem:[%s12158_s17 + $0x208] sm:$0xff] }
 0x6c7   : > { %7062 = vmatprep.subr.bf16.mxu1 %v14123_v4  ;;  %v6652_v19 = vld [vmem:[%s12158_s17 + $0x220] sm:$0xff] }
 0x6c8   : > { %6342 = vmatmul.mubr.bf16.vlgmr.msra.gmra.mrb[68].mxu0 %v14042_v34  ;;  %6577 = vmatmul.mubr.bf16.vlgmr.msra.gmra.mrb[68].mxu1 %v14042_v34  ;;  %v6873_v34 = vld [vmem:[%s12158_s17 + $0x68] sm:$0xff]  ;;  %v14242_v33 = vcombine.high %v6651_v38, %v6652_v19 }
 0x6c9   : > { %v14131_v21 = vcombine.high %v6872_v24, %v6873_v34  ;;  %6828 = vmatpush1.bf16.msra.mxu0 %v14114_v17  ;;  %7063 = vmatpush1.bf16.msra.mxu1 %v14121_v43  ;;  %v14142_v9 = vcombine.low %v6872_v24, %v6873_v34  ;;  %v6887_v24 = vld [vmem:[%s12158_s17 + $0x228] sm:$0xff]  ;;  %v14245_v34 = vcombine.low %v6651_v38, %v6652_v19 }
 0x6ca   : > { %6829 = vmatprep.subr.bf16.mxu0 %v14125_v54  ;;  %v14247_v58 = vcombine.low %v6886_v3, %v6887_v24  ;;  %v14249_v49 = vcombine.high %v6886_v3, %v6887_v24  ;;  %v14295_v38 = vcombine.low %v6892_v8, %v6893_v47  ;;  %v14297_v19 = vcombine.high %v6892_v8, %v6893_v47  ;;  %v6659_v3 = vld [vmem:[%s12158_s17 + $0x300] sm:$0xff]  ;;  %v6897_v8 = vld [vmem:[%s12158_s17 + $0x368] sm:$0xff] }
 0x6cb   : > { %7064 = vmatprep.subr.bf16.mxu1 %v14131_v21  ;;  %v6660_v24 = vld [vmem:[%s12158_s17 + $0x320] sm:$0xff]  ;;  %v14325_v47 = vcombine.low %v6661_v39, %v6662_v48  ;;  %v14338_v39 = vcombine.high %v6663_v51, %v6664_v57  ;;  %v6899_v48 = vld [vmem:[%s12158_s17 + $0x3a8] sm:$0xff] }
 0x6cc   : > { %15666 = vst [vmem:[#allocation28_spill] sm:$0xff] %v14295_v38  ;;  %15667 = vst [vmem:[#allocation27_spill] sm:$0xff] %v14297_v19  ;;  %v14306_v63 = vcombine.high %v6659_v3, %v6660_v24  ;;  %v14309_v40 = vcombine.low %v6659_v3, %v6660_v24  ;;  %v14327_v3 = vcombine.low %v6896_v2, %v6897_v8 }
 0x6cd   : > { %6830 = vmatpush1.bf16.msra.mxu0 %v14138_v15  ;;  %7065 = vmatpush1.bf16.msra.mxu1 %v14142_v9  ;;  %15673 = vst [vmem:[#allocation52_spill] sm:$0xff] %v14325_v47  ;;  %v14329_v24 = vcombine.high %v6896_v2, %v6897_v8  ;;  %15676 = vst [vmem:[#allocation58_spill] sm:$0xff] %v14338_v39  ;;  %v14341_v2 = vcombine.low %v6663_v51, %v6664_v57  ;;  %v6901_v57 = vld [vmem:[%s12158_s17 + $0x3e8] sm:$0xff] }
 0x6ce   : > { %6831 = vmatprep.subr.bf16.mxu0 %v14144_v12  ;;  %7066 = vmatprep.subr.bf16.mxu1 %v14147_v61  ;;  %15668 = vst [vmem:[#allocation30_spill] sm:$0xff] %v14306_v63  ;;  %15669 = vst [vmem:[#allocation64_spill] sm:$0xff] %v14309_v40 }
 0x6cf   : > { %15674 = vst [vmem:[#allocation50_spill] sm:$0xff] %v14327_v3  ;;  %15675 = vst [vmem:[#allocation51_spill] sm:$0xff] %v14329_v24 }
 0x6d0   : > { %15677 = vst [vmem:[#allocation60_spill] sm:$0xff] %v14341_v2 }
 0x6d1   : > { %6832 = vmatpush1.bf16.msra.mxu0 %v14154_v23  ;;  %7067 = vmatpush1.bf16.msra.mxu1 %v14158_v28 }
 0x6d2   : > { %6833 = vmatprep.subr.bf16.mxu0 %v14160_v30  ;;  %7068 = vmatprep.subr.bf16.mxu1 %v14163_v32 }
 0x6d5   : > { %6834 = vmatpush1.bf16.msra.mxu0 %v14170_v26  ;;  %7069 = vmatpush1.bf16.msra.mxu1 %v14174_v59 }
 0x6d6   : > { %6835 = vmatprep.subr.bf16.mxu0 %v14176_v31  ;;  %7070 = vmatprep.subr.bf16.mxu1 %v14179_v62 }
 0x6d9   : > { %6836 = vmatpush1.bf16.msra.mxu0 %v14186_v11  ;;  %7071 = vmatpush1.bf16.msra.mxu1 %v14190_v42 }
 0x6da   : > { %6837 = vmatprep.subr.bf16.mxu0 %v14192_v45  ;;  %7072 = vmatprep.subr.bf16.mxu1 %v14195_v16 }
 0x6dd   : > { %6838 = vmatpush1.bf16.msra.mxu0 %v14202_v56  ;;  %7073 = vmatpush1.bf16.msra.mxu1 %v14206_v60 }
 0x6de   : > { %6839 = vmatprep.subr.bf16.mxu0 %v14208_v35  ;;  %7074 = vmatprep.subr.bf16.mxu1 %v14211_v14 }
 0x6e1   : > { %6840 = vmatpush1.bf16.msra.mxu0 %v14218_v50  ;;  %7075 = vmatpush1.bf16.msra.mxu1 %v14222_v36 }
 0x6e2   : > { %6841 = vmatprep.subr.bf16.mxu0 %v14224_v0  ;;  %7076 = vmatprep.subr.bf16.mxu1 %v14227_v6 }
 0x6e5   : > { %6842 = vmatpush1.bf16.msra.mxu0 %v14230_v27  ;;  %7077 = vmatpush1.bf16.msra.mxu1 %v14234_v10 }
 0x6e6   : > { %6843 = vmatprep.subr.bf16.mxu0 %v14242_v33  ;;  %7078 = vmatprep.subr.bf16.mxu1 %v14249_v49 }
 0x6e9   : > { %6844 = vmatpush1.bf16.msra.mxu0 %v14245_v34  ;;  %7079 = vmatpush1.bf16.msra.mxu1 %v14247_v58 }
 0x6ea   : > { %6845 = vmatprep.subr.bf16.mxu0 %v14258_v13  ;;  %7080 = vmatprep.subr.bf16.mxu1 %v14265_v29 }
 0x6ed   : > { %6846 = vmatpush1.bf16.msra.mxu0 %v14261_v55  ;;  %7081 = vmatpush1.bf16.msra.mxu1 %v14263_v53  ;;  %v15691_v53 = vld [vmem:[#allocation82_spill] sm:$0xff] }
 0x6ee   : > { %6847 = vmatprep.subr.bf16.mxu0 %v14274_v25  ;;  %7082 = vmatprep.subr.bf16.mxu1 %v14281_v5 }
 0x6f1   : > { %6848 = vmatpush1.bf16.msra.mxu0 %v14277_v20  ;;  %7083 = vmatpush1.bf16.msra.mxu1 %v14279_v1 }
 0x6f2   : > { %6849 = vmatprep.subr.bf16.mxu0 %v14290_v52  ;;  %7084 = vmatprep.subr.bf16.mxu1 %v14297_v19  ;;  %v15688_v19 = vld [vmem:[#allocation35_spill] sm:$0xff] }
 0x6f5   : > { %6850 = vmatpush1.bf16.msra.mxu0 %v14293_v22  ;;  %7085 = vmatpush1.bf16.msra.mxu1 %v14295_v38 }
 0x6f6   : > { %6851 = vmatprep.subr.bf16.mxu0 %v14306_v63  ;;  %7086 = vmatprep.subr.bf16.mxu1 %v14313_v41  ;;  %v7341_v41 = vld [vmem:[%s12158_s17 + $0x38] sm:$0xff]  ;;  %v15687_v63 = vld [vmem:[#allocation36_spill] sm:$0xff] }
 0x6f9   : > { %6852 = vmatpush1.bf16.msra.mxu0 %v14309_v40  ;;  %7087 = vmatpush1.bf16.msra.mxu1 %v14311_v18  ;;  %v6898_v18 = vld [vmem:[%s12158_s17 + $0x388] sm:$0xff]  ;;  %v7340_v40 = vld [vmem:[%s12158_s17 + $0x18] sm:$0xff] }
 0x6fa   : > { %6853 = vmatprep.subr.bf16.mxu0 %v14322_v46  ;;  %7088 = vmatprep.subr.bf16.mxu1 %v14329_v24  ;;  %v14343_v8 = vcombine.low %v6898_v18, %v6899_v48  ;;  %v14345_v46 = vcombine.high %v6898_v18, %v6899_v48  ;;  %v6900_v24 = vld [vmem:[%s12158_s17 + $0x3c8] sm:$0xff] }
 0x6fb   : > { %v14359_v48 = vcombine.low %v6900_v24, %v6901_v57 }
 0x6fc   : > { %15678 = vst [vmem:[#allocation54_spill] sm:$0xff] %v14343_v8  ;;  %15679 = vst [vmem:[#allocation55_spill] sm:$0xff] %v14345_v46 }
 0x6fd   : > { %6854 = vmatpush1.bf16.msra.mxu0 %v14325_v47  ;;  %7089 = vmatpush1.bf16.msra.mxu1 %v14327_v3  ;;  %v6665_v47 = vld [vmem:[%s12158_s17 + $0x3c0] sm:$0xff]  ;;  %15682 = vst [vmem:[#allocation61_spill] sm:$0xff] %v14359_v48 }
 0x6fe   : > { %6855 = vmatprep.subr.bf16.mxu0 %v14338_v39  ;;  %7090 = vmatprep.subr.bf16.mxu1 %v14345_v46  ;;  %v6666_v3 = vld [vmem:[%s12158_s17 + $0x3e0] sm:$0xff]  ;;  %v14361_v39 = vcombine.high %v6900_v24, %v6901_v57  ;;  %v7106_v46 = vld [vmem:[%s12158_s17 + $0x30] sm:$0xff]  ;;  %v14377_v24 = vcombine.high %v7340_v40, %v7341_v41 }
 0x6ff   : > { %v14354_v51 = vcombine.high %v6665_v47, %v6666_v3  ;;  %v14357_v18 = vcombine.low %v6665_v47, %v6666_v3  ;;  %v14375_v3 = vcombine.low %v7340_v40, %v7341_v41 }
 0x700   : > { %15683 = vst [vmem:[#allocation62_spill] sm:$0xff] %v14361_v39  ;;  %15685 = vst [vmem:[#allocation76_spill] sm:$0xff] %v14377_v24 }
 0x701   : > { %6856 = vmatpush1.bf16.msra.mxu0 %v14341_v2  ;;  %7091 = vmatpush1.bf16.msra.mxu1 %v14343_v8  ;;  %15680 = vst [vmem:[#allocation63_spill] sm:$0xff] %v14354_v51  ;;  %15681 = vst [vmem:[#allocation67_spill] sm:$0xff] %v14357_v18  ;;  %v7105_v2 = vld [vmem:[%s12158_s17 + $0x10] sm:$0xff] }
 0x702   : > { %6857 = vmatprep.subr.bf16.mxu0 %v14354_v51  ;;  %7092 = vmatprep.subr.bf16.mxu1 %v14361_v39  ;;  %v14370_v8 = vcombine.high %v7105_v2, %v7106_v46  ;;  %v14373_v47 = vcombine.low %v7105_v2, %v7106_v46  ;;  %v15686_v39 = vld [vmem:[#allocation34_spill] sm:$0xff] }
 0x703   : > { %v15689_v46 = vld [vmem:[#allocation38_spill] sm:$0xff] }
 0x704   : > { %15684 = vst [vmem:[#allocation74_spill] sm:$0xff] %v14370_v8 }
 0x705   : > { %6858 = vmatpush1.bf16.msra.mxu0 %v14357_v18  ;;  %7093 = vmatpush1.bf16.msra.mxu1 %v14359_v48 }
 0x706   : > { %7297 = vmatprep.subr.bf16.mxu0 %v14370_v8  ;;  %7532 = vmatprep.subr.bf16.mxu1 %v14377_v24 }
 0x75b   : > { %v5873_v57 = vpop.f32.mrb[64].mxu0  ;;  %v6108_v18 = vpop.f32.mrb[64].mxu1 }
 0x75c   : > { %v5880_v51 = vadd.f32 %v5873_v57, %v15686_v39  ;;  %v6115_v38 = vadd.f32 %v6108_v18, %v15687_v63  ;;  %v5875_v48 = vpop.f32.mrb[65].mxu0  ;;  %v6110_v22 = vpop.f32.mrb[65].mxu1  ;;  %v15690_v18 = vld [vmem:[#allocation80_spill] sm:$0xff] }
 0x75d   : > { %v5881_v52 = vadd.f32 %v5875_v48, %v15688_v19  ;;  %v6116_v2 = vadd.f32 %v6110_v22, %v15689_v46  ;;  %v5877_v1 = vpop.f32.mrb[66].mxu0  ;;  %v6112_v20 = vpop.f32.mrb[66].mxu1  ;;  %v15693_v46 = vld [vmem:[#allocation85_spill] sm:$0xff] }
 0x75e   : > { %v5878_v40 = vpop.f32.mrb[67].mxu0  ;;  %v6113_v41 = vpop.f32.mrb[67].mxu1  ;;  %v6595_v5 = vmul.f32 0.5, %v6115_v38  ;;  %v6587_v25 = vmul.f32 0.5, %v5880_v51  ;;  %v15692_v1 = vld [vmem:[#allocation81_spill] sm:$0xff] }
 0x75f   : > { %v6596_v8 = vmul.f32 0.5, %v6116_v2  ;;  %v6588_v24 = vmul.f32 0.5, %v5881_v52 }
 0x760   : > { %11479 = vtanh.f32 %v6595_v5 }
 0x761   : > { %11481 = vtanh.f32 %v6596_v8 }
 0x762   : > { %11483 = vtanh.f32 %v6587_v25 }
 0x763   : > { %11485 = vtanh.f32 %v6588_v24 }
 0x76a   : > { %v11480_v51 = vpop.eup %11479 }
 0x76b   : > { %v11482_v25 = vpop.eup %11481  ;;  %v6599_v41 = vmul.f32 0.5, %v11480_v51 }
 0x76c   : > { %v11484_v8 = vpop.eup %11483 }
 0x76d   : > { %v11486_v24 = vpop.eup %11485  ;;  %v6601_v29 = vadd.f32 0.5, %v6599_v41 }
 0x76e   : > { %v6592_v55 = vmul.f32 0.5, %v11486_v24 }
 0x79b   : > { %v6343_v39 = vpop.f32.mrb[68].mxu0  ;;  %v6578_v63 = vpop.f32.mrb[68].mxu1 }
 0x79c   : > { %v6350_v57 = vadd.f32 %v6343_v39, %v15690_v18  ;;  %v6585_v19 = vadd.f32 %v6578_v63, %v15691_v53  ;;  %v6345_v48 = vpop.f32.mrb[69].mxu0  ;;  %v6580_v22 = vpop.f32.mrb[69].mxu1  ;;  %v6600_v18 = vmul.f32 0.5, %v11482_v25  ;;  %v6591_v63 = vmul.f32 0.5, %v11484_v8 }
 0x79d   : > { %v6351_v20 = vadd.f32 %v6345_v48, %v15692_v1  ;;  %v6586_v40 = vadd.f32 %v6580_v22, %v15693_v46  ;;  %v6347_v38 = vpop.f32.mrb[70].mxu0  ;;  %v6582_v2 = vpop.f32.mrb[70].mxu1  ;;  %v6594_v46 = vadd.f32 0.5, %v6592_v55 }
 0x79e   : > { %11487 = vtanh.f32 %v6350_v57  ;;  %v6348_v5 = vpop.f32.mrb[71].mxu0  ;;  %v6583_v52 = vpop.f32.mrb[71].mxu1  ;;  %v6605_v39 = vmul.f32 0.5, %v6585_v19  ;;  %v6602_v48 = vadd.f32 0.5, %v6600_v18  ;;  %v6593_v22 = vadd.f32 0.5, %v6591_v63  ;;  %v7342_v63 = vld [vmem:[%s12158_s17 + $0x58] sm:$0xff] }
 0x79f   : > { %11489 = vtanh.f32 %v6351_v20  ;;  %v6606_v53 = vmul.f32 0.5, %v6586_v40  ;;  %v6613_v38 = vmul.f32 %v6601_v29, %v14036_v7 }
 0x7a0   : > { %11491 = vtanh.f32 %v6605_v39  ;;  %v6614_v20 = vmul.f32 %v6602_v48, %v14038_v37  ;;  %v7107_v39 = vld [vmem:[%s12158_s17 + $0x50] sm:$0xff]  ;;  %v7343_v48 = vld [vmem:[%s12158_s17 + $0x78] sm:$0xff] }
 0x7a1   : > { %11493 = vtanh.f32 %v6606_v53  ;;  %v7108_v53 = vld [vmem:[%s12158_s17 + $0x70] sm:$0xff] }
 0x7a8   : > { %v11488_v1 = vpop.eup %11487 }
 0x7a9   : > { %v11490_v57 = vpop.eup %11489  ;;  %v6615_v2 = vmul.f32 %v11488_v1, %v6593_v22  ;;  %v7109_v1 = vld [vmem:[%s12158_s17 + $0x90] sm:$0xff] }
 0x7aa   : > { %v6616_v51 = vmul.f32 %v11490_v57, %v6594_v46  ;;  %v11492_v55 = vpop.eup %11491  ;;  %v14405_v46 = vcombine.high %v7107_v39, %v7108_v53  ;;  %v14407_v57 = vcombine.high %v7342_v63, %v7343_v48 }
 0x7ab   : > { %v14391_v19 = vadd.f32 %v6615_v2, %v6613_v38  ;;  %v11494_v5 = vpop.eup %11493  ;;  %v6609_v7 = vmul.f32 0.5, %v11492_v55  ;;  %v7110_v38 = vld [vmem:[%s12158_s17 + $0xb0] sm:$0xff]  ;;  %v7344_v2 = vld [vmem:[%s12158_s17 + $0x98] sm:$0xff]  ;;  %v14418_v55 = vcombine.low %v7342_v63, %v7343_v48 }
 0x7ac   : > { %v14393_v40 = vadd.f32 %v6616_v51, %v6614_v20  ;;  %v6610_v29 = vmul.f32 0.5, %v11494_v5  ;;  %v7345_v20 = vld [vmem:[%s12158_s17 + $0xb8] sm:$0xff]  ;;  %v14416_v51 = vcombine.low %v7107_v39, %v7108_v53  ;;  %v14420_v5 = vcombine.high %v7109_v1, %v7110_v38  ;;  %v7113_v53 = vld [vmem:[%s12158_s17 + $0x110] sm:$0xff] }
 0x7ad   : > { %11495 = vtanh.f32 %v14391_v19  ;;  %v6611_v52 = vadd.f32 0.5, %v6609_v7  ;;  %15695 = vst [vmem:[#allocation71_spill] sm:$0xff] %v14418_v55  ;;  %v14422_v7 = vcombine.high %v7344_v2, %v7345_v20  ;;  %v7114_v63 = vld [vmem:[%s12158_s17 + $0x130] sm:$0xff]  ;;  %v7348_v48 = vld [vmem:[%s12158_s17 + $0x118] sm:$0xff] }
 0x7ae   : > { %11497 = vtanh.f32 %v14393_v40  ;;  %v6612_v25 = vadd.f32 0.5, %v6610_v29  ;;  %15694 = vst [vmem:[#allocation70_spill] sm:$0xff] %v14416_v51  ;;  %15696 = vst [vmem:[#allocation79_spill] sm:$0xff] %v14420_v5  ;;  %v7111_v29 = vld [vmem:[%s12158_s17 + $0xd0] sm:$0xff] }
 0x7af   : > { %15697 = vst [vmem:[#allocation83_spill] sm:$0xff] %v14422_v7 }
 0x7b7   : > { %v11496_v37 = vpop.eup %11495 }
 0x7b8   : > { %v11498_v8 = vpop.eup %11497  ;;  %v6621_v24 = vmul.f32 %v11496_v37, %v6611_v52  ;;  %v7112_v52 = vld [vmem:[%s12158_s17 + $0xf0] sm:$0xff]  ;;  %v7346_v37 = vld [vmem:[%s12158_s17 + $0xd8] sm:$0xff] }
 0x7b9   : > { %v6622_v41 = vmul.f32 %v11498_v8, %v6612_v25  ;;  %v7347_v25 = vld [vmem:[%s12158_s17 + $0xf8] sm:$0xff]  ;;  %v14432_v8 = vcombine.low %v7109_v1, %v7110_v38  ;;  %v14448_v1 = vcombine.low %v7111_v29, %v7112_v52 }
 0x7ba   : > { %v14398_v18 = vpack.c.bf16 %v6621_v24, %v6621_v24  ;;  %v14434_v24 = vcombine.low %v7344_v2, %v7345_v20  ;;  %v14440_v39 = vcombine.high %v7346_v37, %v7347_v25  ;;  %v14450_v38 = vcombine.low %v7346_v37, %v7347_v25 }
 0x7bb   : > { %v6624_v22 = vpack.c.bf16 %v6622_v41, %v6622_v41  ;;  %15698 = vst [vmem:[#allocation77_spill] sm:$0xff] %v14432_v8  ;;  %v14438_v41 = vcombine.high %v7111_v29, %v7112_v52  ;;  %15702 = vst [vmem:[#allocation86_spill] sm:$0xff] %v14448_v1  ;;  %v14454_v2 = vcombine.high %v7113_v53, %v7114_v63 }
 0x7bc   : > { %6625 = vst [vmem:[#allocation2 + $0x20] sm:$0xf] %v14398_v18  ;;  %15699 = vst [vmem:[#allocation78_spill] sm:$0xff] %v14434_v24  ;;  %v14464_v29 = vcombine.low %v7113_v53, %v7114_v63 }
 0x7bd   : > { %6626 = vst [vmem:[#allocation2 + $0x28] sm:$0xf] %v6624_v22  ;;  %6859 = vmatprep.mubr.bf16.mxu0 %v6624_v22  ;;  %7094 = vmatprep.mubr.bf16.mxu1 %v6624_v22  ;;  %15700 = vst [vmem:[#allocation90_spill] sm:$0xff] %v14438_v41 }
 0x7be   : > { %6860 = vmatmul.mubr.bf16.vlgmr.msra.gmra.mrb[72].mxu0 %v14398_v18  ;;  %7095 = vmatmul.mubr.bf16.vlgmr.msra.gmra.mrb[72].mxu1 %v14398_v18  ;;  %15701 = vst [vmem:[#allocation92_spill] sm:$0xff] %v14440_v39  ;;  %15703 = vst [vmem:[#allocation87_spill] sm:$0xff] %v14450_v38 }
 0x7bf   : > { %7298 = vmatpush1.bf16.msra.mxu0 %v14373_v47  ;;  %7533 = vmatpush1.bf16.msra.mxu1 %v14375_v3  ;;  %15704 = vst [vmem:[#allocation95_spill] sm:$0xff] %v14454_v2  ;;  %15706 = vst [vmem:[#allocation93_spill] sm:$0xff] %v14464_v29 }
 0x7c0   : > { %7329 = vmatprep.mubr.bf16.mxu0 %v6624_v22  ;;  %7564 = vmatprep.mubr.bf16.mxu1 %v6624_v22  ;;  %v7349_v22 = vld [vmem:[%s12158_s17 + $0x138] sm:$0xff] }
 0x7c1   : > { %7299 = vmatprep.subr.bf16.mxu0 %v14405_v46  ;;  %7534 = vmatprep.subr.bf16.mxu1 %v14407_v57  ;;  %v14456_v20 = vcombine.high %v7348_v48, %v7349_v22  ;;  %v14466_v52 = vcombine.low %v7348_v48, %v7349_v22 }
 0x7c3   : > { %7300 = vmatpush1.bf16.msra.mxu0 %v14416_v51  ;;  %7535 = vmatpush1.bf16.msra.mxu1 %v14418_v55  ;;  %15705 = vst [vmem:[#allocation99_spill] sm:$0xff] %v14456_v20  ;;  %15707 = vst [vmem:[#allocation94_spill] sm:$0xff] %v14466_v52  ;;  %v7370_v55 = vld [vmem:[%s12158_s17 + $0x3d8] sm:$0xff] }
 0x7c4   : > { %7301 = vmatprep.subr.bf16.mxu0 %v14420_v5  ;;  %7536 = vmatprep.subr.bf16.mxu1 %v14422_v7  ;;  %v7115_v7 = vld [vmem:[%s12158_s17 + $0x150] sm:$0xff]  ;;  %v7350_v5 = vld [vmem:[%s12158_s17 + $0x158] sm:$0xff] }
 0x7c5   : > { %v7371_v51 = vld [vmem:[%s12158_s17 + $0x3f8] sm:$0xff] }
 0x7c7   : > { %7302 = vmatpush1.bf16.msra.mxu0 %v14432_v8  ;;  %7537 = vmatpush1.bf16.msra.mxu1 %v14434_v24  ;;  %v7116_v8 = vld [vmem:[%s12158_s17 + $0x170] sm:$0xff]  ;;  %v7351_v24 = vld [vmem:[%s12158_s17 + $0x178] sm:$0xff] }
 0x7c8   : > { %7303 = vmatprep.subr.bf16.mxu0 %v14438_v41  ;;  %7538 = vmatprep.subr.bf16.mxu1 %v14440_v39  ;;  %v14470_v37 = vcombine.high %v7115_v7, %v7116_v8  ;;  %v14472_v25 = vcombine.high %v7350_v5, %v7351_v24  ;;  %v7117_v39 = vld [vmem:[%s12158_s17 + $0x190] sm:$0xff]  ;;  %v7352_v41 = vld [vmem:[%s12158_s17 + $0x198] sm:$0xff]  ;;  %v14480_v53 = vcombine.low %v7115_v7, %v7116_v8 }
 0x7c9   : > { %v14482_v63 = vcombine.low %v7350_v5, %v7351_v24 }
 0x7ca   : > { %15708 = vst [vmem:[#allocation106_spill] sm:$0xff] %v14470_v37  ;;  %15709 = vst [vmem:[#allocation102_spill] sm:$0xff] %v14472_v25 }
 0x7cb   : > { %7304 = vmatpush1.bf16.msra.mxu0 %v14448_v1  ;;  %7539 = vmatpush1.bf16.msra.mxu1 %v14450_v38  ;;  %v7118_v1 = vld [vmem:[%s12158_s17 + $0x1b0] sm:$0xff]  ;;  %v7353_v38 = vld [vmem:[%s12158_s17 + $0x1b8] sm:$0xff]  ;;  %15710 = vst [vmem:[#allocation29_spill] sm:$0xff] %v14480_v53  ;;  %15711 = vst [vmem:[#allocation32_spill] sm:$0xff] %v14482_v63 }
 0x7cc   : > { %7305 = vmatprep.subr.bf16.mxu0 %v14454_v2  ;;  %7540 = vmatprep.subr.bf16.mxu1 %v14456_v20  ;;  %v14486_v48 = vcombine.high %v7117_v39, %v7118_v1  ;;  %v14488_v22 = vcombine.high %v7352_v41, %v7353_v38  ;;  %v7119_v20 = vld [vmem:[%s12158_s17 + $0x1d0] sm:$0xff]  ;;  %v7354_v2 = vld [vmem:[%s12158_s17 + $0x1d8] sm:$0xff]  ;;  %v14496_v5 = vcombine.low %v7117_v39, %v7118_v1 }
 0x7cd   : > { %v14498_v7 = vcombine.low %v7352_v41, %v7353_v38 }
 0x7ce   : > { %15712 = vst [vmem:[#allocation31_spill] sm:$0xff] %v14486_v48  ;;  %15713 = vst [vmem:[#allocation33_spill] sm:$0xff] %v14488_v22 }
 0x7cf   : > { %7306 = vmatpush1.bf16.msra.mxu0 %v14464_v29  ;;  %7541 = vmatpush1.bf16.msra.mxu1 %v14466_v52  ;;  %v7120_v29 = vld [vmem:[%s12158_s17 + $0x1f0] sm:$0xff]  ;;  %v7355_v52 = vld [vmem:[%s12158_s17 + $0x1f8] sm:$0xff]  ;;  %15714 = vst [vmem:[#allocation68_spill] sm:$0xff] %v14496_v5  ;;  %15715 = vst [vmem:[#allocation73_spill] sm:$0xff] %v14498_v7 }
 0x7d0   : > { %7307 = vmatprep.subr.bf16.mxu0 %v14470_v37  ;;  %7542 = vmatprep.subr.bf16.mxu1 %v14472_v25  ;;  %v14502_v8 = vcombine.high %v7119_v20, %v7120_v29  ;;  %v14504_v24 = vcombine.high %v7354_v2, %v7355_v52  ;;  %v7121_v25 = vld [vmem:[%s12158_s17 + $0x210] sm:$0xff]  ;;  %v7356_v37 = vld [vmem:[%s12158_s17 + $0x218] sm:$0xff]  ;;  %v14512_v41 = vcombine.low %v7119_v20, %v7120_v29 }
 0x7d1   : > { %v14514_v39 = vcombine.low %v7354_v2, %v7355_v52 }
 0x7d2   : > { %15716 = vst [vmem:[#allocation72_spill] sm:$0xff] %v14502_v8  ;;  %15717 = vst [vmem:[#allocation75_spill] sm:$0xff] %v14504_v24 }
 0x7d3   : > { %7308 = vmatpush1.bf16.msra.mxu0 %v14480_v53  ;;  %7543 = vmatpush1.bf16.msra.mxu1 %v14482_v63  ;;  %v7122_v53 = vld [vmem:[%s12158_s17 + $0x230] sm:$0xff]  ;;  %v7357_v63 = vld [vmem:[%s12158_s17 + $0x238] sm:$0xff]  ;;  %15718 = vst [vmem:[#allocation103_spill] sm:$0xff] %v14512_v41  ;;  %15719 = vst [vmem:[#allocation108_spill] sm:$0xff] %v14514_v39 }
 0x7d4   : > { %7309 = vmatprep.subr.bf16.mxu0 %v14486_v48  ;;  %7544 = vmatprep.subr.bf16.mxu1 %v14488_v22  ;;  %v14518_v1 = vcombine.high %v7121_v25, %v7122_v53  ;;  %v14520_v38 = vcombine.high %v7356_v37, %v7357_v63  ;;  %v7123_v22 = vld [vmem:[%s12158_s17 + $0x250] sm:$0xff]  ;;  %v7358_v48 = vld [vmem:[%s12158_s17 + $0x258] sm:$0xff]  ;;  %v14528_v2 = vcombine.low %v7121_v25, %v7122_v53 }
 0x7d5   : > { %v14530_v20 = vcombine.low %v7356_v37, %v7357_v63 }
 0x7d6   : > { %15720 = vst [vmem:[#allocation111_spill] sm:$0xff] %v14518_v1  ;;  %15721 = vst [vmem:[#allocation109_spill] sm:$0xff] %v14520_v38 }
 0x7d7   : > { %7310 = vmatpush1.bf16.msra.mxu0 %v14496_v5  ;;  %7545 = vmatpush1.bf16.msra.mxu1 %v14498_v7  ;;  %v7124_v5 = vld [vmem:[%s12158_s17 + $0x270] sm:$0xff]  ;;  %v7359_v7 = vld [vmem:[%s12158_s17 + $0x278] sm:$0xff]  ;;  %15722 = vst [vmem:[#allocation110_spill] sm:$0xff] %v14528_v2  ;;  %15723 = vst [vmem:[#allocation112_spill] sm:$0xff] %v14530_v20 }
 0x7d8   : > { %7311 = vmatprep.subr.bf16.mxu0 %v14502_v8  ;;  %7546 = vmatprep.subr.bf16.mxu1 %v14504_v24  ;;  %v14534_v29 = vcombine.high %v7123_v22, %v7124_v5  ;;  %v14536_v52 = vcombine.high %v7358_v48, %v7359_v7  ;;  %v7125_v24 = vld [vmem:[%s12158_s17 + $0x290] sm:$0xff]  ;;  %v7360_v8 = vld [vmem:[%s12158_s17 + $0x298] sm:$0xff]  ;;  %v14544_v37 = vcombine.low %v7123_v22, %v7124_v5 }
 0x7d9   : > { %v14546_v25 = vcombine.low %v7358_v48, %v7359_v7 }
 0x7da   : > { %15724 = vst [vmem:[#allocation113_spill] sm:$0xff] %v14534_v29  ;;  %15725 = vst [vmem:[#allocation22_spill] sm:$0xff] %v14536_v52 }
 0x7db   : > { %7312 = vmatpush1.bf16.msra.mxu0 %v14512_v41  ;;  %7547 = vmatpush1.bf16.msra.mxu1 %v14514_v39  ;;  %v7126_v41 = vld [vmem:[%s12158_s17 + $0x2b0] sm:$0xff]  ;;  %v7361_v39 = vld [vmem:[%s12158_s17 + $0x2b8] sm:$0xff]  ;;  %15726 = vst [vmem:[#allocation24_spill] sm:$0xff] %v14544_v37  ;;  %15727 = vst [vmem:[#allocation23_spill] sm:$0xff] %v14546_v25 }
 0x7dc   : > { %7313 = vmatprep.subr.bf16.mxu0 %v14518_v1  ;;  %7548 = vmatprep.subr.bf16.mxu1 %v14520_v38  ;;  %v14550_v53 = vcombine.high %v7125_v24, %v7126_v41  ;;  %v14552_v63 = vcombine.high %v7360_v8, %v7361_v39  ;;  %v7127_v38 = vld [vmem:[%s12158_s17 + $0x2d0] sm:$0xff]  ;;  %v7362_v1 = vld [vmem:[%s12158_s17 + $0x2d8] sm:$0xff]  ;;  %v14560_v48 = vcombine.low %v7125_v24, %v7126_v41 }
 0x7dd   : > { %v14562_v22 = vcombine.low %v7360_v8, %v7361_v39 }
 0x7de   : > { %15728 = vst [vmem:[#allocation25_spill] sm:$0xff] %v14550_v53  ;;  %15729 = vst [vmem:[#allocation53_spill] sm:$0xff] %v14552_v63 }
 0x7df   : > { %7314 = vmatpush1.bf16.msra.mxu0 %v14528_v2  ;;  %7549 = vmatpush1.bf16.msra.mxu1 %v14530_v20  ;;  %v7128_v2 = vld [vmem:[%s12158_s17 + $0x2f0] sm:$0xff]  ;;  %v7363_v20 = vld [vmem:[%s12158_s17 + $0x2f8] sm:$0xff]  ;;  %15730 = vst [vmem:[#allocation57_spill] sm:$0xff] %v14560_v48  ;;  %15731 = vst [vmem:[#allocation56_spill] sm:$0xff] %v14562_v22 }
 0x7e0   : > { %7315 = vmatprep.subr.bf16.mxu0 %v14534_v29  ;;  %7550 = vmatprep.subr.bf16.mxu1 %v14536_v52  ;;  %v14566_v5 = vcombine.high %v7127_v38, %v7128_v2  ;;  %v14568_v7 = vcombine.high %v7362_v1, %v7363_v20  ;;  %v7129_v52 = vld [vmem:[%s12158_s17 + $0x310] sm:$0xff]  ;;  %v7364_v29 = vld [vmem:[%s12158_s17 + $0x318] sm:$0xff]  ;;  %v14576_v8 = vcombine.low %v7127_v38, %v7128_v2 }
 0x7e1   : > { %v14578_v24 = vcombine.low %v7362_v1, %v7363_v20 }
 0x7e2   : > { %15732 = vst [vmem:[#allocation59_spill] sm:$0xff] %v14566_v5  ;;  %15733 = vst [vmem:[#allocation114_spill] sm:$0xff] %v14568_v7 }
 0x7e3   : > { %7316 = vmatpush1.bf16.msra.mxu0 %v14544_v37  ;;  %7551 = vmatpush1.bf16.msra.mxu1 %v14546_v25  ;;  %v7130_v37 = vld [vmem:[%s12158_s17 + $0x330] sm:$0xff]  ;;  %v7365_v25 = vld [vmem:[%s12158_s17 + $0x338] sm:$0xff]  ;;  %15734 = vst [vmem:[#allocation115_spill] sm:$0xff] %v14576_v8  ;;  %15735 = vst [vmem:[#allocation116_spill] sm:$0xff] %v14578_v24 }
 0x7e4   : > { %7317 = vmatprep.subr.bf16.mxu0 %v14550_v53  ;;  %7552 = vmatprep.subr.bf16.mxu1 %v14552_v63  ;;  %v14582_v41 = vcombine.high %v7129_v52, %v7130_v37  ;;  %v14584_v39 = vcombine.high %v7364_v29, %v7365_v25  ;;  %v7131_v63 = vld [vmem:[%s12158_s17 + $0x350] sm:$0xff]  ;;  %v7366_v53 = vld [vmem:[%s12158_s17 + $0x358] sm:$0xff]  ;;  %v14592_v1 = vcombine.low %v7129_v52, %v7130_v37 }
 0x7e5   : > { %v14594_v38 = vcombine.low %v7364_v29, %v7365_v25 }
 0x7e6   : > { %15736 = vst [vmem:[#allocation117_spill] sm:$0xff] %v14582_v41  ;;  %15737 = vst [vmem:[#allocation118_spill] sm:$0xff] %v14584_v39 }
 0x7e7   : > { %7318 = vmatpush1.bf16.msra.mxu0 %v14560_v48  ;;  %7553 = vmatpush1.bf16.msra.mxu1 %v14562_v22  ;;  %v7132_v48 = vld [vmem:[%s12158_s17 + $0x370] sm:$0xff]  ;;  %v7367_v22 = vld [vmem:[%s12158_s17 + $0x378] sm:$0xff] }
 0x7e8   : > { %7319 = vmatprep.subr.bf16.mxu0 %v14566_v5  ;;  %7554 = vmatprep.subr.bf16.mxu1 %v14568_v7  ;;  %v14598_v2 = vcombine.high %v7131_v63, %v7132_v48  ;;  %v14600_v20 = vcombine.high %v7366_v53, %v7367_v22  ;;  %v7133_v7 = vld [vmem:[%s12158_s17 + $0x390] sm:$0xff]  ;;  %v7368_v5 = vld [vmem:[%s12158_s17 + $0x398] sm:$0xff]  ;;  %v14608_v29 = vcombine.low %v7131_v63, %v7132_v48 }
 0x7e9   : > { %v14610_v52 = vcombine.low %v7366_v53, %v7367_v22  ;;  %v14632_v22 = vcombine.high %v7370_v55, %v7371_v51 }
 0x7ea   : > { %15738 = vst [vmem:[#allocation119_spill] sm:$0xff] %v14600_v20  ;;  %15739 = vst [vmem:[#allocation120_spill] sm:$0xff] %v14608_v29 }
 0x7eb   : > { %7320 = vmatpush1.bf16.msra.mxu0 %v14576_v8  ;;  %7555 = vmatpush1.bf16.msra.mxu1 %v14578_v24  ;;  %v7134_v8 = vld [vmem:[%s12158_s17 + $0x3b0] sm:$0xff]  ;;  %v7369_v24 = vld [vmem:[%s12158_s17 + $0x3b8] sm:$0xff] }
 0x7ec   : > { %7321 = vmatprep.subr.bf16.mxu0 %v14582_v41  ;;  %7556 = vmatprep.subr.bf16.mxu1 %v14584_v39  ;;  %v14614_v37 = vcombine.high %v7133_v7, %v7134_v8  ;;  %v14616_v25 = vcombine.high %v7368_v5, %v7369_v24  ;;  %v7135_v39 = vld [vmem:[%s12158_s17 + $0x3d0] sm:$0xff]  ;;  %v14624_v63 = vcombine.low %v7133_v7, %v7134_v8 }
 0x7ed   : > { %v7136_v41 = vld [vmem:[%s12158_s17 + $0x3f0] sm:$0xff]  ;;  %v14626_v53 = vcombine.low %v7368_v5, %v7369_v24 }
 0x7ee   : > { %v14630_v48 = vcombine.high %v7135_v39, %v7136_v41 }
 0x7ef   : > { %7322 = vmatpush1.bf16.msra.mxu0 %v14592_v1  ;;  %7557 = vmatpush1.bf16.msra.mxu1 %v14594_v38 }
 0x7f0   : > { %7323 = vmatprep.subr.bf16.mxu0 %v14598_v2  ;;  %7558 = vmatprep.subr.bf16.mxu1 %v14600_v20  ;;  %v14636_v20 = vcombine.low %v7135_v39, %v7136_v41 }
 0x7f3   : > { %7324 = vmatpush1.bf16.msra.mxu0 %v14608_v29  ;;  %7559 = vmatpush1.bf16.msra.mxu1 %v14610_v52  ;;  %v14638_v29 = vcombine.low %v7370_v55, %v7371_v51  ;;  %v15772_v55 = vld [vmem:[#allocation41_spill] sm:$0xff] }
 0x7f4   : > { %7325 = vmatprep.subr.bf16.mxu0 %v14614_v37  ;;  %7560 = vmatprep.subr.bf16.mxu1 %v14616_v25 }
 0x7f7   : > { %7326 = vmatpush1.bf16.msra.mxu0 %v14624_v63  ;;  %7561 = vmatpush1.bf16.msra.mxu1 %v14626_v53 }
 0x7f8   : > { %7327 = vmatprep.subr.bf16.mxu0 %v14630_v48  ;;  %7562 = vmatprep.subr.bf16.mxu1 %v14632_v22 }
 0x7fb   : > { %7328 = vmatpush1.bf16.msra.mxu0 %v14636_v20  ;;  %7563 = vmatpush1.bf16.msra.mxu1 %v14638_v29 }
 0x7fc   : > { %7821 = vmatprep.subr.bf16.mxu0 %v14116_v44  ;;  %8056 = vmatprep.subr.bf16.mxu1 %v14123_v4  ;;  %v15741_v44 = vld [vmem:[#allocation145_spill] sm:$0xff]  ;;  %v15743_v4 = vld [vmem:[#allocation148_spill] sm:$0xff] }
 0x7fe   : > { %7330 = vmatmul.mubr.bf16.vlgmr.msra.gmra.mrb[76].mxu0 %v14398_v18  ;;  %7565 = vmatmul.mubr.bf16.vlgmr.msra.gmra.mrb[76].mxu1 %v14398_v18  ;;  %v15771_v18 = vld [vmem:[#allocation39_spill] sm:$0xff] }
 0x7ff   : > { %7822 = vmatpush1.bf16.msra.mxu0 %v14114_v17  ;;  %8057 = vmatpush1.bf16.msra.mxu1 %v14121_v43  ;;  %v15740_v17 = vld [vmem:[#allocation147_spill] sm:$0xff]  ;;  %v15742_v43 = vld [vmem:[#allocation146_spill] sm:$0xff] }
 0x800   : > { %7823 = vmatprep.subr.bf16.mxu0 %v14125_v54  ;;  %8058 = vmatprep.subr.bf16.mxu1 %v14131_v21  ;;  %v15744_v54 = vld [vmem:[#allocation151_spill] sm:$0xff]  ;;  %v15745_v21 = vld [vmem:[#allocation149_spill] sm:$0xff] }
 0x803   : > { %7824 = vmatpush1.bf16.msra.mxu0 %v14138_v15  ;;  %8059 = vmatpush1.bf16.msra.mxu1 %v14142_v9  ;;  %v15746_v15 = vld [vmem:[#allocation150_spill] sm:$0xff]  ;;  %v15747_v9 = vld [vmem:[#allocation152_spill] sm:$0xff] }
 0x804   : > { %7825 = vmatprep.subr.bf16.mxu0 %v14144_v12  ;;  %8060 = vmatprep.subr.bf16.mxu1 %v14147_v61  ;;  %v15748_v12 = vld [vmem:[#allocation27_spill] sm:$0xff]  ;;  %v15749_v61 = vld [vmem:[#allocation26_spill] sm:$0xff] }
 0x807   : > { %7826 = vmatpush1.bf16.msra.mxu0 %v14154_v23  ;;  %8061 = vmatpush1.bf16.msra.mxu1 %v14158_v28  ;;  %v15750_v23 = vld [vmem:[#allocation28_spill] sm:$0xff]  ;;  %v15751_v28 = vld [vmem:[#allocation30_spill] sm:$0xff] }
 0x808   : > { %7827 = vmatprep.subr.bf16.mxu0 %v14160_v30  ;;  %8062 = vmatprep.subr.bf16.mxu1 %v14163_v32  ;;  %v15752_v30 = vld [vmem:[#allocation65_spill] sm:$0xff]  ;;  %v15753_v32 = vld [vmem:[#allocation64_spill] sm:$0xff] }
 0x80b   : > { %7828 = vmatpush1.bf16.msra.mxu0 %v14170_v26  ;;  %8063 = vmatpush1.bf16.msra.mxu1 %v14174_v59  ;;  %v15754_v26 = vld [vmem:[#allocation66_spill] sm:$0xff]  ;;  %v15755_v59 = vld [vmem:[#allocation69_spill] sm:$0xff] }
 0x80c   : > { %7829 = vmatprep.subr.bf16.mxu0 %v14176_v31  ;;  %8064 = vmatprep.subr.bf16.mxu1 %v14179_v62  ;;  %v15756_v31 = vld [vmem:[#allocation51_spill] sm:$0xff]  ;;  %v15757_v62 = vld [vmem:[#allocation52_spill] sm:$0xff] }
 0x80f   : > { %7830 = vmatpush1.bf16.msra.mxu0 %v14186_v11  ;;  %8065 = vmatpush1.bf16.msra.mxu1 %v14190_v42  ;;  %v15758_v11 = vld [vmem:[#allocation50_spill] sm:$0xff] }
 0x810   : > { %7831 = vmatprep.subr.bf16.mxu0 %v14192_v45  ;;  %8066 = vmatprep.subr.bf16.mxu1 %v14195_v16  ;;  %v15759_v42 = vld [vmem:[#allocation58_spill] sm:$0xff]  ;;  %v15760_v45 = vld [vmem:[#allocation55_spill] sm:$0xff]  ;;  %v15761_v16 = vld [vmem:[#allocation60_spill] sm:$0xff] }
 0x813   : > { %7832 = vmatpush1.bf16.msra.mxu0 %v14202_v56  ;;  %8067 = vmatpush1.bf16.msra.mxu1 %v14206_v60  ;;  %v15762_v56 = vld [vmem:[#allocation54_spill] sm:$0xff]  ;;  %v15763_v60 = vld [vmem:[#allocation63_spill] sm:$0xff] }
 0x814   : > { %7833 = vmatprep.subr.bf16.mxu0 %v14208_v35  ;;  %8068 = vmatprep.subr.bf16.mxu1 %v14211_v14  ;;  %v15764_v35 = vld [vmem:[#allocation62_spill] sm:$0xff]  ;;  %v15765_v14 = vld [vmem:[#allocation67_spill] sm:$0xff] }
 0x817   : > { %7834 = vmatpush1.bf16.msra.mxu0 %v14218_v50  ;;  %8069 = vmatpush1.bf16.msra.mxu1 %v14222_v36  ;;  %v15766_v50 = vld [vmem:[#allocation61_spill] sm:$0xff]  ;;  %v15767_v36 = vld [vmem:[#allocation74_spill] sm:$0xff] }
 0x818   : > { %7835 = vmatprep.subr.bf16.mxu0 %v14224_v0  ;;  %8070 = vmatprep.subr.bf16.mxu1 %v14227_v6  ;;  %v15768_v0 = vld [vmem:[#allocation76_spill] sm:$0xff] }
 0x81b   : > { %7836 = vmatpush1.bf16.msra.mxu0 %v14230_v27  ;;  %8071 = vmatpush1.bf16.msra.mxu1 %v14234_v10  ;;  %v15769_v10 = vld [vmem:[#allocation37_spill] sm:$0xff] }
 0x81c   : > { %7837 = vmatprep.subr.bf16.mxu0 %v14242_v33  ;;  %8072 = vmatprep.subr.bf16.mxu1 %v14249_v49 }
 0x81f   : > { %7838 = vmatpush1.bf16.msra.mxu0 %v14245_v34  ;;  %8073 = vmatpush1.bf16.msra.mxu1 %v14247_v58  ;;  %v15770_v34 = vld [vmem:[#allocation40_spill] sm:$0xff] }
 0x820   : > { %7839 = vmatprep.subr.bf16.mxu0 %v14258_v13  ;;  %8074 = vmatprep.subr.bf16.mxu1 %v15740_v17 }
 0x823   : > { %7840 = vmatpush1.bf16.msra.mxu0 %v15741_v44  ;;  %8075 = vmatpush1.bf16.msra.mxu1 %v15742_v43 }
 0x824   : > { %7841 = vmatprep.subr.bf16.mxu0 %v15743_v4  ;;  %8076 = vmatprep.subr.bf16.mxu1 %v15744_v54 }
 0x827   : > { %7842 = vmatpush1.bf16.msra.mxu0 %v15745_v21  ;;  %8077 = vmatpush1.bf16.msra.mxu1 %v15746_v15  ;;  %v15773_v21 = vld [vmem:[#allocation84_spill] sm:$0xff] }
 0x828   : > { %7843 = vmatprep.subr.bf16.mxu0 %v15747_v9  ;;  %8078 = vmatprep.subr.bf16.mxu1 %v15748_v12  ;;  %v15774_v9 = vld [vmem:[#allocation89_spill] sm:$0xff] }
 0x82b   : > { %7844 = vmatpush1.bf16.msra.mxu0 %v15749_v61  ;;  %8079 = vmatpush1.bf16.msra.mxu1 %v15750_v23 }
 0x82c   : > { %7845 = vmatprep.subr.bf16.mxu0 %v15751_v28  ;;  %8080 = vmatprep.subr.bf16.mxu1 %v15752_v30  ;;  %v15775_v28 = vld [vmem:[#allocation88_spill] sm:$0xff] }
 0x82f   : > { %7846 = vmatpush1.bf16.msra.mxu0 %v15753_v32  ;;  %8081 = vmatpush1.bf16.msra.mxu1 %v15754_v26  ;;  %v15776_v32 = vld [vmem:[#allocation91_spill] sm:$0xff] }
 0x830   : > { %7847 = vmatprep.subr.bf16.mxu0 %v15755_v59  ;;  %8082 = vmatprep.subr.bf16.mxu1 %v15756_v31 }
 0x833   : > { %7848 = vmatpush1.bf16.msra.mxu0 %v15757_v62  ;;  %8083 = vmatpush1.bf16.msra.mxu1 %v15758_v11 }
 0x834   : > { %7849 = vmatprep.subr.bf16.mxu0 %v15759_v42  ;;  %8084 = vmatprep.subr.bf16.mxu1 %v15760_v45 }
 0x837   : > { %7850 = vmatpush1.bf16.msra.mxu0 %v15761_v16  ;;  %8085 = vmatpush1.bf16.msra.mxu1 %v15762_v56 }
 0x838   : > { %7851 = vmatprep.subr.bf16.mxu0 %v15763_v60  ;;  %8086 = vmatprep.subr.bf16.mxu1 %v15764_v35 }
 0x83b   : > { %7852 = vmatpush1.bf16.msra.mxu0 %v15765_v14  ;;  %8087 = vmatpush1.bf16.msra.mxu1 %v15766_v50 }
 0x83c   : > { %8291 = vmatprep.subr.bf16.mxu0 %v15767_v36  ;;  %8526 = vmatprep.subr.bf16.mxu1 %v15768_v0 }
 0x891   : > { %v6861_v6 = vpop.f32.mrb[72].mxu0  ;;  %v7096_v27 = vpop.f32.mrb[72].mxu1 }
 0x892   : > { %v6868_v33 = vadd.f32 %v6861_v6, %v15769_v10  ;;  %v7103_v58 = vadd.f32 %v7096_v27, %v15770_v34  ;;  %v6863_v49 = vpop.f32.mrb[73].mxu0  ;;  %v7098_v13 = vpop.f32.mrb[73].mxu1 }
 0x893   : > { %v6869_v51 = vadd.f32 %v6863_v49, %v15771_v18  ;;  %v7104_v5 = vadd.f32 %v7098_v13, %v15772_v55  ;;  %v6865_v7 = vpop.f32.mrb[74].mxu0  ;;  %v7100_v8 = vpop.f32.mrb[74].mxu1 }
 0x894   : > { %v6866_v24 = vpop.f32.mrb[75].mxu0  ;;  %v7101_v41 = vpop.f32.mrb[75].mxu1  ;;  %v7583_v39 = vmul.f32 0.5, %v7103_v58  ;;  %v7575_v44 = vmul.f32 0.5, %v6868_v33 }
 0x895   : > { %v7584_v17 = vmul.f32 0.5, %v7104_v5  ;;  %v7576_v43 = vmul.f32 0.5, %v6869_v51 }
 0x896   : > { %11499 = vtanh.f32 %v7583_v39 }
 0x897   : > { %11501 = vtanh.f32 %v7584_v17 }
 0x898   : > { %11503 = vtanh.f32 %v7575_v44 }
 0x899   : > { %11505 = vtanh.f32 %v7576_v43 }
 0x8a0   : > { %v11500_v62 = vpop.eup %11499 }
 0x8a1   : > { %v11502_v45 = vpop.eup %11501  ;;  %v7587_v60 = vmul.f32 0.5, %v11500_v62  ;;  %v15791_v62 = vld [vmem:[#allocation106_spill] sm:$0xff] }
 0x8a2   : > { %v11504_v16 = vpop.eup %11503  ;;  %v7588_v14 = vmul.f32 0.5, %v11502_v45  ;;  %v15794_v45 = vld [vmem:[#allocation32_spill] sm:$0xff] }
 0x8a3   : > { %v11506_v56 = vpop.eup %11505  ;;  %v7579_v36 = vmul.f32 0.5, %v11504_v16  ;;  %v7589_v6 = vadd.f32 0.5, %v7587_v60  ;;  %v15795_v16 = vld [vmem:[#allocation31_spill] sm:$0xff]  ;;  %v15797_v60 = vld [vmem:[#allocation68_spill] sm:$0xff] }
 0x8a4   : > { %v7580_v0 = vmul.f32 0.5, %v11506_v56  ;;  %v7590_v27 = vadd.f32 0.5, %v7588_v14  ;;  %v15796_v56 = vld [vmem:[#allocation33_spill] sm:$0xff]  ;;  %v15799_v14 = vld [vmem:[#allocation72_spill] sm:$0xff] }
 0x8a5   : > { %v7581_v10 = vadd.f32 0.5, %v7579_v36  ;;  %v7601_v49 = vmul.f32 %v7589_v6, %v14391_v19  ;;  %v15801_v36 = vld [vmem:[#allocation103_spill] sm:$0xff] }
 0x8a6   : > { %v7582_v34 = vadd.f32 0.5, %v7580_v0  ;;  %v7602_v18 = vmul.f32 %v7590_v27, %v14393_v40  ;;  %v15802_v0 = vld [vmem:[#allocation108_spill] sm:$0xff]  ;;  %v15803_v6 = vld [vmem:[#allocation111_spill] sm:$0xff]  ;;  %v15804_v27 = vld [vmem:[#allocation109_spill] sm:$0xff] }
 0x8d1   : > { %v7331_v4 = vpop.f32.mrb[76].mxu0  ;;  %v7566_v54 = vpop.f32.mrb[76].mxu1 }
 0x8d2   : > { %v7338_v15 = vadd.f32 %v7331_v4, %v15773_v21  ;;  %v7573_v12 = vadd.f32 %v7566_v54, %v15774_v9  ;;  %v7333_v61 = vpop.f32.mrb[77].mxu0  ;;  %v7568_v23 = vpop.f32.mrb[77].mxu1  ;;  %v15777_v9 = vld [vmem:[#allocation70_spill] sm:$0xff] }
 0x8d3   : > { %v7339_v30 = vadd.f32 %v7333_v61, %v15775_v28  ;;  %v7574_v26 = vadd.f32 %v7568_v23, %v15776_v32  ;;  %v7335_v59 = vpop.f32.mrb[78].mxu0  ;;  %v7570_v31 = vpop.f32.mrb[78].mxu1  ;;  %v15779_v61 = vld [vmem:[#allocation79_spill] sm:$0xff]  ;;  %v15781_v28 = vld [vmem:[#allocation77_spill] sm:$0xff]  ;;  %v15785_v32 = vld [vmem:[#allocation86_spill] sm:$0xff] }
 0x8d4   : > { %11507 = vtanh.f32 %v7338_v15  ;;  %v7336_v11 = vpop.f32.mrb[79].mxu0  ;;  %v7571_v42 = vpop.f32.mrb[79].mxu1  ;;  %v7593_v35 = vmul.f32 0.5, %v7573_v12  ;;  %v15778_v12 = vld [vmem:[#allocation71_spill] sm:$0xff]  ;;  %v15789_v59 = vld [vmem:[#allocation93_spill] sm:$0xff]  ;;  %v15790_v31 = vld [vmem:[#allocation94_spill] sm:$0xff] }
 0x8d5   : > { %11509 = vtanh.f32 %v7339_v30  ;;  %v7594_v50 = vmul.f32 0.5, %v7574_v26  ;;  %v15780_v23 = vld [vmem:[#allocation83_spill] sm:$0xff]  ;;  %v15782_v30 = vld [vmem:[#allocation78_spill] sm:$0xff]  ;;  %v15793_v42 = vld [vmem:[#allocation29_spill] sm:$0xff] }
 0x8d6   : > { %11511 = vtanh.f32 %v7593_v35  ;;  %v15788_v26 = vld [vmem:[#allocation99_spill] sm:$0xff]  ;;  %v15792_v11 = vld [vmem:[#allocation102_spill] sm:$0xff]  ;;  %v15798_v35 = vld [vmem:[#allocation73_spill] sm:$0xff] }
 0x8d7   : > { %11513 = vtanh.f32 %v7594_v50  ;;  %v15800_v50 = vld [vmem:[#allocation75_spill] sm:$0xff] }
 0x8de   : > { %v11508_v33 = vpop.eup %11507 }
 0x8df   : > { %v11510_v58 = vpop.eup %11509  ;;  %v7603_v13 = vmul.f32 %v11508_v33, %v7581_v10  ;;  %v15805_v10 = vld [vmem:[#allocation110_spill] sm:$0xff]  ;;  %v15806_v33 = vld [vmem:[#allocation112_spill] sm:$0xff] }
 0x8e0   : > { %v7604_v51 = vmul.f32 %v11510_v58, %v7582_v34  ;;  %v11512_v7 = vpop.eup %11511  ;;  %v15807_v34 = vld [vmem:[#allocation113_spill] sm:$0xff]  ;;  %v15808_v58 = vld [vmem:[#allocation22_spill] sm:$0xff] }
 0x8e1   : > { %v14722_v55 = vadd.f32 %v7603_v13, %v7601_v49  ;;  %v11514_v8 = vpop.eup %11513  ;;  %v7597_v24 = vmul.f32 0.5, %v11512_v7  ;;  %v15809_v49 = vld [vmem:[#allocation24_spill] sm:$0xff]  ;;  %v15810_v13 = vld [vmem:[#allocation23_spill] sm:$0xff]  ;;  %v15813_v7 = vld [vmem:[#allocation57_spill] sm:$0xff] }
 0x8e2   : > { %v14724_v5 = vadd.f32 %v7604_v51, %v7602_v18  ;;  %v7598_v41 = vmul.f32 0.5, %v11514_v8  ;;  %v15811_v18 = vld [vmem:[#allocation25_spill] sm:$0xff]  ;;  %v15814_v8 = vld [vmem:[#allocation56_spill] sm:$0xff] }
 0x8e3   : > { %11515 = vtanh.f32 %v14722_v55  ;;  %v7599_v39 = vadd.f32 0.5, %v7597_v24  ;;  %v15812_v51 = vld [vmem:[#allocation53_spill] sm:$0xff]  ;;  %v15815_v24 = vld [vmem:[#allocation59_spill] sm:$0xff] }
 0x8e4   : > { %11517 = vtanh.f32 %v14724_v5  ;;  %v7600_v44 = vadd.f32 0.5, %v7598_v41  ;;  %v15816_v41 = vld [vmem:[#allocation114_spill] sm:$0xff] }
 0x8ed   : > { %v11516_v17 = vpop.eup %11515 }
 0x8ee   : > { %v11518_v19 = vpop.eup %11517  ;;  %v7609_v43 = vmul.f32 %v11516_v17, %v7599_v39  ;;  %v15817_v39 = vld [vmem:[#allocation115_spill] sm:$0xff]  ;;  %v15818_v17 = vld [vmem:[#allocation116_spill] sm:$0xff] }
 0x8ef   : > { %v7610_v4 = vmul.f32 %v11518_v19, %v7600_v44  ;;  %v15819_v44 = vld [vmem:[#allocation117_spill] sm:$0xff]  ;;  %v15820_v19 = vld [vmem:[#allocation118_spill] sm:$0xff] }
 0x8f0   : > { %v14728_v40 = vpack.c.bf16 %v7609_v43, %v7609_v43  ;;  %v15821_v43 = vld [vmem:[#allocation119_spill] sm:$0xff] }
 0x8f1   : > { %v7612_v54 = vpack.c.bf16 %v7610_v4, %v7610_v4  ;;  %v15822_v4 = vld [vmem:[#allocation120_spill] sm:$0xff] }
 0x8f2   : > { %v7615_v21 = vrot.slane %v14728_v40, 4 }
 0x8f3   : > { %v7616_v15 = vrot.slane %v7612_v54, 4  ;;  %7853 = vmatprep.mubr.bf16.mxu0 %v7612_v54  ;;  %8088 = vmatprep.mubr.bf16.mxu1 %v7612_v54 }
 0x8f4   : > { %7619 = vst [vmem:[#allocation2 + $0x20] sm:$0xf0] %v7615_v21  ;;  %7854 = vmatmul.mubr.bf16.vlgmr.msra.gmra.mrb[80].mxu0 %v14728_v40  ;;  %8089 = vmatmul.mubr.bf16.vlgmr.msra.gmra.mrb[80].mxu1 %v14728_v40  ;;  %v8621_v21 = vld [vmem:[%s12158_s17 + $0x80] sm:$0xff] }
 0x8f5   : > { %7620 = vst [vmem:[#allocation2 + $0x28] sm:$0xf0] %v7616_v15  ;;  %8292 = vmatpush1.bf16.msra.mxu0 %v14373_v47  ;;  %8527 = vmatpush1.bf16.msra.mxu1 %v14375_v3  ;;  %v15783_v47 = vld [vmem:[#allocation90_spill] sm:$0xff]  ;;  %v15784_v3 = vld [vmem:[#allocation92_spill] sm:$0xff] }
 0x8f6   : > { %8323 = vmatprep.mubr.bf16.mxu0 %v7612_v54  ;;  %8558 = vmatprep.mubr.bf16.mxu1 %v7612_v54  ;;  %v8855_v54 = vld [vmem:[%s12158_s17 + $0x68] sm:$0xff]  ;;  %v8622_v15 = vld [vmem:[%s12158_s17 + $0xa0] sm:$0xff] }
 0x8f7   : > { %8293 = vmatprep.subr.bf16.mxu0 %v14405_v46  ;;  %8528 = vmatprep.subr.bf16.mxu1 %v14407_v57  ;;  %v15786_v46 = vld [vmem:[#allocation87_spill] sm:$0xff] }
 0x8f8   : > { %v15787_v57 = vld [vmem:[#allocation95_spill] sm:$0xff] }
 0x8f9   : > { %8294 = vmatpush1.bf16.msra.mxu0 %v15777_v9  ;;  %8529 = vmatpush1.bf16.msra.mxu1 %v15778_v12  ;;  %v8856_v9 = vld [vmem:[%s12158_s17 + $0x88] sm:$0xff] }
 0x8fa   : > { %8295 = vmatprep.subr.bf16.mxu0 %v15779_v61  ;;  %8530 = vmatprep.subr.bf16.mxu1 %v15780_v23  ;;  %v8857_v12 = vld [vmem:[%s12158_s17 + $0xa8] sm:$0xff] }
 0x8fd   : > { %8296 = vmatpush1.bf16.msra.mxu0 %v15781_v28  ;;  %8531 = vmatpush1.bf16.msra.mxu1 %v15782_v30  ;;  %v11084_v28 = vcombine.high %v8621_v21, %v8622_v15  ;;  %v11116_v30 = vcombine.high %v8856_v9, %v8857_v12 }
 0x8fe   : > { %8297 = vmatprep.subr.bf16.mxu0 %v15783_v47  ;;  %8532 = vmatprep.subr.bf16.mxu1 %v15784_v3  ;;  %v8623_v47 = vld [vmem:[%s12158_s17 + $0xc0] sm:$0xff] }
 0x8ff   : > { %v8624_v3 = vld [vmem:[%s12158_s17 + $0xe0] sm:$0xff] }
 0x901   : > { %8298 = vmatpush1.bf16.msra.mxu0 %v15785_v32  ;;  %8533 = vmatpush1.bf16.msra.mxu1 %v15786_v46  ;;  %v8858_v32 = vld [vmem:[%s12158_s17 + $0xc8] sm:$0xff] }
 0x902   : > { %8299 = vmatprep.subr.bf16.mxu0 %v15787_v57  ;;  %8534 = vmatprep.subr.bf16.mxu1 %v15788_v26  ;;  %v8859_v46 = vld [vmem:[%s12158_s17 + $0xe8] sm:$0xff]  ;;  %v11083_v57 = vcombine.low %v8621_v21, %v8622_v15  ;;  %v11115_v26 = vcombine.low %v8856_v9, %v8857_v12 }
 0x905   : > { %8300 = vmatpush1.bf16.msra.mxu0 %v15789_v59  ;;  %8535 = vmatpush1.bf16.msra.mxu1 %v15790_v31  ;;  %v11086_v59 = vcombine.high %v8623_v47, %v8624_v3  ;;  %v11118_v31 = vcombine.high %v8858_v32, %v8859_v46 }
 0x906   : > { %8301 = vmatprep.subr.bf16.mxu0 %v15791_v62  ;;  %8536 = vmatprep.subr.bf16.mxu1 %v15792_v11  ;;  %v8625_v62 = vld [vmem:[%s12158_s17 + $0x100] sm:$0xff] }
 0x907   : > { %v8626_v11 = vld [vmem:[%s12158_s17 + $0x120] sm:$0xff] }
 0x909   : > { %8302 = vmatpush1.bf16.msra.mxu0 %v15793_v42  ;;  %8537 = vmatpush1.bf16.msra.mxu1 %v15794_v45  ;;  %v8860_v42 = vld [vmem:[%s12158_s17 + $0x108] sm:$0xff] }
 0x90a   : > { %8303 = vmatprep.subr.bf16.mxu0 %v15795_v16  ;;  %8538 = vmatprep.subr.bf16.mxu1 %v15796_v56  ;;  %v8861_v45 = vld [vmem:[%s12158_s17 + $0x128] sm:$0xff]  ;;  %v11085_v16 = vcombine.low %v8623_v47, %v8624_v3  ;;  %v11117_v56 = vcombine.low %v8858_v32, %v8859_v46 }
 0x90b   : > { %v8873_v47 = vld [vmem:[%s12158_s17 + $0x2a8] sm:$0xff] }
 0x90d   : > { %8304 = vmatpush1.bf16.msra.mxu0 %v15797_v60  ;;  %8539 = vmatpush1.bf16.msra.mxu1 %v15798_v35  ;;  %v11088_v60 = vcombine.high %v8625_v62, %v8626_v11  ;;  %v11120_v35 = vcombine.high %v8860_v42, %v8861_v45 }
 0x90e   : > { %8305 = vmatprep.subr.bf16.mxu0 %v15799_v14  ;;  %8540 = vmatprep.subr.bf16.mxu1 %v15800_v50  ;;  %v8627_v14 = vld [vmem:[%s12158_s17 + $0x140] sm:$0xff] }
 0x90f   : > { %v8628_v50 = vld [vmem:[%s12158_s17 + $0x160] sm:$0xff] }
 0x911   : > { %8306 = vmatpush1.bf16.msra.mxu0 %v15801_v36  ;;  %8541 = vmatpush1.bf16.msra.mxu1 %v15802_v0  ;;  %v8862_v36 = vld [vmem:[%s12158_s17 + $0x148] sm:$0xff] }
 0x912   : > { %8307 = vmatprep.subr.bf16.mxu0 %v15803_v6  ;;  %8542 = vmatprep.subr.bf16.mxu1 %v15804_v27  ;;  %v8863_v0 = vld [vmem:[%s12158_s17 + $0x168] sm:$0xff]  ;;  %v11087_v6 = vcombine.low %v8625_v62, %v8626_v11  ;;  %v11119_v27 = vcombine.low %v8860_v42, %v8861_v45 }
 0x913   : > { %v8875_v62 = vld [vmem:[%s12158_s17 + $0x2e8] sm:$0xff] }
 0x915   : > { %8308 = vmatpush1.bf16.msra.mxu0 %v15805_v10  ;;  %8543 = vmatpush1.bf16.msra.mxu1 %v15806_v33  ;;  %v11090_v10 = vcombine.high %v8627_v14, %v8628_v50  ;;  %v11122_v33 = vcombine.high %v8862_v36, %v8863_v0 }
 0x916   : > { %8309 = vmatprep.subr.bf16.mxu0 %v15807_v34  ;;  %8544 = vmatprep.subr.bf16.mxu1 %v15808_v58  ;;  %v8629_v34 = vld [vmem:[%s12158_s17 + $0x180] sm:$0xff] }
 0x917   : > { %v8630_v58 = vld [vmem:[%s12158_s17 + $0x1a0] sm:$0xff] }
 0x919   : > { %8310 = vmatpush1.bf16.msra.mxu0 %v15809_v49  ;;  %8545 = vmatpush1.bf16.msra.mxu1 %v15810_v13  ;;  %v8864_v49 = vld [vmem:[%s12158_s17 + $0x188] sm:$0xff] }
 0x91a   : > { %8311 = vmatprep.subr.bf16.mxu0 %v15811_v18  ;;  %8546 = vmatprep.subr.bf16.mxu1 %v15812_v51  ;;  %v8865_v13 = vld [vmem:[%s12158_s17 + $0x1a8] sm:$0xff]  ;;  %v11089_v18 = vcombine.low %v8627_v14, %v8628_v50  ;;  %v11121_v51 = vcombine.low %v8862_v36, %v8863_v0 }
 0x91b   : > { %v8877_v14 = vld [vmem:[%s12158_s17 + $0x328] sm:$0xff] }
 0x91d   : > { %8312 = vmatpush1.bf16.msra.mxu0 %v15813_v7  ;;  %8547 = vmatpush1.bf16.msra.mxu1 %v15814_v8  ;;  %v11092_v7 = vcombine.high %v8629_v34, %v8630_v58  ;;  %v11124_v8 = vcombine.high %v8864_v49, %v8865_v13 }
 0x91e   : > { %8313 = vmatprep.subr.bf16.mxu0 %v15815_v24  ;;  %8548 = vmatprep.subr.bf16.mxu1 %v15816_v41  ;;  %v8631_v24 = vld [vmem:[%s12158_s17 + $0x1c0] sm:$0xff] }
 0x91f   : > { %v8632_v41 = vld [vmem:[%s12158_s17 + $0x1e0] sm:$0xff] }
 0x921   : > { %8314 = vmatpush1.bf16.msra.mxu0 %v15817_v39  ;;  %8549 = vmatpush1.bf16.msra.mxu1 %v15818_v17  ;;  %v8866_v39 = vld [vmem:[%s12158_s17 + $0x1c8] sm:$0xff] }
 0x922   : > { %8315 = vmatprep.subr.bf16.mxu0 %v15819_v44  ;;  %8550 = vmatprep.subr.bf16.mxu1 %v15820_v19  ;;  %v8867_v17 = vld [vmem:[%s12158_s17 + $0x1e8] sm:$0xff]  ;;  %v11091_v44 = vcombine.low %v8629_v34, %v8630_v58  ;;  %v11123_v19 = vcombine.low %v8864_v49, %v8865_v13 }
 0x923   : > { %v8879_v34 = vld [vmem:[%s12158_s17 + $0x368] sm:$0xff] }
 0x925   : > { %8316 = vmatpush1.bf16.msra.mxu0 %v14592_v1  ;;  %8551 = vmatpush1.bf16.msra.mxu1 %v14594_v38  ;;  %v8617_v1 = vld [vmem:[%s12158_s17] sm:$0xff] }
 0x926   : > { %8317 = vmatprep.subr.bf16.mxu0 %v14598_v2  ;;  %8552 = vmatprep.subr.bf16.mxu1 %v15821_v43  ;;  %v8618_v38 = vld [vmem:[%s12158_s17 + $0x20] sm:$0xff]  ;;  %v8852_v2 = vld [vmem:[%s12158_s17 + $0x8] sm:$0xff]  ;;  %v11094_v43 = vcombine.high %v8631_v24, %v8632_v41 }
 0x929   : > { %8318 = vmatpush1.bf16.msra.mxu0 %v15822_v4  ;;  %8553 = vmatpush1.bf16.msra.mxu1 %v14610_v52  ;;  %v11079_v52 = vcombine.low %v8617_v1, %v8618_v38  ;;  %v11126_v4 = vcombine.high %v8866_v39, %v8867_v17 }
 0x92a   : > { %8319 = vmatprep.subr.bf16.mxu0 %v14614_v37  ;;  %8554 = vmatprep.subr.bf16.mxu1 %v14616_v25  ;;  %v11080_v37 = vcombine.high %v8617_v1, %v8618_v38  ;;  %v8853_v25 = vld [vmem:[%s12158_s17 + $0x28] sm:$0xff]  ;;  %v11093_v1 = vcombine.low %v8631_v24, %v8632_v41  ;;  %v11125_v38 = vcombine.low %v8866_v39, %v8867_v17 }
 0x92b   : > { %v8881_v24 = vld [vmem:[%s12158_s17 + $0x3a8] sm:$0xff] }
 0x92d   : > { %8320 = vmatpush1.bf16.msra.mxu0 %v14624_v63  ;;  %8555 = vmatpush1.bf16.msra.mxu1 %v14626_v53  ;;  %v8619_v63 = vld [vmem:[%s12158_s17 + $0x40] sm:$0xff] }
 0x92e   : > { %8321 = vmatprep.subr.bf16.mxu0 %v14630_v48  ;;  %8556 = vmatprep.subr.bf16.mxu1 %v14632_v22  ;;  %v8620_v53 = vld [vmem:[%s12158_s17 + $0x60] sm:$0xff]  ;;  %v11112_v48 = vcombine.high %v8852_v2, %v8853_v25 }
 0x92f   : > { %v11082_v22 = vcombine.high %v8619_v63, %v8620_v53  ;;  %v11081_v61 = vcombine.low %v8619_v63, %v8620_v53  ;;  %v8869_v63 = vld [vmem:[%s12158_s17 + $0x228] sm:$0xff] }
 0x931   : > { %8322 = vmatpush1.bf16.msra.mxu0 %v14636_v20  ;;  %8557 = vmatpush1.bf16.msra.mxu1 %v14638_v29  ;;  %v11111_v20 = vcombine.low %v8852_v2, %v8853_v25  ;;  %v8854_v29 = vld [vmem:[%s12158_s17 + $0x48] sm:$0xff]  ;;  %v8633_v2 = vld [vmem:[%s12158_s17 + $0x200] sm:$0xff] }
 0x932   : > { %8809 = vmatprep.subr.bf16.mxu0 %v11080_v37  ;;  %9044 = vmatprep.subr.bf16.mxu1 %v11112_v48  ;;  %v11113_v23 = vcombine.low %v8854_v29, %v8855_v54  ;;  %v8868_v37 = vld [vmem:[%s12158_s17 + $0x208] sm:$0xff] }
 0x933   : > { %v11128_v48 = vcombine.high %v8868_v37, %v8869_v63 }
 0x934   : > { %8324 = vmatmul.mubr.bf16.vlgmr.msra.gmra.mrb[84].mxu0 %v14728_v40  ;;  %8559 = vmatmul.mubr.bf16.vlgmr.msra.gmra.mrb[84].mxu1 %v14728_v40  ;;  %v11114_v40 = vcombine.high %v8854_v29, %v8855_v54  ;;  %v8636_v29 = vld [vmem:[%s12158_s17 + $0x260] sm:$0xff]  ;;  %v8870_v54 = vld [vmem:[%s12158_s17 + $0x248] sm:$0xff] }
 0x935   : > { %8810 = vmatpush1.bf16.msra.mxu0 %v11079_v52  ;;  %9045 = vmatpush1.bf16.msra.mxu1 %v11111_v20  ;;  %v8634_v52 = vld [vmem:[%s12158_s17 + $0x220] sm:$0xff]  ;;  %v11127_v20 = vcombine.low %v8868_v37, %v8869_v63  ;;  %v14862_v37 = vld [vmem:[%s12158_s17 + $0x10] sm:$0xff]  ;;  %v14868_v63 = vld [vmem:[%s12158_s17 + $0x18] sm:$0xff] }
 0x936   : > { %8811 = vmatprep.subr.bf16.mxu0 %v11082_v22  ;;  %9046 = vmatprep.subr.bf16.mxu1 %v11114_v40  ;;  %v11096_v25 = vcombine.high %v8633_v2, %v8634_v52  ;;  %v11095_v53 = vcombine.low %v8633_v2, %v8634_v52  ;;  %v8635_v22 = vld [vmem:[%s12158_s17 + $0x240] sm:$0xff]  ;;  %v8871_v40 = vld [vmem:[%s12158_s17 + $0x268] sm:$0xff] }
 0x937   : > { %v11098_v21 = vcombine.high %v8635_v22, %v8636_v29  ;;  %v11097_v15 = vcombine.low %v8635_v22, %v8636_v29  ;;  %v11129_v9 = vcombine.low %v8870_v54, %v8871_v40  ;;  %v11130_v12 = vcombine.high %v8870_v54, %v8871_v40  ;;  %v15823_v40 = vld [vmem:[#allocation42_spill] sm:$0xff] }
 0x939   : > { %8812 = vmatpush1.bf16.msra.mxu0 %v11081_v61  ;;  %9047 = vmatpush1.bf16.msra.mxu1 %v11113_v23  ;;  %v8637_v61 = vld [vmem:[%s12158_s17 + $0x280] sm:$0xff] }
 0x93a   : > { %8813 = vmatprep.subr.bf16.mxu0 %v11084_v28  ;;  %9048 = vmatprep.subr.bf16.mxu1 %v11116_v30  ;;  %v8638_v23 = vld [vmem:[%s12158_s17 + $0x2a0] sm:$0xff]  ;;  %v8872_v28 = vld [vmem:[%s12158_s17 + $0x288] sm:$0xff] }
 0x93b   : > { %v11100_v30 = vcombine.high %v8637_v61, %v8638_v23  ;;  %v11099_v3 = vcombine.low %v8637_v61, %v8638_v23  ;;  %v11131_v32 = vcombine.low %v8872_v28, %v8873_v47  ;;  %v11132_v46 = vcombine.high %v8872_v28, %v8873_v47  ;;  %v15825_v28 = vld [vmem:[#allocation43_spill] sm:$0xff]  ;;  %v15826_v47 = vld [vmem:[#allocation46_spill] sm:$0xff] }
 0x93d   : > { %8814 = vmatpush1.bf16.msra.mxu0 %v11083_v57  ;;  %9049 = vmatpush1.bf16.msra.mxu1 %v11115_v26  ;;  %v8639_v57 = vld [vmem:[%s12158_s17 + $0x2c0] sm:$0xff] }
 0x93e   : > { %8815 = vmatprep.subr.bf16.mxu0 %v11086_v59  ;;  %9050 = vmatprep.subr.bf16.mxu1 %v11118_v31  ;;  %v8640_v26 = vld [vmem:[%s12158_s17 + $0x2e0] sm:$0xff]  ;;  %v8874_v59 = vld [vmem:[%s12158_s17 + $0x2c8] sm:$0xff] }
 0x93f   : > { %v11102_v31 = vcombine.high %v8639_v57, %v8640_v26  ;;  %v11101_v11 = vcombine.low %v8639_v57, %v8640_v26  ;;  %v11133_v42 = vcombine.low %v8874_v59, %v8875_v62  ;;  %v11134_v45 = vcombine.high %v8874_v59, %v8875_v62 }
 0x941   : > { %8816 = vmatpush1.bf16.msra.mxu0 %v11085_v16  ;;  %9051 = vmatpush1.bf16.msra.mxu1 %v11117_v56  ;;  %v8641_v16 = vld [vmem:[%s12158_s17 + $0x300] sm:$0xff] }
 0x942   : > { %8817 = vmatprep.subr.bf16.mxu0 %v11088_v60  ;;  %9052 = vmatprep.subr.bf16.mxu1 %v11120_v35  ;;  %v8642_v56 = vld [vmem:[%s12158_s17 + $0x320] sm:$0xff]  ;;  %v8876_v60 = vld [vmem:[%s12158_s17 + $0x308] sm:$0xff] }
 0x943   : > { %v11104_v35 = vcombine.high %v8641_v16, %v8642_v56  ;;  %v11103_v50 = vcombine.low %v8641_v16, %v8642_v56  ;;  %v11135_v36 = vcombine.low %v8876_v60, %v8877_v14  ;;  %v11136_v0 = vcombine.high %v8876_v60, %v8877_v14  ;;  %v15827_v16 = vld [vmem:[#allocation96_spill] sm:$0xff]  ;;  %v15828_v60 = vld [vmem:[#allocation98_spill] sm:$0xff] }
 0x945   : > { %8818 = vmatpush1.bf16.msra.mxu0 %v11087_v6  ;;  %9053 = vmatpush1.bf16.msra.mxu1 %v11119_v27  ;;  %v8643_v6 = vld [vmem:[%s12158_s17 + $0x340] sm:$0xff] }
 0x946   : > { %8819 = vmatprep.subr.bf16.mxu0 %v11090_v10  ;;  %9054 = vmatprep.subr.bf16.mxu1 %v11122_v33  ;;  %v8644_v27 = vld [vmem:[%s12158_s17 + $0x360] sm:$0xff]  ;;  %v8878_v10 = vld [vmem:[%s12158_s17 + $0x348] sm:$0xff] }
 0x947   : > { %v11106_v33 = vcombine.high %v8643_v6, %v8644_v27  ;;  %v11105_v58 = vcombine.low %v8643_v6, %v8644_v27  ;;  %v11137_v49 = vcombine.low %v8878_v10, %v8879_v34  ;;  %v11138_v13 = vcombine.high %v8878_v10, %v8879_v34  ;;  %v15830_v6 = vld [vmem:[#allocation101_spill] sm:$0xff] }
 0x949   : > { %8820 = vmatpush1.bf16.msra.mxu0 %v11089_v18  ;;  %9055 = vmatpush1.bf16.msra.mxu1 %v11121_v51  ;;  %v8645_v18 = vld [vmem:[%s12158_s17 + $0x380] sm:$0xff] }
 0x94a   : > { %8821 = vmatprep.subr.bf16.mxu0 %v11092_v7  ;;  %9056 = vmatprep.subr.bf16.mxu1 %v11124_v8  ;;  %v8646_v51 = vld [vmem:[%s12158_s17 + $0x3a0] sm:$0xff]  ;;  %v8880_v7 = vld [vmem:[%s12158_s17 + $0x388] sm:$0xff] }
 0x94b   : > { %v11108_v8 = vcombine.high %v8645_v18, %v8646_v51  ;;  %v11107_v41 = vcombine.low %v8645_v18, %v8646_v51  ;;  %v11139_v39 = vcombine.low %v8880_v7, %v8881_v24  ;;  %v11140_v17 = vcombine.high %v8880_v7, %v8881_v24 }
 0x94d   : > { %8822 = vmatpush1.bf16.msra.mxu0 %v11091_v44  ;;  %9057 = vmatpush1.bf16.msra.mxu1 %v11123_v19  ;;  %v8647_v44 = vld [vmem:[%s12158_s17 + $0x3c0] sm:$0xff] }
 0x94e   : > { %8823 = vmatprep.subr.bf16.mxu0 %v11094_v43  ;;  %9058 = vmatprep.subr.bf16.mxu1 %v11126_v4  ;;  %v8648_v19 = vld [vmem:[%s12158_s17 + $0x3e0] sm:$0xff]  ;;  %v8882_v43 = vld [vmem:[%s12158_s17 + $0x3c8] sm:$0xff] }
 0x94f   : > { %v11110_v4 = vcombine.high %v8647_v44, %v8648_v19 }
 0x951   : > { %8824 = vmatpush1.bf16.msra.mxu0 %v11093_v1  ;;  %9059 = vmatpush1.bf16.msra.mxu1 %v11125_v38  ;;  %v8883_v1 = vld [vmem:[%s12158_s17 + $0x3e8] sm:$0xff]  ;;  %v11109_v38 = vcombine.low %v8647_v44, %v8648_v19 }
 0x952   : > { %8825 = vmatprep.subr.bf16.mxu0 %v11096_v25  ;;  %9060 = vmatprep.subr.bf16.mxu1 %v11128_v48  ;;  %v11141_v2 = vcombine.low %v8882_v43, %v8883_v1  ;;  %v11142_v52 = vcombine.high %v8882_v43, %v8883_v1  ;;  %v14865_v25 = vld [vmem:[%s12158_s17 + $0x30] sm:$0xff] }
 0x953   : > { %v11143_v48 = vcombine.low %v14862_v37, %v14865_v25 }
 0x955   : > { %8826 = vmatpush1.bf16.msra.mxu0 %v11095_v53  ;;  %9061 = vmatpush1.bf16.msra.mxu1 %v11127_v20  ;;  %v11144_v53 = vcombine.high %v14862_v37, %v14865_v25  ;;  %v14873_v20 = vld [vmem:[%s12158_s17 + $0x38] sm:$0xff] }
 0x956   : > { %8827 = vmatprep.subr.bf16.mxu0 %v11098_v21  ;;  %9062 = vmatprep.subr.bf16.mxu1 %v11130_v12  ;;  %v11175_v22 = vcombine.low %v14868_v63, %v14873_v20  ;;  %v11176_v29 = vcombine.high %v14868_v63, %v14873_v20  ;;  %v9328_v37 = vld [vmem:[%s12158_s17 + $0xd8] sm:$0xff] }
 0x957   : > { %v9329_v25 = vld [vmem:[%s12158_s17 + $0xf8] sm:$0xff] }
 0x959   : > { %8828 = vmatpush1.bf16.msra.mxu0 %v11097_v15  ;;  %9063 = vmatpush1.bf16.msra.mxu1 %v11129_v9  ;;  %v15824_v9 = vld [vmem:[#allocation44_spill] sm:$0xff] }
 0x95a   : > { %8829 = vmatprep.subr.bf16.mxu0 %v11100_v30  ;;  %9064 = vmatprep.subr.bf16.mxu1 %v11132_v46 }
 0x95d   : > { %8830 = vmatpush1.bf16.msra.mxu0 %v11099_v3  ;;  %9065 = vmatpush1.bf16.msra.mxu1 %v11131_v32 }
 0x95e   : > { %8831 = vmatprep.subr.bf16.mxu0 %v11102_v31  ;;  %9066 = vmatprep.subr.bf16.mxu1 %v11134_v45 }
 0x961   : > { %8832 = vmatpush1.bf16.msra.mxu0 %v11101_v11  ;;  %9067 = vmatpush1.bf16.msra.mxu1 %v11133_v42 }
 0x962   : > { %8833 = vmatprep.subr.bf16.mxu0 %v11104_v35  ;;  %9068 = vmatprep.subr.bf16.mxu1 %v11136_v0 }
 0x965   : > { %8834 = vmatpush1.bf16.msra.mxu0 %v11103_v50  ;;  %9069 = vmatpush1.bf16.msra.mxu1 %v11135_v36  ;;  %v15829_v36 = vld [vmem:[#allocation97_spill] sm:$0xff] }
 0x966   : > { %8835 = vmatprep.subr.bf16.mxu0 %v11106_v33  ;;  %9070 = vmatprep.subr.bf16.mxu1 %v11138_v13 }
 0x969   : > { %8836 = vmatpush1.bf16.msra.mxu0 %v11105_v58  ;;  %9071 = vmatpush1.bf16.msra.mxu1 %v11137_v49 }
 0x96a   : > { %8837 = vmatprep.subr.bf16.mxu0 %v11108_v8  ;;  %9072 = vmatprep.subr.bf16.mxu1 %v11140_v17 }
 0x96d   : > { %8838 = vmatpush1.bf16.msra.mxu0 %v11107_v41  ;;  %9073 = vmatpush1.bf16.msra.mxu1 %v11139_v39 }
 0x96e   : > { %8839 = vmatprep.subr.bf16.mxu0 %v11110_v4  ;;  %9074 = vmatprep.subr.bf16.mxu1 %v11142_v52 }
 0x971   : > { %8840 = vmatpush1.bf16.msra.mxu0 %v11109_v38  ;;  %9075 = vmatpush1.bf16.msra.mxu1 %v11141_v2 }
 0x972   : > { %9279 = vmatprep.subr.bf16.mxu0 %v11144_v53  ;;  %9514 = vmatprep.subr.bf16.mxu1 %v11176_v29 }
 0x9c7   : > { %v7855_v54 = vpop.f32.mrb[80].mxu0  ;;  %v8090_v21 = vpop.f32.mrb[80].mxu1 }
 0x9c8   : > { %v7862_v15 = vadd.f32 %v7855_v54, %v15823_v40  ;;  %v8097_v12 = vadd.f32 %v8090_v21, %v15824_v9  ;;  %v7857_v61 = vpop.f32.mrb[81].mxu0  ;;  %v8092_v23 = vpop.f32.mrb[81].mxu1 }
 0x9c9   : > { %v7863_v30 = vadd.f32 %v7857_v61, %v15825_v28  ;;  %v8098_v3 = vadd.f32 %v8092_v23, %v15826_v47  ;;  %v7859_v32 = vpop.f32.mrb[82].mxu0  ;;  %v8094_v46 = vpop.f32.mrb[82].mxu1  ;;  %v9089_v47 = vld [vmem:[%s12158_s17 + $0x50] sm:$0xff] }
 0x9ca   : > { %v7860_v57 = vpop.f32.mrb[83].mxu0  ;;  %v8095_v26 = vpop.f32.mrb[83].mxu1  ;;  %v8577_v59 = vmul.f32 0.5, %v8097_v12  ;;  %v8569_v62 = vmul.f32 0.5, %v7862_v15  ;;  %v9090_v32 = vld [vmem:[%s12158_s17 + $0x70] sm:$0xff]  ;;  %v9324_v46 = vld [vmem:[%s12158_s17 + $0x58] sm:$0xff] }
 0x9cb   : > { %v8578_v31 = vmul.f32 0.5, %v8098_v3  ;;  %v8570_v11 = vmul.f32 0.5, %v7863_v30  ;;  %v9325_v57 = vld [vmem:[%s12158_s17 + $0x78] sm:$0xff] }
 0x9cc   : > { %11519 = vtanh.f32 %v8577_v59  ;;  %v9091_v59 = vld [vmem:[%s12158_s17 + $0x90] sm:$0xff] }
 0x9cd   : > { %11521 = vtanh.f32 %v8578_v31  ;;  %v11146_v31 = vcombine.high %v9089_v47, %v9090_v32 }
 0x9ce   : > { %11523 = vtanh.f32 %v8569_v62  ;;  %v11178_v62 = vcombine.high %v9324_v46, %v9325_v57 }
 0x9cf   : > { %11525 = vtanh.f32 %v8570_v11  ;;  %v9092_v11 = vld [vmem:[%s12158_s17 + $0xb0] sm:$0xff] }
 0x9d0   : > { %v11147_v63 = vcombine.low %v9091_v59, %v9092_v11 }
 0x9d6   : > { %v11520_v34 = vpop.eup %11519 }
 0x9d7   : > { %v11522_v13 = vpop.eup %11521  ;;  %v8581_v7 = vmul.f32 0.5, %v11520_v34 }
 0x9d8   : > { %v11524_v18 = vpop.eup %11523  ;;  %v8582_v24 = vmul.f32 0.5, %v11522_v13  ;;  %v9098_v13 = vld [vmem:[%s12158_s17 + $0x170] sm:$0xff] }
 0x9d9   : > { %v11526_v51 = vpop.eup %11525  ;;  %v8573_v39 = vmul.f32 0.5, %v11524_v18  ;;  %v8583_v44 = vadd.f32 0.5, %v8581_v7  ;;  %v9332_v18 = vld [vmem:[%s12158_s17 + $0x158] sm:$0xff] }
 0x9da   : > { %v8574_v17 = vmul.f32 0.5, %v11526_v51  ;;  %v8584_v19 = vadd.f32 0.5, %v8582_v24  ;;  %v9333_v51 = vld [vmem:[%s12158_s17 + $0x178] sm:$0xff] }
 0x9db   : > { %v8575_v43 = vadd.f32 0.5, %v8573_v39  ;;  %v8595_v2 = vmul.f32 %v8583_v44, %v14722_v55  ;;  %v9099_v39 = vld [vmem:[%s12158_s17 + $0x190] sm:$0xff]  ;;  %v9334_v44 = vld [vmem:[%s12158_s17 + $0x198] sm:$0xff] }
 0x9dc   : > { %v8576_v1 = vadd.f32 0.5, %v8574_v17  ;;  %v8596_v53 = vmul.f32 %v8584_v19, %v14724_v5  ;;  %v9100_v17 = vld [vmem:[%s12158_s17 + $0x1b0] sm:$0xff]  ;;  %v9335_v19 = vld [vmem:[%s12158_s17 + $0x1b8] sm:$0xff] }
 0xa07   : > { %v8325_v42 = vpop.f32.mrb[84].mxu0  ;;  %v8560_v45 = vpop.f32.mrb[84].mxu1 }
 0xa08   : > { %v8332_v56 = vadd.f32 %v8325_v42, %v15827_v16  ;;  %v8567_v35 = vadd.f32 %v8560_v45, %v15828_v60  ;;  %v8327_v14 = vpop.f32.mrb[85].mxu0  ;;  %v8562_v50 = vpop.f32.mrb[85].mxu1  ;;  %v9326_v42 = vld [vmem:[%s12158_s17 + $0x98] sm:$0xff]  ;;  %v11145_v16 = vcombine.low %v9089_v47, %v9090_v32  ;;  %v11148_v60 = vcombine.high %v9091_v59, %v9092_v11 }
 0xa09   : > { %v8333_v0 = vadd.f32 %v8327_v14, %v15829_v36  ;;  %v8568_v27 = vadd.f32 %v8562_v50, %v15830_v6  ;;  %v8329_v10 = vpop.f32.mrb[86].mxu0  ;;  %v8564_v33 = vpop.f32.mrb[86].mxu1  ;;  %v9327_v45 = vld [vmem:[%s12158_s17 + $0xb8] sm:$0xff]  ;;  %v9093_v14 = vld [vmem:[%s12158_s17 + $0xd0] sm:$0xff] }
 0xa0a   : > { %11527 = vtanh.f32 %v8332_v56  ;;  %v8330_v58 = vpop.f32.mrb[87].mxu0  ;;  %v8565_v49 = vpop.f32.mrb[87].mxu1  ;;  %v8587_v8 = vmul.f32 0.5, %v8567_v35  ;;  %v11177_v56 = vcombine.low %v9324_v46, %v9325_v57  ;;  %v11180_v35 = vcombine.high %v9326_v42, %v9327_v45  ;;  %v9094_v50 = vld [vmem:[%s12158_s17 + $0xf0] sm:$0xff]  ;;  %v9330_v6 = vld [vmem:[%s12158_s17 + $0x118] sm:$0xff] }
 0xa0b   : > { %11529 = vtanh.f32 %v8333_v0  ;;  %v8588_v41 = vmul.f32 0.5, %v8568_v27  ;;  %v11179_v20 = vcombine.low %v9326_v42, %v9327_v45  ;;  %v9095_v36 = vld [vmem:[%s12158_s17 + $0x110] sm:$0xff]  ;;  %v9331_v27 = vld [vmem:[%s12158_s17 + $0x138] sm:$0xff]  ;;  %v11149_v10 = vcombine.low %v9093_v14, %v9094_v50 }
 0xa0c   : > { %11531 = vtanh.f32 %v8587_v8  ;;  %v9096_v0 = vld [vmem:[%s12158_s17 + $0x130] sm:$0xff]  ;;  %v11181_v33 = vcombine.low %v9328_v37, %v9329_v25  ;;  %v11184_v58 = vcombine.high %v9330_v6, %v9331_v27  ;;  %v11183_v8 = vcombine.low %v9330_v6, %v9331_v27  ;;  %v9341_v59 = vld [vmem:[%s12158_s17 + $0x278] sm:$0xff] }
 0xa0d   : > { %11533 = vtanh.f32 %v8588_v41  ;;  %v11152_v34 = vcombine.high %v9095_v36, %v9096_v0  ;;  %v9097_v49 = vld [vmem:[%s12158_s17 + $0x150] sm:$0xff]  ;;  %v11151_v7 = vcombine.low %v9095_v36, %v9096_v0  ;;  %v11186_v41 = vcombine.high %v9332_v18, %v9333_v51 }
 0xa0e   : > { %v11154_v24 = vcombine.high %v9097_v49, %v9098_v13  ;;  %v9105_v46 = vld [vmem:[%s12158_s17 + $0x250] sm:$0xff] }
 0xa0f   : > { %v9106_v57 = vld [vmem:[%s12158_s17 + $0x270] sm:$0xff] }
 0xa10   : > { %v11162_v11 = vcombine.high %v9105_v46, %v9106_v57  ;;  %v9107_v45 = vld [vmem:[%s12158_s17 + $0x290] sm:$0xff] }
 0xa11   : > { %v9111_v27 = vld [vmem:[%s12158_s17 + $0x310] sm:$0xff] }
 0xa14   : > { %v11528_v4 = vpop.eup %11527 }
 0xa15   : > { %v11530_v38 = vpop.eup %11529  ;;  %v8597_v52 = vmul.f32 %v11528_v4, %v8575_v43  ;;  %v11153_v43 = vcombine.low %v9097_v49, %v9098_v13  ;;  %v11185_v4 = vcombine.low %v9332_v18, %v9333_v51  ;;  %v9113_v51 = vld [vmem:[%s12158_s17 + $0x350] sm:$0xff] }
 0xa16   : > { %v8598_v29 = vmul.f32 %v11530_v38, %v8576_v1  ;;  %v11532_v40 = vpop.eup %11531  ;;  %v11156_v1 = vcombine.high %v9099_v39, %v9100_v17  ;;  %v11188_v38 = vcombine.high %v9334_v44, %v9335_v19 }
 0xa17   : > { %v14891_v54 = vadd.f32 %v8597_v52, %v8595_v2  ;;  %v11534_v15 = vpop.eup %11533  ;;  %v8591_v55 = vmul.f32 0.5, %v11532_v40  ;;  %v9101_v2 = vld [vmem:[%s12158_s17 + $0x1d0] sm:$0xff]  ;;  %v11155_v40 = vcombine.low %v9099_v39, %v9100_v17 }
 0xa18   : > { %v14893_v21 = vadd.f32 %v8598_v29, %v8596_v53  ;;  %v8592_v9 = vmul.f32 0.5, %v11534_v15  ;;  %v9102_v52 = vld [vmem:[%s12158_s17 + $0x1f0] sm:$0xff]  ;;  %v9336_v53 = vld [vmem:[%s12158_s17 + $0x1d8] sm:$0xff]  ;;  %v11187_v15 = vcombine.low %v9334_v44, %v9335_v19 }
 0xa19   : > { %11535 = vtanh.f32 %v14891_v54  ;;  %v8593_v12 = vadd.f32 0.5, %v8591_v55  ;;  %v9337_v29 = vld [vmem:[%s12158_s17 + $0x1f8] sm:$0xff]  ;;  %v11158_v55 = vcombine.high %v9101_v2, %v9102_v52  ;;  %v9115_v19 = vld [vmem:[%s12158_s17 + $0x390] sm:$0xff] }
 0xa1a   : > { %11537 = vtanh.f32 %v14893_v21  ;;  %v8594_v61 = vadd.f32 0.5, %v8592_v9  ;;  %v11190_v9 = vcombine.high %v9336_v53, %v9337_v29 }
 0xa23   : > { %v11536_v5 = vpop.eup %11535 }
 0xa24   : > { %v11538_v23 = vpop.eup %11537  ;;  %v8603_v28 = vmul.f32 %v11536_v5, %v8593_v12  ;;  %v9103_v12 = vld [vmem:[%s12158_s17 + $0x210] sm:$0xff] }
 0xa25   : > { %v8604_v30 = vmul.f32 %v11538_v23, %v8594_v61  ;;  %v9104_v5 = vld [vmem:[%s12158_s17 + $0x230] sm:$0xff]  ;;  %v9338_v61 = vld [vmem:[%s12158_s17 + $0x218] sm:$0xff] }
 0xa26   : > { %v14898_v3 = vpack.c.bf16 %v8603_v28, %v8603_v28  ;;  %v9339_v23 = vld [vmem:[%s12158_s17 + $0x238] sm:$0xff]  ;;  %v11157_v28 = vcombine.low %v9101_v2, %v9102_v52  ;;  %v11160_v47 = vcombine.high %v9103_v12, %v9104_v5 }
 0xa27   : > { %v8606_v26 = vpack.c.bf16 %v8604_v30, %v8604_v30  ;;  %v11189_v30 = vcombine.low %v9336_v53, %v9337_v29  ;;  %v11192_v32 = vcombine.high %v9338_v61, %v9339_v23  ;;  %v9117_v29 = vld [vmem:[%s12158_s17 + $0x3d0] sm:$0xff] }
 0xa28   : > { %8607 = vst [vmem:[#allocation2 + $0x30] sm:$0xf] %v14898_v3 }
 0xa29   : > { %8608 = vst [vmem:[#allocation2 + $0x38] sm:$0xf] %v8606_v26  ;;  %8841 = vmatprep.mubr.bf16.mxu0 %v8606_v26  ;;  %9076 = vmatprep.mubr.bf16.mxu1 %v8606_v26 }
 0xa2a   : > { %8842 = vmatmul.mubr.bf16.vlgmr.msra.gmra.mrb[88].mxu0 %v14898_v3  ;;  %9077 = vmatmul.mubr.bf16.vlgmr.msra.gmra.mrb[88].mxu1 %v14898_v3 }
 0xa2b   : > { %9280 = vmatpush1.bf16.msra.mxu0 %v11143_v48  ;;  %9515 = vmatpush1.bf16.msra.mxu1 %v11175_v22  ;;  %v11150_v48 = vcombine.high %v9093_v14, %v9094_v50  ;;  %v11182_v22 = vcombine.high %v9328_v37, %v9329_v25  ;;  %v9109_v25 = vld [vmem:[%s12158_s17 + $0x2d0] sm:$0xff] }
 0xa2c   : > { %9311 = vmatprep.mubr.bf16.mxu0 %v8606_v26  ;;  %9546 = vmatprep.mubr.bf16.mxu1 %v8606_v26  ;;  %v9340_v26 = vld [vmem:[%s12158_s17 + $0x258] sm:$0xff] }
 0xa2d   : > { %9281 = vmatprep.subr.bf16.mxu0 %v11146_v31  ;;  %9516 = vmatprep.subr.bf16.mxu1 %v11178_v62  ;;  %v11159_v31 = vcombine.low %v9103_v12, %v9104_v5  ;;  %v11191_v62 = vcombine.low %v9338_v61, %v9339_v23  ;;  %v11194_v42 = vcombine.high %v9340_v26, %v9341_v59 }
 0xa2e   : > { %v11193_v14 = vcombine.low %v9340_v26, %v9341_v59 }
 0xa2f   : > { %9282 = vmatpush1.bf16.msra.mxu0 %v11145_v16  ;;  %9517 = vmatpush1.bf16.msra.mxu1 %v11177_v56  ;;  %v9108_v16 = vld [vmem:[%s12158_s17 + $0x2b0] sm:$0xff]  ;;  %v9342_v56 = vld [vmem:[%s12158_s17 + $0x298] sm:$0xff] }
 0xa30   : > { %9283 = vmatprep.subr.bf16.mxu0 %v11148_v60  ;;  %9518 = vmatprep.subr.bf16.mxu1 %v11180_v35  ;;  %v9343_v60 = vld [vmem:[%s12158_s17 + $0x2b8] sm:$0xff]  ;;  %v11161_v35 = vcombine.low %v9105_v46, %v9106_v57  ;;  %v11164_v50 = vcombine.high %v9107_v45, %v9108_v16  ;;  %v15832_v57 = vld [vmem:[#allocation48_spill] sm:$0xff] }
 0xa31   : > { %v11196_v37 = vcombine.high %v9342_v56, %v9343_v60  ;;  %v11195_v36 = vcombine.low %v9342_v56, %v9343_v60 }
 0xa33   : > { %9284 = vmatpush1.bf16.msra.mxu0 %v11147_v63  ;;  %9519 = vmatpush1.bf16.msra.mxu1 %v11179_v20  ;;  %v9110_v63 = vld [vmem:[%s12158_s17 + $0x2f0] sm:$0xff]  ;;  %v9344_v20 = vld [vmem:[%s12158_s17 + $0x2d8] sm:$0xff] }
 0xa34   : > { %9285 = vmatprep.subr.bf16.mxu0 %v11150_v48  ;;  %9520 = vmatprep.subr.bf16.mxu1 %v11182_v22  ;;  %v9345_v48 = vld [vmem:[%s12158_s17 + $0x2f8] sm:$0xff]  ;;  %v11163_v22 = vcombine.low %v9107_v45, %v9108_v16  ;;  %v11166_v0 = vcombine.high %v9109_v25, %v9110_v63 }
 0xa35   : > { %v11198_v6 = vcombine.high %v9344_v20, %v9345_v48  ;;  %v11197_v49 = vcombine.low %v9344_v20, %v9345_v48  ;;  %v15835_v20 = vld [vmem:[#allocation100_spill] sm:$0xff] }
 0xa37   : > { %9286 = vmatpush1.bf16.msra.mxu0 %v11149_v10  ;;  %9521 = vmatpush1.bf16.msra.mxu1 %v11181_v33  ;;  %v9112_v10 = vld [vmem:[%s12158_s17 + $0x330] sm:$0xff]  ;;  %v9346_v33 = vld [vmem:[%s12158_s17 + $0x318] sm:$0xff] }
 0xa38   : > { %9287 = vmatprep.subr.bf16.mxu0 %v11152_v34  ;;  %9522 = vmatprep.subr.bf16.mxu1 %v11184_v58  ;;  %v9347_v34 = vld [vmem:[%s12158_s17 + $0x338] sm:$0xff]  ;;  %v11165_v58 = vcombine.low %v9109_v25, %v9110_v63  ;;  %v11168_v13 = vcombine.high %v9111_v27, %v9112_v10 }
 0xa39   : > { %v11200_v18 = vcombine.high %v9346_v33, %v9347_v34  ;;  %v11199_v39 = vcombine.low %v9346_v33, %v9347_v34  ;;  %v15838_v33 = vld [vmem:[#allocation107_spill] sm:$0xff] }
 0xa3b   : > { %9288 = vmatpush1.bf16.msra.mxu0 %v11151_v7  ;;  %9523 = vmatpush1.bf16.msra.mxu1 %v11183_v8  ;;  %v9114_v7 = vld [vmem:[%s12158_s17 + $0x370] sm:$0xff]  ;;  %v9348_v8 = vld [vmem:[%s12158_s17 + $0x358] sm:$0xff] }
 0xa3c   : > { %9289 = vmatprep.subr.bf16.mxu0 %v11154_v24  ;;  %9524 = vmatprep.subr.bf16.mxu1 %v11186_v41  ;;  %v9349_v24 = vld [vmem:[%s12158_s17 + $0x378] sm:$0xff]  ;;  %v11167_v41 = vcombine.low %v9111_v27, %v9112_v10  ;;  %v11170_v17 = vcombine.high %v9113_v51, %v9114_v7  ;;  %v15837_v27 = vld [vmem:[#allocation104_spill] sm:$0xff] }
 0xa3d   : > { %v11202_v44 = vcombine.high %v9348_v8, %v9349_v24  ;;  %v11201_v2 = vcombine.low %v9348_v8, %v9349_v24 }
 0xa3f   : > { %9290 = vmatpush1.bf16.msra.mxu0 %v11153_v43  ;;  %9525 = vmatpush1.bf16.msra.mxu1 %v11185_v4  ;;  %v9116_v43 = vld [vmem:[%s12158_s17 + $0x3b0] sm:$0xff]  ;;  %v9350_v4 = vld [vmem:[%s12158_s17 + $0x398] sm:$0xff] }
 0xa40   : > { %9291 = vmatprep.subr.bf16.mxu0 %v11156_v1  ;;  %9526 = vmatprep.subr.bf16.mxu1 %v11188_v38  ;;  %v9351_v1 = vld [vmem:[%s12158_s17 + $0x3b8] sm:$0xff]  ;;  %v11169_v38 = vcombine.low %v9113_v51, %v9114_v7  ;;  %v11172_v52 = vcombine.high %v9115_v19, %v9116_v43 }
 0xa41   : > { %v11204_v53 = vcombine.high %v9350_v4, %v9351_v1  ;;  %v11203_v12 = vcombine.low %v9350_v4, %v9351_v1 }
 0xa43   : > { %9292 = vmatpush1.bf16.msra.mxu0 %v11155_v40  ;;  %9527 = vmatpush1.bf16.msra.mxu1 %v11187_v15  ;;  %v9118_v40 = vld [vmem:[%s12158_s17 + $0x3f0] sm:$0xff]  ;;  %v9352_v15 = vld [vmem:[%s12158_s17 + $0x3d8] sm:$0xff] }
 0xa44   : > { %9293 = vmatprep.subr.bf16.mxu0 %v11158_v55  ;;  %9528 = vmatprep.subr.bf16.mxu1 %v11190_v9  ;;  %v9353_v55 = vld [vmem:[%s12158_s17 + $0x3f8] sm:$0xff]  ;;  %v11171_v9 = vcombine.low %v9115_v19, %v9116_v43  ;;  %v11174_v5 = vcombine.high %v9117_v29, %v9118_v40  ;;  %v11173_v23 = vcombine.low %v9117_v29, %v9118_v40 }
 0xa45   : > { %v11206_v61 = vcombine.high %v9352_v15, %v9353_v55 }
 0xa47   : > { %9294 = vmatpush1.bf16.msra.mxu0 %v11157_v28  ;;  %9529 = vmatpush1.bf16.msra.mxu1 %v11189_v30  ;;  %v11205_v28 = vcombine.low %v9352_v15, %v9353_v55 }
 0xa48   : > { %9295 = vmatprep.subr.bf16.mxu0 %v11160_v47  ;;  %9530 = vmatprep.subr.bf16.mxu1 %v11192_v32  ;;  %v15831_v32 = vld [vmem:[#allocation45_spill] sm:$0xff] }
 0xa4b   : > { %9296 = vmatpush1.bf16.msra.mxu0 %v11159_v31  ;;  %9531 = vmatpush1.bf16.msra.mxu1 %v11191_v62  ;;  %v15833_v62 = vld [vmem:[#allocation47_spill] sm:$0xff] }
 0xa4c   : > { %9297 = vmatprep.subr.bf16.mxu0 %v11162_v11  ;;  %9532 = vmatprep.subr.bf16.mxu1 %v11194_v42  ;;  %v15834_v42 = vld [vmem:[#allocation49_spill] sm:$0xff] }
 0xa4f   : > { %9298 = vmatpush1.bf16.msra.mxu0 %v11161_v35  ;;  %9533 = vmatpush1.bf16.msra.mxu1 %v11193_v14 }
 0xa50   : > { %9299 = vmatprep.subr.bf16.mxu0 %v11164_v50  ;;  %9534 = vmatprep.subr.bf16.mxu1 %v11196_v37 }
 0xa53   : > { %9300 = vmatpush1.bf16.msra.mxu0 %v11163_v22  ;;  %9535 = vmatpush1.bf16.msra.mxu1 %v11195_v36  ;;  %v15836_v22 = vld [vmem:[#allocation105_spill] sm:$0xff] }
 0xa54   : > { %9301 = vmatprep.subr.bf16.mxu0 %v11166_v0  ;;  %9536 = vmatprep.subr.bf16.mxu1 %v11198_v6 }
 0xa57   : > { %9302 = vmatpush1.bf16.msra.mxu0 %v11165_v58  ;;  %9537 = vmatpush1.bf16.msra.mxu1 %v11197_v49 }
 0xa58   : > { %9303 = vmatprep.subr.bf16.mxu0 %v11168_v13  ;;  %9538 = vmatprep.subr.bf16.mxu1 %v11200_v18 }
 0xa5b   : > { %9304 = vmatpush1.bf16.msra.mxu0 %v11167_v41  ;;  %9539 = vmatpush1.bf16.msra.mxu1 %v11199_v39 }
 0xa5c   : > { %9305 = vmatprep.subr.bf16.mxu0 %v11170_v17  ;;  %9540 = vmatprep.subr.bf16.mxu1 %v11202_v44 }
 0xa5f   : > { %9306 = vmatpush1.bf16.msra.mxu0 %v11169_v38  ;;  %9541 = vmatpush1.bf16.msra.mxu1 %v11201_v2 }
 0xa60   : > { %9307 = vmatprep.subr.bf16.mxu0 %v11172_v52  ;;  %9542 = vmatprep.subr.bf16.mxu1 %v11204_v53 }
 0xa63   : > { %9308 = vmatpush1.bf16.msra.mxu0 %v11171_v9  ;;  %9543 = vmatpush1.bf16.msra.mxu1 %v11203_v12 }
 0xa64   : > { %9309 = vmatprep.subr.bf16.mxu0 %v11174_v5  ;;  %9544 = vmatprep.subr.bf16.mxu1 %v11206_v61 }
 0xa67   : > { %9310 = vmatpush1.bf16.msra.mxu0 %v11173_v23  ;;  %9545 = vmatpush1.bf16.msra.mxu1 %v11205_v28 }
 0xa6a   : > { %9312 = vmatmul.mubr.bf16.vlgmr.msra.gmra.mrb[92].mxu0 %v14898_v3  ;;  %9547 = vmatmul.mubr.bf16.vlgmr.msra.gmra.mrb[92].mxu1 %v14898_v3 }
 0xafd   : > { %v8843_v30 = vpop.f32.mrb[88].mxu0  ;;  %v9078_v47 = vpop.f32.mrb[88].mxu1 }
 0xafe   : > { %v8850_v46 = vadd.f32 %v8843_v30, %v15831_v32  ;;  %v9085_v26 = vadd.f32 %v9078_v47, %v15832_v57  ;;  %v8845_v59 = vpop.f32.mrb[89].mxu0  ;;  %v9080_v31 = vpop.f32.mrb[89].mxu1 }
 0xaff   : > { %v8851_v11 = vadd.f32 %v8845_v59, %v15833_v62  ;;  %v9086_v45 = vadd.f32 %v9080_v31, %v15834_v42  ;;  %v8847_v16 = vpop.f32.mrb[90].mxu0  ;;  %v9082_v56 = vpop.f32.mrb[90].mxu1  ;;  %v11847_v42 = vmov (!%p11207_p13), 0.0  }
 0xb00   : > { %v8848_v60 = vpop.f32.mrb[91].mxu0  ;;  %v9083_v35 = vpop.f32.mrb[91].mxu1  ;;  %v9565_v14 = vmul.f32 0.5, %v9085_v26  ;;  %v9557_v37 = vmul.f32 0.5, %v8850_v46  ;;  %11270 = vmatprep.subr.bf16.mxu1 (!%p11207_p13), %v11847_v42  ;;  %v11562_v16 = vld [vmem:[#allocation9 + $0x8] sm:$0xff] (!%p11207_p13)   ;;  %v11563_v56 = vld [vmem:[#allocation9 + $0x50] sm:$0xff] (!%p11207_p13)   ;;  %11286 = vmatprep.mubr.msk.bf16.mxu1 (!%p11207_p13), %vm11848_vm0, %v11847_v42 }
 0xb01   : > { %v9566_v50 = vmul.f32 0.5, %v9086_v45  ;;  %v9558_v3 = vmul.f32 0.5, %v8851_v11  ;;  %v11560_v11 = vld [vmem:[#allocation9] sm:$0xff] (!%p11207_p13)   ;;  %v11561_v45 = vld [vmem:[#allocation9 + $0x48] sm:$0xff] (!%p11207_p13)   ;;  %v11564_v60 = vld [vmem:[#allocation9 + $0x10] sm:$0xff] (!%p11207_p13)  }
 0xb02   : > { %11539 = vtanh.f32 %v9565_v14  ;;  %v11565_v35 = vld [vmem:[#allocation9 + $0x58] sm:$0xff] (!%p11207_p13)  }
 0xb03   : > { %11541 = vtanh.f32 %v9566_v50  ;;  %v11566_v14 = vld [vmem:[#allocation9 + $0x18] sm:$0xff] (!%p11207_p13)   ;;  %v11567_v50 = vld [vmem:[#allocation9 + $0x60] sm:$0xff] (!%p11207_p13)  }
 0xb04   : > { %11543 = vtanh.f32 %v9557_v37  ;;  %v11568_v37 = vld [vmem:[#allocation9 + $0x20] sm:$0xff] (!%p11207_p13)  }
 0xb05   : > { %11545 = vtanh.f32 %v9558_v3  ;;  %v11569_v3 = vld [vmem:[#allocation9 + $0x68] sm:$0xff] (!%p11207_p13)  }
 0xb0c   : > { %v11540_v13 = vpop.eup %11539 }
 0xb0d   : > { %v11542_v7 = vpop.eup %11541  ;;  %v9569_v41 = vmul.f32 0.5, %v11540_v13  ;;  %v11208_v13 = vld [vmem:[#allocation11] ss:$0 sm:$0xff] (!%p11207_p13) }
 0xb0e   : > { %v11544_v8 = vpop.eup %11543  ;;  %v9570_v17 = vmul.f32 0.5, %v11542_v7 }
 0xb0f   : > { %v11546_v24 = vpop.eup %11545  ;;  %v9561_v19 = vmul.f32 0.5, %v11544_v8  ;;  %v9571_v4 = vadd.f32 0.5, %v9569_v41 }
 0xb10   : > { %v9562_v43 = vmul.f32 0.5, %v11546_v24  ;;  %v9572_v1 = vadd.f32 0.5, %v9570_v17 }
 0xb11   : > { %v9563_v38 = vadd.f32 0.5, %v9561_v19  ;;  %v9583_v29 = vmul.f32 %v9571_v4, %v14891_v54 }
 0xb12   : > { %v9564_v52 = vadd.f32 0.5, %v9562_v43  ;;  %v9584_v15 = vmul.f32 %v9572_v1, %v14893_v21  ;;  %v11559_v21 = vld [vmem:[#allocation9 + $0x40] sm:$0xff] (!%p11207_p13)  }
 0xb13   : > { %11239 = vmatprep.subr.bf16.mxu0 (!%p11207_p13), %v11559_v21 }
 0xb14   : > { %11240 = vmatpush3.bf16.msra.mxu0 (!%p11207_p13), %v11560_v11 }
 0xb15   : > { %11241 = vmatprep.subr.bf16.mxu0 (!%p11207_p13), %v11561_v45 }
 0xb18   : > { %11242 = vmatpush3.bf16.msra.mxu0 (!%p11207_p13), %v11562_v16 }
 0xb19   : > { %11243 = vmatprep.subr.bf16.mxu0 (!%p11207_p13), %v11563_v56 }
 0xb1c   : > { %11244 = vmatpush3.bf16.msra.mxu0 (!%p11207_p13), %v11564_v60 }
 0xb1d   : > { %11245 = vmatprep.subr.bf16.mxu0 (!%p11207_p13), %v11565_v35 }
 0xb20   : > { %11246 = vmatpush3.bf16.msra.mxu0 (!%p11207_p13), %v11566_v14 }
 0xb21   : > { %11247 = vmatprep.subr.bf16.mxu0 (!%p11207_p13), %v11567_v50 }
 0xb24   : > { %11248 = vmatpush3.bf16.msra.mxu0 (!%p11207_p13), %v11568_v37 }
 0xb25   : > { %11249 = vmatprep.subr.bf16.mxu0 (!%p11207_p13), %v11569_v3 }
 0xb3d   : > { %v9313_v25 = vpop.f32.mrb[92].mxu0  ;;  %v9548_v63 = vpop.f32.mrb[92].mxu1 }
 0xb3e   : > { %v9320_v48 = vadd.f32 %v9313_v25, %v15835_v20  ;;  %v9555_v36 = vadd.f32 %v9548_v63, %v15836_v22  ;;  %v9315_v0 = vpop.f32.mrb[93].mxu0  ;;  %v9550_v6 = vpop.f32.mrb[93].mxu1  ;;  %v11575_v25 = vld [vmem:[#allocation12] sm:$0xff] (!%p11207_p13)   ;;  %v11576_v20 = vld [vmem:[#allocation12 + $0x8] sm:$0xff] (!%p11207_p13)   ;;  %v11577_v22 = vld [vmem:[#allocation12 + $0x10] sm:$0xff] (!%p11207_p13)  }
 0xb3f   : > { %v9321_v10 = vadd.f32 %v9315_v0, %v15837_v27  ;;  %v9556_v34 = vadd.f32 %v9550_v6, %v15838_v33  ;;  %v9317_v58 = vpop.f32.mrb[94].mxu0  ;;  %v9552_v49 = vpop.f32.mrb[94].mxu1  ;;  %v11570_v63 = vld [vmem:[#allocation9 + $0x28] sm:$0xff] (!%p11207_p13)   ;;  %11271 = vmatpush3.bf16.msra.mxu1 (!%p11207_p13), %v11575_v25  ;;  %v11573_v0 = vld [vmem:[#allocation9 + $0x78] sm:$0xff] (!%p11207_p13)  }
 0xb40   : > { %11547 = vtanh.f32 %v9320_v48  ;;  %v9318_v18 = vpop.f32.mrb[95].mxu0  ;;  %v9553_v51 = vpop.f32.mrb[95].mxu1  ;;  %v9575_v39 = vmul.f32 0.5, %v9555_v36  ;;  %v11571_v48 = vld [vmem:[#allocation9 + $0x70] sm:$0xff] (!%p11207_p13)   ;;  %11272 = vmatprep.subr.bf16.mxu1 (!%p11207_p13), %v11847_v42  ;;  %11250 = vmatpush3.bf16.msra.mxu0 (!%p11207_p13), %v11570_v63  ;;  %v11578_v6 = vld [vmem:[#allocation12 + $0x18] sm:$0xff] (!%p11207_p13)  }
 0xb41   : > { %11549 = vtanh.f32 %v9321_v10  ;;  %v9576_v44 = vmul.f32 0.5, %v9556_v34  ;;  %v11572_v36 = vld [vmem:[#allocation9 + $0x30] sm:$0xff] (!%p11207_p13)   ;;  %11251 = vmatprep.subr.bf16.mxu0 (!%p11207_p13), %v11571_v48  ;;  %v11574_v27 = vld [vmem:[#allocation9 + $0x38] sm:$0xff] (!%p11207_p13)   ;;  %v11579_v10 = vld [vmem:[#allocation12 + $0x20] sm:$0xff] (!%p11207_p13)  }
 0xb42   : > { %11551 = vtanh.f32 %v9575_v39  ;;  %v11580_v33 = vld [vmem:[#allocation12 + $0x28] sm:$0xff] (!%p11207_p13)   ;;  %v11581_v34 = vld [vmem:[#allocation12 + $0x30] sm:$0xff] (!%p11207_p13)   ;;  %v11582_v58 = vld [vmem:[#allocation12 + $0x38] sm:$0xff] (!%p11207_p13)  }
 0xb43   : > { %11553 = vtanh.f32 %v9576_v44  ;;  %11273 = vmatpush3.bf16.msra.mxu1 (!%p11207_p13), %v11576_v20  ;;  %v11225_v44 = vld [vmem:[#allocation14] ss:$0 sm:$0xff] (!%p11207_p13) }
 0xb44   : > { %11274 = vmatprep.subr.bf16.mxu1 (!%p11207_p13), %v11847_v42  ;;  %11252 = vmatpush3.bf16.msra.mxu0 (!%p11207_p13), %v11572_v36 }
 0xb45   : > { %11253 = vmatprep.subr.bf16.mxu0 (!%p11207_p13), %v11573_v0 }
 0xb47   : > { %11275 = vmatpush3.bf16.msra.mxu1 (!%p11207_p13), %v11577_v22 }
 0xb48   : > { %11276 = vmatprep.subr.bf16.mxu1 (!%p11207_p13), %v11847_v42  ;;  %11254 = vmatpush3.bf16.msra.mxu0 (!%p11207_p13), %v11574_v27 }
 0xb4a   : > { %v11548_v2 = vpop.eup %11547 }
 0xb4b   : > { %v11550_v53 = vpop.eup %11549  ;;  %v9585_v40 = vmul.f32 %v11548_v2, %v9563_v38  ;;  %11277 = vmatpush3.bf16.msra.mxu1 (!%p11207_p13), %v11578_v6 }
 0xb4c   : > { %v9586_v55 = vmul.f32 %v11550_v53, %v9564_v52  ;;  %v11552_v5 = vpop.eup %11551  ;;  %11278 = vmatprep.subr.bf16.mxu1 (!%p11207_p13), %v11847_v42 }
 0xb4d   : > { %v9587_v9 = vadd.f32 %v9585_v40, %v9583_v29  ;;  %v11554_v61 = vpop.eup %11553  ;;  %v9579_v23 = vmul.f32 0.5, %v11552_v5 }
 0xb4e   : > { %v9588_v12 = vadd.f32 %v9586_v55, %v9584_v15  ;;  %v9580_v28 = vmul.f32 0.5, %v11554_v61 }
 0xb4f   : > { %11555 = vtanh.f32 %v9587_v9  ;;  %v9581_v30 = vadd.f32 0.5, %v9579_v23  ;;  %11279 = vmatpush3.bf16.msra.mxu1 (!%p11207_p13), %v11579_v10 }
 0xb50   : > { %11557 = vtanh.f32 %v9588_v12  ;;  %v9582_v32 = vadd.f32 0.5, %v9580_v28  ;;  %11280 = vmatprep.subr.bf16.mxu1 (!%p11207_p13), %v11847_v42 }
 0xb53   : > { %11281 = vmatpush3.bf16.msra.mxu1 (!%p11207_p13), %v11580_v33 }
 0xb54   : > { %11282 = vmatprep.subr.bf16.mxu1 (!%p11207_p13), %v11847_v42 }
 0xb57   : > { %11283 = vmatpush3.bf16.msra.mxu1 (!%p11207_p13), %v11581_v34 }
 0xb58   : > { %11284 = vmatprep.subr.bf16.mxu1 (!%p11207_p13), %v11847_v42 }
 0xb59   : > { %v11556_v47 = vpop.eup %11555 }
 0xb5a   : > { %v11558_v46 = vpop.eup %11557  ;;  %v9591_v57 = vmul.f32 %v11556_v47, %v9581_v30 }
 0xb5b   : > { %v9592_v26 = vmul.f32 %v11558_v46, %v9582_v32  ;;  %9606 = sbr.rel (%p11207_p13) target bundleno = 3366 (0xd26), region = 88  ;;  %11285 = vmatpush3.bf16.msra.mxu1 (!%p11207_p13), %v11582_v58 }
 0xb5c   : > { %v9593_v59 = vpack.c.bf16 %v9591_v57, %v9591_v57 }
 0xb5d   : > { %v9594_v54 = vpack.c.bf16 %v9592_v26, %v9592_v26 }
 0xb5e   : > { %v9597_v31 = vrot.slane %v9593_v59, 4 }
 0xb5f   : > { %v9598_v62 = vrot.slane %v9594_v54, 4  ;;  %9774 = vmatprep.mubr.bf16.mxu0 (!%p11207_p13), %v9594_v54 }
 0xb60   : > { %9601 = vst [vmem:[#allocation2 + $0x30] sm:$0xf0] %v9597_v31  ;;  %9775 = vmatmul.mubr.bf16.vlgmr.msra.gmra.mrb[0].mxu0 (!%p11207_p13), %v9593_v59 }
 0xb61   : > { %9602 = vst [vmem:[#allocation2 + $0x38] sm:$0xf0] %v9598_v62 }
 0xc33   : > { %v11255_v49 = vpop.f32.mrb[0].mxu0 }
 0xc34   : > { %v11256_v18 = vpop.f32.mrb[1].mxu0 }
 0xc35   : > { %v11257_v51 = vadd.f32 %v11256_v18, %v11255_v49  ;;  %v11258_v7 = vpop.f32.mrb[2].mxu0 }
 0xc36   : > { %v11259_v8 = vpop.f32.mrb[3].mxu0 }
 0xc37   : > { %v9777_v24 = vadd.f32 %v11257_v51, %v11208_v13 }
 0xc39   : > { %v9783_v41 = vmul.f32 0.01, %v9777_v24  ;;  %vm9782_vm1 = vcmp.gt.f32.partialorder %v9777_v24, 0.0 }
 0xc3b   : > { %v9784_v39 = vsel %vm9782_vm1, %v9777_v24, %v9783_v41 }
 0xc3c   : > { %v9785_v17 = vpack.c.bf16 %v9784_v39, %v9784_v39 }
 0xc3e   : > { %11287 = vmatmul.mubr.bf16.vlgmr.msra.gmra.mrb[0].mxu1 %v9785_v17 }
 0xd11   : > { %v9891_v19 = vpop.f32.mrb[0].mxu1 }
 0xd12   : > { %v9892_v43 = vadd.f32 %v11225_v44, %v9891_v19  ;;  %v11288_v4 = vpop.f32.mrb[1].mxu1 }
 0xd13   : > { %v9894_v1 = vpop.f32.mrb[2].mxu1 }
 0xd14   : > { %v9897_v38 = vmul.f32 0.5, %v9892_v43  ;;  %v11289_v2 = vpop.f32.mrb[3].mxu1 }
 0xd16   : > { %11583 = vtanh.f32 %v9897_v38 }
 0xd20   : > { %v11584_v52 = vpop.eup %11583 }
 0xd21   : > { %v9899_v53 = vmul.f32 0.5, %v11584_v52 }
 0xd23   : > { %v9900_v29 = vadd.f32 0.5, %v9899_v53 }
 0xd25   : > { %9901 = vst [vmem:[%s15839_s25] sm:$0xff] %v9900_v29 }
 0xd26 PF: > { %s15840_s30 = sld [smem:[#allocation20_spill]]  ;;  %s15841_s24 = sld [smem:[#allocation19_spill]] }
 0xd27   : > { %s15842_s29 = sld [smem:[#allocation21_spill]]  ;;  %s15843_s27 = smov %s11825_s28 }
 0xd2c   : > { %p23_p8 = scmp.ge.s32.totalorder %s15840_s30, 5   ;;  %s15844_s28 = smov %s15841_s24 }
 0xd2e   :  { %25 = sbr.rel (!%p23_p8) target bundleno = 12 (0xc), region = 136 }
 0xd35   :  { %9913 = vsyncpa [#allocation5], 1 }
 0xd36   :  { %9915 = vsyncpa [#allocation5 + $0x1], 1 }
 0xd37   :  { %9916 = vsyncpa [#allocation7], 1 }
 0xd38   :  { %9918 = vsyncpa [#allocation7 + $0x1], 1 }
 0xd39   :  { %9919 = vsyncpa [#allocation10], 1 }
 0xd3a   :  { %9920 = vsyncpa [#allocation13], 1 }

</bundles_post_ra>
